<compile_context>
chip_gen: v7x
topology: tpu7x:2x2x1
jax: 0.10.0
libtpu: 0.0.40
codegen_flags: <defaults>
</compile_context>

<pallas_src>
import functools

import numpy as np

import jax
import jax.numpy as jnp
from jax.experimental import pallas as pl
from jax.experimental.pallas import tpu as pltpu


_LEFT = 8  # sublane-aligned left slack inside the padded VMEM scratch buffers


# ----------------------------- Pallas kernel --------------------------------

def _inception_kernel(x_ref, w1_ref, b1_ref, w2_ref, b2_ref, w3_ref, b3_ref,
                      wp_ref, bp_ref, o_ref,
                      pad2_ref, pad3_ref, padp_ref, br1_ref, *,
                      H, W, RH, Cin, c1, c2r, c2, c3r, c3, cp):
    """Full Inception block for one batch element, entirely in VMEM.

    x_ref  : (1, H, W, Cin)          bf16 input tile (NHWC)
    w1_ref : (Cin, c1+c2r+c3r)       bf16 fused 1x1 weights [b1 | b2-red | b3-red]
    b1_ref : (1, c1+c2r+c3r)         f32
    w2_ref : (9*c2r,  c2)            bf16 3x3 weights, im2col tap-major (kh,kw,ci)
    w3_ref : (25*c3r, c3)            bf16 5x5 weights, im2col tap-major
    wp_ref : (Cin, cp)               bf16 pool-proj 1x1 weights
    o_ref  : (1, H, W, c1+c2+c3+cp)  f32 concatenated output tile
    pad2/pad3/padp : bf16 halo-padded VMEM scratch (3x3 / 5x5 / max-pool inputs)
    br1_ref: (H*W, c1) f32           branch-1 staging, read back per row chunk
    """
    f32 = jnp.float32
    bf16 = jnp.bfloat16
    L = _LEFT
    rows = RH * W
    n_chunks = H // RH
    ctot = c1 + c2 + c3 + cp

    # ---- halo-only fill: interiors are fully overwritten every step ---------
    def fill_halo(ref, pad_lo, value):
        hp, wpad, cc = ref.shape
        ref[0:pad_lo, :, :] = jnp.full((pad_lo, wpad, cc), value, ref.dtype)
        ref[hp - pad_lo:hp, :, :] = jnp.full((pad_lo, wpad, cc), value, ref.dtype)
        ref[:, L - pad_lo:L, :] = jnp.full((hp, pad_lo, cc), value, ref.dtype)
        ref[:, L + W:L + W + pad_lo, :] = jnp.full((hp, pad_lo, cc), value, ref.dtype)

    fill_halo(pad2_ref, 1, 0.0)
    fill_halo(pad3_ref, 2, 0.0)
    # Max-pool identity: every 3x3/pad=1/stride=1 window holds >=1 real element,
    # so the bf16 min never propagates into the pool-proj matmul.
    fill_halo(padp_ref, 1, float(jnp.finfo(bf16).min))

    # ---- phase 1: fused 1x1 (branch1 + 3x3-reduce + 5x5-reduce), chunked ----
    def reduce_chunk(c, carry):
        h0 = pl.multiple_of(c * RH, RH)
        r0 = pl.multiple_of(c * rows, rows)
        xc = x_ref[0, pl.ds(h0, RH), :, :]                       # (RH, W, Cin) bf16
        y1 = jnp.dot(xc.reshape(rows, Cin), w1_ref[...],
                     preferred_element_type=f32)
        y1 = jnp.maximum(y1 + b1_ref[...], 0.0)                  # (rows, c1+c2r+c3r)
        # NOTE: segment offsets (c1, c1+c2r) are not 128-lane aligned for real
        # Inception widths; per-segment lane padding of w1c is a further
        # (shape-dependent) optimization.
        br1_ref[pl.ds(r0, rows), :] = y1[:, :c1]
        pad2_ref[pl.ds(1 + h0, RH), L:L + W, :] = (
            y1[:, c1:c1 + c2r].astype(bf16).reshape(RH, W, c2r))
        pad3_ref[pl.ds(2 + h0, RH), L:L + W, :] = (
            y1[:, c1 + c2r:c1 + c2r + c3r].astype(bf16).reshape(RH, W, c3r))
        padp_ref[pl.ds(1 + h0, RH), L:L + W, :] = xc
        return carry

    jax.lax.fori_loop(0, n_chunks, reduce_chunk, 0)

    # ---- phase 2: 3x3 / 5x5 / max-pool+1x1 branches + concat, chunked -------
    def conv_chunk(c, carry):
        h0 = pl.multiple_of(c * RH, RH)
        r0 = pl.multiple_of(c * rows, rows)

        def conv_branch(pad_ref, w_ref, b_ref, ksz, cred, cout):
            # Per-kernel-row accumulation: ksz matmuls of K = ksz*cred keeps the
            # live im2col concat ksz-x smaller than the fully fused form.
            lo = ksz // 2
            acc = jnp.zeros((rows, cout), f32)
            for kh in range(ksz):
                win = jnp.concatenate(
                    [pad_ref[pl.ds(h0 + kh, RH),
                             (L - lo) + kw:(L - lo) + kw + W, :]
                     for kw in range(ksz)], axis=-1)             # (RH, W, ksz*cred)
                wk = w_ref[kh * ksz * cred:(kh + 1) * ksz * cred, :]
                acc = acc + jnp.dot(win.reshape(rows, ksz * cred), wk,
                                    preferred_element_type=f32)
            return jnp.maximum(acc + b_ref[...], 0.0)

        br2 = conv_branch(pad2_ref, w2_ref, b2_ref, 3, c2r, c2)
        br3 = conv_branch(pad3_ref, w3_ref, b3_ref, 5, c3r, c3)

        # branch4: 3x3/s1/p1 max-pool (bf16, exact) + pool-proj 1x1 matmul.
        m = padp_ref[pl.ds(h0, RH), (L - 1):(L - 1) + W, :]
        for kh in range(3):
            for kw in range(3):
                if kh == 0 and kw == 0:
                    continue
                m = jnp.maximum(
                    m, padp_ref[pl.ds(h0 + kh, RH),
                                (L - 1) + kw:(L - 1) + kw + W, :])
        brp = jnp.maximum(
            jnp.dot(m.reshape(rows, Cin), wp_ref[...],
                    preferred_element_type=f32) + bp_ref[...], 0.0)

        br1 = br1_ref[pl.ds(r0, rows), :]
        out = jnp.concatenate([br1, br2, br3, brp], axis=-1)     # (rows, ctot) f32
        o_ref[0, pl.ds(h0, RH), :, :] = (
            out.reshape(RH, W, ctot).astype(o_ref.dtype))
        return carry

    jax.lax.fori_loop(0, n_chunks, conv_chunk, 0)


# ------------------------------ JAX wrapper ----------------------------------

def _pick_row_chunk(H, W, target_rows=128):
    """Largest divisor RH of H with RH*W <= target_rows (at least 1)."""
    rh = 1
    for cand in range(1, H + 1):
        if H % cand == 0 and cand * W <= target_rows:
            rh = cand
    return rh


def _nbytes(shape, dtype):
    return int(np.prod(shape)) * np.dtype(dtype).itemsize


def inception_forward(x_nchw, params):
    """Inception block forward.  Input/output in NCHW (PyTorch layout)."""
    x = jnp.transpose(x_nchw, (0, 2, 3, 1))                     # NCHW -> NHWC
    N, H, W, Cin = x.shape
    bf16 = jnp.bfloat16
    x_bf = x.astype(bf16)                                        # bf16 MXU inputs

    w_b1, bb1 = params["b1"]
    w_b2a, bb2a = params["b2a"]
    w_b2b, bb2b = params["b2b"]
    w_b3a, bb3a = params["b3a"]
    w_b3b, bb3b = params["b3b"]
    w_b4, bb4 = params["b4"]

    c1, c2r, c2 = w_b1.shape[0], w_b2a.shape[0], w_b2b.shape[0]
    c3r, c3, cp = w_b3a.shape[0], w_b3b.shape[0], w_b4.shape[0]
    ctot = c1 + c2 + c3 + cp

    def w_1x1(w):                          # OIHW (Cout,Cin,1,1) -> (Cin, Cout)
        return jnp.transpose(w[:, :, 0, 0], (1, 0))

    def w_im2col(w):                       # OIHW -> (KH*KW*Cin, Cout), tap-major
        cout, cin, kh, kw = w.shape
        return jnp.transpose(w, (2, 3, 1, 0)).reshape(kh * kw * cin, cout)

    # Fused 1x1 weights for branch1 / branch2-reduce / branch3-reduce.
    w1c = jnp.concatenate([w_1x1(w_b1), w_1x1(w_b2a), w_1x1(w_b3a)],
                          axis=1).astype(bf16)
    b1c = jnp.concatenate([bb1, bb2a, bb3a]).reshape(1, c1 + c2r + c3r)
    w2 = w_im2col(w_b2b).astype(bf16)
    b2 = bb2b.reshape(1, c2)
    w3 = w_im2col(w_b3b).astype(bf16)
    b3 = bb3b.reshape(1, c3)
    wp = w_1x1(w_b4).astype(bf16)
    bp = bb4.reshape(1, cp)

    RH = _pick_row_chunk(H, W)             # rows-of-H per in-kernel chunk

    kern = functools.partial(_inception_kernel, H=H, W=W, RH=RH, Cin=Cin,
                             c1=c1, c2r=c2r, c2=c2, c3r=c3r, c3=c3, cp=cp)

    L = _LEFT
    pad2_shape = (H + 2, L + W + 1, c2r)   # zero-padded 3x3 input (right halo 1)
    pad3_shape = (H + 4, L + W + 2, c3r)   # zero-padded 5x5 input (right halo 2)
    padp_shape = (H + 2, L + W + 1, Cin)   # min-padded pool input
    br1_shape = (H * W, c1)                # branch-1 staging

    weight_bytes = sum(_nbytes(a.shape, a.dtype)
                       for a in (w1c, b1c, w2, b2, w3, b3, wp, bp))
    scratch_bytes = (_nbytes(pad2_shape, bf16) + _nbytes(pad3_shape, bf16)
                     + _nbytes(padp_shape, bf16) + _nbytes(br1_shape, jnp.float32))
    est = (2 * _nbytes((1, H, W, Cin), bf16)            # double-buffered input tile
           + 2 * _nbytes((1, H, W, ctot), jnp.float32)  # double-buffered output tile
           + 2 * weight_bytes + scratch_bytes)
    vmem_limit = int(min(64 * 2 ** 20, max(32 * 2 ** 20, 2 * est)))

    out = pl.pallas_call(
        kern,
        out_shape=jax.ShapeDtypeStruct((N, H, W, ctot), jnp.float32),
        grid=(N,),
        in_specs=[
            pl.BlockSpec((1, H, W, Cin), lambda n: (n, 0, 0, 0)),
            pl.BlockSpec(w1c.shape, lambda n: (0, 0)),
            pl.BlockSpec(b1c.shape, lambda n: (0, 0)),
            pl.BlockSpec(w2.shape, lambda n: (0, 0)),
            pl.BlockSpec(b2.shape, lambda n: (0, 0)),
            pl.BlockSpec(w3.shape, lambda n: (0, 0)),
            pl.BlockSpec(b3.shape, lambda n: (0, 0)),
            pl.BlockSpec(wp.shape, lambda n: (0, 0)),
            pl.BlockSpec(bp.shape, lambda n: (0, 0)),
        ],
        out_specs=pl.BlockSpec((1, H, W, ctot), lambda n: (n, 0, 0, 0)),
        scratch_shapes=[
            pltpu.VMEM(pad2_shape, bf16),
            pltpu.VMEM(pad3_shape, bf16),
            pltpu.VMEM(padp_shape, bf16),
            pltpu.VMEM(br1_shape, jnp.float32),
        ],
        compiler_params=pltpu.CompilerParams(
            dimension_semantics=("parallel",),
            vmem_limit_bytes=vmem_limit),
    )(x_bf, w1c, b1c, w2, b2, w3, b3, wp, bp)

    return jnp.transpose(out, (0, 3, 1, 2))                      # NHWC -> NCHW


# ------------------------------ parameters -----------------------------------

def init_inception_params(key, in_channels, ch1x1, ch3x3red, ch3x3,
                          ch5x5red, ch5x5, pool_proj):
    """Deterministic synthetic weights (PyTorch Conv2d layout: OIHW + bias)."""
    def conv_params(k, cout, cin, ksz):
        k1, k2 = jax.random.split(k)
        w = 0.1 * jax.random.normal(k1, (cout, cin, ksz, ksz), jnp.float32)
        b = 0.1 * jax.random.normal(k2, (cout,), jnp.float32)
        return w, b
    keys = jax.random.split(key, 6)
    return {
        "b1":  conv_params(keys[0], ch1x1,     in_channels, 1),
        "b2a": conv_params(keys[1], ch3x3red,  in_channels, 1),
        "b2b": conv_params(keys[2], ch3x3,     ch3x3red,    3),
        "b3a": conv_params(keys[3], ch5x5red,  in_channels, 1),
        "b3b": conv_params(keys[4], ch5x5,     ch5x5red,    5),
        "b4":  conv_params(keys[5], pool_proj, in_channels, 1),
    }


# --------------------------- pure-JAX reference ------------------------------

def _conv_ref(x_nhwc, w_oihw, b, padding):
    w_hwio = jnp.transpose(w_oihw, (2, 3, 1, 0))
    y = jax.lax.conv_general_dilated(
        x_nhwc, w_hwio, window_strides=(1, 1),
        padding=[(padding, padding), (padding, padding)],
        dimension_numbers=("NHWC", "HWIO", "NHWC"))
    return jnp.maximum(y + b, 0.0)


def _inception_ref(x_nchw, p):
    x = jnp.transpose(x_nchw, (0, 2, 3, 1))
    pool = jax.lax.reduce_window(x, -jnp.inf, jax.lax.max,
                                 (1, 3, 3, 1), (1, 1, 1, 1),
                                 [(0, 0), (1, 1), (1, 1), (0, 0)])
    b1 = _conv_ref(x, *p["b1"], padding=0)
    b2 = _conv_ref(_conv_ref(x, *p["b2a"], 0), *p["b2b"], 1)
    b3 = _conv_ref(_conv_ref(x, *p["b3a"], 0), *p["b3b"], 2)
    b4 = _conv_ref(pool, *p["b4"], 0)
    return jnp.transpose(jnp.concatenate([b1, b2, b3, b4], axis=-1), (0, 3, 1, 2))


# ---------------------------------- main -------------------------------------

if __name__ == "__main__":
    key = jax.random.PRNGKey(0)
    kx, kp = jax.random.split(key)

    # small shapes: batch=2, in_channels=4, spatial=16x16
    N, C, H, W = 2, 4, 16, 16
    x = jax.random.normal(kx, (N, C, H, W), jnp.float32)

    params = init_inception_params(kp, in_channels=C, ch1x1=8, ch3x3red=4,
                                   ch3x3=8, ch5x5red=4, ch5x5=8, pool_proj=8)

    fwd = jax.jit(inception_forward)
    out = jax.block_until_ready(fwd(x, params))

    assert out.shape == (N, 8 + 8 + 8 + 8, H, W), out.shape
    ref = jax.block_until_ready(_inception_ref(x, params))
    # bf16 MXU inputs with f32 accumulation -> relaxed tolerance vs f32 reference.
    np.testing.assert_allclose(np.asarray(out), np.asarray(ref),
                               rtol=2e-2, atol=2e-2)

    print("KERNEL_OK")
</pallas_src>

<mosaic_0001>
module attributes {stable_mosaic.version = 11 : i64} {
  func.func @_inception_kernel(%arg0: i32, %arg1: memref<1x16x16x4xbf16, #tpu.memory_space<vmem>>, %arg2: memref<4x16xbf16, #tpu.memory_space<vmem>>, %arg3: memref<1x16xf32, #tpu.memory_space<vmem>>, %arg4: memref<36x8xbf16, #tpu.memory_space<vmem>>, %arg5: memref<1x8xf32, #tpu.memory_space<vmem>>, %arg6: memref<100x8xbf16, #tpu.memory_space<vmem>>, %arg7: memref<1x8xf32, #tpu.memory_space<vmem>>, %arg8: memref<4x8xbf16, #tpu.memory_space<vmem>>, %arg9: memref<1x8xf32, #tpu.memory_space<vmem>>, %arg10: memref<1x16x16x32xf32, #tpu.memory_space<vmem>>, %arg11: memref<18x25x4xbf16, #tpu.memory_space<vmem>>, %arg12: memref<20x26x4xbf16, #tpu.memory_space<vmem>>, %arg13: memref<18x25x4xbf16, #tpu.memory_space<vmem>>, %arg14: memref<256x8xf32, #tpu.memory_space<vmem>>) attributes {dimension_semantics = [#tpu.dimension_semantics<parallel>], iteration_bounds = array<i64: 2>, scalar_prefetch = 0 : i64, scratch_operands = 4 : i64, tpu.core_type = #tpu.core_type<tc>, window_params = [{transform_indices = @transform_0, window_bounds = array<i64: 1, 16, 16, 4>}, {pipeline_mode = #tpu.pipeline_mode<synchronous>, transform_indices = @transform_1, window_bounds = array<i64: 4, 16>}, {pipeline_mode = #tpu.pipeline_mode<synchronous>, transform_indices = @transform_2, window_bounds = array<i64: 1, 16>}, {pipeline_mode = #tpu.pipeline_mode<synchronous>, transform_indices = @transform_3, window_bounds = array<i64: 36, 8>}, {pipeline_mode = #tpu.pipeline_mode<synchronous>, transform_indices = @transform_4, window_bounds = array<i64: 1, 8>}, {pipeline_mode = #tpu.pipeline_mode<synchronous>, transform_indices = @transform_5, window_bounds = array<i64: 100, 8>}, {pipeline_mode = #tpu.pipeline_mode<synchronous>, transform_indices = @transform_6, window_bounds = array<i64: 1, 8>}, {pipeline_mode = #tpu.pipeline_mode<synchronous>, transform_indices = @transform_7, window_bounds = array<i64: 4, 8>}, {pipeline_mode = #tpu.pipeline_mode<synchronous>, transform_indices = @transform_8, window_bounds = array<i64: 1, 8>}, {transform_indices = @transform_9, window_bounds = array<i64: 1, 16, 16, 32>}]} {
    %cst = arith.constant 0.000000e+00 : bf16
    %0 = vector.broadcast %cst : bf16 to vector<1x25x4xbf16>
    %c0 = arith.constant 0 : index
    %c0_0 = arith.constant 0 : index
    %c0_1 = arith.constant 0 : index
    %1 = vector.load %arg11[%c0, %c0_0, %c0_1] : memref<18x25x4xbf16, #tpu.memory_space<vmem>>, vector<1x25x4xbf16>
    tpu.vector_store %arg11[%c0, %c0_0, %c0_1], %0 {strides = array<i32>} : memref<18x25x4xbf16, #tpu.memory_space<vmem>>, vector<1x25x4xbf16>,
    %cst_2 = arith.constant 0.000000e+00 : bf16
    %2 = vector.broadcast %cst_2 : bf16 to vector<1x25x4xbf16>
    %c17 = arith.constant 17 : index
    %c0_3 = arith.constant 0 : index
    %c0_4 = arith.constant 0 : index
    %3 = vector.load %arg11[%c17, %c0_3, %c0_4] : memref<18x25x4xbf16, #tpu.memory_space<vmem>>, vector<1x25x4xbf16>
    tpu.vector_store %arg11[%c17, %c0_3, %c0_4], %2 {strides = array<i32>} : memref<18x25x4xbf16, #tpu.memory_space<vmem>>, vector<1x25x4xbf16>,
    %cst_5 = arith.constant 0.000000e+00 : bf16
    %4 = vector.broadcast %cst_5 : bf16 to vector<18x1x4xbf16>
    %c0_6 = arith.constant 0 : index
    %c7 = arith.constant 7 : index
    %c0_7 = arith.constant 0 : index
    %5 = vector.load %arg11[%c0_6, %c7, %c0_7] : memref<18x25x4xbf16, #tpu.memory_space<vmem>>, vector<18x1x4xbf16>
    tpu.vector_store %arg11[%c0_6, %c7, %c0_7], %4 {strides = array<i32>} : memref<18x25x4xbf16, #tpu.memory_space<vmem>>, vector<18x1x4xbf16>,
    %cst_8 = arith.constant 0.000000e+00 : bf16
    %6 = vector.broadcast %cst_8 : bf16 to vector<18x1x4xbf16>
    %c0_9 = arith.constant 0 : index
    %c24 = arith.constant 24 : index
    %c0_10 = arith.constant 0 : index
    %7 = vector.load %arg11[%c0_9, %c24, %c0_10] : memref<18x25x4xbf16, #tpu.memory_space<vmem>>, vector<18x1x4xbf16>
    tpu.vector_store %arg11[%c0_9, %c24, %c0_10], %6 {strides = array<i32>} : memref<18x25x4xbf16, #tpu.memory_space<vmem>>, vector<18x1x4xbf16>,
    %cst_11 = arith.constant 0.000000e+00 : bf16
    %8 = vector.broadcast %cst_11 : bf16 to vector<2x26x4xbf16>
    %c0_12 = arith.constant 0 : index
    %c0_13 = arith.constant 0 : index
    %c0_14 = arith.constant 0 : index
    %9 = vector.load %arg12[%c0_12, %c0_13, %c0_14] : memref<20x26x4xbf16, #tpu.memory_space<vmem>>, vector<2x26x4xbf16>
    tpu.vector_store %arg12[%c0_12, %c0_13, %c0_14], %8 {strides = array<i32>} : memref<20x26x4xbf16, #tpu.memory_space<vmem>>, vector<2x26x4xbf16>,
    %cst_15 = arith.constant 0.000000e+00 : bf16
    %10 = vector.broadcast %cst_15 : bf16 to vector<2x26x4xbf16>
    %c18 = arith.constant 18 : index
    %c0_16 = arith.constant 0 : index
    %c0_17 = arith.constant 0 : index
    %11 = vector.load %arg12[%c18, %c0_16, %c0_17] : memref<20x26x4xbf16, #tpu.memory_space<vmem>>, vector<2x26x4xbf16>
    tpu.vector_store %arg12[%c18, %c0_16, %c0_17], %10 {strides = array<i32>} : memref<20x26x4xbf16, #tpu.memory_space<vmem>>, vector<2x26x4xbf16>,
    %cst_18 = arith.constant 0.000000e+00 : bf16
    %12 = vector.broadcast %cst_18 : bf16 to vector<20x2x4xbf16>
    %c0_19 = arith.constant 0 : index
    %c6 = arith.constant 6 : index
    %c0_20 = arith.constant 0 : index
    %13 = vector.load %arg12[%c0_19, %c6, %c0_20] : memref<20x26x4xbf16, #tpu.memory_space<vmem>>, vector<20x2x4xbf16>
    tpu.vector_store %arg12[%c0_19, %c6, %c0_20], %12 {strides = array<i32>} : memref<20x26x4xbf16, #tpu.memory_space<vmem>>, vector<20x2x4xbf16>,
    %cst_21 = arith.constant 0.000000e+00 : bf16
    %14 = vector.broadcast %cst_21 : bf16 to vector<20x2x4xbf16>
    %c0_22 = arith.constant 0 : index
    %c24_23 = arith.constant 24 : index
    %c0_24 = arith.constant 0 : index
    %15 = vector.load %arg12[%c0_22, %c24_23, %c0_24] : memref<20x26x4xbf16, #tpu.memory_space<vmem>>, vector<20x2x4xbf16>
    tpu.vector_store %arg12[%c0_22, %c24_23, %c0_24], %14 {strides = array<i32>} : memref<20x26x4xbf16, #tpu.memory_space<vmem>>, vector<20x2x4xbf16>,
    %cst_25 = arith.constant -3.389530e+38 : bf16
    %16 = vector.broadcast %cst_25 : bf16 to vector<1x25x4xbf16>
    %c0_26 = arith.constant 0 : index
    %c0_27 = arith.constant 0 : index
    %c0_28 = arith.constant 0 : index
    %17 = vector.load %arg13[%c0_26, %c0_27, %c0_28] : memref<18x25x4xbf16, #tpu.memory_space<vmem>>, vector<1x25x4xbf16>
    tpu.vector_store %arg13[%c0_26, %c0_27, %c0_28], %16 {strides = array<i32>} : memref<18x25x4xbf16, #tpu.memory_space<vmem>>, vector<1x25x4xbf16>,
    %cst_29 = arith.constant -3.389530e+38 : bf16
    %18 = vector.broadcast %cst_29 : bf16 to vector<1x25x4xbf16>
    %c17_30 = arith.constant 17 : index
    %c0_31 = arith.constant 0 : index
    %c0_32 = arith.constant 0 : index
    %19 = vector.load %arg13[%c17_30, %c0_31, %c0_32] : memref<18x25x4xbf16, #tpu.memory_space<vmem>>, vector<1x25x4xbf16>
    tpu.vector_store %arg13[%c17_30, %c0_31, %c0_32], %18 {strides = array<i32>} : memref<18x25x4xbf16, #tpu.memory_space<vmem>>, vector<1x25x4xbf16>,
    %cst_33 = arith.constant -3.389530e+38 : bf16
    %20 = vector.broadcast %cst_33 : bf16 to vector<18x1x4xbf16>
    %c0_34 = arith.constant 0 : index
    %c7_35 = arith.constant 7 : index
    %c0_36 = arith.constant 0 : index
    %21 = vector.load %arg13[%c0_34, %c7_35, %c0_36] : memref<18x25x4xbf16, #tpu.memory_space<vmem>>, vector<18x1x4xbf16>
    tpu.vector_store %arg13[%c0_34, %c7_35, %c0_36], %20 {strides = array<i32>} : memref<18x25x4xbf16, #tpu.memory_space<vmem>>, vector<18x1x4xbf16>,
    %cst_37 = arith.constant -3.389530e+38 : bf16
    %22 = vector.broadcast %cst_37 : bf16 to vector<18x1x4xbf16>
    %c0_38 = arith.constant 0 : index
    %c24_39 = arith.constant 24 : index
    %c0_40 = arith.constant 0 : index
    %23 = vector.load %arg13[%c0_38, %c24_39, %c0_40] : memref<18x25x4xbf16, #tpu.memory_space<vmem>>, vector<18x1x4xbf16>
    tpu.vector_store %arg13[%c0_38, %c24_39, %c0_40], %22 {strides = array<i32>} : memref<18x25x4xbf16, #tpu.memory_space<vmem>>, vector<18x1x4xbf16>,
    %c0_i32 = arith.constant 0 : i32
    %c2_i32 = arith.constant 2 : i32
    %24 = arith.addi %c0_i32, %c2_i32 : i32
    %c1_i32 = arith.constant 1 : i32
    scf.for %arg15 = %c0_i32 to %24 step %c1_i32  : i32 {
      %c8_i32 = arith.constant 8 : i32
      %26 = arith.muli %arg15, %c8_i32 : i32
      %27 = tpu.assume_multiple %26, 8 : i32
      %c128_i32 = arith.constant 128 : i32
      %28 = arith.muli %arg15, %c128_i32 : i32
      %29 = tpu.assume_multiple %28, 128 : i32
      %c0_46 = arith.constant 0 : index
      %30 = arith.index_cast %27 : i32 to index
      %c0_47 = arith.constant 0 : index
      %c0_48 = arith.constant 0 : index
      %31 = vector.load %arg1[%c0_46, %30, %c0_47, %c0_48] : memref<1x16x16x4xbf16, #tpu.memory_space<vmem>>, vector<1x8x16x4xbf16>
      %32 = vector.shape_cast %31 : vector<1x8x16x4xbf16> to vector<8x16x4xbf16>
      %33 = vector.shape_cast %32 : vector<8x16x4xbf16> to vector<128x4xbf16>
      %c0_49 = arith.constant 0 : index
      %c0_50 = arith.constant 0 : index
      %34 = vector.load %arg2[%c0_49, %c0_50] : memref<4x16xbf16, #tpu.memory_space<vmem>>, vector<4x16xbf16>
      %cst_51 = arith.constant dense<0.000000e+00> : vector<128x16xf32>
      %35 = tpu.matmul %33, %34, %cst_51 {dimension_numbers = #tpu.dot_dimension_numbers<[1], [0], [0], [1], [0, 0, 1, 1], [], []>} : vector<128x4xbf16>, vector<4x16xbf16>, vector<128x16xf32> -> vector<128x16xf32>
      %c0_52 = arith.constant 0 : index
      %c0_53 = arith.constant 0 : index
      %36 = vector.load %arg3[%c0_52, %c0_53] : memref<1x16xf32, #tpu.memory_space<vmem>>, vector<1x16xf32>
      %37 = vector.broadcast %36 : vector<1x16xf32> to vector<128x16xf32>
      %38 = arith.addf %35, %37 : vector<128x16xf32>
      %cst_54 = arith.constant 0.000000e+00 : f32
      %39 = vector.broadcast %cst_54 : f32 to vector<128x16xf32>
      %40 = arith.maximumf %38, %39 : vector<128x16xf32>
      %41 = vector.extract_strided_slice %40 {offsets = [0, 0], sizes = [128, 8], strides = [1, 1]} : vector<128x16xf32> to vector<128x8xf32>
      %42 = arith.index_cast %29 : i32 to index
      %c0_55 = arith.constant 0 : index
      %43 = vector.load %arg14[%42, %c0_55] : memref<256x8xf32, #tpu.memory_space<vmem>>, vector<128x8xf32>
      tpu.vector_store %arg14[%42, %c0_55], %41 {strides = array<i32>} : memref<256x8xf32, #tpu.memory_space<vmem>>, vector<128x8xf32>,
      %44 = vector.extract_strided_slice %40 {offsets = [0, 8], sizes = [128, 4], strides = [1, 1]} : vector<128x16xf32> to vector<128x4xf32>
      %45 = arith.truncf %44 : vector<128x4xf32> to vector<128x4xbf16>
      %46 = vector.shape_cast %45 : vector<128x4xbf16> to vector<8x16x4xbf16>
      %c1_i32_56 = arith.constant 1 : i32
      %47 = arith.addi %c1_i32_56, %27 : i32
      %48 = arith.index_cast %47 : i32 to index
      %c8 = arith.constant 8 : index
      %c0_57 = arith.constant 0 : index
      %49 = vector.load %arg11[%48, %c8, %c0_57] : memref<18x25x4xbf16, #tpu.memory_space<vmem>>, vector<8x16x4xbf16>
      tpu.vector_store %arg11[%48, %c8, %c0_57], %46 {strides = array<i32>} : memref<18x25x4xbf16, #tpu.memory_space<vmem>>, vector<8x16x4xbf16>,
      %50 = vector.extract_strided_slice %40 {offsets = [0, 12], sizes = [128, 4], strides = [1, 1]} : vector<128x16xf32> to vector<128x4xf32>
      %51 = arith.truncf %50 : vector<128x4xf32> to vector<128x4xbf16>
      %52 = vector.shape_cast %51 : vector<128x4xbf16> to vector<8x16x4xbf16>
      %c2_i32_58 = arith.constant 2 : i32
      %53 = arith.addi %c2_i32_58, %27 : i32
      %54 = arith.index_cast %53 : i32 to index
      %c8_59 = arith.constant 8 : index
      %c0_60 = arith.constant 0 : index
      %55 = vector.load %arg12[%54, %c8_59, %c0_60] : memref<20x26x4xbf16, #tpu.memory_space<vmem>>, vector<8x16x4xbf16>
      tpu.vector_store %arg12[%54, %c8_59, %c0_60], %52 {strides = array<i32>} : memref<20x26x4xbf16, #tpu.memory_space<vmem>>, vector<8x16x4xbf16>,
      %c1_i32_61 = arith.constant 1 : i32
      %56 = arith.addi %c1_i32_61, %27 : i32
      %57 = arith.index_cast %56 : i32 to index
      %c8_62 = arith.constant 8 : index
      %c0_63 = arith.constant 0 : index
      %58 = vector.load %arg13[%57, %c8_62, %c0_63] : memref<18x25x4xbf16, #tpu.memory_space<vmem>>, vector<8x16x4xbf16>
      tpu.vector_store %arg13[%57, %c8_62, %c0_63], %32 {strides = array<i32>} : memref<18x25x4xbf16, #tpu.memory_space<vmem>>, vector<8x16x4xbf16>,
    }
    %c2_i32_41 = arith.constant 2 : i32
    %c0_i32_42 = arith.constant 0 : i32
    %c2_i32_43 = arith.constant 2 : i32
    %25 = arith.addi %c0_i32_42, %c2_i32_43 : i32
    %c1_i32_44 = arith.constant 1 : i32
    scf.for %arg15 = %c0_i32_42 to %25 step %c1_i32_44  : i32 {
      %c8_i32 = arith.constant 8 : i32
      %26 = arith.muli %arg15, %c8_i32 : i32
      %27 = tpu.assume_multiple %26, 8 : i32
      %c128_i32 = arith.constant 128 : i32
      %28 = arith.muli %arg15, %c128_i32 : i32
      %29 = tpu.assume_multiple %28, 128 : i32
      %cst_46 = arith.constant 0.000000e+00 : f32
      %30 = vector.broadcast %cst_46 : f32 to vector<128x8xf32>
      %c0_i32_47 = arith.constant 0 : i32
      %31 = arith.addi %27, %c0_i32_47 : i32
      %32 = arith.index_cast %31 : i32 to index
      %c7_48 = arith.constant 7 : index
      %c0_49 = arith.constant 0 : index
      %33 = vector.load %arg11[%32, %c7_48, %c0_49] : memref<18x25x4xbf16, #tpu.memory_space<vmem>>, vector<8x16x4xbf16>
      %c0_i32_50 = arith.constant 0 : i32
      %34 = arith.addi %27, %c0_i32_50 : i32
      %35 = arith.index_cast %34 : i32 to index
      %c8 = arith.constant 8 : index
      %c0_51 = arith.constant 0 : index
      %36 = vector.load %arg11[%35, %c8, %c0_51] : memref<18x25x4xbf16, #tpu.memory_space<vmem>>, vector<8x16x4xbf16>
      %c0_i32_52 = arith.constant 0 : i32
      %37 = arith.addi %27, %c0_i32_52 : i32
      %38 = arith.index_cast %37 : i32 to index
      %c9 = arith.constant 9 : index
      %c0_53 = arith.constant 0 : index
      %39 = vector.load %arg11[%38, %c9, %c0_53] : memref<18x25x4xbf16, #tpu.memory_space<vmem>>, vector<8x16x4xbf16>
      %40 = tpu.concatenate %33, %36, %39 in 2 : vector<8x16x4xbf16>, vector<8x16x4xbf16>, vector<8x16x4xbf16> -> vector<8x16x12xbf16>
      %c0_54 = arith.constant 0 : index
      %c0_55 = arith.constant 0 : index
      %41 = vector.load %arg4[%c0_54, %c0_55] : memref<36x8xbf16, #tpu.memory_space<vmem>>, vector<12x8xbf16>
      %42 = vector.shape_cast %40 : vector<8x16x12xbf16> to vector<128x12xbf16>
      %cst_56 = arith.constant dense<0.000000e+00> : vector<128x8xf32>
      %43 = tpu.matmul %42, %41, %cst_56 {dimension_numbers = #tpu.dot_dimension_numbers<[1], [0], [0], [1], [0, 0, 1, 1], [], []>} : vector<128x12xbf16>, vector<12x8xbf16>, vector<128x8xf32> -> vector<128x8xf32>
      %44 = arith.addf %30, %43 : vector<128x8xf32>
      %c1_i32_57 = arith.constant 1 : i32
      %45 = arith.addi %27, %c1_i32_57 : i32
      %46 = arith.index_cast %45 : i32 to index
      %c7_58 = arith.constant 7 : index
      %c0_59 = arith.constant 0 : index
      %47 = vector.load %arg11[%46, %c7_58, %c0_59] : memref<18x25x4xbf16, #tpu.memory_space<vmem>>, vector<8x16x4xbf16>
      %c1_i32_60 = arith.constant 1 : i32
      %48 = arith.addi %27, %c1_i32_60 : i32
      %49 = arith.index_cast %48 : i32 to index
      %c8_61 = arith.constant 8 : index
      %c0_62 = arith.constant 0 : index
      %50 = vector.load %arg11[%49, %c8_61, %c0_62] : memref<18x25x4xbf16, #tpu.memory_space<vmem>>, vector<8x16x4xbf16>
      %c1_i32_63 = arith.constant 1 : i32
      %51 = arith.addi %27, %c1_i32_63 : i32
      %52 = arith.index_cast %51 : i32 to index
      %c9_64 = arith.constant 9 : index
      %c0_65 = arith.constant 0 : index
      %53 = vector.load %arg11[%52, %c9_64, %c0_65] : memref<18x25x4xbf16, #tpu.memory_space<vmem>>, vector<8x16x4xbf16>
      %54 = tpu.concatenate %47, %50, %53 in 2 : vector<8x16x4xbf16>, vector<8x16x4xbf16>, vector<8x16x4xbf16> -> vector<8x16x12xbf16>
      %c12 = arith.constant 12 : index
      %c0_66 = arith.constant 0 : index
      %55 = vector.load %arg4[%c12, %c0_66] : memref<36x8xbf16, #tpu.memory_space<vmem>>, vector<12x8xbf16>
      %56 = vector.shape_cast %54 : vector<8x16x12xbf16> to vector<128x12xbf16>
      %cst_67 = arith.constant dense<0.000000e+00> : vector<128x8xf32>
      %57 = tpu.matmul %56, %55, %cst_67 {dimension_numbers = #tpu.dot_dimension_numbers<[1], [0], [0], [1], [0, 0, 1, 1], [], []>} : vector<128x12xbf16>, vector<12x8xbf16>, vector<128x8xf32> -> vector<128x8xf32>
      %58 = arith.addf %44, %57 : vector<128x8xf32>
      %c2_i32_68 = arith.constant 2 : i32
      %59 = arith.addi %27, %c2_i32_68 : i32
      %60 = arith.index_cast %59 : i32 to index
      %c7_69 = arith.constant 7 : index
      %c0_70 = arith.constant 0 : index
      %61 = vector.load %arg11[%60, %c7_69, %c0_70] : memref<18x25x4xbf16, #tpu.memory_space<vmem>>, vector<8x16x4xbf16>
      %c2_i32_71 = arith.constant 2 : i32
      %62 = arith.addi %27, %c2_i32_71 : i32
      %63 = arith.index_cast %62 : i32 to index
      %c8_72 = arith.constant 8 : index
      %c0_73 = arith.constant 0 : index
      %64 = vector.load %arg11[%63, %c8_72, %c0_73] : memref<18x25x4xbf16, #tpu.memory_space<vmem>>, vector<8x16x4xbf16>
      %c2_i32_74 = arith.constant 2 : i32
      %65 = arith.addi %27, %c2_i32_74 : i32
      %66 = arith.index_cast %65 : i32 to index
      %c9_75 = arith.constant 9 : index
      %c0_76 = arith.constant 0 : index
      %67 = vector.load %arg11[%66, %c9_75, %c0_76] : memref<18x25x4xbf16, #tpu.memory_space<vmem>>, vector<8x16x4xbf16>
      %68 = tpu.concatenate %61, %64, %67 in 2 : vector<8x16x4xbf16>, vector<8x16x4xbf16>, vector<8x16x4xbf16> -> vector<8x16x12xbf16>
      %c24_77 = arith.constant 24 : index
      %c0_78 = arith.constant 0 : index
      %69 = vector.load %arg4[%c24_77, %c0_78] : memref<36x8xbf16, #tpu.memory_space<vmem>>, vector<12x8xbf16>
      %70 = vector.shape_cast %68 : vector<8x16x12xbf16> to vector<128x12xbf16>
      %cst_79 = arith.constant dense<0.000000e+00> : vector<128x8xf32>
      %71 = tpu.matmul %70, %69, %cst_79 {dimension_numbers = #tpu.dot_dimension_numbers<[1], [0], [0], [1], [0, 0, 1, 1], [], []>} : vector<128x12xbf16>, vector<12x8xbf16>, vector<128x8xf32> -> vector<128x8xf32>
      %72 = arith.addf %58, %71 : vector<128x8xf32>
      %c0_80 = arith.constant 0 : index
      %c0_81 = arith.constant 0 : index
      %73 = vector.load %arg5[%c0_80, %c0_81] : memref<1x8xf32, #tpu.memory_space<vmem>>, vector<1x8xf32>
      %74 = vector.broadcast %73 : vector<1x8xf32> to vector<128x8xf32>
      %75 = arith.addf %72, %74 : vector<128x8xf32>
      %cst_82 = arith.constant 0.000000e+00 : f32
      %76 = vector.broadcast %cst_82 : f32 to vector<128x8xf32>
      %77 = arith.maximumf %75, %76 : vector<128x8xf32>
      %cst_83 = arith.constant 0.000000e+00 : f32
      %78 = vector.broadcast %cst_83 : f32 to vector<128x8xf32>
      %c0_i32_84 = arith.constant 0 : i32
      %79 = arith.addi %27, %c0_i32_84 : i32
      %80 = arith.index_cast %79 : i32 to index
      %c6_85 = arith.constant 6 : index
      %c0_86 = arith.constant 0 : index
      %81 = vector.load %arg12[%80, %c6_85, %c0_86] : memref<20x26x4xbf16, #tpu.memory_space<vmem>>, vector<8x16x4xbf16>
      %c0_i32_87 = arith.constant 0 : i32
      %82 = arith.addi %27, %c0_i32_87 : i32
      %83 = arith.index_cast %82 : i32 to index
      %c7_88 = arith.constant 7 : index
      %c0_89 = arith.constant 0 : index
      %84 = vector.load %arg12[%83, %c7_88, %c0_89] : memref<20x26x4xbf16, #tpu.memory_space<vmem>>, vector<8x16x4xbf16>
      %c0_i32_90 = arith.constant 0 : i32
      %85 = arith.addi %27, %c0_i32_90 : i32
      %86 = arith.index_cast %85 : i32 to index
      %c8_91 = arith.constant 8 : index
      %c0_92 = arith.constant 0 : index
      %87 = vector.load %arg12[%86, %c8_91, %c0_92] : memref<20x26x4xbf16, #tpu.memory_space<vmem>>, vector<8x16x4xbf16>
      %c0_i32_93 = arith.constant 0 : i32
      %88 = arith.addi %27, %c0_i32_93 : i32
      %89 = arith.index_cast %88 : i32 to index
      %c9_94 = arith.constant 9 : index
      %c0_95 = arith.constant 0 : index
      %90 = vector.load %arg12[%89, %c9_94, %c0_95] : memref<20x26x4xbf16, #tpu.memory_space<vmem>>, vector<8x16x4xbf16>
      %c0_i32_96 = arith.constant 0 : i32
      %91 = arith.addi %27, %c0_i32_96 : i32
      %92 = arith.index_cast %91 : i32 to index
      %c10 = arith.constant 10 : index
      %c0_97 = arith.constant 0 : index
      %93 = vector.load %arg12[%92, %c10, %c0_97] : memref<20x26x4xbf16, #tpu.memory_space<vmem>>, vector<8x16x4xbf16>
      %94 = tpu.concatenate %81, %84, %87, %90, %93 in 2 : vector<8x16x4xbf16>, vector<8x16x4xbf16>, vector<8x16x4xbf16>, vector<8x16x4xbf16>, vector<8x16x4xbf16> -> vector<8x16x20xbf16>
      %c0_98 = arith.constant 0 : index
      %c0_99 = arith.constant 0 : index
      %95 = vector.load %arg6[%c0_98, %c0_99] : memref<100x8xbf16, #tpu.memory_space<vmem>>, vector<20x8xbf16>
      %96 = vector.shape_cast %94 : vector<8x16x20xbf16> to vector<128x20xbf16>
      %cst_100 = arith.constant dense<0.000000e+00> : vector<128x8xf32>
      %97 = tpu.matmul %96, %95, %cst_100 {dimension_numbers = #tpu.dot_dimension_numbers<[1], [0], [0], [1], [0, 0, 1, 1], [], []>} : vector<128x20xbf16>, vector<20x8xbf16>, vector<128x8xf32> -> vector<128x8xf32>
      %98 = arith.addf %78, %97 : vector<128x8xf32>
      %c1_i32_101 = arith.constant 1 : i32
      %99 = arith.addi %27, %c1_i32_101 : i32
      %100 = arith.index_cast %99 : i32 to index
      %c6_102 = arith.constant 6 : index
      %c0_103 = arith.constant 0 : index
      %101 = vector.load %arg12[%100, %c6_102, %c0_103] : memref<20x26x4xbf16, #tpu.memory_space<vmem>>, vector<8x16x4xbf16>
      %c1_i32_104 = arith.constant 1 : i32
      %102 = arith.addi %27, %c1_i32_104 : i32
      %103 = arith.index_cast %102 : i32 to index
      %c7_105 = arith.constant 7 : index
      %c0_106 = arith.constant 0 : index
      %104 = vector.load %arg12[%103, %c7_105, %c0_106] : memref<20x26x4xbf16, #tpu.memory_space<vmem>>, vector<8x16x4xbf16>
      %c1_i32_107 = arith.constant 1 : i32
      %105 = arith.addi %27, %c1_i32_107 : i32
      %106 = arith.index_cast %105 : i32 to index
      %c8_108 = arith.constant 8 : index
      %c0_109 = arith.constant 0 : index
      %107 = vector.load %arg12[%106, %c8_108, %c0_109] : memref<20x26x4xbf16, #tpu.memory_space<vmem>>, vector<8x16x4xbf16>
      %c1_i32_110 = arith.constant 1 : i32
      %108 = arith.addi %27, %c1_i32_110 : i32
      %109 = arith.index_cast %108 : i32 to index
      %c9_111 = arith.constant 9 : index
      %c0_112 = arith.constant 0 : index
      %110 = vector.load %arg12[%109, %c9_111, %c0_112] : memref<20x26x4xbf16, #tpu.memory_space<vmem>>, vector<8x16x4xbf16>
      %c1_i32_113 = arith.constant 1 : i32
      %111 = arith.addi %27, %c1_i32_113 : i32
      %112 = arith.index_cast %111 : i32 to index
      %c10_114 = arith.constant 10 : index
      %c0_115 = arith.constant 0 : index
      %113 = vector.load %arg12[%112, %c10_114, %c0_115] : memref<20x26x4xbf16, #tpu.memory_space<vmem>>, vector<8x16x4xbf16>
      %114 = tpu.concatenate %101, %104, %107, %110, %113 in 2 : vector<8x16x4xbf16>, vector<8x16x4xbf16>, vector<8x16x4xbf16>, vector<8x16x4xbf16>, vector<8x16x4xbf16> -> vector<8x16x20xbf16>
      %c20 = arith.constant 20 : index
      %c0_116 = arith.constant 0 : index
      %115 = vector.load %arg6[%c20, %c0_116] : memref<100x8xbf16, #tpu.memory_space<vmem>>, vector<20x8xbf16>
      %116 = vector.shape_cast %114 : vector<8x16x20xbf16> to vector<128x20xbf16>
      %cst_117 = arith.constant dense<0.000000e+00> : vector<128x8xf32>
      %117 = tpu.matmul %116, %115, %cst_117 {dimension_numbers = #tpu.dot_dimension_numbers<[1], [0], [0], [1], [0, 0, 1, 1], [], []>} : vector<128x20xbf16>, vector<20x8xbf16>, vector<128x8xf32> -> vector<128x8xf32>
      %118 = arith.addf %98, %117 : vector<128x8xf32>
      %c2_i32_118 = arith.constant 2 : i32
      %119 = arith.addi %27, %c2_i32_118 : i32
      %120 = arith.index_cast %119 : i32 to index
      %c6_119 = arith.constant 6 : index
      %c0_120 = arith.constant 0 : index
      %121 = vector.load %arg12[%120, %c6_119, %c0_120] : memref<20x26x4xbf16, #tpu.memory_space<vmem>>, vector<8x16x4xbf16>
      %c2_i32_121 = arith.constant 2 : i32
      %122 = arith.addi %27, %c2_i32_121 : i32
      %123 = arith.index_cast %122 : i32 to index
      %c7_122 = arith.constant 7 : index
      %c0_123 = arith.constant 0 : index
      %124 = vector.load %arg12[%123, %c7_122, %c0_123] : memref<20x26x4xbf16, #tpu.memory_space<vmem>>, vector<8x16x4xbf16>
      %c2_i32_124 = arith.constant 2 : i32
      %125 = arith.addi %27, %c2_i32_124 : i32
      %126 = arith.index_cast %125 : i32 to index
      %c8_125 = arith.constant 8 : index
      %c0_126 = arith.constant 0 : index
      %127 = vector.load %arg12[%126, %c8_125, %c0_126] : memref<20x26x4xbf16, #tpu.memory_space<vmem>>, vector<8x16x4xbf16>
      %c2_i32_127 = arith.constant 2 : i32
      %128 = arith.addi %27, %c2_i32_127 : i32
      %129 = arith.index_cast %128 : i32 to index
      %c9_128 = arith.constant 9 : index
      %c0_129 = arith.constant 0 : index
      %130 = vector.load %arg12[%129, %c9_128, %c0_129] : memref<20x26x4xbf16, #tpu.memory_space<vmem>>, vector<8x16x4xbf16>
      %c2_i32_130 = arith.constant 2 : i32
      %131 = arith.addi %27, %c2_i32_130 : i32
      %132 = arith.index_cast %131 : i32 to index
      %c10_131 = arith.constant 10 : index
      %c0_132 = arith.constant 0 : index
      %133 = vector.load %arg12[%132, %c10_131, %c0_132] : memref<20x26x4xbf16, #tpu.memory_space<vmem>>, vector<8x16x4xbf16>
      %134 = tpu.concatenate %121, %124, %127, %130, %133 in 2 : vector<8x16x4xbf16>, vector<8x16x4xbf16>, vector<8x16x4xbf16>, vector<8x16x4xbf16>, vector<8x16x4xbf16> -> vector<8x16x20xbf16>
      %c40 = arith.constant 40 : index
      %c0_133 = arith.constant 0 : index
      %135 = vector.load %arg6[%c40, %c0_133] : memref<100x8xbf16, #tpu.memory_space<vmem>>, vector<20x8xbf16>
      %136 = vector.shape_cast %134 : vector<8x16x20xbf16> to vector<128x20xbf16>
      %cst_134 = arith.constant dense<0.000000e+00> : vector<128x8xf32>
      %137 = tpu.matmul %136, %135, %cst_134 {dimension_numbers = #tpu.dot_dimension_numbers<[1], [0], [0], [1], [0, 0, 1, 1], [], []>} : vector<128x20xbf16>, vector<20x8xbf16>, vector<128x8xf32> -> vector<128x8xf32>
      %138 = arith.addf %118, %137 : vector<128x8xf32>
      %c3_i32 = arith.constant 3 : i32
      %139 = arith.addi %27, %c3_i32 : i32
      %140 = arith.index_cast %139 : i32 to index
      %c6_135 = arith.constant 6 : index
      %c0_136 = arith.constant 0 : index
      %141 = vector.load %arg12[%140, %c6_135, %c0_136] : memref<20x26x4xbf16, #tpu.memory_space<vmem>>, vector<8x16x4xbf16>
      %c3_i32_137 = arith.constant 3 : i32
      %142 = arith.addi %27, %c3_i32_137 : i32
      %143 = arith.index_cast %142 : i32 to index
      %c7_138 = arith.constant 7 : index
      %c0_139 = arith.constant 0 : index
      %144 = vector.load %arg12[%143, %c7_138, %c0_139] : memref<20x26x4xbf16, #tpu.memory_space<vmem>>, vector<8x16x4xbf16>
      %c3_i32_140 = arith.constant 3 : i32
      %145 = arith.addi %27, %c3_i32_140 : i32
      %146 = arith.index_cast %145 : i32 to index
      %c8_141 = arith.constant 8 : index
      %c0_142 = arith.constant 0 : index
      %147 = vector.load %arg12[%146, %c8_141, %c0_142] : memref<20x26x4xbf16, #tpu.memory_space<vmem>>, vector<8x16x4xbf16>
      %c3_i32_143 = arith.constant 3 : i32
      %148 = arith.addi %27, %c3_i32_143 : i32
      %149 = arith.index_cast %148 : i32 to index
      %c9_144 = arith.constant 9 : index
      %c0_145 = arith.constant 0 : index
      %150 = vector.load %arg12[%149, %c9_144, %c0_145] : memref<20x26x4xbf16, #tpu.memory_space<vmem>>, vector<8x16x4xbf16>
      %c3_i32_146 = arith.constant 3 : i32
      %151 = arith.addi %27, %c3_i32_146 : i32
      %152 = arith.index_cast %151 : i32 to index
      %c10_147 = arith.constant 10 : index
      %c0_148 = arith.constant 0 : index
      %153 = vector.load %arg12[%152, %c10_147, %c0_148] : memref<20x26x4xbf16, #tpu.memory_space<vmem>>, vector<8x16x4xbf16>
      %154 = tpu.concatenate %141, %144, %147, %150, %153 in 2 : vector<8x16x4xbf16>, vector<8x16x4xbf16>, vector<8x16x4xbf16>, vector<8x16x4xbf16>, vector<8x16x4xbf16> -> vector<8x16x20xbf16>
      %c60 = arith.constant 60 : index
      %c0_149 = arith.constant 0 : index
      %155 = vector.load %arg6[%c60, %c0_149] : memref<100x8xbf16, #tpu.memory_space<vmem>>, vector<20x8xbf16>
      %156 = vector.shape_cast %154 : vector<8x16x20xbf16> to vector<128x20xbf16>
      %cst_150 = arith.constant dense<0.000000e+00> : vector<128x8xf32>
      %157 = tpu.matmul %156, %155, %cst_150 {dimension_numbers = #tpu.dot_dimension_numbers<[1], [0], [0], [1], [0, 0, 1, 1], [], []>} : vector<128x20xbf16>, vector<20x8xbf16>, vector<128x8xf32> -> vector<128x8xf32>
      %158 = arith.addf %138, %157 : vector<128x8xf32>
      %c4_i32 = arith.constant 4 : i32
      %159 = arith.addi %27, %c4_i32 : i32
      %160 = arith.index_cast %159 : i32 to index
      %c6_151 = arith.constant 6 : index
      %c0_152 = arith.constant 0 : index
      %161 = vector.load %arg12[%160, %c6_151, %c0_152] : memref<20x26x4xbf16, #tpu.memory_space<vmem>>, vector<8x16x4xbf16>
      %c4_i32_153 = arith.constant 4 : i32
      %162 = arith.addi %27, %c4_i32_153 : i32
      %163 = arith.index_cast %162 : i32 to index
      %c7_154 = arith.constant 7 : index
      %c0_155 = arith.constant 0 : index
      %164 = vector.load %arg12[%163, %c7_154, %c0_155] : memref<20x26x4xbf16, #tpu.memory_space<vmem>>, vector<8x16x4xbf16>
      %c4_i32_156 = arith.constant 4 : i32
      %165 = arith.addi %27, %c4_i32_156 : i32
      %166 = arith.index_cast %165 : i32 to index
      %c8_157 = arith.constant 8 : index
      %c0_158 = arith.constant 0 : index
      %167 = vector.load %arg12[%166, %c8_157, %c0_158] : memref<20x26x4xbf16, #tpu.memory_space<vmem>>, vector<8x16x4xbf16>
      %c4_i32_159 = arith.constant 4 : i32
      %168 = arith.addi %27, %c4_i32_159 : i32
      %169 = arith.index_cast %168 : i32 to index
      %c9_160 = arith.constant 9 : index
      %c0_161 = arith.constant 0 : index
      %170 = vector.load %arg12[%169, %c9_160, %c0_161] : memref<20x26x4xbf16, #tpu.memory_space<vmem>>, vector<8x16x4xbf16>
      %c4_i32_162 = arith.constant 4 : i32
      %171 = arith.addi %27, %c4_i32_162 : i32
      %172 = arith.index_cast %171 : i32 to index
      %c10_163 = arith.constant 10 : index
      %c0_164 = arith.constant 0 : index
      %173 = vector.load %arg12[%172, %c10_163, %c0_164] : memref<20x26x4xbf16, #tpu.memory_space<vmem>>, vector<8x16x4xbf16>
      %174 = tpu.concatenate %161, %164, %167, %170, %173 in 2 : vector<8x16x4xbf16>, vector<8x16x4xbf16>, vector<8x16x4xbf16>, vector<8x16x4xbf16>, vector<8x16x4xbf16> -> vector<8x16x20xbf16>
      %c80 = arith.constant 80 : index
      %c0_165 = arith.constant 0 : index
      %175 = vector.load %arg6[%c80, %c0_165] : memref<100x8xbf16, #tpu.memory_space<vmem>>, vector<20x8xbf16>
      %176 = vector.shape_cast %174 : vector<8x16x20xbf16> to vector<128x20xbf16>
      %cst_166 = arith.constant dense<0.000000e+00> : vector<128x8xf32>
      %177 = tpu.matmul %176, %175, %cst_166 {dimension_numbers = #tpu.dot_dimension_numbers<[1], [0], [0], [1], [0, 0, 1, 1], [], []>} : vector<128x20xbf16>, vector<20x8xbf16>, vector<128x8xf32> -> vector<128x8xf32>
      %178 = arith.addf %158, %177 : vector<128x8xf32>
      %c0_167 = arith.constant 0 : index
      %c0_168 = arith.constant 0 : index
      %179 = vector.load %arg7[%c0_167, %c0_168] : memref<1x8xf32, #tpu.memory_space<vmem>>, vector<1x8xf32>
      %180 = vector.broadcast %179 : vector<1x8xf32> to vector<128x8xf32>
      %181 = arith.addf %178, %180 : vector<128x8xf32>
      %cst_169 = arith.constant 0.000000e+00 : f32
      %182 = vector.broadcast %cst_169 : f32 to vector<128x8xf32>
      %183 = arith.maximumf %181, %182 : vector<128x8xf32>
      %184 = arith.index_cast %27 : i32 to index
      %c7_170 = arith.constant 7 : index
      %c0_171 = arith.constant 0 : index
      %185 = vector.load %arg13[%184, %c7_170, %c0_171] : memref<18x25x4xbf16, #tpu.memory_space<vmem>>, vector<8x16x4xbf16>
      %c0_i32_172 = arith.constant 0 : i32
      %186 = arith.addi %27, %c0_i32_172 : i32
      %187 = arith.index_cast %186 : i32 to index
      %c8_173 = arith.constant 8 : index
      %c0_174 = arith.constant 0 : index
      %188 = vector.load %arg13[%187, %c8_173, %c0_174] : memref<18x25x4xbf16, #tpu.memory_space<vmem>>, vector<8x16x4xbf16>
      %189 = arith.maximumf %185, %188 : vector<8x16x4xbf16>
      %c0_i32_175 = arith.constant 0 : i32
      %190 = arith.addi %27, %c0_i32_175 : i32
      %191 = arith.index_cast %190 : i32 to index
      %c9_176 = arith.constant 9 : index
      %c0_177 = arith.constant 0 : index
      %192 = vector.load %arg13[%191, %c9_176, %c0_177] : memref<18x25x4xbf16, #tpu.memory_space<vmem>>, vector<8x16x4xbf16>
      %193 = arith.maximumf %189, %192 : vector<8x16x4xbf16>
      %c1_i32_178 = arith.constant 1 : i32
      %194 = arith.addi %27, %c1_i32_178 : i32
      %195 = arith.index_cast %194 : i32 to index
      %c7_179 = arith.constant 7 : index
      %c0_180 = arith.constant 0 : index
      %196 = vector.load %arg13[%195, %c7_179, %c0_180] : memref<18x25x4xbf16, #tpu.memory_space<vmem>>, vector<8x16x4xbf16>
      %197 = arith.maximumf %193, %196 : vector<8x16x4xbf16>
      %c1_i32_181 = arith.constant 1 : i32
      %198 = arith.addi %27, %c1_i32_181 : i32
      %199 = arith.index_cast %198 : i32 to index
      %c8_182 = arith.constant 8 : index
      %c0_183 = arith.constant 0 : index
      %200 = vector.load %arg13[%199, %c8_182, %c0_183] : memref<18x25x4xbf16, #tpu.memory_space<vmem>>, vector<8x16x4xbf16>
      %201 = arith.maximumf %197, %200 : vector<8x16x4xbf16>
      %c1_i32_184 = arith.constant 1 : i32
      %202 = arith.addi %27, %c1_i32_184 : i32
      %203 = arith.index_cast %202 : i32 to index
      %c9_185 = arith.constant 9 : index
      %c0_186 = arith.constant 0 : index
      %204 = vector.load %arg13[%203, %c9_185, %c0_186] : memref<18x25x4xbf16, #tpu.memory_space<vmem>>, vector<8x16x4xbf16>
      %205 = arith.maximumf %201, %204 : vector<8x16x4xbf16>
      %c2_i32_187 = arith.constant 2 : i32
      %206 = arith.addi %27, %c2_i32_187 : i32
      %207 = arith.index_cast %206 : i32 to index
      %c7_188 = arith.constant 7 : index
      %c0_189 = arith.constant 0 : index
      %208 = vector.load %arg13[%207, %c7_188, %c0_189] : memref<18x25x4xbf16, #tpu.memory_space<vmem>>, vector<8x16x4xbf16>
      %209 = arith.maximumf %205, %208 : vector<8x16x4xbf16>
      %c2_i32_190 = arith.constant 2 : i32
      %210 = arith.addi %27, %c2_i32_190 : i32
      %211 = arith.index_cast %210 : i32 to index
      %c8_191 = arith.constant 8 : index
      %c0_192 = arith.constant 0 : index
      %212 = vector.load %arg13[%211, %c8_191, %c0_192] : memref<18x25x4xbf16, #tpu.memory_space<vmem>>, vector<8x16x4xbf16>
      %213 = arith.maximumf %209, %212 : vector<8x16x4xbf16>
      %c2_i32_193 = arith.constant 2 : i32
      %214 = arith.addi %27, %c2_i32_193 : i32
      %215 = arith.index_cast %214 : i32 to index
      %c9_194 = arith.constant 9 : index
      %c0_195 = arith.constant 0 : index
      %216 = vector.load %arg13[%215, %c9_194, %c0_195] : memref<18x25x4xbf16, #tpu.memory_space<vmem>>, vector<8x16x4xbf16>
      %217 = arith.maximumf %213, %216 : vector<8x16x4xbf16>
      %218 = vector.shape_cast %217 : vector<8x16x4xbf16> to vector<128x4xbf16>
      %c0_196 = arith.constant 0 : index
      %c0_197 = arith.constant 0 : index
      %219 = vector.load %arg8[%c0_196, %c0_197] : memref<4x8xbf16, #tpu.memory_space<vmem>>, vector<4x8xbf16>
      %cst_198 = arith.constant dense<0.000000e+00> : vector<128x8xf32>
      %220 = tpu.matmul %218, %219, %cst_198 {dimension_numbers = #tpu.dot_dimension_numbers<[1], [0], [0], [1], [0, 0, 1, 1], [], []>} : vector<128x4xbf16>, vector<4x8xbf16>, vector<128x8xf32> -> vector<128x8xf32>
      %c0_199 = arith.constant 0 : index
      %c0_200 = arith.constant 0 : index
      %221 = vector.load %arg9[%c0_199, %c0_200] : memref<1x8xf32, #tpu.memory_space<vmem>>, vector<1x8xf32>
      %222 = vector.broadcast %221 : vector<1x8xf32> to vector<128x8xf32>
      %223 = arith.addf %220, %222 : vector<128x8xf32>
      %cst_201 = arith.constant 0.000000e+00 : f32
      %224 = vector.broadcast %cst_201 : f32 to vector<128x8xf32>
      %225 = arith.maximumf %223, %224 : vector<128x8xf32>
      %226 = arith.index_cast %29 : i32 to index
      %c0_202 = arith.constant 0 : index
      %227 = vector.load %arg14[%226, %c0_202] : memref<256x8xf32, #tpu.memory_space<vmem>>, vector<128x8xf32>
      %228 = tpu.concatenate %227, %77, %183, %225 in 1 : vector<128x8xf32>, vector<128x8xf32>, vector<128x8xf32>, vector<128x8xf32> -> vector<128x32xf32>
      %229 = vector.shape_cast %228 : vector<128x32xf32> to vector<8x16x32xf32>
      %c0_203 = arith.constant 0 : index
      %230 = arith.index_cast %27 : i32 to index
      %c0_204 = arith.constant 0 : index
      %c0_205 = arith.constant 0 : index
      %231 = vector.load %arg10[%c0_203, %230, %c0_204, %c0_205] : memref<1x16x16x32xf32, #tpu.memory_space<vmem>>, vector<1x8x16x32xf32>
      %232 = vector.shape_cast %231 : vector<1x8x16x32xf32> to vector<8x16x32xf32>
      %233 = vector.shape_cast %229 : vector<8x16x32xf32> to vector<1x8x16x32xf32>
      tpu.vector_store %arg10[%c0_203, %230, %c0_204, %c0_205], %233 {strides = array<i32>} : memref<1x16x16x32xf32, #tpu.memory_space<vmem>>, vector<1x8x16x32xf32>,
    }
    %c2_i32_45 = arith.constant 2 : i32
    return
  }
  func.func @transform_0(%arg0: i32) -> (i32, i32, i32, i32) {
    %c0_i32 = arith.constant 0 : i32
    %c0_i32_0 = arith.constant 0 : i32
    %c0_i32_1 = arith.constant 0 : i32
    %c0_i32_2 = arith.constant 0 : i32
    return %arg0, %c0_i32, %c0_i32_0, %c0_i32_1 : i32, i32, i32, i32
  }
  func.func @transform_1(%arg0: i32) -> (i32, i32) {
    %c0_i32 = arith.constant 0 : i32
    %c0_i32_0 = arith.constant 0 : i32
    %c0_i32_1 = arith.constant 0 : i32
    return %c0_i32, %c0_i32_0 : i32, i32
  }
  func.func @transform_2(%arg0: i32) -> (i32, i32) {
    %c0_i32 = arith.constant 0 : i32
    %c0_i32_0 = arith.constant 0 : i32
    %c0_i32_1 = arith.constant 0 : i32
    return %c0_i32, %c0_i32_0 : i32, i32
  }
  func.func @transform_3(%arg0: i32) -> (i32, i32) {
    %c0_i32 = arith.constant 0 : i32
    %c0_i32_0 = arith.constant 0 : i32
    %c0_i32_1 = arith.constant 0 : i32
    return %c0_i32, %c0_i32_0 : i32, i32
  }
  func.func @transform_4(%arg0: i32) -> (i32, i32) {
    %c0_i32 = arith.constant 0 : i32
    %c0_i32_0 = arith.constant 0 : i32
    %c0_i32_1 = arith.constant 0 : i32
    return %c0_i32, %c0_i32_0 : i32, i32
  }
  func.func @transform_5(%arg0: i32) -> (i32, i32) {
    %c0_i32 = arith.constant 0 : i32
    %c0_i32_0 = arith.constant 0 : i32
    %c0_i32_1 = arith.constant 0 : i32
    return %c0_i32, %c0_i32_0 : i32, i32
  }
  func.func @transform_6(%arg0: i32) -> (i32, i32) {
    %c0_i32 = arith.constant 0 : i32
    %c0_i32_0 = arith.constant 0 : i32
    %c0_i32_1 = arith.constant 0 : i32
    return %c0_i32, %c0_i32_0 : i32, i32
  }
  func.func @transform_7(%arg0: i32) -> (i32, i32) {
    %c0_i32 = arith.constant 0 : i32
    %c0_i32_0 = arith.constant 0 : i32
    %c0_i32_1 = arith.constant 0 : i32
    return %c0_i32, %c0_i32_0 : i32, i32
  }
  func.func @transform_8(%arg0: i32) -> (i32, i32) {
    %c0_i32 = arith.constant 0 : i32
    %c0_i32_0 = arith.constant 0 : i32
    %c0_i32_1 = arith.constant 0 : i32
    return %c0_i32, %c0_i32_0 : i32, i32
  }
  func.func @transform_9(%arg0: i32) -> (i32, i32, i32, i32) {
    %c0_i32 = arith.constant 0 : i32
    %c0_i32_0 = arith.constant 0 : i32
    %c0_i32_1 = arith.constant 0 : i32
    %c0_i32_2 = arith.constant 0 : i32
    return %arg0, %c0_i32, %c0_i32_0, %c0_i32_1 : i32, i32, i32, i32
  }
}

</mosaic_0001>

<bundles_post_ra>
// kernel: inception_forward.1
= control target key start
LH: loop header
LB: loop body
LE: loop exit
PB: predicated region body
PF: predicated region fallthrough
CT: control target
= control target key end

     0   :  { %14 = vsyncpa [#allocation7], 0  ;;  %s16974_s0 = inlined_call_operand.vmem [shape: bf16[2,16,16,4], index: 0, kind: input, shape index: {}]   ;;  %s16975_s1 = inlined_call_operand.vmem [shape: bf16[4,16], index: 1, kind: input, shape index: {}]   ;;  %s16976_s2 = inlined_call_operand.vmem [shape: f32[1,16], index: 2, kind: input, shape index: {}]   ;;  %s16977_s3 = inlined_call_operand.vmem [shape: bf16[36,8], index: 3, kind: input, shape index: {}]   ;;  %s16978_s4 = inlined_call_operand.vmem [shape: f32[1,8], index: 4, kind: input, shape index: {}]   ;;  %s16979_s5 = inlined_call_operand.vmem [shape: bf16[100,8], index: 5, kind: input, shape index: {}]   ;;  %s16980_s6 = inlined_call_operand.vmem [shape: f32[1,8], index: 6, kind: input, shape index: {}]   ;;  %s16981_s7 = inlined_call_operand.vmem [shape: bf16[4,8], index: 7, kind: input, shape index: {}]   ;;  %s16982_s8 = inlined_call_operand.vmem [shape: f32[1,8], index: 8, kind: input, shape index: {}]   ;;  %s16983_s9 = inlined_call_operand.hbm [shape: f32[2,16,16,32], index: 9, kind: output, shape index: {}]  }
   0x1   :  { %16 = vsyncpa [#allocation7 + $0x1], 0  ;;  %s11188_s30 = smov 0   ;;  %s11190_s10 = smov 0  }
   0x2   :  { %s11192_s11 = smov 0   ;;  %s11194_s12 = smov 0  }
   0x3 LB: > { %s11209_s13 = sadd.s32 4294967295, %s11116_s12   ;;  %s9265_s14 = sadd.s32 4294967294, %s11116_s12   ;;  %s11116_s12 = sphi %s11194_s12, %s17592_s12   ;;  %s11112_s11 = sphi %s11192_s11, %s17591_s11   ;;  %s11108_s10 = sphi %s11190_s10, %s17590_s10   ;;  %s11104_s30 = sphi %s11188_s30, %s17589_s30  }
   0x4   : > { %s11213_s15 = sadd.s32 1, %s11116_s12   ;;  %s223_s16 = sadd.s32 1, %s11112_s11 }
   0x5   : > { %s220_s17 = ssub.s32 %s11116_s12, %s11213_s15  ;;  %p233_p0 = scmp.ne.s32.totalorder %s11112_s11, %s11108_s10 }
   0x6   : > { %p221_p1 = scmp.eq.s32.totalorder %s220_s17, 0  ;;  %p234_p2 = scmp.eq.s32.totalorder %s11209_s13, 1 }
   0x7   : > { %p239_p3 = scmp.ne.s32.totalorder %s11108_s10, %s11104_s30  ;;  %p240_p4 = scmp.eq.s32.totalorder %s9265_s14, 1 }
   0x8   : > { %s11224_s18 = scalar_select %p221_p1, %s11112_s11, %s223_s16  }
   0x9   : > { %p11226_p5 = por %p234_p2, %p233_p0  ;;  %p11230_p6 = por %p240_p4, %p239_p3 }
   0xa   : > { %p9268_p7 = scmp.ge.s32.totalorder %s11116_s12, 1  ;;  %p290_p8 = scmp.lt.s32.totalorder %s11116_s12, 3 }
   0xc   : > { %p291_p9 = pnand %p9268_p7, %p290_p8 }
   0xd   : > { %s17090_s21 = sand.u32 (!%p291_p9), 1, %s11108_s10   ;;  %p326_p10 = scmp.lt.s32.totalorder (!%p291_p9), %s11209_s13, 1  ;;  %vm333_vm0 = vcmask (!%p291_p9), 27648   ;;  %vm337_vm1 = vcmask (!%p291_p9), 24576   ;;  %vm350_vm2 = vcmask (!%p291_p9), 27651   ;;  %v11126_v0 = vmov (!%p291_p9), 0  }
   0xe   : > { %294 = sbr.rel (%p291_p9) target bundleno = 1814 (0x716), region = 56  ;;  %s11240_s22 = sshll.u32 (!%p291_p9), %s17090_s21, 8  ;;  %334 = vst.msk [vmem:[#allocation2] sm:$0xf] (!%p291_p9), %vm333_vm0, %v11126_v0  ;;  %335 = vst.msk [vmem:[#allocation2 + $0x4] sm:$0xf] (!%p291_p9), %vm333_vm0, %v11126_v0 }
   0xf   : > { %336 = vst.msk [vmem:[#allocation2 + $0x8] sm:$0xf] (!%p291_p9), %vm333_vm0, %v11126_v0  ;;  %344 = vst.msk [vmem:[#allocation2 + $0x110] sm:$0xf] (!%p291_p9), %vm333_vm0, %v11126_v0  ;;  %vm338_vm3 = vsmask.f32 (!%p291_p9), 256 }
  0x10   : > { %345 = vst.msk [vmem:[#allocation2 + $0x114] sm:$0xf] (!%p291_p9), %vm333_vm0, %v11126_v0  ;;  %346 = vst.msk [vmem:[#allocation2 + $0x118] sm:$0xf] (!%p291_p9), %vm333_vm0, %v11126_v0  ;;  %v340_v1 = vld [vmem:[#allocation2 + $0xc] sm:$0x1] (!%p291_p9) }
  0x11   : > { %461 = vst.msk [vmem:[#allocation3] sm:$0xf] (!%p291_p9), %vm333_vm0, %v11126_v0  ;;  %462 = vst.msk [vmem:[#allocation3 + $0x4] sm:$0xf] (!%p291_p9), %vm333_vm0, %v11126_v0  ;;  %v347_v3 = vld [vmem:[#allocation2 + $0x11c] sm:$0x1] (!%p291_p9) }
  0x12   : > { %463 = vst.msk [vmem:[#allocation3 + $0x8] sm:$0xf] (!%p291_p9), %vm333_vm0, %v11126_v0  ;;  %466 = vst.msk [vmem:[#allocation3 + $0x10] sm:$0xf] (!%p291_p9), %vm333_vm0, %v11126_v0  ;;  %v11127_v6 = vmov (!%p291_p9), 4286578559  }
  0x13   : > { %467 = vst.msk [vmem:[#allocation3 + $0x14] sm:$0xf] (!%p291_p9), %vm333_vm0, %v11126_v0  ;;  %468 = vst.msk [vmem:[#allocation3 + $0x18] sm:$0xf] (!%p291_p9), %vm333_vm0, %v11126_v0  ;;  %v523_v7 = vld [vmem:[#allocation4 + $0xc] sm:$0x1] (!%p291_p9) }
  0x14   : > { %471 = vst.msk [vmem:[#allocation3 + $0x120] sm:$0xf] (!%p291_p9), %vm333_vm0, %v11126_v0  ;;  %472 = vst.msk [vmem:[#allocation3 + $0x124] sm:$0xf] (!%p291_p9), %vm333_vm0, %v11126_v0  ;;  %v530_v9 = vld [vmem:[#allocation4 + $0x11c] sm:$0x1] (!%p291_p9) }
  0x15   : > { %473 = vst.msk [vmem:[#allocation3 + $0x128] sm:$0xf] %vm333_vm0, %v11126_v0  ;;  %475 = vst.msk [vmem:[#allocation3 + $0x130] sm:$0xf] %vm333_vm0, %v11126_v0  ;;  %s327_s23 = scalar_select %p326_p10, %s11209_s13, 1 }
  0x16   : > { %476 = vst.msk [vmem:[#allocation3 + $0x134] sm:$0xf] %vm333_vm0, %v11126_v0  ;;  %477 = vst.msk [vmem:[#allocation3 + $0x138] sm:$0xf] %vm333_vm0, %v11126_v0  ;;  %vm351_vm5 = vsmask.f32 7950 }
  0x17   : > { %465 = vst.msk [vmem:[#allocation3 + $0xc] sm:$0x1] %vm337_vm1, %v11126_v0  ;;  %469 = vst.msk [vmem:[#allocation3 + $0x1c] sm:$0x1] %vm337_vm1, %v11126_v0  ;;  %s10151_s24 = sshll.u32 %s327_s23, 7  ;;  %s11544_s29 = smov 0  }
  0x18   : > { %474 = vst.msk [vmem:[#allocation3 + $0x12c] sm:$0x1] %vm337_vm1, %v11126_v0  ;;  %478 = vst.msk [vmem:[#allocation3 + $0x13c] sm:$0x1] %vm337_vm1, %v11126_v0  ;;  %v356_v12 = vld [vmem:[#allocation2 + $0x10] sm:$0x8]  ;;  %s11397_s27 = scalar_lea.vmem %s16974_s0, %s10151_s24 }
  0x19   : > { %502 = vst.msk [vmem:[#allocation3 + $0x2c] sm:$0x1] %vm337_vm1, %v11126_v0  ;;  %503 = vst.msk [vmem:[#allocation3 + $0x3c] sm:$0x1] %vm337_vm1, %v11126_v0  ;;  %v359_v14 = vld [vmem:[#allocation2 + $0x20] sm:$0x8] }
  0x1a   : > { %504 = vst.msk [vmem:[#allocation3 + $0x4c] sm:$0x1] %vm337_vm1, %v11126_v0  ;;  %505 = vst.msk [vmem:[#allocation3 + $0x5c] sm:$0x1] %vm337_vm1, %v11126_v0  ;;  %v362_v15 = vld [vmem:[#allocation2 + $0x30] sm:$0x8] }
  0x1b   : > { %506 = vst.msk [vmem:[#allocation3 + $0x6c] sm:$0x1] %vm337_vm1, %v11126_v0  ;;  %507 = vst.msk [vmem:[#allocation3 + $0x7c] sm:$0x1] %vm337_vm1, %v11126_v0  ;;  %v365_v18 = vld [vmem:[#allocation2 + $0x40] sm:$0x8] }
  0x1c   : > { %508 = vst.msk [vmem:[#allocation3 + $0x8c] sm:$0x1] %vm337_vm1, %v11126_v0  ;;  %509 = vst.msk [vmem:[#allocation3 + $0x9c] sm:$0x1] %vm337_vm1, %v11126_v0  ;;  %v368_v19 = vld [vmem:[#allocation2 + $0x50] sm:$0x8] }
  0x1d   : > { %510 = vst.msk [vmem:[#allocation3 + $0xac] sm:$0x1] %vm337_vm1, %v11126_v0  ;;  %511 = vst.msk [vmem:[#allocation3 + $0xbc] sm:$0x1] %vm337_vm1, %v11126_v0  ;;  %v353_v20 = vld [vmem:[#allocation2] sm:$0x8] }
  0x1e   : > { %512 = vst.msk [vmem:[#allocation3 + $0xcc] sm:$0x1] %vm337_vm1, %v11126_v0  ;;  %513 = vst.msk [vmem:[#allocation3 + $0xdc] sm:$0x1] %vm337_vm1, %v11126_v0  ;;  %v371_v23 = vld [vmem:[#allocation2 + $0x60] sm:$0x8] }
  0x1f   : > { %514 = vst.msk [vmem:[#allocation3 + $0xec] sm:$0x1] %vm337_vm1, %v11126_v0  ;;  %515 = vst.msk [vmem:[#allocation3 + $0xfc] sm:$0x1] %vm337_vm1, %v11126_v0  ;;  %v374_v26 = vld [vmem:[#allocation2 + $0x70] sm:$0x8] }
  0x20   : > { %516 = vst.msk [vmem:[#allocation3 + $0x10c] sm:$0x1] %vm337_vm1, %v11126_v0  ;;  %517 = vst.msk [vmem:[#allocation3 + $0x11c] sm:$0x1] %vm337_vm1, %v11126_v0  ;;  %v377_v27 = vld [vmem:[#allocation2 + $0x80] sm:$0x8] }
  0x21   : > { %482 = vst.msk [vmem:[#allocation3 + $0x20] sm:$0x8] %vm350_vm2, %v11126_v0  ;;  %483 = vst.msk [vmem:[#allocation3 + $0x30] sm:$0x8] %vm350_vm2, %v11126_v0  ;;  %v380_v30 = vld [vmem:[#allocation2 + $0x90] sm:$0x8] }
  0x22   : > { %484 = vst.msk [vmem:[#allocation3 + $0x40] sm:$0x8] %vm350_vm2, %v11126_v0  ;;  %485 = vst.msk [vmem:[#allocation3 + $0x50] sm:$0x8] %vm350_vm2, %v11126_v0  ;;  %v383_v31 = vld [vmem:[#allocation2 + $0xa0] sm:$0x8] }
  0x23   : > { %486 = vst.msk [vmem:[#allocation3 + $0x60] sm:$0x8] %vm350_vm2, %v11126_v0  ;;  %487 = vst.msk [vmem:[#allocation3 + $0x70] sm:$0x8] %vm350_vm2, %v11126_v0  ;;  %v386_v34 = vld [vmem:[#allocation2 + $0xb0] sm:$0x8] }
  0x24   : > { %488 = vst.msk [vmem:[#allocation3 + $0x80] sm:$0x8] %vm350_vm2, %v11126_v0  ;;  %489 = vst.msk [vmem:[#allocation3 + $0x90] sm:$0x8] %vm350_vm2, %v11126_v0  ;;  %v389_v35 = vld [vmem:[#allocation2 + $0xc0] sm:$0x8] }
  0x25   : > { %490 = vst.msk [vmem:[#allocation3 + $0xa0] sm:$0x8] %vm350_vm2, %v11126_v0  ;;  %491 = vst.msk [vmem:[#allocation3 + $0xb0] sm:$0x8] %vm350_vm2, %v11126_v0  ;;  %v392_v38 = vld [vmem:[#allocation2 + $0xd0] sm:$0x8] }
  0x26   : > { %492 = vst.msk [vmem:[#allocation3 + $0xc0] sm:$0x8] %vm350_vm2, %v11126_v0  ;;  %493 = vst.msk [vmem:[#allocation3 + $0xd0] sm:$0x8] %vm350_vm2, %v11126_v0  ;;  %v395_v39 = vld [vmem:[#allocation2 + $0xe0] sm:$0x8] }
  0x27   : > { %494 = vst.msk [vmem:[#allocation3 + $0xe0] sm:$0x8] %vm350_vm2, %v11126_v0  ;;  %495 = vst.msk [vmem:[#allocation3 + $0xf0] sm:$0x8] %vm350_vm2, %v11126_v0  ;;  %v398_v42 = vld [vmem:[#allocation2 + $0xf0] sm:$0x8] }
  0x28   : > { %496 = vst.msk [vmem:[#allocation3 + $0x100] sm:$0x8] %vm350_vm2, %v11126_v0  ;;  %497 = vst.msk [vmem:[#allocation3 + $0x110] sm:$0x8] %vm350_vm2, %v11126_v0  ;;  %v401_v43 = vld [vmem:[#allocation2 + $0x100] sm:$0x8] }
  0x29   : > { %vm11352_vm4 = vmand %vm337_vm1, %vm338_vm3  ;;  %500 = vst.msk [vmem:[#allocation3 + $0xc] sm:$0x1] %vm337_vm1, %v11126_v0  ;;  %v404_v46 = vld [vmem:[#allocation2 + $0x110] sm:$0x8]  ;;  %v410_v50 = vld [vmem:[#allocation2 + $0x1c] sm:$0x1] }
  0x2a   : > { %501 = vst.msk [vmem:[#allocation3 + $0x1c] sm:$0x1] %vm337_vm1, %v11126_v0  ;;  %518 = vst.msk [vmem:[#allocation3 + $0x12c] sm:$0x1] %vm337_vm1, %v11126_v0  ;;  %v341_v4 = vsel %vm11352_vm4, 0, %v340_v1  ;;  %v348_v5 = vsel %vm11352_vm4, 0, %v347_v3 }
  0x2b   : > { %519 = vst.msk [vmem:[#allocation3 + $0x13c] sm:$0x1] %vm337_vm1, %v11126_v0  ;;  %342 = vst [vmem:[#allocation2 + $0xc] sm:$0x1] %v341_v4  ;;  %v524_v8 = vsel %vm11352_vm4, 4286578559, %v523_v7 }
  0x2c   : > { %480 = vst.msk [vmem:[#allocation3] sm:$0x8] %vm350_vm2, %v11126_v0  ;;  %481 = vst.msk [vmem:[#allocation3 + $0x10] sm:$0x8] %vm350_vm2, %v11126_v0  ;;  %v531_v10 = vsel %vm11352_vm4, 4286578559, %v530_v9 }
  0x2d   : > { %498 = vst.msk [vmem:[#allocation3 + $0x120] sm:$0x8] %vm350_vm2, %v11126_v0  ;;  %499 = vst.msk [vmem:[#allocation3 + $0x130] sm:$0x8] %vm350_vm2, %v11126_v0  ;;  %v413_v51 = vld [vmem:[#allocation2 + $0x2c] sm:$0x1] }
  0x2e   : > { %520 = vst.msk [vmem:[#allocation4] sm:$0xf] %vm333_vm0, %v11127_v6  ;;  %521 = vst.msk [vmem:[#allocation4 + $0x4] sm:$0xf] %vm333_vm0, %v11127_v6  ;;  %v411_v52 = vsel %vm11352_vm4, 0, %v410_v50  ;;  %v414_v53 = vsel %vm11352_vm4, 0, %v413_v51 }
  0x2f   : > { %522 = vst.msk [vmem:[#allocation4 + $0x8] sm:$0xf] %vm333_vm0, %v11127_v6  ;;  %527 = vst.msk [vmem:[#allocation4 + $0x110] sm:$0xf] %vm333_vm0, %v11127_v6  ;;  %v416_v54 = vld [vmem:[#allocation2 + $0x3c] sm:$0x1] }
  0x30   : > { %528 = vst.msk [vmem:[#allocation4 + $0x114] sm:$0xf] %vm333_vm0, %v11127_v6  ;;  %529 = vst.msk [vmem:[#allocation4 + $0x118] sm:$0xf] %vm333_vm0, %v11127_v6  ;;  %v419_v55 = vld [vmem:[#allocation2 + $0x4c] sm:$0x1] }
  0x31   : > { %349 = vst [vmem:[#allocation2 + $0x11c] sm:$0x1] %v348_v5  ;;  %525 = vst [vmem:[#allocation4 + $0xc] sm:$0x1] %v524_v8  ;;  %v417_v56 = vsel %vm11352_vm4, 0, %v416_v54  ;;  %v420_v57 = vsel %vm11352_vm4, 0, %v419_v55 }
  0x32   : > { %vm11390_vm6 = vmand %vm350_vm2, %vm351_vm5  ;;  %532 = vst [vmem:[#allocation4 + $0x11c] sm:$0x1] %v531_v10  ;;  %v407_v47 = vld [vmem:[#allocation2 + $0xc] sm:$0x1]  ;;  %v422_v58 = vld [vmem:[#allocation2 + $0x5c] sm:$0x1] }
  0x33   : > { %v357_v13 = vsel %vm11390_vm6, 0, %v356_v12  ;;  %v360_v16 = vsel %vm11390_vm6, 0, %v359_v14  ;;  %v363_v17 = vsel %vm11390_vm6, 0, %v362_v15  ;;  %v366_v21 = vsel %vm11390_vm6, 0, %v365_v18  ;;  %412 = vst [vmem:[#allocation2 + $0x1c] sm:$0x1] %v411_v52 }
  0x34   : > { %358 = vst [vmem:[#allocation2 + $0x10] sm:$0x8] %v357_v13  ;;  %361 = vst [vmem:[#allocation2 + $0x20] sm:$0x8] %v360_v16  ;;  %v369_v22 = vsel %vm11390_vm6, 0, %v368_v19  ;;  %v354_v24 = vsel %vm11390_vm6, 0, %v353_v20 }
  0x35   : > { %364 = vst [vmem:[#allocation2 + $0x30] sm:$0x8] %v363_v17  ;;  %367 = vst [vmem:[#allocation2 + $0x40] sm:$0x8] %v366_v21  ;;  %v372_v25 = vsel %vm11390_vm6, 0, %v371_v23  ;;  %v375_v28 = vsel %vm11390_vm6, 0, %v374_v26 }
  0x36   : > { %370 = vst [vmem:[#allocation2 + $0x50] sm:$0x8] %v369_v22  ;;  %355 = vst [vmem:[#allocation2] sm:$0x8] %v354_v24  ;;  %v378_v29 = vsel %vm11390_vm6, 0, %v377_v27  ;;  %v381_v32 = vsel %vm11390_vm6, 0, %v380_v30 }
  0x37   : > { %373 = vst [vmem:[#allocation2 + $0x60] sm:$0x8] %v372_v25  ;;  %376 = vst [vmem:[#allocation2 + $0x70] sm:$0x8] %v375_v28  ;;  %v384_v33 = vsel %vm11390_vm6, 0, %v383_v31  ;;  %v387_v36 = vsel %vm11390_vm6, 0, %v386_v34 }
  0x38   : > { %379 = vst [vmem:[#allocation2 + $0x80] sm:$0x8] %v378_v29  ;;  %382 = vst [vmem:[#allocation2 + $0x90] sm:$0x8] %v381_v32  ;;  %v390_v37 = vsel %vm11390_vm6, 0, %v389_v35  ;;  %v393_v40 = vsel %vm11390_vm6, 0, %v392_v38 }
  0x39   : > { %385 = vst [vmem:[#allocation2 + $0xa0] sm:$0x8] %v384_v33  ;;  %388 = vst [vmem:[#allocation2 + $0xb0] sm:$0x8] %v387_v36  ;;  %v396_v41 = vsel %vm11390_vm6, 0, %v395_v39  ;;  %v399_v44 = vsel %vm11390_vm6, 0, %v398_v42 }
  0x3a   : > { %391 = vst [vmem:[#allocation2 + $0xc0] sm:$0x8] %v390_v37  ;;  %394 = vst [vmem:[#allocation2 + $0xd0] sm:$0x8] %v393_v40  ;;  %v402_v45 = vsel %vm11390_vm6, 0, %v401_v43  ;;  %v405_v48 = vsel %vm11390_vm6, 0, %v404_v46 }
  0x3b   : > { %397 = vst [vmem:[#allocation2 + $0xe0] sm:$0x8] %v396_v41  ;;  %400 = vst [vmem:[#allocation2 + $0xf0] sm:$0x8] %v399_v44  ;;  %v408_v49 = vsel %vm11352_vm4, 0, %v407_v47  ;;  %v423_v60 = vsel %vm11352_vm4, 0, %v422_v58 }
  0x3c   : > { %403 = vst [vmem:[#allocation2 + $0x100] sm:$0x8] %v402_v45  ;;  %406 = vst [vmem:[#allocation2 + $0x110] sm:$0x8] %v405_v48  ;;  %v425_v59 = vld [vmem:[#allocation2 + $0x6c] sm:$0x1] }
  0x3d   : > { %409 = vst [vmem:[#allocation2 + $0xc] sm:$0x1] %v408_v49  ;;  %415 = vst [vmem:[#allocation2 + $0x2c] sm:$0x1] %v414_v53  ;;  %v426_v61 = vsel %vm11352_vm4, 0, %v425_v59 }
  0x3e   : > { %418 = vst [vmem:[#allocation2 + $0x3c] sm:$0x1] %v417_v56  ;;  %421 = vst [vmem:[#allocation2 + $0x4c] sm:$0x1] %v420_v57  ;;  %v428_v62 = vld [vmem:[#allocation2 + $0x7c] sm:$0x1] }
  0x3f   : > { %v431_v63 = vld [vmem:[#allocation2 + $0x8c] sm:$0x1]  ;;  %424 = vst [vmem:[#allocation2 + $0x5c] sm:$0x1] %v423_v60  ;;  %427 = vst [vmem:[#allocation2 + $0x6c] sm:$0x1] %v426_v61 }
  0x40   : > { %v429_v0 = vsel %vm11352_vm4, 0, %v428_v62  ;;  %v432_v1 = vsel %vm11352_vm4, 0, %v431_v63  ;;  %v434_v3 = vld [vmem:[#allocation2 + $0x9c] sm:$0x1]  ;;  %v437_v4 = vld [vmem:[#allocation2 + $0xac] sm:$0x1] }
  0x41   : > { %430 = vst [vmem:[#allocation2 + $0x7c] sm:$0x1] %v429_v0  ;;  %433 = vst [vmem:[#allocation2 + $0x8c] sm:$0x1] %v432_v1  ;;  %v435_v5 = vsel %vm11352_vm4, 0, %v434_v3  ;;  %v438_v6 = vsel %vm11352_vm4, 0, %v437_v4 }
  0x42   : > { %v440_v7 = vld [vmem:[#allocation2 + $0xbc] sm:$0x1]  ;;  %v443_v8 = vld [vmem:[#allocation2 + $0xcc] sm:$0x1]  ;;  %436 = vst [vmem:[#allocation2 + $0x9c] sm:$0x1] %v435_v5 }
  0x43   : > { %439 = vst [vmem:[#allocation2 + $0xac] sm:$0x1] %v438_v6  ;;  %v441_v9 = vsel %vm11352_vm4, 0, %v440_v7  ;;  %v444_v10 = vsel %vm11352_vm4, 0, %v443_v8  ;;  %v446_v12 = vld [vmem:[#allocation2 + $0xdc] sm:$0x1] }
  0x44   : > { %v449_v13 = vld [vmem:[#allocation2 + $0xec] sm:$0x1]  ;;  %442 = vst [vmem:[#allocation2 + $0xbc] sm:$0x1] %v441_v9  ;;  %445 = vst [vmem:[#allocation2 + $0xcc] sm:$0x1] %v444_v10 }
  0x45   : > { %v447_v14 = vsel %vm11352_vm4, 0, %v446_v12  ;;  %v450_v15 = vsel %vm11352_vm4, 0, %v449_v13  ;;  %v452_v16 = vld [vmem:[#allocation2 + $0xfc] sm:$0x1]  ;;  %v455_v17 = vld [vmem:[#allocation2 + $0x10c] sm:$0x1] }
  0x46   : > { %448 = vst [vmem:[#allocation2 + $0xdc] sm:$0x1] %v447_v14  ;;  %451 = vst [vmem:[#allocation2 + $0xec] sm:$0x1] %v450_v15  ;;  %v453_v18 = vsel %vm11352_vm4, 0, %v452_v16  ;;  %v456_v19 = vsel %vm11352_vm4, 0, %v455_v17 }
  0x47   : > { %v458_v20 = vld [vmem:[#allocation2 + $0x11c] sm:$0x1]  ;;  %v533_v21 = vld [vmem:[#allocation4] sm:$0x8]  ;;  %454 = vst [vmem:[#allocation2 + $0xfc] sm:$0x1] %v453_v18 }
  0x48   : > { %457 = vst [vmem:[#allocation2 + $0x10c] sm:$0x1] %v456_v19  ;;  %v459_v22 = vsel %vm11352_vm4, 0, %v458_v20  ;;  %v534_v23 = vsel %vm11390_vm6, 4286578559, %v533_v21 }
  0x49   : > { %v536_v24 = vld [vmem:[#allocation4 + $0x10] sm:$0x8]  ;;  %460 = vst [vmem:[#allocation2 + $0x11c] sm:$0x1] %v459_v22  ;;  %535 = vst [vmem:[#allocation4] sm:$0x8] %v534_v23 }
  0x4a   : > { %v537_v25 = vsel %vm11390_vm6, 4286578559, %v536_v24  ;;  %v539_v26 = vld [vmem:[#allocation4 + $0x20] sm:$0x8]  ;;  %v542_v27 = vld [vmem:[#allocation4 + $0x30] sm:$0x8] }
  0x4b   : > { %538 = vst [vmem:[#allocation4 + $0x10] sm:$0x8] %v537_v25  ;;  %v540_v28 = vsel %vm11390_vm6, 4286578559, %v539_v26  ;;  %v543_v29 = vsel %vm11390_vm6, 4286578559, %v542_v27 }
  0x4c   : > { %v545_v30 = vld [vmem:[#allocation4 + $0x40] sm:$0x8]  ;;  %541 = vst [vmem:[#allocation4 + $0x20] sm:$0x8] %v540_v28  ;;  %544 = vst [vmem:[#allocation4 + $0x30] sm:$0x8] %v543_v29 }
  0x4d   : > { %v546_v31 = vsel %vm11390_vm6, 4286578559, %v545_v30  ;;  %v548_v32 = vld [vmem:[#allocation4 + $0x50] sm:$0x8]  ;;  %v551_v33 = vld [vmem:[#allocation4 + $0x60] sm:$0x8] }
  0x4e   : > { %547 = vst [vmem:[#allocation4 + $0x40] sm:$0x8] %v546_v31  ;;  %v549_v34 = vsel %vm11390_vm6, 4286578559, %v548_v32  ;;  %v552_v35 = vsel %vm11390_vm6, 4286578559, %v551_v33 }
  0x4f   : > { %v554_v36 = vld [vmem:[#allocation4 + $0x70] sm:$0x8]  ;;  %550 = vst [vmem:[#allocation4 + $0x50] sm:$0x8] %v549_v34  ;;  %553 = vst [vmem:[#allocation4 + $0x60] sm:$0x8] %v552_v35 }
  0x50   : > { %v555_v37 = vsel %vm11390_vm6, 4286578559, %v554_v36  ;;  %v557_v38 = vld [vmem:[#allocation4 + $0x80] sm:$0x8]  ;;  %v560_v39 = vld [vmem:[#allocation4 + $0x90] sm:$0x8] }
  0x51   : > { %556 = vst [vmem:[#allocation4 + $0x70] sm:$0x8] %v555_v37  ;;  %v558_v40 = vsel %vm11390_vm6, 4286578559, %v557_v38  ;;  %v561_v41 = vsel %vm11390_vm6, 4286578559, %v560_v39 }
  0x52   : > { %v563_v42 = vld [vmem:[#allocation4 + $0xa0] sm:$0x8]  ;;  %559 = vst [vmem:[#allocation4 + $0x80] sm:$0x8] %v558_v40  ;;  %562 = vst [vmem:[#allocation4 + $0x90] sm:$0x8] %v561_v41 }
  0x53   : > { %v564_v43 = vsel %vm11390_vm6, 4286578559, %v563_v42  ;;  %v566_v44 = vld [vmem:[#allocation4 + $0xb0] sm:$0x8]  ;;  %v569_v45 = vld [vmem:[#allocation4 + $0xc0] sm:$0x8] }
  0x54   : > { %565 = vst [vmem:[#allocation4 + $0xa0] sm:$0x8] %v564_v43  ;;  %v567_v46 = vsel %vm11390_vm6, 4286578559, %v566_v44  ;;  %v570_v47 = vsel %vm11390_vm6, 4286578559, %v569_v45 }
  0x55   : > { %v572_v48 = vld [vmem:[#allocation4 + $0xd0] sm:$0x8]  ;;  %568 = vst [vmem:[#allocation4 + $0xb0] sm:$0x8] %v567_v46  ;;  %571 = vst [vmem:[#allocation4 + $0xc0] sm:$0x8] %v570_v47 }
  0x56   : > { %v573_v49 = vsel %vm11390_vm6, 4286578559, %v572_v48  ;;  %v575_v50 = vld [vmem:[#allocation4 + $0xe0] sm:$0x8]  ;;  %v578_v51 = vld [vmem:[#allocation4 + $0xf0] sm:$0x8] }
  0x57   : > { %574 = vst [vmem:[#allocation4 + $0xd0] sm:$0x8] %v573_v49  ;;  %v576_v52 = vsel %vm11390_vm6, 4286578559, %v575_v50  ;;  %v579_v53 = vsel %vm11390_vm6, 4286578559, %v578_v51 }
  0x58   : > { %v581_v54 = vld [vmem:[#allocation4 + $0x100] sm:$0x8]  ;;  %577 = vst [vmem:[#allocation4 + $0xe0] sm:$0x8] %v576_v52  ;;  %580 = vst [vmem:[#allocation4 + $0xf0] sm:$0x8] %v579_v53 }
  0x59   : > { %v582_v55 = vsel %vm11390_vm6, 4286578559, %v581_v54  ;;  %v584_v56 = vld [vmem:[#allocation4 + $0x110] sm:$0x8]  ;;  %v587_v57 = vld [vmem:[#allocation4 + $0xc] sm:$0x1] }
  0x5a   : > { %583 = vst [vmem:[#allocation4 + $0x100] sm:$0x8] %v582_v55  ;;  %v585_v58 = vsel %vm11390_vm6, 4286578559, %v584_v56  ;;  %v588_v59 = vsel %vm11352_vm4, 4286578559, %v587_v57 }
  0x5b   : > { %v590_v60 = vld [vmem:[#allocation4 + $0x1c] sm:$0x1]  ;;  %586 = vst [vmem:[#allocation4 + $0x110] sm:$0x8] %v585_v58  ;;  %589 = vst [vmem:[#allocation4 + $0xc] sm:$0x1] %v588_v59 }
  0x5c   : > { %v591_v61 = vsel %vm11352_vm4, 4286578559, %v590_v60  ;;  %v593_v62 = vld [vmem:[#allocation4 + $0x2c] sm:$0x1]  ;;  %v596_v63 = vld [vmem:[#allocation4 + $0x3c] sm:$0x1] }
  0x5d   : > { %592 = vst [vmem:[#allocation4 + $0x1c] sm:$0x1] %v591_v61  ;;  %v594_v0 = vsel %vm11352_vm4, 4286578559, %v593_v62  ;;  %v597_v1 = vsel %vm11352_vm4, 4286578559, %v596_v63 }
  0x5e   : > { %v599_v11 = vld [vmem:[#allocation4 + $0x4c] sm:$0x1]  ;;  %595 = vst [vmem:[#allocation4 + $0x2c] sm:$0x1] %v594_v0  ;;  %598 = vst [vmem:[#allocation4 + $0x3c] sm:$0x1] %v597_v1 }
  0x5f   : > { %v600_v3 = vsel %vm11352_vm4, 4286578559, %v599_v11  ;;  %v602_v4 = vld [vmem:[#allocation4 + $0x5c] sm:$0x1]  ;;  %v605_v5 = vld [vmem:[#allocation4 + $0x6c] sm:$0x1] }
  0x60   : > { %601 = vst [vmem:[#allocation4 + $0x4c] sm:$0x1] %v600_v3  ;;  %v603_v6 = vsel %vm11352_vm4, 4286578559, %v602_v4  ;;  %v606_v7 = vsel %vm11352_vm4, 4286578559, %v605_v5 }
  0x61   : > { %v608_v8 = vld [vmem:[#allocation4 + $0x7c] sm:$0x1]  ;;  %604 = vst [vmem:[#allocation4 + $0x5c] sm:$0x1] %v603_v6  ;;  %607 = vst [vmem:[#allocation4 + $0x6c] sm:$0x1] %v606_v7 }
  0x62   : > { %v609_v9 = vsel %vm11352_vm4, 4286578559, %v608_v8  ;;  %v611_v10 = vld [vmem:[#allocation4 + $0x8c] sm:$0x1]  ;;  %v614_v12 = vld [vmem:[#allocation4 + $0x9c] sm:$0x1] }
  0x63   : > { %610 = vst [vmem:[#allocation4 + $0x7c] sm:$0x1] %v609_v9  ;;  %v612_v13 = vsel %vm11352_vm4, 4286578559, %v611_v10  ;;  %v615_v14 = vsel %vm11352_vm4, 4286578559, %v614_v12 }
  0x64   : > { %v617_v15 = vld [vmem:[#allocation4 + $0xac] sm:$0x1]  ;;  %613 = vst [vmem:[#allocation4 + $0x8c] sm:$0x1] %v612_v13  ;;  %616 = vst [vmem:[#allocation4 + $0x9c] sm:$0x1] %v615_v14 }
  0x65   : > { %v618_v16 = vsel %vm11352_vm4, 4286578559, %v617_v15  ;;  %v620_v17 = vld [vmem:[#allocation4 + $0xbc] sm:$0x1]  ;;  %v623_v18 = vld [vmem:[#allocation4 + $0xcc] sm:$0x1] }
  0x66   : > { %619 = vst [vmem:[#allocation4 + $0xac] sm:$0x1] %v618_v16  ;;  %v621_v19 = vsel %vm11352_vm4, 4286578559, %v620_v17  ;;  %v624_v20 = vsel %vm11352_vm4, 4286578559, %v623_v18 }
  0x67   : > { %v626_v21 = vld [vmem:[#allocation4 + $0xdc] sm:$0x1]  ;;  %622 = vst [vmem:[#allocation4 + $0xbc] sm:$0x1] %v621_v19  ;;  %625 = vst [vmem:[#allocation4 + $0xcc] sm:$0x1] %v624_v20 }
  0x68   : > { %v627_v22 = vsel %vm11352_vm4, 4286578559, %v626_v21  ;;  %v629_v23 = vld [vmem:[#allocation4 + $0xec] sm:$0x1]  ;;  %v632_v24 = vld [vmem:[#allocation4 + $0xfc] sm:$0x1] }
  0x69   : > { %628 = vst [vmem:[#allocation4 + $0xdc] sm:$0x1] %v627_v22  ;;  %v630_v25 = vsel %vm11352_vm4, 4286578559, %v629_v23  ;;  %v633_v26 = vsel %vm11352_vm4, 4286578559, %v632_v24 }
  0x6a   : > { %v635_v27 = vld [vmem:[#allocation4 + $0x10c] sm:$0x1]  ;;  %631 = vst [vmem:[#allocation4 + $0xec] sm:$0x1] %v630_v25  ;;  %634 = vst [vmem:[#allocation4 + $0xfc] sm:$0x1] %v633_v26 }
  0x6b   : > { %v636_v28 = vsel %vm11352_vm4, 4286578559, %v635_v27  ;;  %v638_v29 = vld [vmem:[#allocation4 + $0x11c] sm:$0x1] }
  0x6c   : > { %637 = vst [vmem:[#allocation4 + $0x10c] sm:$0x1] %v636_v28  ;;  %v639_v30 = vsel %vm11352_vm4, 4286578559, %v638_v29 }
  0x6d   : > { %640 = vst [vmem:[#allocation4 + $0x11c] sm:$0x1] %v639_v30 }
  0x6e LB: >> { %v668_v31 = vld [vmem:[%s16975_s1] sm:$0x3]  ;;  %vm741_vm7 = vcmask 1041408   ;;  %s11556_s17 = sshll.u32 %s11120_s29, 7  ;;  %s10153_s23 = sshll.u32 %s11120_s29, 6  ;;  %vm716_vm8 = vcmask 31744   ;;  %s11120_s29 = sphi %s11544_s29, %s646_s29  }
  0x6f   : >> { %10574 = vmatprep.subr.msk.bf16.mxu0 %vm741_vm7, %v668_v31  ;;  %10575 = vmatprep.subr.msk.bf16.mxu1 %vm741_vm7, %v668_v31  ;;  %v743_v2 = vsel %vm741_vm7, %v668_v31, 0  ;;  %s11560_s24 = scalar_lea.vmem %s11397_s27, %s10153_s23  ;;  %s11566_s25 = scalar_lea.vmem [#allocation4], %s11556_s17  ;;  %v11624_v56 = vld [vmem:[%s16976_s2] ss:$0 sm:$0xff]  ;;  %vm859_vm9 = vcmask 64512  }
  0x70   : >> { %10283 = vmatpush3.bf16.msra.mxu0 %v743_v2  ;;  %10473 = vmatpush3.bf16.msra.mxu1 %v743_v2  ;;  %v652_v32 = vld [vmem:[%s11560_s24] sm:$0xf]  ;;  %v653_v33 = vld [vmem:[%s11560_s24 + $0x4] sm:$0xf]  ;;  %v654_v37 = vld [vmem:[%s11560_s24 + $0x8] sm:$0xf] }
  0x71   : >> { %v660_v34 = vld [vmem:[%s11560_s24 + $0x20] sm:$0xf]  ;;  %v9277_v35 = vcombine.low %v652_v32, %v653_v33  ;;  %9347 = vst.msk [vmem:[%s11566_s25 + $0x14] sm:$0xf] %vm333_vm0, %v652_v32  ;;  %9348 = vst.msk [vmem:[%s11566_s25 + $0x18] sm:$0xf] %vm333_vm0, %v653_v33 }
  0x72   : >> { %v661_v36 = vld [vmem:[%s11560_s24 + $0x24] sm:$0xf]  ;;  %9355 = vst.msk [vmem:[%s11566_s25 + $0x54] sm:$0xf] %vm333_vm0, %v660_v34  ;;  %v655_v38 = vld [vmem:[%s11560_s24 + $0xc] sm:$0xf] }
  0x73   : >> { %v9281_v39 = vcombine.low %v660_v34, %v661_v36  ;;  %9356 = vst.msk [vmem:[%s11566_s25 + $0x58] sm:$0xf] %vm333_vm0, %v661_v36  ;;  %v9278_v40 = vcombine.low %v654_v37, %v655_v38  ;;  %9349 = vst.msk [vmem:[%s11566_s25 + $0x24] sm:$0xf] %vm333_vm0, %v654_v37  ;;  %v662_v41 = vld [vmem:[%s11560_s24 + $0x28] sm:$0xf]  ;;  %10284 = vmatprep.mubr.msk.bf16.mxu0 %vm716_vm8, %v9277_v35 }
  0x74   : >> { %9350 = vst.msk [vmem:[%s11566_s25 + $0x28] sm:$0xf] %vm333_vm0, %v655_v38  ;;  %v663_v42 = vld [vmem:[%s11560_s24 + $0x2c] sm:$0xf]  ;;  %v656_v43 = vld [vmem:[%s11560_s24 + $0x10] sm:$0xf] }
  0x75   : >> { %v9282_v44 = vcombine.low %v662_v41, %v663_v42  ;;  %9357 = vst.msk [vmem:[%s11566_s25 + $0x64] sm:$0xf] %vm333_vm0, %v662_v41  ;;  %9358 = vst.msk [vmem:[%s11566_s25 + $0x68] sm:$0xf] %vm333_vm0, %v663_v42  ;;  %v657_v45 = vld [vmem:[%s11560_s24 + $0x14] sm:$0xf]  ;;  %10292 = vmatprep.mubr.msk.bf16.mxu1 %vm716_vm8, %v9281_v39  ;;  %10285 = vmatmul.mubr.msk.bf16.vlgmr.msra.gmra.mrb[0].mxu0 %vm716_vm8, %v9278_v40 }
  0x76   : >> { %9351 = vst.msk [vmem:[%s11566_s25 + $0x34] sm:$0xf] %vm333_vm0, %v656_v43  ;;  %v658_v46 = vld [vmem:[%s11560_s24 + $0x18] sm:$0xf]  ;;  %v659_v47 = vld [vmem:[%s11560_s24 + $0x1c] sm:$0xf]  ;;  %v9279_v48 = vcombine.low %v656_v43, %v657_v45 }
  0x77   : >> { %9352 = vst.msk [vmem:[%s11566_s25 + $0x38] sm:$0xf] %vm333_vm0, %v657_v45  ;;  %9353 = vst.msk [vmem:[%s11566_s25 + $0x44] sm:$0xf] %vm333_vm0, %v658_v46  ;;  %v664_v49 = vld [vmem:[%s11560_s24 + $0x30] sm:$0xf]  ;;  %10293 = vmatmul.mubr.msk.bf16.vlgmr.msra.gmra.mrb[0].mxu1 %vm716_vm8, %v9282_v44  ;;  %v9280_v54 = vcombine.low %v658_v46, %v659_v47 }
  0x78   : >> { %9354 = vst.msk [vmem:[%s11566_s25 + $0x48] sm:$0xf] %vm333_vm0, %v659_v47  ;;  %v665_v50 = vld [vmem:[%s11560_s24 + $0x34] sm:$0xf]  ;;  %v666_v51 = vld [vmem:[%s11560_s24 + $0x38] sm:$0xf]  ;;  %10288 = vmatprep.mubr.msk.bf16.mxu0 %vm716_vm8, %v9279_v48 }
  0x79   : >> { %v9283_v52 = vcombine.low %v664_v49, %v665_v50  ;;  %9359 = vst.msk [vmem:[%s11566_s25 + $0x74] sm:$0xf] %vm333_vm0, %v664_v49  ;;  %9360 = vst.msk [vmem:[%s11566_s25 + $0x78] sm:$0xf] %vm333_vm0, %v665_v50  ;;  %v667_v53 = vld [vmem:[%s11560_s24 + $0x3c] sm:$0xf] }
  0x7a   : >> { %9361 = vst.msk [vmem:[%s11566_s25 + $0x84] sm:$0xf] %vm333_vm0, %v666_v51  ;;  %9362 = vst.msk [vmem:[%s11566_s25 + $0x88] sm:$0xf] %vm333_vm0, %v667_v53  ;;  %v9284_v55 = vcombine.low %v666_v51, %v667_v53  ;;  %s11636_s16 = scalar_lea.vmem [#allocation5], %s11556_s17  ;;  %s11128_s23 = smov 120  }
  0x7b   : >> { %10296 = vmatprep.mubr.msk.bf16.mxu1 %vm716_vm8, %v9283_v52  ;;  %s11129_s24 = smov 116   ;;  %s11715_s25 = scalar_lea.vmem [#allocation2], %s11556_s17 }
  0x7c   : >> { %s11724_s26 = scalar_lea.vmem [#allocation3], %s11556_s17  ;;  %s646_s29 = sadd.s32 1, %s11120_s29  }
  0x7d   : >> { %10289 = vmatmul.mubr.msk.bf16.gmra.mrb[4].mxu0 %vm716_vm8, %v9280_v54  ;;  %p643_p11 = scmp.ge.s32.totalorder %s646_s29, 2  }
  0x7e   : > { %s11787_s17 = smov (%p643_p11), 0  }
  0x7f   : >> { %10297 = vmatmul.mubr.msk.bf16.gmra.mrb[4].mxu1 %vm716_vm8, %v9284_v55 }
 0x148   : >> { %v10286_v57 = vpop.f32.mrb[0].mxu0 }
 0x149   : >> { %v788_v58 = vadd.f32 %v10286_v57, %v11624_v56  ;;  %v779_v60 = vpop.f32.mrb[1].mxu0 }
 0x14a   : >> { %v10294_v59 = vpop.f32.mrb[0].mxu1  ;;  %v780_v62 = vadd.f32 %v11624_v56, %v779_v60  ;;  %v10287_v0 = vpop.f32.mrb[2].mxu0 }
 0x14b   : >> { %v820_v61 = vadd.f32 %v10294_v59, %v11624_v56  ;;  %v811_v63 = vpop.f32.mrb[1].mxu1  ;;  %v844_v1 = vmax.f32 %v788_v58, 0.0  ;;  %v791_v3 = vadd.f32 %v10287_v0, %v11624_v56  ;;  %v782_v5 = vpop.f32.mrb[3].mxu0 }
 0x14c   : >> { %v812_v11 = vadd.f32 %v11624_v56, %v811_v63  ;;  %v10295_v4 = vpop.f32.mrb[2].mxu1  ;;  %v11631_v7 = vmax.f32 %v780_v62, 0.0  ;;  %v783_v9 = vadd.f32 %v11624_v56, %v782_v5 }
 0x14d   : >> { %v852_v6 = vmax.f32 %v820_v61, 0.0  ;;  %v823_v8 = vadd.f32 %v10295_v4, %v11624_v56  ;;  %v814_v10 = vpop.f32.mrb[3].mxu1  ;;  %862 = vst.msk [vmem:[%s11636_s16 + $0x10] sm:$0xff] %vm859_vm9, %v844_v1  ;;  %v845_v13 = vmax.f32 %v791_v3, 0.0  ;;  %v10156_v15 = vpack.c.bf16 %v844_v1, %v844_v1 }
 0x14e   : >> { %v850_v12 = vmax.f32 %v812_v11, 0.0  ;;  %v815_v14 = vadd.f32 %v11624_v56, %v814_v10  ;;  %860 = vst.msk [vmem:[%s11636_s16] sm:$0xff] %vm859_vm9, %v11631_v7  ;;  %v843_v17 = vmax.f32 %v783_v9, 0.0  ;;  %v10154_v45 = vpack.c.bf16 %v11631_v7, %v11631_v7 }
 0x14f   : >> { %870 = vst.msk [vmem:[%s11636_s16 + $0x50] sm:$0xff] %vm859_vm9, %v852_v6  ;;  %v853_v16 = vmax.f32 %v823_v8, 0.0  ;;  %v10164_v18 = vpack.c.bf16 %v852_v6, %v852_v6  ;;  %863 = vst.msk [vmem:[%s11636_s16 + $0x18] sm:$0xff] %vm859_vm9, %v845_v13  ;;  %929 = vrot.lane.b32.xlu1 %v10156_v15, %s11128_s23  ;;  %v10157_v21 = vpack.c.bf16 %v845_v13, %v845_v13 }
 0x150   : >> { %868 = vst.msk [vmem:[%s11636_s16 + $0x40] sm:$0xff] %vm859_vm9, %v850_v12  ;;  %v851_v19 = vmax.f32 %v815_v14, 0.0  ;;  %861 = vst.msk [vmem:[%s11636_s16 + $0x8] sm:$0xff] %vm859_vm9, %v843_v17  ;;  %v10290_v20 = vpop.f32.mrb[4].mxu0  ;;  %v10162_v46 = vpack.c.bf16 %v850_v12, %v850_v12  ;;  %v10155_v48 = vpack.c.bf16 %v843_v17, %v843_v17 }
 0x151   : >> { %871 = vst.msk [vmem:[%s11636_s16 + $0x58] sm:$0xff] %vm859_vm9, %v853_v16  ;;  %945 = vrot.lane.b32.xlu0 %v10164_v18, %s11128_s23  ;;  %v804_v22 = vadd.f32 %v10290_v20, %v11624_v56  ;;  %v795_v23 = vpop.f32.mrb[5].mxu0  ;;  %v10165_v38 = vpack.c.bf16 %v853_v16, %v853_v16 }
 0x152   : >> { %869 = vst.msk [vmem:[%s11636_s16 + $0x48] sm:$0xff] %vm859_vm9, %v851_v19  ;;  %v10298_v24 = vpop.f32.mrb[4].mxu1  ;;  %v796_v25 = vadd.f32 %v11624_v56, %v795_v23  ;;  %v10291_v26 = vpop.f32.mrb[6].mxu0  ;;  %v10163_v47 = vpack.c.bf16 %v851_v19, %v851_v19 }
 0x153   : >> { %v836_v27 = vadd.f32 %v10298_v24, %v11624_v56  ;;  %v827_v28 = vpop.f32.mrb[5].mxu1  ;;  %931 = vrot.lane.b32.xlu1 %v10157_v21, %s11128_s23  ;;  %v848_v29 = vmax.f32 %v804_v22, 0.0  ;;  %v807_v30 = vadd.f32 %v10291_v26, %v11624_v56  ;;  %v798_v31 = vpop.f32.mrb[7].mxu0 }
 0x154   : >> { %v828_v2 = vadd.f32 %v11624_v56, %v827_v28  ;;  %v10299_v32 = vpop.f32.mrb[6].mxu1  ;;  %v846_v33 = vmax.f32 %v796_v25, 0.0  ;;  %v799_v34 = vadd.f32 %v11624_v56, %v798_v31 }
 0x155   : >> { %997 = vrot.lane.b32.xlu0 %v10156_v15, %s11129_s24  ;;  %v856_v35 = vmax.f32 %v836_v27, 0.0  ;;  %v839_v36 = vadd.f32 %v10299_v32, %v11624_v56  ;;  %v830_v37 = vpop.f32.mrb[7].mxu1  ;;  %866 = vst.msk [vmem:[%s11636_s16 + $0x30] sm:$0xff] %vm859_vm9, %v848_v29  ;;  %v849_v39 = vmax.f32 %v807_v30, 0.0  ;;  %v10160_v50 = vpack.c.bf16 %v848_v29, %v848_v29 }
 0x156   : >> { %v854_v40 = vmax.f32 %v828_v2, 0.0  ;;  %v831_v41 = vadd.f32 %v11624_v56, %v830_v37  ;;  %864 = vst.msk [vmem:[%s11636_s16 + $0x20] sm:$0xff] %vm859_vm9, %v846_v33  ;;  %v847_v42 = vmax.f32 %v799_v34, 0.0  ;;  %v10158_v54 = vpack.c.bf16 %v846_v33, %v846_v33 }
 0x157   : >> { %874 = vst.msk [vmem:[%s11636_s16 + $0x70] sm:$0xff] %vm859_vm9, %v856_v35  ;;  %v857_v43 = vmax.f32 %v839_v36, 0.0  ;;  %947 = vrot.lane.b32.xlu1 %v10165_v38, %s11128_s23  ;;  %867 = vst.msk [vmem:[%s11636_s16 + $0x38] sm:$0xff] %vm859_vm9, %v849_v39  ;;  %v10161_v49 = vpack.c.bf16 %v849_v39, %v849_v39  ;;  %v10168_v52 = vpack.c.bf16 %v856_v35, %v856_v35 }
 0x158   : >> { %872 = vst.msk [vmem:[%s11636_s16 + $0x60] sm:$0xff] %vm859_vm9, %v854_v40  ;;  %v855_v44 = vmax.f32 %v831_v41, 0.0  ;;  %865 = vst.msk [vmem:[%s11636_s16 + $0x28] sm:$0xff] %vm859_vm9, %v847_v42  ;;  %v10159_v53 = vpack.c.bf16 %v847_v42, %v847_v42  ;;  %v10166_v56 = vpack.c.bf16 %v854_v40, %v854_v40 }
 0x159   : >> { %1013 = vrot.lane.b32.xlu0 %v10164_v18, %s11129_s24  ;;  %875 = vst.msk [vmem:[%s11636_s16 + $0x78] sm:$0xff] %vm859_vm9, %v857_v43  ;;  %v10169_v51 = vpack.c.bf16 %v857_v43, %v857_v43 }
 0x15a   : >> { %873 = vst.msk [vmem:[%s11636_s16 + $0x68] sm:$0xff] %vm859_vm9, %v855_v44  ;;  %v10167_v55 = vpack.c.bf16 %v855_v44, %v855_v44 }
 0x15b   : >> { %999 = vrot.lane.b32.xlu1 %v10157_v21, %s11129_s24 }
 0x15d   : >> { %925 = vrot.lane.b32.xlu0 %v10154_v45, %s11128_s23 }
 0x15f   : >> { %1015 = vrot.lane.b32.xlu1 %v10165_v38, %s11129_s24 }
 0x161   : >> { %941 = vrot.lane.b32.xlu0 %v10162_v46, %s11128_s23 }
 0x163   : >> { %943 = vrot.lane.b32.xlu1 %v10163_v47, %s11128_s23 }
 0x165   : >> { %993 = vrot.lane.b32.xlu0 %v10154_v45, %s11129_s24 }
 0x167   : >> { %995 = vrot.lane.b32.xlu1 %v10155_v48, %s11129_s24 }
 0x169   : >> { %1009 = vrot.lane.b32.xlu0 %v10162_v46, %s11129_s24 }
 0x16b   : >> { %1011 = vrot.lane.b32.xlu1 %v10163_v47, %s11129_s24 }
 0x16d   : >> { %927 = vrot.lane.b32.xlu0 %v10155_v48, %s11128_s23 }
 0x16f   : >> { %939 = vrot.lane.b32.xlu1 %v10161_v49, %s11128_s23 }
 0x171   : >> { %937 = vrot.lane.b32.xlu0 %v10160_v50, %s11128_s23 }
 0x173   : >> { %955 = vrot.lane.b32.xlu1 %v10169_v51, %s11128_s23 }
 0x175   : >> { %953 = vrot.lane.b32.xlu0 %v10168_v52, %s11128_s23 }
 0x177   : >> { %1007 = vrot.lane.b32.xlu1 %v10161_v49, %s11129_s24 }
 0x179   : >> { %1005 = vrot.lane.b32.xlu0 %v10160_v50, %s11129_s24 }
 0x17b   : >> { %935 = vrot.lane.b32.xlu1 %v10159_v53, %s11128_s23 }
 0x17d   : >> { %933 = vrot.lane.b32.xlu0 %v10158_v54, %s11128_s23 }
 0x17f   : >> { %951 = vrot.lane.b32.xlu1 %v10167_v55, %s11128_s23 }
 0x181   : >> { %949 = vrot.lane.b32.xlu0 %v10166_v56, %s11128_s23 }
 0x183   : >> { %1003 = vrot.lane.b32.xlu1 %v10159_v53, %s11129_s24 }
 0x185   : >> { %1001 = vrot.lane.b32.xlu0 %v10158_v54, %s11129_s24 }
 0x187   : >> { %1019 = vrot.lane.b32.xlu1 %v10167_v55, %s11129_s24 }
 0x189   : >> { %1017 = vrot.lane.b32.xlu0 %v10166_v56, %s11129_s24 }
 0x18b   : >> { %1023 = vrot.lane.b32.xlu1 %v10169_v51, %s11129_s24 }
 0x18d   : >> { %1021 = vrot.lane.b32.xlu0 %v10168_v52, %s11129_s24 }
 0x1c1   : >> { %v930_v57 = vpop.permute.xlu1 %929 }
 0x1c2   : >> { %9313 = vst.msk [vmem:[%s11715_s25 + $0x24] sm:$0xf] %vm333_vm0, %v930_v57 }
 0x1c3   : >> { %v946_v58 = vpop.permute.xlu0 %945 }
 0x1c4   : >> { %9321 = vst.msk [vmem:[%s11715_s25 + $0x64] sm:$0xf] %vm333_vm0, %v946_v58 }
 0x1c5   : >> { %v932_v59 = vpop.permute.xlu1 %931 }
 0x1c6   : >> { %9314 = vst.msk [vmem:[%s11715_s25 + $0x28] sm:$0xf] %vm333_vm0, %v932_v59 }
 0x1c7   : >> { %v998_v60 = vpop.permute.xlu0 %997 }
 0x1c8   : >> { %9331 = vst.msk [vmem:[%s11724_s26 + $0x34] sm:$0xf] %vm333_vm0, %v998_v60 }
 0x1c9   : >> { %v948_v61 = vpop.permute.xlu1 %947 }
 0x1ca   : >> { %9322 = vst.msk [vmem:[%s11715_s25 + $0x68] sm:$0xf] %vm333_vm0, %v948_v61 }
 0x1cb   : >> { %v1014_v62 = vpop.permute.xlu0 %1013 }
 0x1cc   : >> { %9339 = vst.msk [vmem:[%s11724_s26 + $0x74] sm:$0xf] %vm333_vm0, %v1014_v62 }
 0x1cd   : >> { %v1000_v63 = vpop.permute.xlu1 %999 }
 0x1ce   : >> { %9332 = vst.msk [vmem:[%s11724_s26 + $0x38] sm:$0xf] %vm333_vm0, %v1000_v63 }
 0x1cf   : >> { %v926_v0 = vpop.permute.xlu0 %925 }
 0x1d0   : >> { %9311 = vst.msk [vmem:[%s11715_s25 + $0x14] sm:$0xf] %vm333_vm0, %v926_v0 }
 0x1d1   : >> { %v1016_v1 = vpop.permute.xlu1 %1015 }
 0x1d2   : >> { %9340 = vst.msk [vmem:[%s11724_s26 + $0x78] sm:$0xf] %vm333_vm0, %v1016_v1 }
 0x1d3   : >> { %v942_v11 = vpop.permute.xlu0 %941 }
 0x1d4   : >> { %9319 = vst.msk [vmem:[%s11715_s25 + $0x54] sm:$0xf] %vm333_vm0, %v942_v11 }
 0x1d5   : >> { %v944_v3 = vpop.permute.xlu1 %943 }
 0x1d6   : >> { %9320 = vst.msk [vmem:[%s11715_s25 + $0x58] sm:$0xf] %vm333_vm0, %v944_v3 }
 0x1d7   : >> { %v994_v4 = vpop.permute.xlu0 %993 }
 0x1d8   : >> { %9329 = vst.msk [vmem:[%s11724_s26 + $0x24] sm:$0xf] %vm333_vm0, %v994_v4 }
 0x1d9   : >> { %v996_v5 = vpop.permute.xlu1 %995 }
 0x1da   : >> { %9330 = vst.msk [vmem:[%s11724_s26 + $0x28] sm:$0xf] %vm333_vm0, %v996_v5 }
 0x1db   : >> { %v1010_v6 = vpop.permute.xlu0 %1009 }
 0x1dc   : >> { %9337 = vst.msk [vmem:[%s11724_s26 + $0x64] sm:$0xf] %vm333_vm0, %v1010_v6 }
 0x1dd   : >> { %v1012_v7 = vpop.permute.xlu1 %1011 }
 0x1de   : >> { %9338 = vst.msk [vmem:[%s11724_s26 + $0x68] sm:$0xf] %vm333_vm0, %v1012_v7 }
 0x1df   : >> { %v928_v8 = vpop.permute.xlu0 %927 }
 0x1e0   : >> { %9312 = vst.msk [vmem:[%s11715_s25 + $0x18] sm:$0xf] %vm333_vm0, %v928_v8 }
 0x1e1   : >> { %v940_v9 = vpop.permute.xlu1 %939 }
 0x1e2   : >> { %9318 = vst.msk [vmem:[%s11715_s25 + $0x48] sm:$0xf] %vm333_vm0, %v940_v9 }
 0x1e3   : >> { %v938_v10 = vpop.permute.xlu0 %937 }
 0x1e4   : >> { %9317 = vst.msk [vmem:[%s11715_s25 + $0x44] sm:$0xf] %vm333_vm0, %v938_v10 }
 0x1e5   : >> { %v956_v12 = vpop.permute.xlu1 %955 }
 0x1e6   : >> { %9326 = vst.msk [vmem:[%s11715_s25 + $0x88] sm:$0xf] %vm333_vm0, %v956_v12 }
 0x1e7   : >> { %v954_v13 = vpop.permute.xlu0 %953 }
 0x1e8   : >> { %9325 = vst.msk [vmem:[%s11715_s25 + $0x84] sm:$0xf] %vm333_vm0, %v954_v13 }
 0x1e9   : >> { %v1008_v14 = vpop.permute.xlu1 %1007 }
 0x1ea   : >> { %9336 = vst.msk [vmem:[%s11724_s26 + $0x58] sm:$0xf] %vm333_vm0, %v1008_v14 }
 0x1eb   : >> { %v1006_v15 = vpop.permute.xlu0 %1005 }
 0x1ec   : >> { %9335 = vst.msk [vmem:[%s11724_s26 + $0x54] sm:$0xf] %vm333_vm0, %v1006_v15 }
 0x1ed   : >> { %v936_v16 = vpop.permute.xlu1 %935 }
 0x1ee   : >> { %9316 = vst.msk [vmem:[%s11715_s25 + $0x38] sm:$0xf] %vm333_vm0, %v936_v16 }
 0x1ef   : >> { %v934_v17 = vpop.permute.xlu0 %933 }
 0x1f0   : >> { %9315 = vst.msk [vmem:[%s11715_s25 + $0x34] sm:$0xf] %vm333_vm0, %v934_v17 }
 0x1f1   : >> { %v952_v18 = vpop.permute.xlu1 %951 }
 0x1f2   : >> { %9324 = vst.msk [vmem:[%s11715_s25 + $0x78] sm:$0xf] %vm333_vm0, %v952_v18 }
 0x1f3   : >> { %v950_v19 = vpop.permute.xlu0 %949 }
 0x1f4   : >> { %9323 = vst.msk [vmem:[%s11715_s25 + $0x74] sm:$0xf] %vm333_vm0, %v950_v19 }
 0x1f5   : >> { %v1004_v20 = vpop.permute.xlu1 %1003 }
 0x1f6   : >> { %9334 = vst.msk [vmem:[%s11724_s26 + $0x48] sm:$0xf] %vm333_vm0, %v1004_v20 }
 0x1f7   : >> { %v1002_v21 = vpop.permute.xlu0 %1001 }
 0x1f8   : >> { %9333 = vst.msk [vmem:[%s11724_s26 + $0x44] sm:$0xf] %vm333_vm0, %v1002_v21 }
 0x1f9   : >> { %v1020_v22 = vpop.permute.xlu1 %1019 }
 0x1fa   : >> { %9342 = vst.msk [vmem:[%s11724_s26 + $0x88] sm:$0xf] %vm333_vm0, %v1020_v22  ;;  %645 = sbr.rel (!%p643_p11) target bundleno = 110 (0x6e), region = 126 }
 0x1fb   : >> { %v1018_v23 = vpop.permute.xlu0 %1017 }
 0x1fc   : >> { %9341 = vst.msk [vmem:[%s11724_s26 + $0x84] sm:$0xf] %vm333_vm0, %v1018_v23 }
 0x1fd   : >> { %v1024_v24 = vpop.permute.xlu1 %1023 }
 0x1fe   : >> { %9344 = vst.msk [vmem:[%s11724_s26 + $0x98] sm:$0xf] %vm333_vm0, %v1024_v24 }
 0x1ff   : >> { %v1022_v25 = vpop.permute.xlu0 %1021 }
 0x200   : >> { %9343 = vst.msk [vmem:[%s11724_s26 + $0x94] sm:$0xf] %vm333_vm0, %v1022_v25 }
 0x201 LB: >> { %s11793_s14 = sshll.u32 %s11124_s17, 7  ;;  %s11130_s27 = smov 4   ;;  %vm1297_vm10 = vcmask 1042432   ;;  %vm2044_vm11 = vcmask 1045504   ;;  %vm3058_vm12 = vsmask.f32 7424  ;;  %s11124_s17 = sphi %s11787_s17, %s1083_s17  }
 0x202   : >> { %s11796_s16 = scalar_lea.vmem [#allocation2], %s11793_s14  ;;  %s11131_s29 = smov 8   ;;  %vm1430_vm13 = vsmask.f32 4352  ;;  %vm3267_vm14 = vsmask.f32 2304 }
 0x203   : >> { %v11799_v26 = vld [vmem:[%s11796_s16 + $0x24] sm:$0xf]  ;;  %v11802_v27 = vld [vmem:[%s11796_s16 + $0x28] sm:$0xf]  ;;  %v11815_v31 = vld [vmem:[%s11796_s16 + $0x34] sm:$0xf] }
 0x204   : >> { %17129 = vst [vmem:[#allocation9_spill] sm:$0xff] %v11799_v26  ;;  %17130 = vst [vmem:[#allocation10_spill] sm:$0xff] %v11802_v27  ;;  %v11805_v28 = vld [vmem:[%s11796_s16 + $0x4] sm:$0xf]  ;;  %v11809_v29 = vcombine.low %v11799_v26, %v11802_v27  ;;  %v11812_v30 = vld [vmem:[%s11796_s16 + $0x8] sm:$0xf] }
 0x205   : >> { %17131 = vst [vmem:[#allocation11_spill] sm:$0xff] %v11805_v28  ;;  %17132 = vst [vmem:[#allocation12_spill] sm:$0xff] %v11815_v31  ;;  %v11818_v2 = vld [vmem:[%s11796_s16 + $0x38] sm:$0xf]  ;;  %v11822_v32 = vcombine.low %v11805_v28, %v11812_v30  ;;  %v11829_v34 = vld [vmem:[%s11796_s16 + $0x14] sm:$0xf] }
 0x206   : >> { %17133 = vst [vmem:[#allocation13_spill] sm:$0xff] %v11818_v2  ;;  %v11826_v33 = vcombine.low %v11815_v31, %v11818_v2  ;;  %v11832_v35 = vld [vmem:[%s11796_s16 + $0x18] sm:$0xf]  ;;  %v1105_v36 = vld [vmem:[%s11796_s16 + $0x54] sm:$0xf]  ;;  %v1210_v37 = vshrl.u32 %v11809_v29, 16 }
 0x207   : >> { %17134 = vst [vmem:[#allocation14_spill] sm:$0xff] %v11832_v35  ;;  %v1213_v38 = vshll.u32 %v11809_v29, 16  ;;  %v11839_v39 = vcombine.low %v11829_v34, %v11832_v35  ;;  %v11842_v40 = vld [vmem:[%s11796_s16 + $0x58] sm:$0xf]  ;;  %v11845_v41 = vld [vmem:[%s11796_s16 + $0x44] sm:$0xf] }
 0x208   : >> { %17135 = vst [vmem:[#allocation15_spill] sm:$0xff] %v11842_v40  ;;  %17136 = vst [vmem:[#allocation16_spill] sm:$0xff] %v11845_v41  ;;  %v1194_v42 = vshrl.u32 %v11822_v32, 16  ;;  %v1197_v43 = vshll.u32 %v11822_v32, 16  ;;  %v1218_v44 = vshrl.u32 %v11826_v33, 16  ;;  %v1221_v45 = vshll.u32 %v11826_v33, 16 }
 0x209   : >> { %v11852_v46 = vld [vmem:[%s11796_s16 + $0x48] sm:$0xf]  ;;  %v1212_v47 = vrot.slane %v1210_v37, 4  ;;  %v1215_v48 = vrot.slane %v1213_v38, 5  ;;  %v1202_v49 = vshrl.u32 %v11839_v39, 16  ;;  %v1205_v50 = vshll.u32 %v11839_v39, 16 }
 0x20a   : >> { %17137 = vst [vmem:[#allocation17_spill] sm:$0xff] %v11852_v46  ;;  %v1111_v51 = vld [vmem:[%s11796_s16 + $0x74] sm:$0xf]  ;;  %v1196_v52 = vrot.slane %v1194_v42, 4  ;;  %v1199_v53 = vrot.slane %v1197_v43, 5  ;;  %v1220_v54 = vrot.slane %v1218_v44, 4  ;;  %v11861_v60 = vcombine.low %v1105_v36, %v11842_v40 }
 0x20b   : >> { %v1223_v55 = vrot.slane %v1221_v45, 5  ;;  %v11858_v56 = vld [vmem:[%s11796_s16 + $0x78] sm:$0xf]  ;;  %v1216_v57 = vor.u32 %v1215_v48, %v1212_v47  ;;  %v1204_v58 = vrot.slane %v1202_v49, 4  ;;  %v1207_v59 = vrot.slane %v1205_v50, 5  ;;  %s12066_s23 = scalar_lea.vmem [#allocation3], %s11793_s14 }
 0x20c   : >> { %17138 = vst [vmem:[#allocation18_spill] sm:$0xff] %v11858_v56  ;;  %v11864_v61 = vld [vmem:[%s11796_s16 + $0x64] sm:$0xf]  ;;  %v11867_v62 = vld [vmem:[%s11796_s16 + $0x68] sm:$0xf]  ;;  %v1200_v63 = vor.u32 %v1199_v53, %v1196_v52  ;;  %v11871_v1 = vcombine.low %v11845_v41, %v11852_v46  ;;  %v11874_v11 = vcombine.low %v1111_v51, %v11858_v56  ;;  %v1234_v4 = vshrl.u32 %v11861_v60, 16 }
 0x20d   : >> { %17139 = vst [vmem:[#allocation19_spill] sm:$0xff] %v11864_v61  ;;  %17140 = vst [vmem:[#allocation20_spill] sm:$0xff] %v11867_v62  ;;  %v1224_v0 = vor.u32 %v1223_v55, %v1220_v54  ;;  %1261 = vrot.lane.b32.xlu1 %v1216_v57, %s11130_s27  ;;  %v1208_v3 = vor.u32 %v1207_v59, %v1204_v58  ;;  %v1237_v5 = vshll.u32 %v11861_v60, 16  ;;  %v10668_v24 = vld [vmem:[%s11796_s16 + $0xc] ss:$0 sps:$4 sm:$0x11]  }
 0x20e   : >> { %v11881_v6 = vcombine.low %v11864_v61, %v11867_v62  ;;  %1257 = vrot.lane.b32.xlu0 %v1200_v63, %s11130_s27  ;;  %v1226_v7 = vshrl.u32 %v11871_v1, 16  ;;  %v1229_v8 = vshll.u32 %v11871_v1, 16  ;;  %v1250_v9 = vshrl.u32 %v11874_v11, 16  ;;  %v10669_v42 = vld [vmem:[%s11796_s16 + $0x1c] ss:$0 sps:$4 sm:$0x11]  }
 0x20f   : >> { %v1253_v10 = vshll.u32 %v11874_v11, 16  ;;  %v1236_v12 = vrot.slane %v1234_v4, 4  ;;  %v1239_v13 = vrot.slane %v1237_v5, 5  ;;  %v1298_v37 = vrot.slane %v11822_v32, 5  ;;  %v11922_v59 = vld [vmem:[%s11796_s16 + $0x28] sm:$0xf] }
 0x210   : >> { %v1242_v14 = vshrl.u32 %v11881_v6, 16  ;;  %v1245_v15 = vshll.u32 %v11881_v6, 16  ;;  %v1228_v16 = vrot.slane %v1226_v7, 4  ;;  %v1231_v17 = vrot.slane %v1229_v8, 5  ;;  %17142 = vst [vmem:[#allocation22_spill] sm:$0xff] %v11922_v59  ;;  %s11132_s26 = smov 12  }
 0x211   : >> { %1263 = vrot.lane.b32.xlu1 %v1224_v0, %s11130_s27  ;;  %v1240_v18 = vor.u32 %v1239_v13, %v1236_v12  ;;  %v1252_v19 = vrot.slane %v1250_v9, 4  ;;  %v1255_v20 = vrot.slane %v1253_v10, 5  ;;  %v1299_v38 = vrot.slane %v10668_v24, 5  ;;  %v10670_v47 = vld [vmem:[%s11796_s16 + $0x2c] ss:$0 sps:$4 sm:$0x11]  }
 0x212   : >> { %1259 = vrot.lane.b32.xlu0 %v1208_v3, %s11130_s27  ;;  %v1232_v21 = vor.u32 %v1231_v17, %v1228_v16  ;;  %v1244_v22 = vrot.slane %v1242_v14, 4  ;;  %v1247_v23 = vrot.slane %v1245_v15, 5  ;;  %v1301_v44 = vrot.slane %v11839_v39, 5  ;;  %v10671_v50 = vld [vmem:[%s11796_s16 + $0x3c] ss:$0 sps:$4 sm:$0x11]  }
 0x213   : >> { %v1256_v25 = vor.u32 %v1255_v20, %v1252_v19  ;;  %v1300_v43 = vsel %vm1297_vm10, %v1298_v37, %v1299_v38  ;;  %v1302_v45 = vrot.slane %v10669_v42, 5  ;;  %v1304_v48 = vrot.slane %v11809_v29, 5  ;;  %v10672_v51 = vld [vmem:[%s11796_s16 + $0x4c] ss:$0 sps:$4 sm:$0x11]   ;;  %s15926_s24 = scalar_lea.vmem [#allocation4], %s11793_s14 }
 0x214   : >> { %v1248_v36 = vor.u32 %v1247_v23, %v1244_v22  ;;  %v1305_v49 = vrot.slane %v10670_v47, 5  ;;  %v1307_v52 = vrot.slane %v11826_v33, 5  ;;  %v1308_v53 = vrot.slane %v10671_v50, 5  ;;  %v10673_v29 = vld [vmem:[%s11796_s16 + $0x5c] ss:$0 sps:$4 sm:$0x11]  }
 0x215   : >> { %1267 = vrot.lane.b32.xlu1 %v1240_v18, %s11130_s27  ;;  %v1303_v32 = vsel %vm1297_vm10, %v1301_v44, %v1302_v45  ;;  %v1310_v55 = vrot.slane %v11871_v1, 5  ;;  %v1311_v57 = vrot.slane %v10672_v51, 5  ;;  %v1313_v58 = vrot.slane %v11861_v60, 5  ;;  %v11919_v33 = vld [vmem:[%s11796_s16 + $0x24] sm:$0xf]  ;;  %s1083_s17 = sadd.s32 1, %s11124_s17  }
 0x216   : >> { %1265 = vrot.lane.b32.xlu0 %v1232_v21, %s11130_s27  ;;  %v1306_v39 = vsel %vm1297_vm10, %v1304_v48, %v1305_v49  ;;  %v1309_v54 = vsel %vm1297_vm10, %v1307_v52, %v1308_v53  ;;  %17141 = vst [vmem:[#allocation21_spill] sm:$0xff] %v11919_v33  ;;  %v1314_v63 = vrot.slane %v10673_v29, 5  ;;  %v10674_v0 = vld [vmem:[%s11796_s16 + $0x6c] ss:$0 sps:$4 sm:$0x11]   ;;  %v11936_v60 = vcombine.low %v11919_v33, %v11922_v59  ;;  %p1080_p12 = scmp.ge.s32.totalorder %s1083_s17, 2  }
 0x217   : >> { %v1312_v3 = vsel %vm1297_vm10, %v1310_v55, %v1311_v57  ;;  %v11929_v1 = vld [vmem:[%s11796_s16 + $0x14] sm:$0xf]  ;;  %v11932_v4 = vld [vmem:[%s11796_s16 + $0x18] sm:$0xf]  ;;  %v9411_v5 = vld [vmem:[%s11796_s16 + $0x44] sm:$0xf] }
 0x218   : >> { %17143 = vst [vmem:[#allocation23_spill] sm:$0xff] %v11929_v1  ;;  %17144 = vst [vmem:[#allocation24_spill] sm:$0xff] %v11932_v4  ;;  %v11942_v7 = vcombine.low %v11929_v1, %v11932_v4  ;;  %v11945_v8 = vld [vmem:[%s11796_s16 + $0x48] sm:$0xf]  ;;  %v9408_v9 = vld [vmem:[%s11796_s16 + $0x34] sm:$0xf]  ;;  %v1315_v12 = vsel %vm1297_vm10, %v1313_v58, %v1314_v63 }
 0x219   : >> { %1271 = vrot.lane.b32.xlu1 %v1256_v25, %s11130_s27  ;;  %17145 = vst [vmem:[#allocation25_spill] sm:$0xff] %v11945_v8  ;;  %v11949_v10 = vld [vmem:[%s11796_s16 + $0x38] sm:$0xf]  ;;  %v1316_v13 = vrot.slane %v11881_v6, 5  ;;  %v1317_v14 = vrot.slane %v10674_v0, 5  ;;  %v1668_v16 = vshrl.u32 %v11936_v60, 16  ;;  %v11957_v17 = vcombine.low %v9411_v5, %v11945_v8 }
 0x21a   : >> { %1269 = vrot.lane.b32.xlu0 %v1248_v36, %s11130_s27  ;;  %17146 = vst [vmem:[#allocation26_spill] sm:$0xff] %v11949_v10  ;;  %v10675_v15 = vld [vmem:[%s11796_s16 + $0x7c] ss:$0 sps:$4 sm:$0x11]   ;;  %v11960_v18 = vcombine.low %v9408_v9, %v11949_v10  ;;  %v1671_v19 = vshll.u32 %v11936_v60, 16  ;;  %v1660_v20 = vshrl.u32 %v11942_v7, 16 }
 0x21b   : >> { %v1663_v6 = vshll.u32 %v11942_v7, 16  ;;  %v1318_v21 = vsel %vm1297_vm10, %v1316_v13, %v1317_v14  ;;  %v1319_v22 = vrot.slane %v11874_v11, 5  ;;  %v1320_v23 = vrot.slane %v10675_v15, 5  ;;  %v9417_v24 = vld [vmem:[%s11796_s16 + $0x64] sm:$0xf]  ;;  %s17588_s28 = sand.u32 (%p1080_p12), 1, %s11108_s10  }
 0x21c   : >> { %v11971_v25 = vld [vmem:[%s11796_s16 + $0x68] sm:$0xf]  ;;  %v1670_v36 = vrot.slane %v1668_v16, 4  ;;  %v11975_v38 = vld [vmem:[%s11796_s16 + $0x58] sm:$0xf]  ;;  %v1684_v42 = vshrl.u32 %v11957_v17, 16 }
 0x21d   : >> { %1324 = vrot.lane.b32.xlu1 %v1300_v43, %s11131_s29  ;;  %17147 = vst [vmem:[#allocation27_spill] sm:$0xff] %v11971_v25  ;;  %17148 = vst [vmem:[#allocation28_spill] sm:$0xff] %v11975_v38  ;;  %v1687_v43 = vshll.u32 %v11957_v17, 16  ;;  %v1679_v11 = vshll.u32 %v11960_v18, 16  ;;  %v1673_v45 = vrot.slane %v1671_v19, 5  ;;  %v1662_v47 = vrot.slane %v1660_v20, 4 }
 0x21e   : >> { %1322 = vrot.lane.b32.xlu0 %v1298_v37, %s11131_s29  ;;  %v9414_v37 = vld [vmem:[%s11796_s16 + $0x54] sm:$0xf]  ;;  %v1321_v49 = vsel %vm1297_vm10, %v1319_v22, %v1320_v23  ;;  %v9423_v51 = vld [vmem:[%s11796_s16 + $0x84] sm:$0xf]  ;;  %v11996_v53 = vld [vmem:[%s11796_s16 + $0x78] sm:$0xf] }
 0x21f   : >> { %v11988_v50 = vcombine.low %v9414_v37, %v11975_v38  ;;  %17150 = vst [vmem:[#allocation30_spill] sm:$0xff] %v11996_v53  ;;  %v1686_v29 = vrot.slane %v1684_v42, 4  ;;  %v1681_v57 = vrot.slane %v1679_v11, 5  ;;  %v12188_v33 = vld [vmem:[%s12066_s23 + $0x18] sm:$0xf]  ;;  %vm2019_vm15 = vcmask 97280  }
 0x220   : >> { %17155 = vst [vmem:[#allocation34_spill] sm:$0xff] %v12188_v33  ;;  %v12202_v1 = vld [vmem:[%s12066_s23 + $0x14] sm:$0xf]  ;;  %v12339_v35 = vld [vmem:[%s12066_s23 + $0x58] sm:$0xf]  ;;  %vm3581_vm0 = vcmask 130048  }
 0x221   : >> { %1328 = vrot.lane.b32.xlu1 %v1303_v32, %s11131_s29  ;;  %v1665_v32 = vrot.slane %v1663_v6, 5  ;;  %v1692_v9 = vshrl.u32 %v11988_v50, 16  ;;  %17157 = vst [vmem:[#allocation36_spill] sm:$0xff] %v12202_v1  ;;  %v12348_v40 = vld [vmem:[%s11796_s16 + $0x10] sm:$0x8]  ;;  %vm4404_vm1 = vcmask 162816  }
 0x222   : >> { %1326 = vrot.lane.b32.xlu0 %v1301_v44, %s11131_s29  ;;  %v1676_v44 = vshrl.u32 %v11960_v18, 16  ;;  %v12371_v62 = vld [vmem:[%s11796_s16 + $0x30] sm:$0x8]  ;;  %v12423_v8 = vld [vmem:[%s12066_s23 + $0x64] sm:$0xf]  ;;  %vm3633_vm2 = vcmask 1044480  }
 0x223   : >> { %v1666_v5 = vor.u32 %v1665_v32, %v1662_v47  ;;  %17170 = vst [vmem:[#allocation44_spill] sm:$0xff] %v12371_v62  ;;  %17181 = vst [vmem:[#allocation49_spill] sm:$0xff] %v12423_v8  ;;  %v12439_v10 = vld [vmem:[%s11796_s16 + $0x60] sm:$0x8]  ;;  %vm7616_vm4 = vcmask 1046532   ;;  %s16933_s17 = scalar_lea.sflag (%p1080_p12), [#allocation7], %s17588_s28 }
 0x224   : >> { %17183 = vst [vmem:[#allocation50_spill] sm:$0xff] %v12439_v10  ;;  %vm15971_vm5 = vmor %vm1297_vm10, %vm7616_vm4  ;;  %vm7381_vm6 = vsmask.f32 3328 }
 0x225   : >> { %1332 = vrot.lane.b32.xlu1 %v1306_v39, %s11131_s29  ;;  %v11992_v39 = vld [vmem:[%s11796_s16 + $0x88] sm:$0xf] }
 0x226   : >> { %1330 = vrot.lane.b32.xlu0 %v1304_v48, %s11131_s29  ;;  %v11983_v48 = vcombine.low %v9417_v24, %v11971_v25  ;;  %17149 = vst [vmem:[#allocation29_spill] sm:$0xff] %v11992_v39 }
 0x228   : >> { %v1700_v63 = vshrl.u32 %v11983_v48, 16  ;;  %v1703_v0 = vshll.u32 %v11983_v48, 16 }
 0x229   : >> { %1336 = vrot.lane.b32.xlu1 %v1309_v54, %s11131_s29  ;;  %v1689_v54 = vrot.slane %v1687_v43, 5  ;;  %v10684_v43 = vld [vmem:[%s11796_s16 + $0x1c] ss:$0 sps:$4 sm:$0x11]  }
 0x22a   : >> { %1334 = vrot.lane.b32.xlu0 %v1307_v52, %s11131_s29  ;;  %v9420_v52 = vld [vmem:[%s11796_s16 + $0x74] sm:$0xf]  ;;  %v1702_v16 = vrot.slane %v1700_v63, 4  ;;  %v1705_v19 = vrot.slane %v1703_v0, 5  ;;  %v1769_v63 = vrot.slane %v11960_v18, 5 }
 0x22b   : >> { %v1690_v14 = vor.u32 %v1689_v54, %v1686_v29  ;;  %v1766_v54 = vrot.slane %v11936_v60, 5 }
 0x22d   : >> { %1340 = vrot.lane.b32.xlu1 %v1312_v3, %s11131_s29  ;;  %v12002_v3 = vcombine.low %v9423_v51, %v11992_v39  ;;  %v1764_v51 = vrot.slane %v10684_v43, 5  ;;  %v9492_v43 = vld [vmem:[%s11796_s16 + $0x44] sm:$0xf] }
 0x22e   : >> { %1338 = vrot.lane.b32.xlu0 %v1310_v55, %s11131_s29  ;;  %v1678_v55 = vrot.slane %v1676_v44, 4 }
 0x22f   : >> { %v1716_v20 = vshrl.u32 %v12002_v3, 16  ;;  %v1719_v6 = vshll.u32 %v12002_v3, 16 }
 0x230   : >> { %v1682_v15 = vor.u32 %v1681_v57, %v1678_v55  ;;  %v10686_v57 = vld [vmem:[%s11796_s16 + $0x3c] ss:$0 sps:$4 sm:$0x11]  }
 0x231   : >> { %1344 = vrot.lane.b32.xlu1 %v1315_v12, %s11131_s29  ;;  %v1695_v12 = vshll.u32 %v11988_v50, 16  ;;  %v1718_v37 = vrot.slane %v1716_v20, 4  ;;  %v1721_v42 = vrot.slane %v1719_v6, 5  ;;  %v1770_v0 = vrot.slane %v10686_v57, 5 }
 0x232   : >> { %1342 = vrot.lane.b32.xlu0 %v1313_v58, %s11131_s29  ;;  %v1674_v58 = vor.u32 %v1673_v45, %v1670_v36  ;;  %v1706_v36 = vor.u32 %v1705_v19, %v1702_v16  ;;  %v9487_v16 = vld [vmem:[%s11796_s16 + $0x28] sm:$0xf]  ;;  %v1772_v19 = vrot.slane %v11957_v17, 5  ;;  %v1775_v6 = vrot.slane %v11988_v50, 5  ;;  %v9495_v17 = vld [vmem:[%s11796_s16 + $0x54] sm:$0xf] }
 0x233   : >> { %v1722_v47 = vor.u32 %v1721_v42, %v1718_v37  ;;  %v1771_v18 = vsel %vm1297_vm10, %v1769_v63, %v1770_v0  ;;  %v9496_v42 = vld [vmem:[%s11796_s16 + $0x58] sm:$0xf]  ;;  %v9505_v0 = vld [vmem:[%s11796_s16 + $0x88] sm:$0xf] }
 0x235   : >> { %1348 = vrot.lane.b32.xlu1 %v1318_v21, %s11131_s29  ;;  %v1694_v21 = vrot.slane %v1692_v9, 4  ;;  %v9490_v9 = vld [vmem:[%s11796_s16 + $0x38] sm:$0xf] }
 0x236   : >> { %1346 = vrot.lane.b32.xlu0 %v1316_v13, %s11131_s29  ;;  %v12008_v13 = vcombine.low %v9420_v52, %v11996_v53  ;;  %v10685_v52 = vld [vmem:[%s11796_s16 + $0x2c] ss:$0 sps:$4 sm:$0x11]  }
 0x237   : >> { %v1767_v55 = vrot.slane %v10685_v52, 5  ;;  %v9499_v52 = vld [vmem:[%s11796_s16 + $0x68] sm:$0xf] }
 0x238   : >> { %v1708_v23 = vshrl.u32 %v12008_v13, 16  ;;  %v1711_v24 = vshll.u32 %v12008_v13, 16 }
 0x239   : >> { %1352 = vrot.lane.b32.xlu1 %v1321_v49, %s11131_s29  ;;  %v1763_v49 = vrot.slane %v11942_v7, 5  ;;  %v10687_v7 = vld [vmem:[%s11796_s16 + $0x4c] ss:$0 sps:$4 sm:$0x11]  }
 0x23a   : >> { %1350 = vrot.lane.b32.xlu0 %v1319_v22, %s11131_s29  ;;  %v1697_v22 = vrot.slane %v1695_v12, 5  ;;  %v1710_v11 = vrot.slane %v1708_v23, 4  ;;  %v1713_v45 = vrot.slane %v1711_v24, 5  ;;  %v10688_v12 = vld [vmem:[%s11796_s16 + $0x5c] ss:$0 sps:$4 sm:$0x11]  }
 0x23b   : >> { %v1765_v29 = vsel %vm1297_vm10, %v1763_v49, %v1764_v51  ;;  %v1773_v20 = vrot.slane %v10687_v7, 5  ;;  %v1781_v23 = vrot.slane %v12008_v13, 5  ;;  %v10690_v24 = vld [vmem:[%s11796_s16 + $0x7c] ss:$0 sps:$4 sm:$0x11]   ;;  %v12068_v51 = vcombine.low %v9495_v17, %v9496_v42 }
 0x23c   : >> { %v1698_v44 = vor.u32 %v1697_v22, %v1694_v21  ;;  %v1714_v32 = vor.u32 %v1713_v45, %v1710_v11  ;;  %v1776_v21 = vrot.slane %v10688_v12, 5  ;;  %v1778_v22 = vrot.slane %v11983_v48, 5  ;;  %v9493_v11 = vld [vmem:[%s11796_s16 + $0x48] sm:$0xf]  ;;  %v9501_v45 = vld [vmem:[%s11796_s16 + $0x74] sm:$0xf] }
 0x23d   : >> { %1725 = vrot.lane.b32.xlu1 %v1674_v58, %s11130_s27  ;;  %v1768_v58 = vsel %vm1297_vm10, %v1766_v54, %v1767_v55  ;;  %v12075_v7 = vcombine.low %v9492_v43, %v9493_v11  ;;  %v2407_v17 = vshrl.u32 %v12068_v51, 16  ;;  %v2410_v43 = vshll.u32 %v12068_v51, 16  ;;  %v12183_v48 = vld [vmem:[%s11796_s16 + $0x6c] ss:$0 sps:$4 sm:$0x11]  }
 0x23e   : >> { %1723 = vrot.lane.b32.xlu0 %v1666_v5, %s11130_s27  ;;  %v9489_v5 = vld [vmem:[%s11796_s16 + $0x34] sm:$0xf]  ;;  %v10772_v13 = vld [vmem:[%s16977_s3] sm:$0x3f]  }
 0x23f   : >> { %v12038_v60 = vcombine.low %v9489_v5, %v9490_v9  ;;  %v2399_v11 = vshrl.u32 %v12075_v7, 16 }
 0x241   : >> { %1729 = vrot.lane.b32.xlu1 %v1690_v14, %s11130_s27  ;;  %v10689_v14 = vld [vmem:[%s11796_s16 + $0x6c] ss:$0 sps:$4 sm:$0x11]   ;;  %v2394_v55 = vshll.u32 %v12038_v60, 16 }
 0x242   : >> { %1727 = vrot.lane.b32.xlu0 %v1682_v15, %s11130_s27  ;;  %v9486_v15 = vld [vmem:[%s11796_s16 + $0x24] sm:$0xf]  ;;  %v1779_v50 = vrot.slane %v10689_v14, 5  ;;  %v1782_v14 = vrot.slane %v10690_v24, 5 }
 0x243   : >> { %v12052_v37 = vcombine.low %v9486_v15, %v9487_v16  ;;  %v12102_v24 = vrot.slane %v2394_v55, 5 }
 0x245   : >> { %1733 = vrot.lane.b32.xlu1 %v1706_v36, %s11130_s27  ;;  %v12050_v36 = vld [vmem:[%s11796_s16 + $0x8c] ss:$0 sps:$4 sm:$0x11]   ;;  %v2383_v57 = vshrl.u32 %v12052_v37, 16  ;;  %v2386_v9 = vshll.u32 %v12052_v37, 16 }
 0x246   : >> { %1731 = vrot.lane.b32.xlu0 %v1698_v44, %s11130_s27  ;;  %v2391_v44 = vshrl.u32 %v12038_v60, 16  ;;  %v1785_v15 = vrot.slane %v12050_v36, 5 }
 0x247   : >> { %v12104_v36 = vrot.slane %v2383_v57, 4 }
 0x249   : >> { %1737 = vrot.lane.b32.xlu1 %v1722_v47, %s11130_s27  ;;  %v1774_v47 = vsel %vm1297_vm10, %v1772_v19, %v1773_v20  ;;  %v1780_v20 = vsel %vm1297_vm10, %v1778_v22, %v1779_v50  ;;  %v12109_v50 = vrot.slane %v2386_v9, 5  ;;  %v12131_v9 = vld [vmem:[%s11796_s16 + $0x2c] ss:$0 sps:$4 sm:$0x11]  }
 0x24a   : >> { %1735 = vrot.lane.b32.xlu0 %v1714_v32, %s11130_s27  ;;  %v9502_v32 = vld [vmem:[%s11796_s16 + $0x78] sm:$0xf] }
 0x24b   : >> { %v12083_v12 = vcombine.low %v9501_v45, %v9502_v32  ;;  %v2389_v61 = vor.u32 %v12109_v50, %v12104_v36  ;;  %v12228_v36 = vld [vmem:[%s11796_s16 + $0x9c] ss:$0 sps:$4 sm:$0x11]   ;;  %v12232_v50 = vcombine.low %v12188_v33, %v12188_v33 }
 0x24c   : >> { %17160 = vst [vmem:[#allocation38_spill] sm:$0xff] %v12228_v36  ;;  %v2931_v36 = vld [vmem:[%s12066_s23 + $0x30] sm:$0x8] }
 0x24d   : >> { %1789 = vrot.lane.b32.xlu1 %v1765_v29, %s11131_s29  ;;  %v9507_v29 = vld [vmem:[%s11796_s16 + $0x94] sm:$0xf]  ;;  %v2423_v45 = vshrl.u32 %v12083_v12, 16 }
 0x24e   : >> { %1787 = vrot.lane.b32.xlu0 %v1763_v49, %s11131_s29  ;;  %v9498_v49 = vld [vmem:[%s11796_s16 + $0x64] sm:$0xf] }
 0x24f   : >> { %v12087_v16 = vcombine.low %v9498_v49, %v9499_v52  ;;  %v12136_v5 = vrot.slane %v2423_v45, 4 }
 0x251   : >> { %1793 = vrot.lane.b32.xlu1 %v1768_v58, %s11131_s29  ;;  %v9504_v58 = vld [vmem:[%s11796_s16 + $0x84] sm:$0xf]  ;;  %v2415_v32 = vshrl.u32 %v12087_v16, 16  ;;  %v2418_v49 = vshll.u32 %v12087_v16, 16 }
 0x252   : >> { %1791 = vrot.lane.b32.xlu0 %v1766_v54, %s11131_s29  ;;  %v9508_v54 = vld [vmem:[%s11796_s16 + $0x98] sm:$0xf]  ;;  %v12097_v42 = vcombine.low %v9504_v58, %v9505_v0  ;;  %v1783_v0 = vsel %vm1297_vm10, %v1781_v23, %v1782_v14 }
 0x254   : >> { %v2431_v55 = vshrl.u32 %v12097_v42, 16  ;;  %v2434_v57 = vshll.u32 %v12097_v42, 16 }
 0x255   : >> { %1797 = vrot.lane.b32.xlu1 %v1771_v18, %s11131_s29  ;;  %v12089_v18 = vcombine.low %v9507_v29, %v9508_v54  ;;  %v12119_v54 = vrot.slane %v2407_v17, 4 }
 0x256   : >> { %1795 = vrot.lane.b32.xlu0 %v1769_v63, %s11131_s29  ;;  %v1777_v63 = vsel %vm1297_vm10, %v1775_v6, %v1776_v21  ;;  %v12094_v21 = vrot.slane %v2391_v44, 4  ;;  %v2402_v44 = vshll.u32 %v12075_v7, 16  ;;  %v12153_v45 = vrot.slane %v2431_v55, 4 }
 0x257   : >> { %17151 = vst [vmem:[#allocation31_spill] sm:$0xff] %v12089_v18  ;;  %v2439_v52 = vshrl.u32 %v12089_v18, 16  ;;  %v2442_v29 = vshll.u32 %v12089_v18, 16  ;;  %v17154_v55 = vrot.slane %v12002_v3, 5 }
 0x258   : >> { %v12134_v17 = vrot.slane %v2402_v44, 5 }
 0x259   : >> { %1801 = vrot.lane.b32.xlu1 %v1774_v47, %s11131_s29  ;;  %v2426_v47 = vshll.u32 %v12083_v12, 16  ;;  %v12151_v44 = vrot.slane %v2442_v29, 5  ;;  %v12171_v29 = vld [vmem:[%s12066_s23 + $0x4] sm:$0xf] }
 0x25a   : >> { %1799 = vrot.lane.b32.xlu0 %v1772_v19, %s11131_s29  ;;  %v10752_v19 = vld [vmem:[%s16977_s3 + $0x4] sm:$0xfc]   ;;  %17153 = vst [vmem:[#allocation33_spill] sm:$0xff] %v12171_v29 }
 0x25b   : >> { %v2018_v58 = vrot.slane %v10752_v19, 2  ;;  %v12138_v19 = vrot.slane %v2426_v47, 5  ;;  %v12155_v47 = vrot.slane %v2434_v57, 5  ;;  %v1786_v57 = vsel %vm1297_vm10, %v17154_v55, %v1785_v15  ;;  %v2925_v55 = vld [vmem:[%s12066_s23 + $0x10] sm:$0x8] }
 0x25d   : >> { %1805 = vrot.lane.b32.xlu1 %v1777_v63, %s11131_s29  ;;  %v12128_v63 = vrot.slane %v2399_v11, 4  ;;  %10576 = vmatprep.subr.msk.bf16.mxu0 %vm2044_vm11, %v2018_v58  ;;  %v2046_v14 = vsel %vm2044_vm11, %v2018_v58, 0  ;;  %v12149_v11 = vrot.slane %v2439_v52, 4  ;;  %v12159_v58 = vld [vmem:[%s11796_s16 + $0x3c] ss:$0 sps:$4 sm:$0x11]   ;;  %v2437_v33 = vor.u32 %v12155_v47, %v12153_v45 }
 0x25e   : >> { %1803 = vrot.lane.b32.xlu0 %v1775_v6, %s11131_s29  ;;  %v12126_v6 = vrot.slane %v2410_v43, 5  ;;  %v12145_v43 = vrot.slane %v2415_v32, 4  ;;  %10301 = vmatpush3.bf16.msra.mxu0 %v2046_v14  ;;  %v12163_v32 = vld [vmem:[%s11796_s16 + $0x4c] ss:$0 sps:$4 sm:$0x11]   ;;  %v17165_v47 = vrot.slane %v12131_v9, 5 }
 0x25f   : >> { %v2922_v52 = vld [vmem:[%s12066_s23] sm:$0x8]  ;;  %v12180_v14 = vld [vmem:[%s11796_s16 + $0x5c] ss:$0 sps:$4 sm:$0x11]   ;;  %10577 = vmatprep.subr.msk.bf16.mxu0 %vm2044_vm11, %v10772_v13  ;;  %v17171_v9 = vrot.slane %v12163_v32, 5 }
 0x260   : >> { %v12198_v15 = vcombine.low %v2922_v52, %v12171_v29  ;;  %v2413_v41 = vor.u32 %v12126_v6, %v12119_v54  ;;  %v12218_v52 = vld [vmem:[%s11796_s16 + $0x8c] ss:$0 sps:$4 sm:$0x11]   ;;  %v17159_v29 = vrot.slane %v12002_v3, 5  ;;  %v12237_v3 = vcombine.low %v2925_v55, %v12202_v1  ;;  %v12259_v6 = vld [vmem:[%s12066_s23 + $0x24] sm:$0xf] }
 0x261   : >> { %1809 = vrot.lane.b32.xlu1 %v1780_v20, %s11131_s29  ;;  %v12147_v20 = vrot.slane %v2418_v49, 5  ;;  %v12167_v49 = vld [vmem:[%s12066_s23 + $0x8] sm:$0xf]  ;;  %v12276_v13 = vld [vmem:[%s12066_s23 + $0x38] sm:$0xf]  ;;  %v17173_v59 = vrot.slane %v12180_v14, 5 }
 0x262   : >> { %1807 = vrot.lane.b32.xlu0 %v1778_v22, %s11131_s29  ;;  %17152 = vst [vmem:[#allocation32_spill] sm:$0xff] %v12167_v49  ;;  %17156 = vst [vmem:[#allocation35_spill] sm:$0xff] %v12198_v15  ;;  %v2397_v22 = vor.u32 %v12102_v24, %v12094_v21  ;;  %v3062_v21 = vshll.u32 %v12198_v15, 16  ;;  %v2405_v24 = vor.u32 %v12134_v17, %v12128_v63  ;;  %v3077_v55 = vshll.u32 %v12237_v3, 16  ;;  %v12400_v14 = vld [vmem:[%s12066_s23 + $0x68] sm:$0xf] }
 0x263   : >> { %17161 = vst [vmem:[#allocation39_spill] sm:$0xff] %v12237_v3  ;;  %v2429_v63 = vor.u32 %v12138_v19, %v12136_v5  ;;  %17177 = vst [vmem:[#allocation47_spill] sm:$0xff] %v12400_v14  ;;  %v17187_v25 = vrot.slane %v12218_v52, 5  ;;  %v17195_v31 = vld [vmem:[#allocation31_spill] sm:$0xff] }
 0x264   : >> { %v12267_v18 = vrot.slane %v3062_v21, 1  ;;  %v2421_v21 = vor.u32 %v12147_v20, %v12145_v43  ;;  %v12289_v19 = vrot.slane %v3077_v55, 1  ;;  %v2445_v20 = vor.u32 %v12151_v44, %v12149_v11  ;;  %v2934_v44 = vld [vmem:[%s12066_s23 + $0x40] sm:$0x8]  ;;  %v2937_v55 = vld [vmem:[%s12066_s23 + $0x50] sm:$0x8] }
 0x265   : >> { %1813 = vrot.lane.b32.xlu1 %v1783_v0, %s11131_s29  ;;  %v12205_v0 = vld [vmem:[%s12066_s23 + $0x28] sm:$0xf]  ;;  %v12351_v11 = vld [vmem:[%s11796_s16 + $0x20] sm:$0x8] }
 0x266   : >> { %1811 = vrot.lane.b32.xlu0 %v1781_v23, %s11131_s29  ;;  %v12195_v23 = vcombine.low %v12167_v49, %v12167_v49  ;;  %17158 = vst [vmem:[#allocation37_spill] sm:$0xff] %v12205_v0  ;;  %v12215_v49 = vld [vmem:[%s11796_s16 + $0x7c] ss:$0 sps:$4 sm:$0x11]   ;;  %17167 = vst [vmem:[#allocation43_spill] sm:$0xff] %v12351_v11 }
 0x269   : >> { %1817 = vrot.lane.b32.xlu1 %v1786_v57, %s11131_s29  ;;  %v3067_v57 = vshll.u32 %v12195_v23, 16 }
 0x26a   : >> { %1815 = vrot.lane.b32.xlu0 %v17159_v29, %s11131_s29  ;;  %v12241_v29 = vcombine.low %v12205_v0, %v12205_v0  ;;  %v2928_v0 = vld [vmem:[%s12066_s23 + $0x20] sm:$0x8] }
 0x26b   : >> { %v12263_v1 = vrot.slane %v3067_v57, 1  ;;  %v12273_v17 = vcombine.low %v2928_v0, %v12259_v6  ;;  %v12280_v57 = vld [vmem:[%s12066_s23 + $0x34] sm:$0xf] }
 0x26c   : >> { %v3097_v54 = vshll.u32 %v12241_v29, 16  ;;  %v12299_v43 = vcombine.low %v2931_v36, %v12280_v57  ;;  %v17166_v36 = vrot.slane %v12052_v37, 5 }
 0x26d   : >> { %2448 = vrot.lane.b32.xlu1 %v2397_v22, %s11130_s27  ;;  %v3082_v22 = vshll.u32 %v12232_v50, 16  ;;  %17162 = vst [vmem:[#allocation40_spill] sm:$0xff] %v12273_v17 }
 0x26e   : >> { %2446 = vrot.lane.b32.xlu0 %v2389_v61, %s11130_s27  ;;  %v12291_v0 = vrot.slane %v3097_v54, 1  ;;  %17163 = vst [vmem:[#allocation41_spill] sm:$0xff] %v12299_v43  ;;  %v3092_v54 = vshll.u32 %v12273_v17, 16  ;;  %v12321_v61 = vld [vmem:[%s12066_s23 + $0x44] sm:$0xf]  ;;  %v3107_v27 = vshll.u32 %v12299_v43, 16  ;;  %v2488_v45 = vsel %vm1297_vm10, %v17166_v36, %v17165_v47 }
 0x26f   : >> { %v12287_v5 = vrot.slane %v3082_v22, 1  ;;  %v12307_v22 = vld [vmem:[%s12066_s23 + $0x48] sm:$0xf]  ;;  %v17168_v36 = vrot.slane %v12159_v58, 5  ;;  %v17169_v47 = vrot.slane %v12038_v60, 5  ;;  %v3105_v32 = vshrl.u32 %v12299_v43, 16 }
 0x270   : >> { %v12373_v46 = vrot.slane %v3092_v54, 1  ;;  %v3109_v2 = vrot.slane %v3107_v27, 1  ;;  %v12413_v27 = vld [vmem:[%s11796_s16 + $0x40] sm:$0x8]  ;;  %v12419_v43 = vcombine.low %v12339_v35, %v12339_v35 }
 0x271   : >> { %2452 = vrot.lane.b32.xlu1 %v2413_v41, %s11130_s27  ;;  %v12355_v41 = vcombine.low %v12307_v22, %v12307_v22  ;;  %v2491_v56 = vsel %vm1297_vm10, %v17169_v47, %v17168_v36  ;;  %v17174_v36 = vrot.slane %v12068_v51, 5  ;;  %17180 = vst [vmem:[#allocation48_spill] sm:$0xff] %v12413_v27  ;;  %v12436_v47 = vld [vmem:[%s11796_s16 + $0x50] sm:$0x8]  ;;  %v17205_v27 = vld [vmem:[#allocation34_spill] sm:$0xff] }
 0x272   : >> { %2450 = vrot.lane.b32.xlu0 %v2405_v24, %s11130_s27  ;;  %v12296_v24 = vcombine.low %v12276_v13, %v12276_v13  ;;  %v3142_v52 = vshll.u32 %v12419_v43, 16 }
 0x273   : >> { %v12388_v54 = vsel %vm1297_vm10, %v17174_v36, %v17173_v59  ;;  %v2940_v59 = vld [vmem:[%s12066_s23 + $0x60] sm:$0x8] }
 0x275   : >> { %2456 = vrot.lane.b32.xlu1 %v2429_v63, %s11130_s27  ;;  %v12315_v63 = vld [vmem:[%s11796_s16] sm:$0x8] }
 0x276   : >> { %2454 = vrot.lane.b32.xlu0 %v2421_v21, %s11130_s27  ;;  %17164 = vst [vmem:[#allocation42_spill] sm:$0xff] %v12315_v63  ;;  %v12358_v21 = vld [vmem:[%s12066_s23 + $0x54] sm:$0xf] }
 0x279   : >> { %2460 = vrot.lane.b32.xlu1 %v2445_v20, %s11130_s27  ;;  %v12393_v20 = vcombine.low %v2934_v44, %v12321_v61  ;;  %v17179_v44 = vrot.slane %v12087_v16, 5 }
 0x27a   : >> { %2458 = vrot.lane.b32.xlu0 %v2437_v33, %s11130_s27  ;;  %v17172_v33 = vrot.slane %v12075_v7, 5 }
 0x27b   : >> { %17175 = vst [vmem:[#allocation45_spill] sm:$0xff] %v12393_v20  ;;  %v3122_v26 = vshll.u32 %v12393_v20, 16 }
 0x27c   : >> { %v2494_v58 = vsel %vm1297_vm10, %v17172_v33, %v17171_v9  ;;  %v12397_v9 = vcombine.low %v2937_v55, %v12358_v21  ;;  %v17178_v33 = vrot.slane %v12183_v48, 5  ;;  %v3127_v55 = vshll.u32 %v12355_v41, 16 }
 0x27d   : >> { %2512 = vrot.lane.b32.xlu1 %v2488_v45, %s11131_s29  ;;  %v12426_v45 = vld [vmem:[%s12066_s23 + $0x78] sm:$0xf]  ;;  %v17182_v48 = vrot.slane %v12052_v37, 5  ;;  %v17185_v37 = vrot.slane %v12215_v49, 5  ;;  %v17188_v49 = vrot.slane %v12097_v42, 5 }
 0x27e   : >> { %17176 = vst [vmem:[#allocation46_spill] sm:$0xff] %v12397_v9  ;;  %v12410_v36 = vsel %vm1297_vm10, %v17179_v44, %v17178_v33  ;;  %v3137_v53 = vshll.u32 %v12397_v9, 16  ;;  %v3135_v4 = vshrl.u32 %v12397_v9, 16  ;;  %v17208_v9 = vshll.u32 %v12296_v24, 16 }
 0x27f   : >> { %2510 = vrot.lane.b32.xlu0 %v17182_v48, %s11131_s29  ;;  %v12445_v63 = vpop.permute.xlu1 %1261  ;;  %v17186_v48 = vrot.slane %v12083_v12, 5 }
 0x280   : >> { %17184 = vst [vmem:[#allocation51_spill] sm:$0xff] %v12445_v63  ;;  %v12460_v28 = vpop.permute.xlu0 %1257  ;;  %v12501_v63 = vcombine.low %v2940_v59, %v12423_v8  ;;  %v17206_v8 = vld [vmem:[#allocation36_spill] sm:$0xff]  ;;  %v3139_v59 = vrot.slane %v3137_v53, 1  ;;  %v3114_v11 = vrot.slane %v17208_v9, 1 }
 0x281   : >> { %v12452_v33 = vsel %vm1297_vm10, %v17186_v48, %v17185_v37  ;;  %v12467_v37 = vsel %vm1297_vm10, %v17188_v49, %v17187_v25  ;;  %v17189_v48 = vshrl.u32 %v12198_v15, 16  ;;  %2516 = vrot.lane.b32.xlu1 %v2491_v56, %s11131_s29  ;;  %v12479_v25 = vcombine.low %v12400_v14, %v12400_v14  ;;  %v17190_v49 = vld [vmem:[#allocation32_spill] sm:$0xff]  ;;  %v17191_v15 = vld [vmem:[#allocation33_spill] sm:$0xff]  ;;  %v12498_v14 = vld [vmem:[%s11796_s16 + $0x70] sm:$0x8] }
 0x282   : >> { %v12483_v39 = vcombine.low %v17191_v15, %v17190_v49  ;;  %v17196_v56 = vrot.slane %v17195_v31, 5  ;;  %17199 = vst [vmem:[#allocation33_spill] sm:$0xff] %v12498_v14  ;;  %v12505_v15 = vcombine.low %v12426_v45, %v12426_v45  ;;  %v12509_v49 = vld [vmem:[%s12066_s23 + $0x74] sm:$0xf]  ;;  %v12527_v31 = vcombine.low %v17206_v8, %v17205_v27 }
 0x283   : >> { %v3065_v44 = vor.u32 %v12267_v18, %v17189_v48  ;;  %v17192_v18 = vrot.slane %v12038_v60, 5  ;;  %v17193_v48 = vld [vmem:[#allocation38_spill] sm:$0xff]  ;;  %v2943_v60 = vld [vmem:[%s12066_s23 + $0x70] sm:$0x8]  ;;  %v3129_v8 = vrot.slane %v3127_v55, 1  ;;  %v3131_v27 = vshrl.u32 %v12355_v41, 16 }
 0x284   : >> { %v17194_v38 = vrot.slane %v17193_v48, 5  ;;  %17200 = vst [vmem:[#allocation38_spill] sm:$0xff] %v12501_v63  ;;  %v3157_v10 = vshll.u32 %v12479_v25, 16  ;;  %v3152_v53 = vshll.u32 %v12501_v63, 16  ;;  %v17211_v41 = vshrl.u32 %v12232_v50, 16 }
 0x285   : >> { %2514 = vrot.lane.b32.xlu0 %v17192_v18, %s11131_s29  ;;  %v12511_v18 = vpop.permute.xlu1 %1263  ;;  %2520 = vrot.lane.b32.xlu1 %v2494_v58, %s11131_s29  ;;  %v3172_v58 = vshll.u32 %v12505_v15, 16 }
 0x286   : >> { %v12493_v62 = vsel %vm1297_vm10, %v17196_v56, %v17194_v38  ;;  %17201 = vst [vmem:[#allocation52_spill] sm:$0xff] %v12511_v18  ;;  %v17202_v38 = vshrl.u32 %v12195_v23, 16  ;;  %v12519_v56 = vld [vmem:[%s11796_s16 + $0x54] sm:$0xf]  ;;  %v12533_v18 = vsel %vm3058_vm12, %v3065_v44, %v12263_v1  ;;  %v17207_v23 = vshrl.u32 %v12237_v3, 16 }
 0x287   : >> { %17197 = vst [vmem:[#allocation32_spill] sm:$0xff] %v12493_v62  ;;  %v12529_v62 = vpop.permute.xlu0 %1259  ;;  %v17210_v44 = vshrl.u32 %v12273_v17, 16  ;;  %v12556_v9 = vor.u32 %v17211_v41, %v12287_v5  ;;  %v3144_v41 = vrot.slane %v3142_v52, 1  ;;  %v3146_v17 = vshrl.u32 %v12419_v43, 16 }
 0x288   : >> { %v12516_v48 = vor.u32 %v17202_v38, %v12263_v1  ;;  %v3080_v38 = vor.u32 %v12289_v19, %v17207_v23  ;;  %v17209_v1 = vrot.slane %v12075_v7, 5  ;;  %v17212_v7 = vshrl.u32 %v12241_v29, 16 }
 0x289   : >> { %v3095_v19 = vor.u32 %v12373_v46, %v17210_v44  ;;  %v12551_v23 = vpop.permute.xlu1 %1267  ;;  %v12569_v46 = vcombine.low %v2943_v60, %v12509_v49  ;;  %v17215_v44 = vshrl.u32 %v12393_v20, 16  ;;  %v3140_v3 = vor.u32 %v3139_v59, %v3135_v4  ;;  %2524 = vrot.lane.b32.xlu1 %v12388_v54, %s11131_s29 }
 0x28a   : >> { %17203 = vst [vmem:[#allocation53_spill] sm:$0xff] %v12516_v48  ;;  %v3124_v48 = vrot.slane %v3122_v26, 1  ;;  %2518 = vrot.lane.b32.xlu0 %v17209_v1, %s11131_s29  ;;  %v3110_v26 = vor.u32 %v3109_v2, %v3105_v32  ;;  %v12561_v55 = vor.u32 %v17212_v7, %v12291_v0  ;;  %v12564_v1 = vld [vmem:[%s11796_s16 + $0x74] sm:$0xf]  ;;  %v12580_v29 = vsel %vm3058_vm12, %v3080_v38, %v12287_v5 }
 0x28b   : >> { %17213 = vst [vmem:[#allocation34_spill] sm:$0xff] %v12564_v1  ;;  %17214 = vst [vmem:[#allocation36_spill] sm:$0xff] %v12569_v46  ;;  %v12571_v32 = vpop.permute.xlu0 %1265  ;;  %v17216_v7 = vshrl.u32 %v12296_v24, 16  ;;  %v12586_v2 = vrot.slane %v3157_v10, 1  ;;  %v17217_v43 = vrot.slane %v12068_v51, 5  ;;  %v12594_v4 = vsel %vm3058_vm12, %v3095_v19, %v12291_v0 }
 0x28c   : >> { %v3125_v50 = vor.u32 %v3124_v48, %v17215_v44  ;;  %v3161_v48 = vshrl.u32 %v12479_v25, 16  ;;  %v12597_v5 = vsel %vm3058_vm12, %v3110_v26, %v3114_v11  ;;  %v3150_v24 = vshrl.u32 %v12501_v63, 16  ;;  %v12619_v26 = vld [vmem:[%s11796_s16 + $0x10] sm:$0x8] }
 0x28d   : >> { %v12584_v60 = vor.u32 %v17216_v7, %v3114_v11  ;;  %v3154_v54 = vrot.slane %v3152_v53, 1  ;;  %v12600_v52 = vpop.permute.xlu1 %1271  ;;  %v12602_v10 = vor.u32 %v3131_v27, %v3129_v8  ;;  %v12604_v25 = vrot.slane %v3172_v58, 1  ;;  %2528 = vrot.lane.b32.xlu1 %v12410_v36, %s11131_s29  ;;  %v17219_v53 = vld [vmem:[#allocation37_spill] sm:$0xff] }
 0x28e   : >> { %2522 = vrot.lane.b32.xlu0 %v17217_v43, %s11131_s29  ;;  %17218 = vst [vmem:[#allocation54_spill] sm:$0xff] %v12600_v52  ;;  %v3176_v51 = vshrl.u32 %v12505_v15, 16  ;;  %v3167_v59 = vshll.u32 %v12569_v46, 16  ;;  %v12611_v0 = vsel %vm3058_vm12, %v3125_v50, %v3129_v8  ;;  %v12613_v11 = vor.u32 %v3146_v17, %v3144_v41  ;;  %v12637_v58 = vld [vmem:[%s11796_s16 + $0x20] sm:$0x8]  ;;  %v17222_v43 = vld [vmem:[#allocation23_spill] sm:$0xff] }
 0x28f   : >> { %v12608_v38 = vpop.permute.xlu0 %1269  ;;  %v12616_v19 = vsel %vm3058_vm12, %v3140_v3, %v3144_v41  ;;  %v12623_v27 = vcombine.low %v12280_v57, %v12276_v13  ;;  %v12628_v15 = vor.u32 %v3161_v48, %v12586_v2  ;;  %v12634_v3 = vcombine.low %v12259_v6, %v17219_v53 }
 0x290   : >> { %v17220_v13 = vrot.slane %v12087_v16, 5  ;;  %v12642_v57 = vor.u32 %v3154_v54, %v3150_v24  ;;  %v12647_v44 = vcombine.low %v12358_v21, %v12339_v35  ;;  %v12651_v50 = vcombine.low %v12321_v61, %v12307_v22  ;;  %v17223_v61 = vld [vmem:[#allocation42_spill] sm:$0xff]  ;;  %v17224_v22 = vld [vmem:[#allocation11_spill] sm:$0xff] }
 0x291   : >> { %v1325_v6 = vpop.permute.xlu1 %1324  ;;  %v17221_v41 = vcombine.low %v11812_v30, %v11812_v30  ;;  %v12659_v7 = vor.u32 %v3176_v51, %v12604_v25  ;;  %v12661_v48 = vrot.slane %v3167_v59, 1  ;;  %v17225_v54 = vcombine.low %v17223_v61, %v17224_v22  ;;  %2532 = vrot.lane.b32.xlu1 %v12452_v33, %s11131_s29  ;;  %v17251_v8 = vld [vmem:[#allocation53_spill] sm:$0xff] }
 0x292   : >> { %2526 = vrot.lane.b32.xlu0 %v17220_v13, %s11131_s29  ;;  %v17226_v13 = vld [vmem:[#allocation21_spill] sm:$0xff]  ;;  %v17227_v61 = vrot.slane %v12083_v12, 5  ;;  %v17230_v12 = vcombine.low %v12348_v40, %v11829_v34  ;;  %v12702_v34 = vcombine.low %v12509_v49, %v12426_v45  ;;  %vm8494_vm10 = vsmask.f32 4368 }
 0x293   : >> { %v1359_v16 = vsel %vm716_vm8, %v17221_v41, %v12460_v28  ;;  %v1323_v24 = vpop.permute.xlu0 %1322  ;;  %v1357_v53 = vsel %vm716_vm8, %v17225_v54, %v12460_v28 }
 0x294   : >> { %v1399_v21 = vsel %vm859_vm9, %v1359_v16, %v1325_v6  ;;  %v1397_v36 = vsel %vm859_vm9, %v1357_v53, %v1323_v24  ;;  %v17228_v24 = vld [vmem:[#allocation14_spill] sm:$0xff] }
 0x295   : >> { %v1438_v41 = vshrl.u32 %v1399_v21, 16  ;;  %v1441_v59 = vshll.u32 %v1399_v21, 16  ;;  %v1431_v16 = vshrl.u32 %v1397_v36, 16  ;;  %v1434_v35 = vshll.u32 %v1397_v36, 16  ;;  %v1329_v21 = vpop.permute.xlu1 %1328  ;;  %2536 = vrot.lane.b32.xlu1 %v12467_v37, %s11131_s29 }
 0x296   : >> { %2530 = vrot.lane.b32.xlu0 %v17227_v61, %s11131_s29  ;;  %v17229_v53 = vcombine.low %v17228_v24, %v17228_v24  ;;  %v1362_v61 = vsel %vm716_vm8, %v17230_v12, %v12529_v62 }
 0x297   : >> { %v1440_v54 = vrot.slane %v1438_v41, 3  ;;  %v1443_v51 = vrot.slane %v1441_v59, 4  ;;  %v1433_v6 = vrot.slane %v1431_v16, 3  ;;  %v1436_v36 = vrot.slane %v1434_v35, 4  ;;  %v1327_v41 = vpop.permute.xlu0 %1326 }
 0x298   : >> { %v1364_v33 = vsel %vm716_vm8, %v17229_v53, %v12529_v62  ;;  %v1401_v17 = vsel %vm859_vm9, %v1362_v61, %v1327_v41 }
 0x299   : >> { %v1403_v30 = vsel %vm859_vm9, %v1364_v33, %v1329_v21  ;;  %v1444_v59 = vor.u32 %v1443_v51, %v1440_v54  ;;  %v1437_v24 = vor.u32 %v1436_v36, %v1433_v6  ;;  %v1446_v16 = vshrl.u32 %v1401_v17, 16  ;;  %v17232_v51 = vld [vmem:[#allocation51_spill] sm:$0xff]  ;;  %v1333_v37 = vpop.permute.xlu1 %1332 }
 0x29a   : >> { %v1453_v22 = vshrl.u32 %v1403_v30, 16  ;;  %v1456_v28 = vshll.u32 %v1403_v30, 16  ;;  %v1449_v35 = vshll.u32 %v1401_v17, 16  ;;  %v17231_v21 = vrot.slane %v12097_v42, 5  ;;  %v17233_v30 = vld [vmem:[#allocation10_spill] sm:$0xff]  ;;  %v17235_v6 = vld [vmem:[#allocation43_spill] sm:$0xff] }
 0x29b   : >> { %v17234_v54 = vcombine.low %v17233_v30, %v17233_v30  ;;  %v17236_v17 = vld [vmem:[#allocation9_spill] sm:$0xff]  ;;  %v1448_v36 = vrot.slane %v1446_v16, 3  ;;  %v1331_v49 = vpop.permute.xlu0 %1330  ;;  %v17239_v30 = vld [vmem:[#allocation32_spill] sm:$0xff]  ;;  %v17240_v16 = vld [vmem:[#allocation31_spill] sm:$0xff] }
 0x29c   : >> { %2534 = vrot.lane.b32.xlu0 %v17231_v21, %s11131_s29  ;;  %v1455_v40 = vrot.slane %v1453_v22, 3  ;;  %v1458_v62 = vrot.slane %v1456_v28, 4  ;;  %v17237_v33 = vcombine.low %v17235_v6, %v17236_v17  ;;  %v1451_v12 = vrot.slane %v1449_v35, 4  ;;  %2540 = vrot.lane.b32.xlu1 %v17239_v30, %s11131_s29 }
 0x29d   : >> { %v1369_v53 = vsel %vm716_vm8, %v17234_v54, %v17232_v51  ;;  %v12716_v28 = vsel %vm1430_vm13, %v1437_v24, %v1444_v59  ;;  %v17241_v35 = vrot.slane %v17240_v16, 5 }
 0x29e   : >> { %v1367_v42 = vsel %vm716_vm8, %v17237_v33, %v17232_v51  ;;  %v1407_v45 = vsel %vm859_vm9, %v1369_v53, %v1333_v37  ;;  %17238 = vst [vmem:[#allocation37_spill] sm:$0xff] %v12716_v28  ;;  %v1459_v22 = vor.u32 %v1458_v62, %v1455_v40  ;;  %v1452_v54 = vor.u32 %v1451_v12, %v1448_v36  ;;  %v17242_v51 = vld [vmem:[#allocation47_spill] sm:$0xff]  ;;  %v17243_v53 = vld [vmem:[#allocation49_spill] sm:$0xff]  ;;  %v17244_v40 = vld [vmem:[#allocation52_spill] sm:$0xff] }
 0x29f   : >> { %v1468_v61 = vshrl.u32 %v1407_v45, 16  ;;  %v1471_v41 = vshll.u32 %v1407_v45, 16  ;;  %v1405_v21 = vsel %vm859_vm9, %v1367_v42, %v1331_v49  ;;  %v12726_v37 = vcombine.low %v17243_v53, %v17242_v51  ;;  %v17245_v62 = vld [vmem:[#allocation13_spill] sm:$0xff]  ;;  %v1337_v45 = vpop.permute.xlu1 %1336  ;;  %v17247_v36 = vld [vmem:[#allocation44_spill] sm:$0xff]  ;;  %v1335_v51 = vpop.permute.xlu0 %1334 }
 0x2a0   : >> { %v1461_v6 = vshrl.u32 %v1405_v21, 16  ;;  %v1464_v17 = vshll.u32 %v1405_v21, 16  ;;  %2538 = vrot.lane.b32.xlu0 %v17241_v35, %s11131_s29  ;;  %v17246_v33 = vcombine.low %v17245_v62, %v17245_v62  ;;  %v17248_v12 = vld [vmem:[#allocation12_spill] sm:$0xff]  ;;  %3181 = vrot.lane.b32.xlu1 %v17251_v8, %s11130_s27 }
 0x2a1   : >> { %v1470_v59 = vrot.slane %v1468_v61, 3  ;;  %v1473_v24 = vrot.slane %v1471_v41, 4  ;;  %v17249_v49 = vcombine.low %v17247_v36, %v17248_v12  ;;  %v12740_v61 = vsel %vm1430_vm13, %v1452_v54, %v1459_v22  ;;  %v17252_v54 = vld [vmem:[#allocation17_spill] sm:$0xff]  ;;  %v17255_v8 = vld [vmem:[#allocation16_spill] sm:$0xff] }
 0x2a2   : >> { %v1374_v42 = vsel %vm716_vm8, %v17246_v33, %v17244_v40  ;;  %v1463_v30 = vrot.slane %v1461_v6, 3  ;;  %v1466_v16 = vrot.slane %v1464_v17, 4  ;;  %17250 = vst [vmem:[#allocation23_spill] sm:$0xff] %v12740_v61  ;;  %v3269_v6 = vshrl.u32 %v12483_v39, 16  ;;  %v12951_v61 = vld [vmem:[%s11796_s16 + $0x64] sm:$0xf] }
 0x2a3   : >> { %v1372_v21 = vsel %vm716_vm8, %v17249_v49, %v17244_v40  ;;  %v1411_v35 = vsel %vm859_vm9, %v1374_v42, %v1337_v45  ;;  %v1474_v41 = vor.u32 %v1473_v24, %v1470_v59  ;;  %v1341_v22 = vpop.permute.xlu1 %1340  ;;  %v17253_v59 = vcombine.low %v17252_v54, %v17252_v54  ;;  %v17254_v42 = vld [vmem:[#allocation48_spill] sm:$0xff] }
 0x2a4   : >> { %v1483_v53 = vshrl.u32 %v1411_v35, 16  ;;  %v1486_v62 = vshll.u32 %v1411_v35, 16  ;;  %v1409_v33 = vsel %vm859_vm9, %v1372_v21, %v1335_v51  ;;  %v1467_v63 = vor.u32 %v1466_v16, %v1463_v30  ;;  %3179 = vrot.lane.b32.xlu0 %v12533_v18, %s11130_s27  ;;  %v1339_v16 = vpop.permute.xlu0 %1338  ;;  %3185 = vrot.lane.b32.xlu1 %v12556_v9, %s11130_s27 }
 0x2a5   : >> { %v1476_v36 = vshrl.u32 %v1409_v33, 16  ;;  %v1479_v12 = vshll.u32 %v1409_v33, 16  ;;  %v1379_v24 = vsel %vm716_vm8, %v17253_v59, %v12571_v32  ;;  %v17256_v45 = vcombine.low %v17254_v42, %v17255_v8 }
 0x2a6   : >> { %v1485_v17 = vrot.slane %v1483_v53, 3  ;;  %v1488_v40 = vrot.slane %v1486_v62, 4  ;;  %v1415_v18 = vsel %vm859_vm9, %v1379_v24, %v1341_v22  ;;  %v12760_v35 = vsel %vm1430_vm13, %v1467_v63, %v1474_v41  ;;  %v17258_v63 = vld [vmem:[#allocation15_spill] sm:$0xff] }
 0x2a7   : >> { %v1377_v49 = vsel %vm716_vm8, %v17256_v45, %v12571_v32  ;;  %v1478_v21 = vrot.slane %v1476_v36, 3  ;;  %v1481_v30 = vrot.slane %v1479_v12, 4  ;;  %17257 = vst [vmem:[#allocation42_spill] sm:$0xff] %v12760_v35  ;;  %v1498_v53 = vshrl.u32 %v1415_v18, 16 }
 0x2a8   : >> { %v1489_v51 = vor.u32 %v1488_v40, %v1485_v17  ;;  %v1501_v62 = vshll.u32 %v1415_v18, 16  ;;  %v1413_v33 = vsel %vm859_vm9, %v1377_v49, %v1339_v16  ;;  %3183 = vrot.lane.b32.xlu0 %v12580_v29, %s11130_s27  ;;  %v3272_v32 = vshll.u32 %v12483_v39, 16  ;;  %v1345_v40 = vpop.permute.xlu1 %1344  ;;  %v1343_v45 = vpop.permute.xlu0 %1342  ;;  %3189 = vrot.lane.b32.xlu1 %v12561_v55, %s11130_s27 }
 0x2a9   : >> { %v1482_v54 = vor.u32 %v1481_v30, %v1478_v21  ;;  %v1491_v59 = vshrl.u32 %v1413_v33, 16  ;;  %v1494_v42 = vshll.u32 %v1413_v33, 16  ;;  %v1500_v36 = vrot.slane %v1498_v53, 3 }
 0x2aa   : >> { %v1503_v12 = vrot.slane %v1501_v62, 4  ;;  %v17259_v41 = vcombine.low %v17258_v63, %v17258_v63  ;;  %v17260_v9 = vcombine.low %v12436_v47, %v12519_v56  ;;  %v12789_v62 = vld [vmem:[%s12066_s23 + $0xc] ss:$0 sps:$4 sm:$0x11]  }
 0x2ab   : >> { %v1493_v24 = vrot.slane %v1491_v59, 3  ;;  %v1496_v29 = vrot.slane %v1494_v42, 4  ;;  %v12780_v49 = vsel %vm1430_vm13, %v1482_v54, %v1489_v51  ;;  %v17262_v59 = vld [vmem:[#allocation20_spill] sm:$0xff] }
 0x2ac   : >> { %v1384_v17 = vsel %vm716_vm8, %v17259_v41, %v12551_v23  ;;  %v1382_v22 = vsel %vm716_vm8, %v17260_v9, %v12551_v23  ;;  %17261 = vst [vmem:[#allocation11_spill] sm:$0xff] %v12780_v49  ;;  %v1504_v21 = vor.u32 %v1503_v12, %v1500_v36  ;;  %3187 = vrot.lane.b32.xlu0 %v12594_v4, %s11130_s27  ;;  %v1349_v54 = vpop.permute.xlu1 %1348  ;;  %v17264_v36 = vld [vmem:[#allocation50_spill] sm:$0xff]  ;;  %v17265_v12 = vld [vmem:[#allocation19_spill] sm:$0xff]  ;;  %v1347_v9 = vpop.permute.xlu0 %1346 }
 0x2ad   : >> { %v1419_v8 = vsel %vm859_vm9, %v1384_v17, %v1345_v40  ;;  %v1417_v16 = vsel %vm859_vm9, %v1382_v22, %v1343_v45  ;;  %v1497_v47 = vor.u32 %v1496_v29, %v1493_v24  ;;  %v17263_v42 = vcombine.low %v17262_v59, %v17262_v59  ;;  %3193 = vrot.lane.b32.xlu1 %v12584_v60, %s11130_s27 }
 0x2ae   : >> { %v1513_v30 = vshrl.u32 %v1419_v8, 16  ;;  %v1516_v18 = vshll.u32 %v1419_v8, 16  ;;  %v1506_v56 = vshrl.u32 %v1417_v16, 16  ;;  %v1509_v23 = vshll.u32 %v1417_v16, 16 }
 0x2af   : >> { %v1389_v55 = vsel %vm716_vm8, %v17263_v42, %v12608_v38  ;;  %v17266_v63 = vcombine.low %v17264_v36, %v17265_v12  ;;  %v12803_v22 = vsel %vm1430_vm13, %v1497_v47, %v1504_v21  ;;  %v12815_v47 = vld [vmem:[%s12066_s23 + $0x1c] ss:$0 sps:$4 sm:$0x11]   ;;  %v12824_v60 = vrot.slane %v3269_v6, 5 }
 0x2b0   : >> { %v1515_v51 = vrot.slane %v1513_v30, 3  ;;  %v1518_v33 = vrot.slane %v1516_v18, 4  ;;  %v1508_v41 = vrot.slane %v1506_v56, 3  ;;  %v1511_v17 = vrot.slane %v1509_v23, 4  ;;  %17267 = vst [vmem:[#allocation21_spill] sm:$0xff] %v12803_v22  ;;  %3191 = vrot.lane.b32.xlu0 %v12597_v5, %s11130_s27  ;;  %v12827_v42 = vpop.permute.xlu0 %1350 }
 0x2b1   : >> { %v1387_v4 = vsel %vm716_vm8, %v17266_v63, %v12608_v38  ;;  %v1423_v40 = vsel %vm859_vm9, %v1389_v55, %v1349_v54  ;;  %v12809_v30 = vld [vmem:[%s11796_s16 + $0x30] sm:$0x8]  ;;  %v3277_v54 = vshll.u32 %v12789_v62, 16  ;;  %17269 = vst [vmem:[#allocation51_spill] sm:$0xff] %v12827_v42  ;;  %v17270_v55 = vshrl.u32 %v12569_v46, 16  ;;  %3197 = vrot.lane.b32.xlu1 %v12602_v10, %s11130_s27 }
 0x2b2   : >> { %v1519_v24 = vor.u32 %v1518_v33, %v1515_v51  ;;  %v1528_v29 = vshrl.u32 %v1423_v40, 16  ;;  %v1531_v8 = vshll.u32 %v1423_v40, 16  ;;  %v1421_v45 = vsel %vm859_vm9, %v1387_v4, %v1347_v9  ;;  %v12817_v51 = vpop.permute.xlu1 %1352  ;;  %v12820_v33 = vld [vmem:[%s11796_s16 + $0x40] sm:$0x8]  ;;  %v12850_v9 = vld [vmem:[%s11796_s16 + $0x34] sm:$0xf] }
 0x2b3   : >> { %v1512_v38 = vor.u32 %v1511_v17, %v1508_v41  ;;  %v1521_v18 = vshrl.u32 %v1421_v45, 16  ;;  %v1524_v16 = vshll.u32 %v1421_v45, 16  ;;  %17268 = vst [vmem:[#allocation14_spill] sm:$0xff] %v12817_v51  ;;  %v3170_v36 = vor.u32 %v12661_v48, %v17270_v55  ;;  %v12833_v12 = vld [vmem:[%s12066_s23 + $0x2c] ss:$0 sps:$4 sm:$0x11]  }
 0x2b4   : >> { %v1530_v56 = vrot.slane %v1528_v29, 3  ;;  %v1533_v23 = vrot.slane %v1531_v8, 4  ;;  %v3160_v6 = vsel %vm3058_vm12, %v12642_v57, %v12586_v2  ;;  %v3274_v41 = vrot.slane %v3272_v32, 6  ;;  %v12845_v40 = vld [vmem:[%s12066_s23 + $0x3c] ss:$0 sps:$4 sm:$0x11]   ;;  %3195 = vrot.lane.b32.xlu0 %v12611_v0, %s11130_s27 }
 0x2b5   : >> { %v1523_v59 = vrot.slane %v1521_v18, 3  ;;  %v1526_v5 = vrot.slane %v1524_v16, 4  ;;  %v12836_v63 = vsel %vm1430_vm13, %v1512_v38, %v1519_v24  ;;  %v3282_v17 = vshrl.u32 %v12527_v31, 16  ;;  %17272 = vst [vmem:[#allocation43_spill] sm:$0xff] %v12845_v40  ;;  %v12869_v18 = vpop.permute.xlu0 %1723  ;;  %3201 = vrot.lane.b32.xlu1 %v12613_v11, %s11130_s27 }
 0x2b6   : >> { %17271 = vst [vmem:[#allocation10_spill] sm:$0xff] %v12836_v63  ;;  %v1534_v4 = vor.u32 %v1533_v23, %v1530_v56  ;;  %v3285_v24 = vshll.u32 %v12527_v31, 16  ;;  %v3295_v2 = vshrl.u32 %v12634_v3, 16  ;;  %v12857_v57 = vld [vmem:[%s12066_s23 + $0x4c] ss:$0 sps:$4 sm:$0x11]   ;;  %v12859_v32 = vpop.permute.xlu1 %1725  ;;  %v3175_v16 = vsel %vm3058_vm12, %v3170_v36, %v12604_v25 }
 0x2b7   : >> { %v1527_v48 = vor.u32 %v1526_v5, %v1523_v59  ;;  %17273 = vst [vmem:[#allocation9_spill] sm:$0xff] %v12857_v57  ;;  %v12861_v29 = vrot.slane %v3277_v54, 6  ;;  %v3290_v8 = vshll.u32 %v12815_v47, 16  ;;  %v3298_v0 = vshll.u32 %v12634_v3, 16  ;;  %v12874_v56 = vld [vmem:[%s11796_s16 + $0x44] sm:$0xf] }
 0x2b8   : >> { %v3308_v45 = vshrl.u32 %v12623_v27, 16  ;;  %v12867_v38 = vld [vmem:[%s12066_s23 + $0x5c] ss:$0 sps:$4 sm:$0x11]   ;;  %v3311_v54 = vshll.u32 %v12623_v27, 16  ;;  %v3321_v59 = vshrl.u32 %v12651_v50, 16  ;;  %3199 = vrot.lane.b32.xlu0 %v12616_v19, %s11130_s27 }
 0x2b9   : >> { %17274 = vst [vmem:[#allocation32_spill] sm:$0xff] %v12867_v38  ;;  %v3324_v5 = vshll.u32 %v12651_v50, 16  ;;  %v3334_v55 = vshrl.u32 %v12647_v44, 16  ;;  %v3337_v21 = vshll.u32 %v12647_v44, 16  ;;  %v12889_v36 = vsel %vm1430_vm13, %v1527_v48, %v1534_v4  ;;  %v12899_v48 = vpop.permute.xlu0 %1727  ;;  %3205 = vrot.lane.b32.xlu1 %v12628_v15, %s11130_s27 }
 0x2ba   : >> { %v12886_v25 = vld [vmem:[%s12066_s23 + $0x6c] ss:$0 sps:$4 sm:$0x11]   ;;  %17276 = vst [vmem:[#allocation47_spill] sm:$0xff] %v12889_v36  ;;  %v3284_v23 = vrot.slane %v3282_v17, 5  ;;  %v3287_v53 = vrot.slane %v3285_v24, 6  ;;  %v12894_v46 = vpop.permute.xlu1 %1729 }
 0x2bb   : >> { %17275 = vst [vmem:[#allocation31_spill] sm:$0xff] %v12886_v25  ;;  %v3297_v10 = vrot.slane %v3295_v2, 5  ;;  %v3303_v11 = vshll.u32 %v12833_v12, 16  ;;  %v3300_v20 = vrot.slane %v3298_v0, 6  ;;  %v3316_v63 = vshll.u32 %v12845_v40, 16 }
 0x2bc   : >> { %v3347_v22 = vshrl.u32 %v12726_v37, 16  ;;  %v3350_v4 = vshll.u32 %v12726_v37, 16  ;;  %v3310_v36 = vrot.slane %v3308_v45, 5  ;;  %v3313_v19 = vrot.slane %v3311_v54, 6  ;;  %v12905_v2 = vld [vmem:[%s11796_s16 + $0x50] sm:$0x8]  ;;  %3203 = vrot.lane.b32.xlu0 %v3160_v6, %s11130_s27 }
 0x2bd   : >> { %v3323_v17 = vrot.slane %v3321_v59, 5  ;;  %v3329_v24 = vshll.u32 %v12857_v57, 16  ;;  %v12908_v0 = vld [vmem:[%s11796_s16 + $0x60] sm:$0x8]  ;;  %v3326_v49 = vrot.slane %v3324_v5, 6  ;;  %v3336_v42 = vrot.slane %v3334_v55, 5  ;;  %3209 = vrot.lane.b32.xlu1 %v12659_v7, %s11130_s27 }
 0x2be   : >> { %v3339_v51 = vrot.slane %v3337_v21, 6  ;;  %v3342_v35 = vshll.u32 %v12867_v38, 16  ;;  %v12913_v45 = vor.u32 %v3274_v41, %v12824_v60  ;;  %v12915_v54 = vor.u32 %v3287_v53, %v3284_v23  ;;  %v12918_v15 = vld [vmem:[%s12066_s23 + $0x7c] ss:$0 sps:$4 sm:$0x11]   ;;  %v12920_v14 = vpop.permute.xlu1 %1733  ;;  %v12928_v60 = vpop.permute.xlu0 %1731 }
 0x2bf   : >> { %v3292_v59 = vrot.slane %v3290_v8, 6  ;;  %v3305_v1 = vrot.slane %v3303_v11, 6  ;;  %17277 = vst [vmem:[#allocation49_spill] sm:$0xff] %v12918_v15  ;;  %v12922_v52 = vor.u32 %v3300_v20, %v3297_v10  ;;  %v12925_v21 = vld [vmem:[%s11796_s16 + $0x70] sm:$0x8]  ;;  %v3349_v5 = vrot.slane %v3347_v22, 5 }
 0x2c0   : >> { %v3352_v55 = vrot.slane %v3350_v4, 6  ;;  %v3355_v6 = vshll.u32 %v12886_v25, 16  ;;  %v12930_v53 = vor.u32 %v3313_v19, %v3310_v36  ;;  %v3318_v41 = vrot.slane %v3316_v63, 6  ;;  %v12933_v8 = vld [vmem:[%s11796_s16 + $0x80] sm:$0x8]  ;;  %3207 = vrot.lane.b32.xlu0 %v3175_v16, %s11130_s27 }
 0x2c1   : >> { %v3360_v20 = vshrl.u32 %v12702_v34, 16  ;;  %v3363_v10 = vshll.u32 %v12702_v34, 16  ;;  %v12939_v22 = vor.u32 %v3326_v49, %v3323_v17  ;;  %v3331_v23 = vrot.slane %v3329_v24, 6  ;;  %v2962_v36 = vld [vmem:[%s12066_s23 + $0x4] sm:$0xe] }
 0x2c2   : >> { %v12941_v11 = vor.u32 %v3339_v51, %v3336_v42  ;;  %v3344_v4 = vrot.slane %v3342_v35, 6  ;;  %v12946_v63 = vld [vmem:[%s11796_s16 + $0x54] sm:$0xf]  ;;  %v3368_v51 = vshll.u32 %v12918_v15, 16  ;;  %v12961_v42 = vpop.permute.xlu1 %1737  ;;  %v12966_v16 = vsel %vm3267_vm14, %v12913_v45, %v12861_v29  ;;  %v12969_v17 = vld [vmem:[%s11796_s16 + $0x84] sm:$0xf]  ;;  %v12976_v38 = vpop.permute.xlu0 %1735 }
 0x2c3   : >> { %v12956_v49 = vld [vmem:[%s11796_s16 + $0x74] sm:$0xf]  ;;  %v12973_v7 = vor.u32 %v3352_v55, %v3349_v5  ;;  %v3357_v19 = vrot.slane %v3355_v6, 6  ;;  %v12980_v35 = vsel %vm3267_vm14, %v12915_v54, %v3292_v59  ;;  %v3362_v15 = vrot.slane %v3360_v20, 5  ;;  %v11017_v29 = vld [vmem:[%s12066_s23 + $0x8] sm:$0xf] }
 0x2c4   : >> { %17278 = vst [vmem:[#allocation52_spill] sm:$0xff] %v12941_v11  ;;  %v2963_v25 = vld [vmem:[%s12066_s23 + $0x14] sm:$0xe]  ;;  %v3365_v57 = vrot.slane %v3363_v10, 6  ;;  %v9600_v28 = vcombine.low %v2962_v36, %v11017_v29  ;;  %v12984_v40 = vld [vmem:[%s11796_s16 + $0x20] sm:$0x8]  ;;  %v12991_v5 = vsel %vm3267_vm14, %v12922_v52, %v3305_v1  ;;  %v12995_v59 = vsel %vm3267_vm14, %v12930_v53, %v3318_v41 }
 0x2c5   : >> { %17279 = vst [vmem:[#allocation13_spill] sm:$0xff] %v12973_v7  ;;  %v17280_v24 = vrot.slane %v12527_v31, 5  ;;  %v12999_v55 = vsel %vm3267_vm14, %v12939_v22, %v3331_v23  ;;  %v13003_v6 = vsel %vm3267_vm14, %v12941_v11, %v3344_v4  ;;  %v17281_v31 = vrot.slane %v12483_v39, 5  ;;  %v11018_v41 = vld [vmem:[%s16977_s3] sm:$0x3f]  }
 0x2c6   : >> { %v13008_v1 = vrot.slane %v3368_v51, 6  ;;  %v13014_v20 = vsel %vm2044_vm11, %v11018_v41, 0  ;;  %v11019_v23 = vld [vmem:[%s12066_s23 + $0x18] sm:$0xf]  ;;  %v1790_v36 = vpop.permute.xlu1 %1789  ;;  %v13025_v29 = vsel %vm3267_vm14, %v12973_v7, %v3357_v19  ;;  %v13033_v11 = vld [vmem:[%s11796_s16 + $0x24] sm:$0xf]  ;;  %v13043_v10 = vor.u32 %v3365_v57, %v3362_v15 }
 0x2c7   : >> { %3229 = vrot.lane.b32.xlu1 %v17280_v24, %s11131_s29  ;;  %3227 = vrot.lane.b32.xlu0 %v17281_v31, %s11131_s29  ;;  %v9601_v4 = vcombine.low %v2963_v25, %v11019_v23  ;;  %v17282_v24 = vld [vmem:[#allocation24_spill] sm:$0xff]  ;;  %17284 = vst [vmem:[#allocation44_spill] sm:$0xff] %v13025_v29  ;;  %v13028_v31 = vld [vmem:[%s11796_s16 + $0x28] sm:$0xf]  ;;  %17286 = vst [vmem:[#allocation53_spill] sm:$0xff] %v13033_v11  ;;  %v13045_v7 = vrot.slane %v9600_v28, 6 }
 0x2c8   : >> { %v17283_v39 = vcombine.low %v17282_v24, %v17282_v24  ;;  %17285 = vst [vmem:[#allocation12_spill] sm:$0xff] %v13028_v31  ;;  %v17287_v24 = vcombine.low %v12619_v26, %v17222_v43  ;;  %v13048_v41 = vld [vmem:[%s11796_s16 + $0x30] sm:$0x8]  ;;  %v17289_v28 = vrot.slane %v12634_v3, 5  ;;  %v13061_v15 = vld [vmem:[%s11796_s16 + $0x38] sm:$0xf] }
 0x2c9   : >> { %v13058_v57 = vrot.slane %v9601_v4, 6  ;;  %17290 = vst [vmem:[#allocation17_spill] sm:$0xff] %v13061_v15  ;;  %v13076_v4 = vld [vmem:[%s12066_s23 + $0x24] sm:$0xe]  ;;  %v17295_v3 = vrot.slane %v12647_v44, 5 }
 0x2ca   : >> { %v1823_v51 = vsel %vm716_vm8, %v17283_v39, %v12869_v18  ;;  %v1821_v19 = vsel %vm716_vm8, %v17287_v24, %v12869_v18  ;;  %v1788_v39 = vpop.permute.xlu0 %1787 }
 0x2cb   : >> { %v1862_v23 = vsel %vm859_vm9, %v1823_v51, %v1790_v36  ;;  %v1860_v25 = vsel %vm859_vm9, %v1821_v19, %v1788_v39  ;;  %v17288_v36 = vrot.slane %v12623_v27, 5  ;;  %3231 = vrot.lane.b32.xlu0 %v17289_v28, %s11131_s29  ;;  %v17291_v27 = vld [vmem:[#allocation22_spill] sm:$0xff] }
 0x2cc   : >> { %v1900_v31 = vshrl.u32 %v1862_v23, 16  ;;  %v1903_v29 = vshll.u32 %v1862_v23, 16  ;;  %v1893_v43 = vshrl.u32 %v1860_v25, 16  ;;  %v1896_v18 = vshll.u32 %v1860_v25, 16  ;;  %v1794_v25 = vpop.permute.xlu1 %1793 }
 0x2cd   : >> { %3233 = vrot.lane.b32.xlu1 %v17288_v36, %s11131_s29  ;;  %v17292_v19 = vcombine.low %v17291_v27, %v17291_v27  ;;  %v13071_v36 = vld [vmem:[%s11796_s16 + $0x34] sm:$0xf] }
 0x2ce   : >> { %v1902_v23 = vrot.slane %v1900_v31, 3  ;;  %v1905_v24 = vrot.slane %v1903_v29, 4  ;;  %17293 = vst [vmem:[#allocation48_spill] sm:$0xff] %v13071_v36  ;;  %v1895_v28 = vrot.slane %v1893_v43, 3  ;;  %v1898_v26 = vrot.slane %v1896_v18, 4 }
 0x2cf   : >> { %v1828_v39 = vsel %vm716_vm8, %v17292_v19, %v12859_v32  ;;  %v17294_v29 = vcombine.low %v12637_v58, %v17226_v13  ;;  %v1792_v19 = vpop.permute.xlu0 %1791  ;;  %v13092_v58 = vld [vmem:[%s12066_s23 + $0x28] sm:$0xf] }
 0x2d0   : >> { %v1866_v31 = vsel %vm859_vm9, %v1828_v39, %v1794_v25  ;;  %v1906_v36 = vor.u32 %v1905_v24, %v1902_v23  ;;  %v17296_v39 = vrot.slane %v12651_v50, 5  ;;  %v1899_v25 = vor.u32 %v1898_v26, %v1895_v28 }
 0x2d1   : >> { %v1826_v27 = vsel %vm716_vm8, %v17294_v29, %v12859_v32  ;;  %v1915_v51 = vshrl.u32 %v1866_v31, 16  ;;  %v1918_v15 = vshll.u32 %v1866_v31, 16  ;;  %3237 = vrot.lane.b32.xlu1 %v17295_v3, %s11131_s29  ;;  %v9602_v13 = vcombine.low %v13076_v4, %v13092_v58  ;;  %v1798_v29 = vpop.permute.xlu1 %1797  ;;  %v2966_v4 = vld [vmem:[%s12066_s23 + $0x44] sm:$0xe]  ;;  %v2967_v58 = vld [vmem:[%s12066_s23 + $0x54] sm:$0xe] }
 0x2d2   : >> { %v1864_v11 = vsel %vm859_vm9, %v1826_v27, %v1792_v19  ;;  %3235 = vrot.lane.b32.xlu0 %v17296_v39, %s11131_s29  ;;  %v17297_v27 = vld [vmem:[#allocation26_spill] sm:$0xff]  ;;  %v17299_v50 = vcombine.low %v12809_v30, %v12850_v9 }
 0x2d3   : >> { %v1908_v43 = vshrl.u32 %v1864_v11, 16  ;;  %v1911_v18 = vshll.u32 %v1864_v11, 16  ;;  %v1917_v32 = vrot.slane %v1915_v51, 3  ;;  %v1920_v31 = vrot.slane %v1918_v15, 4  ;;  %v1796_v28 = vpop.permute.xlu0 %1795 }
 0x2d4   : >> { %v17298_v44 = vcombine.low %v17297_v27, %v17297_v27  ;;  %v1831_v11 = vsel %vm716_vm8, %v17299_v50, %v12899_v48  ;;  %v1907_v15 = vsel %vm1430_vm13, %v1899_v25, %v1906_v36  ;;  %v3436_v36 = vrot.slane %v12833_v12, 6  ;;  %v2969_v12 = vld [vmem:[%s12066_s23 + $0x74] sm:$0xe] }
 0x2d5   : >> { %v1910_v26 = vrot.slane %v1908_v43, 3  ;;  %v1913_v24 = vrot.slane %v1911_v18, 4  ;;  %v1921_v51 = vor.u32 %v1920_v31, %v1917_v32  ;;  %v1868_v27 = vsel %vm859_vm9, %v1831_v11, %v1796_v28  ;;  %10302 = vmatprep.mubr.msk.bf16.mxu0 %vm2019_vm15, %v1907_v15  ;;  %v17302_v32 = vld [vmem:[#allocation25_spill] sm:$0xff] }
 0x2d6   : >> { %v1833_v23 = vsel %vm716_vm8, %v17298_v44, %v12899_v48  ;;  %v17300_v44 = vrot.slane %v12702_v34, 5  ;;  %v1923_v9 = vshrl.u32 %v1868_v27, 16  ;;  %v1926_v48 = vshll.u32 %v1868_v27, 16 }
 0x2d7   : >> { %v1870_v3 = vsel %vm859_vm9, %v1833_v23, %v1798_v29  ;;  %v1914_v30 = vor.u32 %v1913_v24, %v1910_v26  ;;  %v17301_v43 = vrot.slane %v12726_v37, 5  ;;  %v17303_v31 = vcombine.low %v17302_v32, %v17302_v32  ;;  %v1802_v23 = vpop.permute.xlu1 %1801  ;;  %v13130_v37 = vld [vmem:[%s16977_s3 + $0xc] sm:$0x3f]  }
 0x2d8   : >> { %v1930_v19 = vshrl.u32 %v1870_v3, 16  ;;  %v1933_v39 = vshll.u32 %v1870_v3, 16  ;;  %3241 = vrot.lane.b32.xlu1 %v17300_v44, %s11131_s29  ;;  %v17304_v34 = vcombine.low %v12820_v33, %v12874_v56  ;;  %v1925_v11 = vrot.slane %v1923_v9, 3  ;;  %v1800_v3 = vpop.permute.xlu0 %1799 }
 0x2d9   : >> { %3239 = vrot.lane.b32.xlu0 %v17301_v43, %s11131_s29  ;;  %v1838_v29 = vsel %vm716_vm8, %v17303_v31, %v12894_v46  ;;  %v1928_v26 = vrot.slane %v1926_v48, 4  ;;  %v1922_v28 = vsel %vm1430_vm13, %v1914_v30, %v1921_v51  ;;  %v13143_v51 = vsel %vm3267_vm14, %v13043_v10, %v13008_v1  ;;  %v17305_v48 = vld [vmem:[#allocation28_spill] sm:$0xff] }
 0x2da   : >> { %v1932_v18 = vrot.slane %v1930_v19, 3  ;;  %v1935_v25 = vrot.slane %v1933_v39, 4  ;;  %v1836_v50 = vsel %vm716_vm8, %v17304_v34, %v12894_v46  ;;  %v1874_v24 = vsel %vm859_vm9, %v1838_v29, %v1802_v23  ;;  %10303 = vmatmul.mubr.msk.bf16.vlgmr.msra.gmra.mrb[0].mxu0 %vm2019_vm15, %v1922_v28  ;;  %v17309_v28 = vld [vmem:[#allocation27_spill] sm:$0xff] }
 0x2db   : >> { %v1945_v19 = vshrl.u32 %v1874_v24, 16  ;;  %v1948_v39 = vshll.u32 %v1874_v24, 16  ;;  %v1872_v27 = vsel %vm859_vm9, %v1836_v50, %v1800_v3  ;;  %v1929_v46 = vor.u32 %v1928_v26, %v1925_v11  ;;  %10319 = vmatpush3.bf16.msra.mxu0 %v13014_v20  ;;  %v1806_v9 = vpop.permute.xlu1 %1805 }
 0x2dc   : >> { %v1936_v15 = vor.u32 %v1935_v25, %v1932_v18  ;;  %3374 = vrot.lane.b32.xlu1 %v12966_v16, %s11132_s26  ;;  %v1938_v33 = vshrl.u32 %v1872_v27, 16  ;;  %v1941_v56 = vshll.u32 %v1872_v27, 16  ;;  %v17306_v16 = vcombine.low %v17305_v48, %v17305_v48  ;;  %10578 = vmatprep.subr.msk.bf16.mxu0 %vm2044_vm11, %v13130_v37  ;;  %v1804_v32 = vpop.permute.xlu0 %1803 }
 0x2dd   : >> { %3372 = vrot.lane.b32.xlu0 %v12913_v45, %s11132_s26  ;;  %v1947_v44 = vrot.slane %v1945_v19, 3  ;;  %v1950_v30 = vrot.slane %v1948_v39, 4  ;;  %v17307_v45 = vcombine.low %v12905_v2, %v12946_v63  ;;  %v17308_v11 = vrot.slane %v12789_v62, 6 }
 0x2de   : >> { %v1843_v43 = vsel %vm716_vm8, %v17306_v16, %v12928_v60  ;;  %v1940_v1 = vrot.slane %v1938_v33, 3  ;;  %v1943_v20 = vrot.slane %v1941_v56, 4  ;;  %v1937_v31 = vsel %vm1430_vm13, %v1929_v46, %v1936_v15  ;;  %v13191_v16 = vld [vmem:[%s11796_s16 + $0x48] sm:$0xf] }
 0x2df   : >> { %v1841_v18 = vsel %vm716_vm8, %v17307_v45, %v12928_v60  ;;  %v1878_v25 = vsel %vm859_vm9, %v1843_v43, %v1806_v9  ;;  %v1951_v29 = vor.u32 %v1950_v30, %v1947_v44  ;;  %10306 = vmatprep.mubr.msk.bf16.mxu0 %vm2019_vm15, %v1937_v31  ;;  %v13170_v26 = vsel %vm741_vm7, %v13045_v7, %v17308_v11  ;;  %v1810_v19 = vpop.permute.xlu1 %1809  ;;  %v13206_v31 = vld [vmem:[%s11796_s16 + $0x40] sm:$0x8] }
 0x2e0   : >> { %v1960_v23 = vshrl.u32 %v1878_v25, 16  ;;  %v1963_v34 = vshll.u32 %v1878_v25, 16  ;;  %v1876_v50 = vsel %vm859_vm9, %v1841_v18, %v1804_v32  ;;  %3378 = vrot.lane.b32.xlu1 %v12980_v35, %s11132_s26  ;;  %v1944_v2 = vor.u32 %v1943_v20, %v1940_v1  ;;  %v1808_v33 = vpop.permute.xlu0 %1807  ;;  %v17312_v20 = vld [vmem:[#allocation30_spill] sm:$0xff] }
 0x2e1   : >> { %v1953_v60 = vshrl.u32 %v1876_v50, 16  ;;  %v1956_v63 = vshll.u32 %v1876_v50, 16  ;;  %3376 = vrot.lane.b32.xlu0 %v12915_v54, %s11132_s26  ;;  %v17310_v15 = vcombine.low %v17309_v28, %v17309_v28  ;;  %v17311_v39 = vcombine.low %v12908_v0, %v12951_v61  ;;  %v13423_v28 = vld [vmem:[%s12066_s23 + $0x48] sm:$0xf] }
 0x2e2   : >> { %v1962_v24 = vrot.slane %v1960_v23, 3  ;;  %v1965_v3 = vrot.slane %v1963_v34, 4  ;;  %v1952_v56 = vsel %vm1430_vm13, %v1944_v2, %v1951_v29  ;;  %v17313_v25 = vcombine.low %v17312_v20, %v17312_v20 }
 0x2e3   : >> { %v1848_v35 = vsel %vm716_vm8, %v17310_v15, %v12920_v14  ;;  %v1846_v54 = vsel %vm716_vm8, %v17311_v39, %v12920_v14  ;;  %v1955_v62 = vrot.slane %v1953_v60, 3  ;;  %v1958_v27 = vrot.slane %v1956_v63, 4  ;;  %10307 = vmatmul.mubr.msk.bf16.gmra.mrb[4].mxu0 %vm2019_vm15, %v1952_v56  ;;  %v1814_v1 = vpop.permute.xlu1 %1813 }
 0x2e4   : >> { %v1882_v46 = vsel %vm859_vm9, %v1848_v35, %v1810_v19  ;;  %v1966_v44 = vor.u32 %v1965_v3, %v1962_v24  ;;  %v1880_v48 = vsel %vm859_vm9, %v1846_v54, %v1808_v33  ;;  %3382 = vrot.lane.b32.xlu1 %v12991_v5, %s11132_s26  ;;  %v1853_v5 = vsel %vm716_vm8, %v17313_v25, %v12976_v38  ;;  %v1812_v50 = vpop.permute.xlu0 %1811  ;;  %v13217_v3 = vld [vmem:[%s11796_s16 + $0x44] sm:$0xf] }
 0x2e5   : >> { %v1975_v30 = vshrl.u32 %v1882_v46, 16  ;;  %v1978_v9 = vshll.u32 %v1882_v46, 16  ;;  %v1959_v14 = vor.u32 %v1958_v27, %v1955_v62  ;;  %v1968_v61 = vshrl.u32 %v1880_v48, 16  ;;  %3380 = vrot.lane.b32.xlu0 %v12922_v52, %s11132_s26  ;;  %v17315_v19 = vld [vmem:[#allocation29_spill] sm:$0xff] }
 0x2e6   : >> { %v1971_v0 = vshll.u32 %v1880_v48, 16  ;;  %v17314_v32 = vcombine.low %v12925_v21, %v12956_v49  ;;  %v1886_v34 = vsel %vm859_vm9, %v1853_v5, %v1814_v1  ;;  %v17316_v39 = vcombine.low %v17315_v19, %v17315_v19  ;;  %v13252_v1 = vld [vmem:[%s11796_s16 + $0x50] sm:$0x8]  ;;  %v17323_v19 = vld [vmem:[#allocation52_spill] sm:$0xff] }
 0x2e7   : >> { %v1977_v45 = vrot.slane %v1975_v30, 3  ;;  %v1980_v18 = vrot.slane %v1978_v9, 4  ;;  %v1970_v29 = vrot.slane %v1968_v61, 3  ;;  %v1967_v2 = vsel %vm1430_vm13, %v1959_v14, %v1966_v44  ;;  %v1818_v54 = vpop.permute.xlu1 %1817  ;;  %v13234_v30 = vld [vmem:[%s12066_s23 + $0x34] sm:$0xe] }
 0x2e8   : >> { %v1851_v52 = vsel %vm716_vm8, %v17314_v32, %v12976_v38  ;;  %v1973_v23 = vrot.slane %v1971_v0, 4  ;;  %v1990_v63 = vshrl.u32 %v1886_v34, 16  ;;  %v1993_v11 = vshll.u32 %v1886_v34, 16  ;;  %10310 = vmatprep.mubr.msk.bf16.mxu0 %vm2019_vm15, %v1967_v2  ;;  %3386 = vrot.lane.b32.xlu1 %v12995_v59, %s11132_s26  ;;  %v1816_v56 = vpop.permute.xlu0 %1815 }
 0x2e9   : >> { %v1981_v60 = vor.u32 %v1980_v18, %v1977_v45  ;;  %v1884_v24 = vsel %vm859_vm9, %v1851_v52, %v1812_v50  ;;  %3384 = vrot.lane.b32.xlu0 %v12930_v53, %s11132_s26  ;;  %v1858_v59 = vsel %vm716_vm8, %v17316_v39, %v12961_v42  ;;  %v17317_v53 = vcombine.low %v12933_v8, %v12969_v17  ;;  %v9610_v8 = vld [vmem:[%s12066_s23 + $0x10] sm:$0x8]  ;;  %v2968_v50 = vld [vmem:[%s12066_s23 + $0x64] sm:$0xe]  ;;  %v11030_v39 = vld [vmem:[%s12066_s23 + $0x48] sm:$0xf] }
 0x2ea   : >> { %v1974_v38 = vor.u32 %v1973_v23, %v1970_v29  ;;  %v1983_v21 = vshrl.u32 %v1884_v24, 16  ;;  %v1986_v49 = vshll.u32 %v1884_v24, 16  ;;  %v1992_v15 = vrot.slane %v1990_v63, 3  ;;  %v17321_v63 = vld [vmem:[#allocation43_spill] sm:$0xff]  ;;  %v13281_v24 = vld [vmem:[%s11796_s16 + $0x58] sm:$0xf] }
 0x2eb   : >> { %v1995_v35 = vrot.slane %v1993_v11, 4  ;;  %v1856_v62 = vsel %vm716_vm8, %v17317_v53, %v12961_v42  ;;  %v1890_v33 = vsel %vm859_vm9, %v1858_v59, %v1818_v54  ;;  %v13242_v42 = vld [vmem:[%s12066_s23 + $0x14] sm:$0xf]  ;;  %v13249_v18 = vrot.slane %v9602_v13, 6  ;;  %v13254_v25 = vpop.permute.xlu1 %2448  ;;  %v13300_v54 = vld [vmem:[%s11796_s16 + $0x68] sm:$0xf] }
 0x2ec   : >> { %v1985_v27 = vrot.slane %v1983_v21, 3  ;;  %v1988_v46 = vrot.slane %v1986_v49, 4  ;;  %v1982_v44 = vsel %vm1430_vm13, %v1974_v38, %v1981_v60  ;;  %v2005_v48 = vshrl.u32 %v1890_v33, 16  ;;  %3390 = vrot.lane.b32.xlu1 %v12999_v55, %s11132_s26  ;;  %17318 = vst [vmem:[#allocation16_spill] sm:$0xff] %v13242_v42  ;;  %v13266_v23 = vpop.permute.xlu0 %2446  ;;  %v13286_v21 = vld [vmem:[%s11796_s16 + $0x54] sm:$0xf] }
 0x2ed   : >> { %v1996_v9 = vor.u32 %v1995_v35, %v1992_v15  ;;  %v2008_v14 = vshll.u32 %v1890_v33, 16  ;;  %v1888_v61 = vsel %vm859_vm9, %v1856_v62, %v1816_v56  ;;  %10311 = vmatmul.mubr.msk.bf16.gmra.mrb[8].mxu0 %vm2019_vm15, %v1982_v44  ;;  %3388 = vrot.lane.b32.xlu0 %v12939_v22, %s11132_s26  ;;  %v17319_v5 = vrot.slane %v12815_v47, 6  ;;  %v11027_v22 = vld [vmem:[%s12066_s23 + $0x38] sm:$0xf]  ;;  %v13270_v47 = vld [vmem:[%s11796_s16 + $0x60] sm:$0x8] }
 0x2ee   : >> { %v1989_v17 = vor.u32 %v1988_v46, %v1985_v27  ;;  %v1998_v0 = vshrl.u32 %v1888_v61, 16  ;;  %v2001_v45 = vshll.u32 %v1888_v61, 16  ;;  %v2007_v55 = vrot.slane %v2005_v48, 3  ;;  %v13291_v15 = vld [vmem:[%s11796_s16 + $0x70] sm:$0x8]  ;;  %v17336_v61 = vld [vmem:[#allocation32_spill] sm:$0xff] }
 0x2ef   : >> { %v2010_v20 = vrot.slane %v2008_v14, 4  ;;  %v13260_v32 = vsel %vm741_vm7, %v13058_v57, %v17319_v5  ;;  %v9603_v52 = vcombine.low %v13234_v30, %v11027_v22  ;;  %v13274_v2 = vcombine.low %v9610_v8, %v13242_v42  ;;  %v13294_v35 = vld [vmem:[%s12066_s23 + $0x18] sm:$0xf]  ;;  %v13306_v46 = vld [vmem:[%s11796_s16 + $0x80] sm:$0x8]  ;;  %v13312_v44 = vpop.permute.xlu1 %2452 }
 0x2f0   : >> { %v2000_v13 = vrot.slane %v1998_v0, 3  ;;  %v2003_v29 = vrot.slane %v2001_v45, 4  ;;  %v1997_v34 = vsel %vm1430_vm13, %v1989_v17, %v1996_v9  ;;  %3394 = vrot.lane.b32.xlu1 %v13003_v6, %s11132_s26  ;;  %v3439_v11 = vrot.slane %v17321_v63, 6  ;;  %17322 = vst [vmem:[#allocation20_spill] sm:$0xff] %v13294_v35  ;;  %v11032_v62 = vld [vmem:[%s12066_s23 + $0x58] sm:$0xf]  ;;  %v13332_v0 = vpop.permute.xlu0 %2450 }
 0x2f1   : >> { %17320 = vst [vmem:[#allocation15_spill] sm:$0xff] %v13274_v2  ;;  %v2011_v60 = vor.u32 %v2010_v20, %v2007_v55  ;;  %10314 = vmatprep.mubr.msk.bf16.mxu0 %vm2019_vm15, %v1997_v34  ;;  %3392 = vrot.lane.b32.xlu0 %v17323_v19, %s11132_s26  ;;  %v9604_v59 = vcombine.low %v2966_v4, %v11030_v39  ;;  %17324 = vst [vmem:[#allocation50_spill] sm:$0xff] %v13306_v46  ;;  %v9613_v33 = vld [vmem:[%s12066_s23 + $0x20] sm:$0x8]  ;;  %v13310_v56 = vld [vmem:[%s12066_s23 + $0x24] sm:$0xf] }
 0x2f2   : >> { %v2004_v6 = vor.u32 %v2003_v29, %v2000_v13  ;;  %v9605_v27 = vcombine.low %v2967_v58, %v11032_v62  ;;  %17325 = vst [vmem:[#allocation19_spill] sm:$0xff] %v13310_v56  ;;  %v13318_v30 = vsel %vm741_vm7, %v13249_v18, %v3436_v36  ;;  %v13321_v9 = vld [vmem:[%s11796_s16 + $0x64] sm:$0xf]  ;;  %v13326_v14 = vld [vmem:[%s11796_s16 + $0x78] sm:$0xf]  ;;  %v13342_v20 = vcombine.low %v13294_v35, %v13294_v35 }
 0x2f3   : >> { %v11035_v8 = vld [vmem:[%s12066_s23 + $0x68] sm:$0xf]  ;;  %v13336_v45 = vld [vmem:[%s11796_s16 + $0x74] sm:$0xf]  ;;  %v3799_v5 = vshll.u32 %v13274_v2, 16  ;;  %v17327_v58 = vld [vmem:[#allocation44_spill] sm:$0xff]  ;;  %v13368_v19 = vcombine.low %v9613_v33, %v13310_v56  ;;  %v13383_v33 = vpop.permute.xlu1 %2456 }
 0x2f4   : >> { %v9606_v17 = vcombine.low %v2968_v50, %v11035_v8  ;;  %v2012_v36 = vsel %vm1430_vm13, %v2004_v6, %v2011_v60  ;;  %v9616_v22 = vld [vmem:[%s12066_s23 + $0x30] sm:$0x8]  ;;  %v13347_v4 = vld [vmem:[%s12066_s23 + $0x34] sm:$0xf]  ;;  %3398 = vrot.lane.b32.xlu1 %v17327_v58, %s11132_s26  ;;  %v13352_v13 = vrot.slane %v9603_v52, 6  ;;  %v17332_v39 = vld [vmem:[#allocation13_spill] sm:$0xff] }
 0x2f5   : >> { %17326 = vst [vmem:[#allocation24_spill] sm:$0xff] %v13347_v4  ;;  %10315 = vmatmul.mubr.msk.bf16.gmra.mrb[12].mxu0 %vm2019_vm15, %v2012_v36  ;;  %v13355_v29 = vld [vmem:[%s11796_s16 + $0x88] sm:$0xf]  ;;  %v13360_v50 = vld [vmem:[%s11796_s16 + $0x84] sm:$0xf]  ;;  %17331 = vst [vmem:[#allocation28_spill] sm:$0xff] %v13368_v19  ;;  %3396 = vrot.lane.b32.xlu0 %v17332_v39, %s11132_s26 }
 0x2f6   : >> { %17328 = vst [vmem:[#allocation22_spill] sm:$0xff] %v13355_v29  ;;  %17329 = vst [vmem:[#allocation26_spill] sm:$0xff] %v13360_v50  ;;  %v13365_v6 = vld [vmem:[%s11796_s16 + $0x90] sm:$0x8]  ;;  %v17333_v52 = vld [vmem:[#allocation37_spill] sm:$0xff]  ;;  %v13374_v62 = vrot.slane %v9604_v59, 6 }
 0x2f7   : >> { %17330 = vst [vmem:[#allocation25_spill] sm:$0xff] %v13365_v6  ;;  %10320 = vmatprep.mubr.msk.bf16.mxu0 %vm2019_vm15, %v17333_v52  ;;  %v17334_v8 = vld [vmem:[#allocation9_spill] sm:$0xff]  ;;  %v13377_v58 = vrot.slane %v9605_v27, 6  ;;  %v11039_v34 = vld [vmem:[%s12066_s23 + $0x78] sm:$0xf]  ;;  %v3445_v48 = vrot.slane %v17336_v61, 6  ;;  %v13395_v27 = vpop.permute.xlu0 %2454  ;;  %v13442_v42 = vpop.permute.xlu1 %2460 }
 0x2f8   : >> { %v3442_v36 = vrot.slane %v17334_v8, 6  ;;  %v9607_v60 = vcombine.low %v2969_v12, %v11039_v34  ;;  %v13381_v55 = vld [vmem:[%s12066_s23 + $0x28] sm:$0xf]  ;;  %v13386_v53 = vrot.slane %v9606_v17, 6  ;;  %v17337_v39 = vld [vmem:[#allocation31_spill] sm:$0xff]  ;;  %v13393_v8 = vcombine.low %v9616_v22, %v13347_v4  ;;  %3402 = vrot.lane.b32.xlu1 %v13143_v51, %s11132_s26  ;;  %17342 = vst [vmem:[#allocation44_spill] sm:$0xff] %v13423_v28 }
 0x2f9   : >> { %17335 = vst [vmem:[#allocation27_spill] sm:$0xff] %v13381_v55  ;;  %v3448_v52 = vrot.slane %v17337_v39, 6  ;;  %v13390_v59 = vld [vmem:[%s12066_s23 + $0x38] sm:$0xf]  ;;  %v3804_v61 = vshll.u32 %v13342_v20, 16  ;;  %v3797_v17 = vshrl.u32 %v13274_v2, 16  ;;  %v13410_v22 = vsel %vm741_vm7, %v13352_v13, %v3439_v11  ;;  %3400 = vrot.lane.b32.xlu0 %v13043_v10, %s11132_s26 }
 0x2fa   : >> { %17338 = vst [vmem:[#allocation30_spill] sm:$0xff] %v13390_v59  ;;  %17339 = vst [vmem:[#allocation29_spill] sm:$0xff] %v13393_v8  ;;  %v13398_v12 = vld [vmem:[%s11796_s16 + $0x98] sm:$0xf]  ;;  %v3801_v49 = vrot.slane %v3799_v5, 1  ;;  %v13419_v38 = vcombine.low %v13381_v55, %v13381_v55  ;;  %v3814_v5 = vshll.u32 %v13368_v19, 16  ;;  %v13429_v51 = vsel %vm741_vm7, %v13374_v62, %v3442_v36 }
 0x2fb   : >> { %17340 = vst [vmem:[#allocation43_spill] sm:$0xff] %v13398_v12  ;;  %v13413_v39 = vld [vmem:[%s11796_s16 + $0x94] sm:$0xf]  ;;  %v13431_v63 = vrot.slane %v9607_v60, 6  ;;  %v17343_v11 = vld [vmem:[#allocation49_spill] sm:$0xff]  ;;  %v13436_v34 = vcombine.low %v13390_v59, %v13390_v59  ;;  %17345 = vst [vmem:[#allocation37_spill] sm:$0xff] %v13442_v42  ;;  %v13446_v10 = vsel %vm741_vm7, %v13377_v58, %v3445_v48  ;;  %v13450_v36 = vsel %vm741_vm7, %v13386_v53, %v3448_v52  ;;  %v13455_v59 = vpop.permute.xlu0 %2458 }
 0x2fc   : >> { %17341 = vst [vmem:[#allocation52_spill] sm:$0xff] %v13413_v39  ;;  %v3451_v43 = vrot.slane %v17343_v11, 6  ;;  %v9619_v2 = vld [vmem:[%s12066_s23 + $0x40] sm:$0x8]  ;;  %v13440_v4 = vld [vmem:[%s12066_s23 + $0x44] sm:$0xf]  ;;  %v3802_v55 = vor.u32 %v3801_v49, %v3797_v17  ;;  %v13460_v48 = vcombine.low %v13423_v28, %v13423_v28 }
 0x2fd   : >> { %17344 = vst [vmem:[#allocation13_spill] sm:$0xff] %v13440_v4  ;;  %v2766_v60 = vsel %vm2044_vm11, %v13130_v37, 0  ;;  %v3829_v11 = vshll.u32 %v13393_v8, 16  ;;  %17346 = vst [vmem:[#allocation9_spill] sm:$0xff] %v13455_v59  ;;  %v3806_v35 = vrot.slane %v3804_v61, 1  ;;  %v3808_v56 = vshrl.u32 %v13342_v20, 16 }
 0x2fe   : >> { %v17347_v39 = vld [vmem:[#allocation23_spill] sm:$0xff]  ;;  %s11133_s16 = smov 16   ;;  %v3819_v37 = vshll.u32 %v13419_v38, 16  ;;  %v3812_v52 = vshrl.u32 %v13368_v19, 16  ;;  %v3816_v61 = vrot.slane %v3814_v5, 1  ;;  %v13469_v20 = vcombine.low %v9619_v2, %v13440_v4  ;;  %v17349_v49 = vld [vmem:[#allocation54_spill] sm:$0xff] }
 0x2ff   : >> { %10321 = vmatmul.mubr.msk.bf16.vlgmr.msra.gmra.mrb[0].mxu0 %vm2019_vm15, %v17347_v39  ;;  %3455 = vrot.lane.b32.xlu1 %v13170_v26, %s11133_s16  ;;  %v17350_v17 = vld [vmem:[#allocation18_spill] sm:$0xff]  ;;  %v17352_v39 = vld [vmem:[#allocation33_spill] sm:$0xff]  ;;  %v13487_v2 = vsel %vm741_vm7, %v13431_v63, %v3451_v43  ;;  %v3834_v5 = vshll.u32 %v13436_v34, 16  ;;  %v13498_v50 = vor.u32 %v3808_v56, %v3806_v35  ;;  %v13501_v43 = vsel %vm3058_vm12, %v3802_v55, %v3806_v35  ;;  %v17365_v59 = vld [vmem:[#allocation11_spill] sm:$0xff] }
 0x300   : >> { %17348 = vst [vmem:[#allocation32_spill] sm:$0xff] %v13469_v20  ;;  %v17351_v28 = vcombine.low %v17350_v17, %v17350_v17  ;;  %v17353_v12 = vld [vmem:[#allocation34_spill] sm:$0xff]  ;;  %3453 = vrot.lane.b32.xlu0 %v13045_v7, %s11133_s16  ;;  %v13491_v17 = vld [vmem:[%s12066_s23 + $0x58] sm:$0xf]  ;;  %10337 = vmatpush3.bf16.msra.mxu0 %v2766_v60  ;;  %v3827_v7 = vshrl.u32 %v13393_v8, 16  ;;  %17360 = vst [vmem:[#allocation23_spill] sm:$0xff] %v13501_v43 }
 0x301   : >> { %v17354_v42 = vcombine.low %v17352_v39, %v17353_v12  ;;  %v17355_v19 = vld [vmem:[#allocation42_spill] sm:$0xff]  ;;  %17356 = vst [vmem:[#allocation31_spill] sm:$0xff] %v13491_v17  ;;  %v17358_v12 = vld [vmem:[#allocation51_spill] sm:$0xff]  ;;  %v3831_v39 = vrot.slane %v3829_v11, 1  ;;  %17359 = vst [vmem:[#allocation49_spill] sm:$0xff] %v13498_v50  ;;  %v3823_v46 = vshrl.u32 %v13419_v38, 16  ;;  %v13510_v11 = vcombine.low %v13491_v17, %v13491_v17 }
 0x302   : >> { %v1394_v6 = vsel %vm716_vm8, %v17351_v28, %v17349_v49  ;;  %10324 = vmatprep.mubr.msk.bf16.mxu0 %vm2019_vm15, %v17355_v19  ;;  %v17357_v28 = vld [vmem:[#allocation14_spill] sm:$0xff]  ;;  %v2511_v19 = vpop.permute.xlu0 %2510  ;;  %v3849_v29 = vshll.u32 %v13460_v48, 16  ;;  %v3844_v60 = vshll.u32 %v13469_v20, 16  ;;  %v17361_v38 = vld [vmem:[#allocation12_spill] sm:$0xff] }
 0x303   : >> { %v1392_v26 = vsel %vm716_vm8, %v17354_v42, %v17349_v49  ;;  %v1427_v4 = vsel %vm859_vm9, %v1394_v6, %v17357_v28  ;;  %v2513_v49 = vpop.permute.xlu1 %2512  ;;  %3459 = vrot.lane.b32.xlu1 %v13260_v32, %s11133_s16  ;;  %v3821_v6 = vrot.slane %v3819_v37, 1  ;;  %v17362_v55 = vcombine.low %v17361_v38, %v17361_v38 }
 0x304   : >> { %v1425_v42 = vsel %vm859_vm9, %v1392_v26, %v17358_v12  ;;  %v3817_v26 = vor.u32 %v3816_v61, %v3812_v52  ;;  %v1543_v56 = vshrl.u32 %v1427_v4, 16  ;;  %v1546_v28 = vshll.u32 %v1427_v4, 16  ;;  %3457 = vrot.lane.b32.xlu0 %v13058_v57, %s11133_s16  ;;  %v17363_v4 = vld [vmem:[#allocation53_spill] sm:$0xff] }
 0x305   : >> { %v1536_v12 = vshrl.u32 %v1425_v42, 16  ;;  %v1539_v35 = vshll.u32 %v1425_v42, 16  ;;  %v2546_v32 = vsel %vm716_vm8, %v17362_v55, %v13266_v23  ;;  %v3836_v52 = vrot.slane %v3834_v5, 1 }
 0x306   : >> { %v3838_v61 = vshrl.u32 %v13436_v34, 16  ;;  %v3832_v8 = vor.u32 %v3831_v39, %v3827_v7  ;;  %v2585_v17 = vsel %vm859_vm9, %v2546_v32, %v2513_v49  ;;  %v17364_v42 = vcombine.low %v12984_v40, %v17363_v4  ;;  %v2515_v43 = vpop.permute.xlu0 %2514  ;;  %v9622_v49 = vld [vmem:[%s12066_s23 + $0x50] sm:$0x8] }
 0x307   : >> { %v2517_v37 = vpop.permute.xlu1 %2516  ;;  %v3851_v50 = vrot.slane %v3849_v29, 1  ;;  %v3853_v38 = vshrl.u32 %v13460_v48, 16  ;;  %10325 = vmatmul.mubr.msk.bf16.gmra.mrb[4].mxu0 %vm2019_vm15, %v17365_v59  ;;  %3463 = vrot.lane.b32.xlu1 %v13318_v30, %s11133_s16  ;;  %v3842_v34 = vshrl.u32 %v13469_v20, 16  ;;  %v3846_v5 = vrot.slane %v3844_v60, 1  ;;  %v17366_v48 = vld [vmem:[#allocation21_spill] sm:$0xff] }
 0x308   : >> { %v2544_v57 = vsel %vm716_vm8, %v17364_v42, %v13266_v23  ;;  %v3864_v40 = vshll.u32 %v13510_v11, 16  ;;  %v1545_v23 = vrot.slane %v1543_v56, 3  ;;  %v1548_v7 = vrot.slane %v1546_v28, 4  ;;  %3461 = vrot.lane.b32.xlu0 %v13249_v18, %s11133_s16  ;;  %10328 = vmatprep.mubr.msk.bf16.mxu0 %vm2019_vm15, %v17366_v48  ;;  %v13540_v59 = vld [vmem:[%s12066_s23 + $0x54] sm:$0xf] }
 0x309   : >> { %v2583_v55 = vsel %vm859_vm9, %v2544_v57, %v2511_v19  ;;  %v1538_v39 = vrot.slane %v1536_v12, 3  ;;  %v1541_v29 = vrot.slane %v1539_v35, 4  ;;  %v2623_v19 = vshrl.u32 %v2585_v17, 16  ;;  %v17368_v57 = vld [vmem:[#allocation17_spill] sm:$0xff] }
 0x30a   : >> { %v13542_v32 = vor.u32 %v3823_v46, %v3821_v6  ;;  %v13545_v60 = vsel %vm3058_vm12, %v3817_v26, %v3821_v6  ;;  %v13547_v4 = vor.u32 %v3838_v61, %v3836_v52  ;;  %v2626_v56 = vshll.u32 %v2585_v17, 16  ;;  %v2519_v35 = vpop.permute.xlu0 %2518 }
 0x30b   : >> { %v2521_v30 = vpop.permute.xlu1 %2520  ;;  %v2616_v28 = vshrl.u32 %v2583_v55, 16  ;;  %v2619_v12 = vshll.u32 %v2583_v55, 16  ;;  %v13550_v18 = vsel %vm3058_vm12, %v3832_v8, %v3836_v52  ;;  %3467 = vrot.lane.b32.xlu1 %v13410_v22, %s11133_s16  ;;  %v13554_v42 = vor.u32 %v3853_v38, %v3851_v50  ;;  %v17370_v55 = vld [vmem:[#allocation48_spill] sm:$0xff] }
 0x30c   : >> { %v3847_v46 = vor.u32 %v3846_v5, %v3842_v34  ;;  %v3868_v6 = vshrl.u32 %v13510_v11, 16  ;;  %v13558_v26 = vcombine.low %v9622_v49, %v13540_v59  ;;  %v1549_v17 = vor.u32 %v1548_v7, %v1545_v23  ;;  %3465 = vrot.lane.b32.xlu0 %v13352_v13, %s11133_s16  ;;  %v13582_v13 = vld [vmem:[%s12066_s23 + $0x64] sm:$0xf] }
 0x30d   : >> { %v1542_v61 = vor.u32 %v1541_v29, %v1538_v39  ;;  %v17369_v8 = vcombine.low %v17368_v57, %v17368_v57  ;;  %v13567_v22 = vrot.slane %v3864_v40, 1  ;;  %v2625_v38 = vrot.slane %v2623_v19, 3  ;;  %v9625_v39 = vld [vmem:[%s12066_s23 + $0x60] sm:$0x8]  ;;  %v13586_v57 = vld [vmem:[%s12066_s23 + $0x68] sm:$0xf] }
 0x30e   : >> { %17367 = vst [vmem:[#allocation54_spill] sm:$0xff] %v13558_v26  ;;  %v17371_v34 = vcombine.low %v13048_v41, %v17370_v55  ;;  %v17372_v49 = vcombine.low %v13191_v16, %v13191_v16  ;;  %v2628_v40 = vrot.slane %v2626_v56, 4  ;;  %v2618_v29 = vrot.slane %v2616_v28, 3  ;;  %v2523_v19 = vpop.permute.xlu0 %2522 }
 0x30f   : >> { %v2551_v52 = vsel %vm716_vm8, %v17369_v8, %v13254_v25  ;;  %v2525_v7 = vpop.permute.xlu1 %2524  ;;  %v2621_v48 = vrot.slane %v2619_v12, 4  ;;  %v17373_v16 = vcombine.low %v13206_v31, %v13217_v3  ;;  %v17374_v8 = vld [vmem:[#allocation10_spill] sm:$0xff]  ;;  %3471 = vrot.lane.b32.xlu1 %v13429_v51, %s11133_s16  ;;  %v13599_v56 = vsel %vm3058_vm12, %v3847_v46, %v3851_v50 }
 0x310   : >> { %v2589_v11 = vsel %vm859_vm9, %v2551_v52, %v2517_v37  ;;  %v2549_v5 = vsel %vm716_vm8, %v17371_v34, %v13254_v25  ;;  %v2556_v23 = vsel %vm716_vm8, %v17372_v49, %v13332_v0  ;;  %10329 = vmatmul.mubr.msk.bf16.gmra.mrb[8].mxu0 %vm2019_vm15, %v17374_v8  ;;  %3469 = vrot.lane.b32.xlu0 %v13374_v62, %s11133_s16  ;;  %v13647_v8 = vld [vmem:[%s12066_s23 + $0x74] sm:$0xf] }
 0x311   : >> { %v2587_v37 = vsel %vm859_vm9, %v2549_v5, %v2515_v43  ;;  %v2593_v41 = vsel %vm859_vm9, %v2556_v23, %v2521_v30  ;;  %v2554_v25 = vsel %vm716_vm8, %v17373_v16, %v13332_v0  ;;  %v2638_v43 = vshrl.u32 %v2589_v11, 16  ;;  %v17375_v30 = vld [vmem:[#allocation47_spill] sm:$0xff] }
 0x312   : >> { %v2641_v28 = vshll.u32 %v2589_v11, 16  ;;  %v2591_v12 = vsel %vm859_vm9, %v2554_v25, %v2519_v35  ;;  %10332 = vmatprep.mubr.msk.bf16.mxu0 %vm2019_vm15, %v17375_v30  ;;  %v13607_v31 = vor.u32 %v3868_v6, %v13567_v22  ;;  %v2631_v3 = vshrl.u32 %v2587_v37, 16  ;;  %v2527_v62 = vpop.permute.xlu0 %2526  ;;  %v9628_v25 = vld [vmem:[%s12066_s23 + $0x70] sm:$0x8] }
 0x313   : >> { %v2634_v0 = vshll.u32 %v2587_v37, 16  ;;  %v2529_v52 = vpop.permute.xlu1 %2528  ;;  %v13611_v50 = vcombine.low %v13586_v57, %v13586_v57  ;;  %v13614_v51 = vcombine.low %v9625_v39, %v13582_v13  ;;  %v2629_v35 = vor.u32 %v2628_v40, %v2625_v38  ;;  %3475 = vrot.lane.b32.xlu1 %v13446_v10, %s11133_s16 }
 0x314   : >> { %v2622_v46 = vor.u32 %v2621_v48, %v2618_v29  ;;  %v2653_v11 = vshrl.u32 %v2593_v41, 16  ;;  %v1550_v55 = vsel %vm1430_vm13, %v1542_v61, %v1549_v17  ;;  %v2656_v34 = vshll.u32 %v2593_v41, 16  ;;  %3473 = vrot.lane.b32.xlu0 %v13377_v58, %s11133_s16 }
 0x315   : >> { %17376 = vst [vmem:[#allocation18_spill] sm:$0xff] %v13614_v51  ;;  %v2646_v5 = vshrl.u32 %v2591_v12, 16  ;;  %v2649_v6 = vshll.u32 %v2591_v12, 16  ;;  %v17377_v49 = vcombine.low %v13281_v24, %v13281_v24  ;;  %v2640_v39 = vrot.slane %v2638_v43, 3  ;;  %v13654_v12 = vld [vmem:[%s12066_s23 + $0x78] sm:$0xf] }
 0x316   : >> { %v2643_v38 = vrot.slane %v2641_v28, 4  ;;  %v17378_v17 = vcombine.low %v13252_v1, %v13286_v21  ;;  %v17379_v40 = vcombine.low %v13300_v54, %v13300_v54  ;;  %v2633_v10 = vrot.slane %v2631_v3, 3  ;;  %v2531_v16 = vpop.permute.xlu0 %2530 }
 0x317   : >> { %v2561_v23 = vsel %vm716_vm8, %v17377_v49, %v13312_v44  ;;  %v2636_v29 = vrot.slane %v2634_v0, 4  ;;  %v2533_v41 = vpop.permute.xlu1 %2532  ;;  %v2655_v1 = vrot.slane %v2653_v11, 3  ;;  %v17380_v54 = vcombine.low %v13270_v47, %v13321_v9  ;;  %3479 = vrot.lane.b32.xlu1 %v13450_v36, %s11133_s16 }
 0x318   : >> { %v2559_v61 = vsel %vm716_vm8, %v17378_v17, %v13312_v44  ;;  %v2566_v24 = vsel %vm716_vm8, %v17379_v40, %v13395_v27  ;;  %v2597_v48 = vsel %vm859_vm9, %v2561_v23, %v2525_v7  ;;  %v2630_v58 = vsel %vm1430_vm13, %v2622_v46, %v2629_v35  ;;  %10333 = vmatmul.mubr.msk.bf16.gmra.mrb[12].mxu0 %vm2019_vm15, %v1550_v55 }
 0x319   : >> { %v2595_v37 = vsel %vm859_vm9, %v2559_v61, %v2523_v19  ;;  %v2601_v21 = vsel %vm859_vm9, %v2566_v24, %v2529_v52  ;;  %v2564_v44 = vsel %vm716_vm8, %v17380_v54, %v13395_v27  ;;  %v2658_v7 = vrot.slane %v2656_v34, 4  ;;  %3477 = vrot.lane.b32.xlu0 %v13386_v53, %s11133_s16  ;;  %10338 = vmatprep.mubr.msk.bf16.mxu0 %vm2019_vm15, %v2630_v58  ;;  %v17388_v58 = vld [vmem:[#allocation26_spill] sm:$0xff] }
 0x31a   : >> { %v2648_v43 = vrot.slane %v2646_v5, 3  ;;  %v2651_v28 = vrot.slane %v2649_v6, 4  ;;  %v2599_v19 = vsel %vm859_vm9, %v2564_v44, %v2527_v62  ;;  %v2668_v47 = vshrl.u32 %v2597_v48, 16  ;;  %v2535_v55 = vpop.permute.xlu0 %2534  ;;  %v17387_v44 = vld [vmem:[#allocation50_spill] sm:$0xff] }
 0x31b   : >> { %v2671_v9 = vshll.u32 %v2597_v48, 16  ;;  %v2661_v27 = vshrl.u32 %v2595_v37, 16  ;;  %v2664_v30 = vshll.u32 %v2595_v37, 16  ;;  %v2644_v3 = vor.u32 %v2643_v38, %v2640_v39  ;;  %v2537_v46 = vpop.permute.xlu1 %2536  ;;  %3483 = vrot.lane.b32.xlu1 %v13487_v2, %s11133_s16 }
 0x31c   : >> { %v2637_v0 = vor.u32 %v2636_v29, %v2633_v10  ;;  %v2683_v52 = vshrl.u32 %v2601_v21, 16  ;;  %v2686_v35 = vshll.u32 %v2601_v21, 16  ;;  %v2676_v11 = vshrl.u32 %v2599_v19, 16  ;;  %v17384_v10 = vld [vmem:[#allocation9_spill] sm:$0xff]  ;;  %v17385_v29 = vld [vmem:[#allocation22_spill] sm:$0xff] }
 0x31d   : >> { %v2679_v62 = vshll.u32 %v2599_v19, 16  ;;  %v13661_v36 = vcombine.low %v13654_v12, %v13654_v12  ;;  %v13664_v34 = vcombine.low %v9628_v25, %v13647_v8  ;;  %v2659_v5 = vor.u32 %v2658_v7, %v2655_v1  ;;  %3481 = vrot.lane.b32.xlu0 %v13431_v63, %s11133_s16 }
 0x31e   : >> { %v2652_v6 = vor.u32 %v2651_v28, %v2648_v43  ;;  %v17382_v53 = vcombine.low %v13326_v14, %v13326_v14  ;;  %v17383_v23 = vcombine.low %v13291_v15, %v13336_v45  ;;  %v2670_v38 = vrot.slane %v2668_v47, 3  ;;  %v2539_v54 = vpop.permute.xlu0 %2538  ;;  %v17390_v43 = vld [vmem:[#allocation49_spill] sm:$0xff] }
 0x31f   : >> { %17381 = vst [vmem:[#allocation33_spill] sm:$0xff] %v13664_v34  ;;  %v2673_v17 = vrot.slane %v2671_v9, 4  ;;  %v2663_v61 = vrot.slane %v2661_v27, 3  ;;  %v2666_v40 = vrot.slane %v2664_v30, 4  ;;  %v2685_v24 = vrot.slane %v2683_v52, 3  ;;  %v2541_v45 = vpop.permute.xlu1 %2540  ;;  %3918 = vrot.lane.b32.xlu1 %v17390_v43, %s11130_s27  ;;  %v17391_v9 = vld [vmem:[#allocation23_spill] sm:$0xff] }
 0x320   : >> { %v2571_v49 = vsel %vm716_vm8, %v17382_v53, %v13383_v33  ;;  %v2569_v39 = vsel %vm716_vm8, %v17383_v23, %v13383_v33  ;;  %v2688_v14 = vrot.slane %v2686_v35, 4  ;;  %v17386_v48 = vcombine.low %v17385_v29, %v17385_v29  ;;  %v13705_v30 = vld [vmem:[%s12066_s23 + $0x88] sm:$0xf] }
 0x321   : >> { %v2645_v33 = vsel %vm1430_vm13, %v2637_v0, %v2644_v3  ;;  %v2678_v37 = vrot.slane %v2676_v11, 3  ;;  %v2681_v2 = vrot.slane %v2679_v62, 4  ;;  %v2605_v1 = vsel %vm859_vm9, %v2571_v49, %v2533_v41  ;;  %3916 = vrot.lane.b32.xlu0 %v17391_v9, %s11130_s27 }
 0x322   : >> { %v2576_v15 = vsel %vm716_vm8, %v17386_v48, %v17384_v10  ;;  %v2603_v21 = vsel %vm859_vm9, %v2569_v39, %v2531_v16  ;;  %v17389_v25 = vcombine.low %v17387_v44, %v17388_v58  ;;  %10339 = vmatmul.mubr.msk.bf16.vlgmr.msra.gmra.mrb[0].mxu0 %vm2019_vm15, %v2645_v33  ;;  %v2660_v28 = vsel %vm1430_vm13, %v2652_v6, %v2659_v5 }
 0x323   : >> { %v2609_v63 = vsel %vm859_vm9, %v2576_v15, %v2537_v46  ;;  %v3859_v41 = vshll.u32 %v13558_v26, 16  ;;  %v2674_v19 = vor.u32 %v2673_v17, %v2670_v38  ;;  %v2667_v16 = vor.u32 %v2666_v40, %v2663_v61  ;;  %10342 = vmatprep.mubr.msk.bf16.mxu0 %vm2019_vm15, %v2660_v28  ;;  %v13707_v46 = vpop.permute.xlu1 %3181  ;;  %3922 = vrot.lane.b32.xlu1 %v13542_v32, %s11130_s27  ;;  %v17392_v38 = vld [vmem:[#allocation37_spill] sm:$0xff]  ;;  %v17393_v17 = vld [vmem:[#allocation43_spill] sm:$0xff] }
 0x324   : >> { %v2574_v7 = vsel %vm716_vm8, %v17389_v25, %v17384_v10  ;;  %v3857_v27 = vshrl.u32 %v13558_v26, 16  ;;  %v2698_v3 = vshrl.u32 %v2605_v1, 16  ;;  %v2701_v0 = vshll.u32 %v2605_v1, 16 }
 0x325   : >> { %v2607_v47 = vsel %vm859_vm9, %v2574_v7, %v2535_v55  ;;  %v2691_v52 = vshrl.u32 %v2603_v21, 16  ;;  %v2694_v35 = vshll.u32 %v2603_v21, 16  ;;  %v2689_v11 = vor.u32 %v2688_v14, %v2685_v24  ;;  %v13709_v55 = vpop.permute.xlu0 %3179  ;;  %v17395_v24 = vld [vmem:[#allocation25_spill] sm:$0xff]  ;;  %v17396_v14 = vld [vmem:[#allocation52_spill] sm:$0xff]  ;;  %3920 = vrot.lane.b32.xlu0 %v13545_v60, %s11130_s27 }
 0x326   : >> { %v2682_v62 = vor.u32 %v2681_v2, %v2678_v37  ;;  %v2713_v5 = vshrl.u32 %v2609_v63, 16  ;;  %v2716_v6 = vshll.u32 %v2609_v63, 16  ;;  %v2706_v53 = vshrl.u32 %v2607_v47, 16  ;;  %v9631_v7 = vld [vmem:[%s12066_s23 + $0x80] sm:$0x8] }
 0x327   : >> { %v2709_v49 = vshll.u32 %v2607_v47, 16  ;;  %v3861_v23 = vrot.slane %v3859_v41, 1  ;;  %v13715_v39 = vcombine.low %v13705_v30, %v13705_v30  ;;  %v17394_v61 = vcombine.low %v17393_v17, %v17393_v17  ;;  %v13731_v1 = vpop.permute.xlu1 %3185  ;;  %v13739_v60 = vld [vmem:[%s12066_s23 + $0x84] sm:$0xf]  ;;  %3926 = vrot.lane.b32.xlu1 %v13547_v4, %s11130_s27 }
 0x328   : >> { %v17397_v10 = vcombine.low %v17395_v24, %v17396_v14  ;;  %v3879_v32 = vshll.u32 %v13611_v50, 16  ;;  %v3874_v48 = vshll.u32 %v13614_v51, 16  ;;  %v2700_v15 = vrot.slane %v2698_v3, 3 }
 0x329   : >> { %v2581_v40 = vsel %vm716_vm8, %v17394_v61, %v17392_v38  ;;  %v2703_v33 = vrot.slane %v2701_v0, 4  ;;  %v2693_v37 = vrot.slane %v2691_v52, 3  ;;  %v2696_v2 = vrot.slane %v2694_v35, 4  ;;  %v13733_v44 = vpop.permute.xlu0 %3183  ;;  %3924 = vrot.lane.b32.xlu0 %v13550_v18, %s11130_s27 }
 0x32a   : >> { %v2579_v29 = vsel %vm716_vm8, %v17397_v10, %v17392_v38  ;;  %v2715_v21 = vrot.slane %v2713_v5, 3  ;;  %v2718_v63 = vrot.slane %v2716_v6, 4  ;;  %v2675_v58 = vsel %vm1430_vm13, %v2667_v16, %v2674_v19 }
 0x32b   : >> { %v2690_v25 = vsel %vm1430_vm13, %v2682_v62, %v2689_v11  ;;  %v2708_v43 = vrot.slane %v2706_v53, 3  ;;  %v2711_v28 = vrot.slane %v2709_v49, 4  ;;  %v2613_v41 = vsel %vm859_vm9, %v2581_v40, %v2541_v45  ;;  %10343 = vmatmul.mubr.msk.bf16.gmra.mrb[4].mxu0 %vm2019_vm15, %v2675_v58  ;;  %3930 = vrot.lane.b32.xlu1 %v13554_v42, %s11130_s27 }
 0x32c   : >> { %v2611_v47 = vsel %vm859_vm9, %v2579_v29, %v2539_v54  ;;  %10346 = vmatprep.mubr.msk.bf16.mxu0 %vm2019_vm15, %v2690_v25  ;;  %v3862_v19 = vor.u32 %v3861_v23, %v3857_v27  ;;  %v3883_v16 = vshrl.u32 %v13611_v50, 16  ;;  %v3872_v9 = vshrl.u32 %v13614_v51, 16  ;;  %v13752_v54 = vpop.permute.xlu1 %3189  ;;  %v14156_v51 = vld [vmem:[%s12066_s23 + $0x4c] ss:$0 sps:$4 sm:$0x11]  }
 0x32d   : >> { %v3889_v3 = vshll.u32 %v13664_v34, 16  ;;  %v2704_v45 = vor.u32 %v2703_v33, %v2700_v15  ;;  %v2697_v0 = vor.u32 %v2696_v2, %v2693_v37  ;;  %v3876_v52 = vrot.slane %v3874_v48, 1  ;;  %v13757_v5 = vpop.permute.xlu0 %3187  ;;  %3928 = vrot.lane.b32.xlu0 %v13599_v56, %s11130_s27 }
 0x32e   : >> { %v13755_v35 = vcombine.low %v9631_v7, %v13739_v60  ;;  %v2728_v4 = vshrl.u32 %v2613_v41, 16  ;;  %v2731_v11 = vshll.u32 %v2613_v41, 16  ;;  %v2721_v18 = vshrl.u32 %v2611_v47, 16 }
 0x32f   : >> { %v2724_v62 = vshll.u32 %v2611_v47, 16  ;;  %v2719_v27 = vor.u32 %v2718_v63, %v2715_v21  ;;  %v2712_v50 = vor.u32 %v2711_v28, %v2708_v43  ;;  %v3881_v6 = vrot.slane %v3879_v32, 1  ;;  %3934 = vrot.lane.b32.xlu1 %v13607_v31, %s11130_s27 }
 0x330   : >> { %17398 = vst [vmem:[#allocation34_spill] sm:$0xff] %v13755_v35  ;;  %v3894_v53 = vshll.u32 %v13661_v36, 16  ;;  %v3867_v49 = vsel %vm3058_vm12, %v3862_v19, %v13567_v22  ;;  %v3898_v23 = vshrl.u32 %v13661_v36, 16  ;;  %v3887_v38 = vshrl.u32 %v13664_v34, 16  ;;  %v13768_v17 = vpop.permute.xlu1 %3193 }
 0x331   : >> { %v2705_v61 = vsel %vm1430_vm13, %v2697_v0, %v2704_v45  ;;  %v3877_v40 = vor.u32 %v3876_v52, %v3872_v9  ;;  %v3891_v24 = vrot.slane %v3889_v3, 1  ;;  %v3904_v42 = vshll.u32 %v13755_v35, 16  ;;  %v13772_v56 = vpop.permute.xlu0 %3191  ;;  %3932 = vrot.lane.b32.xlu0 %v3867_v49, %s11130_s27  ;;  %v17399_v45 = vld [vmem:[#allocation27_spill] sm:$0xff] }
 0x332   : >> { %v2730_v14 = vrot.slane %v2728_v4, 3  ;;  %v2733_v10 = vrot.slane %v2731_v11, 4  ;;  %v2723_v29 = vrot.slane %v2721_v18, 3  ;;  %v2726_v32 = vrot.slane %v2724_v62, 4  ;;  %v17400_v0 = vld [vmem:[#allocation19_spill] sm:$0xff]  ;;  %v17402_v4 = vld [vmem:[#allocation16_spill] sm:$0xff] }
 0x333   : >> { %10347 = vmatmul.mubr.msk.bf16.gmra.mrb[8].mxu0 %vm2019_vm15, %v2705_v61  ;;  %v2720_v22 = vsel %vm1430_vm13, %v2712_v50, %v2719_v27  ;;  %v3885_v36 = vor.u32 %v3883_v16, %v3881_v6  ;;  %v3896_v48 = vrot.slane %v3894_v53, 1  ;;  %v3909_v15 = vshll.u32 %v13715_v39, 16  ;;  %v17404_v53 = vld [vmem:[#allocation13_spill] sm:$0xff]  ;;  %v17406_v61 = vld [vmem:[#allocation24_spill] sm:$0xff] }
 0x334   : >> { %10350 = vmatprep.mubr.msk.bf16.mxu0 %vm2019_vm15, %v2720_v22  ;;  %v13781_v33 = vpop.permute.xlu1 %3197  ;;  %v3882_v37 = vsel %vm3058_vm12, %v3877_v40, %v3881_v6  ;;  %v3892_v2 = vor.u32 %v3891_v24, %v3887_v38  ;;  %v3902_v21 = vshrl.u32 %v13755_v35, 16  ;;  %v3906_v63 = vrot.slane %v3904_v42, 1  ;;  %v17403_v6 = vld [vmem:[#allocation44_spill] sm:$0xff]  ;;  %v17405_v38 = vld [vmem:[#allocation30_spill] sm:$0xff]  ;;  %v9656_v35 = vld [vmem:[%s12066_s23 + $0x74] sm:$0xe] }
 0x335   : >> { %v2734_v58 = vor.u32 %v2733_v10, %v2730_v14  ;;  %v2727_v31 = vor.u32 %v2726_v32, %v2723_v29  ;;  %v13785_v25 = vpop.permute.xlu0 %3195  ;;  %3938 = vrot.lane.b32.xlu1 %v3885_v36, %s11130_s27  ;;  %v3900_v7 = vor.u32 %v3898_v23, %v3896_v48  ;;  %v3911_v43 = vrot.slane %v3909_v15, 1  ;;  %3936 = vrot.lane.b32.xlu0 %v3882_v37, %s11130_s27  ;;  %v17407_v36 = vld [vmem:[#allocation31_spill] sm:$0xff]  ;;  %v13832_v15 = vld [vmem:[%s12066_s23 + $0x1c] ss:$0 sps:$4 sm:$0x11]  }
 0x336   : >> { %v3913_v28 = vshrl.u32 %v13715_v39, 16  ;;  %v3897_v47 = vsel %vm3058_vm12, %v3892_v2, %v3896_v48  ;;  %v3907_v19 = vor.u32 %v3906_v63, %v3902_v21  ;;  %v9683_v52 = vcombine.low %v17400_v0, %v17399_v45  ;;  %v17401_v39 = vld [vmem:[#allocation20_spill] sm:$0xff] }
 0x337   : >> { %v2735_v9 = vsel %vm1430_vm13, %v2727_v31, %v2734_v58  ;;  %v9682_v11 = vcombine.low %v17402_v4, %v17401_v39  ;;  %v13811_v49 = vcombine.low %v17404_v53, %v17403_v6  ;;  %v9684_v40 = vcombine.low %v17406_v61, %v17405_v38  ;;  %v13849_v31 = vld [vmem:[%s12066_s23 + $0x2c] ss:$0 sps:$4 sm:$0x11]   ;;  %v13862_v39 = vld [vmem:[%s12066_s23 + $0x3c] ss:$0 sps:$4 sm:$0x11]   ;;  %vm16133_vm13 = vmor %vm338_vm3, %vm8494_vm10 }
 0x338   : >> { %v13790_v41 = vpop.permute.xlu1 %3201  ;;  %v3915_v3 = vor.u32 %v3913_v28, %v3911_v43  ;;  %v3912_v62 = vsel %vm3058_vm12, %v3907_v19, %v3911_v43  ;;  %v3957_v50 = vrot.slane %v9683_v52, 5  ;;  %v13824_v10 = vcombine.low %v13582_v13, %v13586_v57  ;;  %v13873_v61 = vld [vmem:[%s12066_s23 + $0x4c] ss:$0 sps:$4 sm:$0x11]  }
 0x339   : >> { %v13793_v16 = vpop.permute.xlu0 %3199  ;;  %3942 = vrot.lane.b32.xlu1 %v3900_v7, %s11130_s27  ;;  %3940 = vrot.lane.b32.xlu0 %v3897_v47, %s11130_s27  ;;  %v3956_v23 = vrot.slane %v9682_v11, 5  ;;  %v3959_v14 = vrot.slane %v13811_v49, 5  ;;  %v4005_v29 = vshrl.u32 %v9682_v11, 16  ;;  %v4008_v32 = vshll.u32 %v9682_v11, 16 }
 0x33a   : >> { %v3958_v22 = vrot.slane %v9684_v40, 5  ;;  %v13829_v48 = vcombine.low %v13540_v59, %v17407_v36  ;;  %v13840_v21 = vcombine.low %v13739_v60, %v13705_v30  ;;  %v3961_v13 = vrot.slane %v13824_v10, 5 }
 0x33b   : >> { %10351 = vmatmul.mubr.msk.bf16.gmra.mrb[12].mxu0 %vm2019_vm15, %v2735_v9  ;;  %v13846_v63 = vcombine.low %v13647_v8, %v13654_v12  ;;  %v4007_v59 = vrot.slane %v4005_v29, 5  ;;  %v4010_v58 = vrot.slane %v4008_v32, 6  ;;  %v4013_v60 = vshll.u32 %v13832_v15, 16 }
 0x33c   : >> { %v13803_v18 = vpop.permute.xlu1 %3205  ;;  %v3960_v7 = vrot.slane %v13829_v48, 5  ;;  %v4018_v43 = vshrl.u32 %v9683_v52, 16  ;;  %v4021_v28 = vshll.u32 %v9683_v52, 16  ;;  %v4031_v9 = vshrl.u32 %v9684_v40, 16 }
 0x33d   : >> { %v13806_v27 = vpop.permute.xlu0 %3203  ;;  %3946 = vrot.lane.b32.xlu1 %v3915_v3, %s11130_s27  ;;  %3944 = vrot.lane.b32.xlu0 %v3912_v62, %s11130_s27  ;;  %v4034_v8 = vshll.u32 %v9684_v40, 16  ;;  %v3963_v3 = vrot.slane %v13840_v21, 5  ;;  %v3962_v45 = vrot.slane %v13846_v63, 5  ;;  %v4011_v0 = vor.u32 %v4010_v58, %v4007_v59 }
 0x33e   : >> { %v4015_v4 = vrot.slane %v4013_v60, 6  ;;  %v4020_v52 = vrot.slane %v4018_v43, 5  ;;  %v4023_v11 = vrot.slane %v4021_v28, 6  ;;  %v4026_v62 = vshll.u32 %v13849_v31, 16 }
 0x33f   : >> { %v4033_v53 = vrot.slane %v4031_v9, 5  ;;  %v4039_v38 = vshll.u32 %v13862_v39, 16  ;;  %v4044_v40 = vshrl.u32 %v13811_v49, 16 }
 0x340   : >> { %v13816_v24 = vpop.permute.xlu1 %3209  ;;  %v4016_v29 = vsel %vm3267_vm14, %v4011_v0, %v4015_v4  ;;  %v4024_v32 = vor.u32 %v4023_v11, %v4020_v52 }
 0x341   : >> { %v13818_v42 = vpop.permute.xlu0 %3207  ;;  %3966 = vrot.lane.b32.xlu1 %v3957_v50, %s11131_s29  ;;  %3964 = vrot.lane.b32.xlu0 %v3956_v23, %s11131_s29  ;;  %v4036_v23 = vrot.slane %v4034_v8, 6  ;;  %v4041_v60 = vrot.slane %v4039_v38, 6  ;;  %v4046_v43 = vrot.slane %v4044_v40, 5  ;;  %v4057_v8 = vshrl.u32 %v13829_v48, 16 }
 0x342   : >> { %v4073_v40 = vshll.u32 %v13824_v10, 16 }
 0x343   : >> { %v4037_v58 = vor.u32 %v4036_v23, %v4033_v53  ;;  %v13900_v23 = vld [vmem:[%s12066_s23 + $0x6c] ss:$0 sps:$4 sm:$0x11]  }
 0x344   : >> { %v13834_v37 = vpop.permute.xlu1 %3229 }
 0x345   : >> { %v13836_v2 = vpop.permute.xlu0 %3227  ;;  %3970 = vrot.lane.b32.xlu1 %v3959_v14, %s11131_s29  ;;  %3968 = vrot.lane.b32.xlu0 %v3958_v22, %s11131_s29  ;;  %v4047_v14 = vshll.u32 %v13811_v49, 16  ;;  %v4028_v22 = vrot.slane %v4026_v62, 6  ;;  %v4052_v49 = vshll.u32 %v13873_v61, 16  ;;  %v4042_v52 = vsel %vm3267_vm14, %v4037_v58, %v4041_v60 }
 0x347   : >> { %v4049_v28 = vrot.slane %v4047_v14, 6  ;;  %v4029_v9 = vsel %vm3267_vm14, %v4024_v32, %v4028_v22  ;;  %v4054_v62 = vrot.slane %v4052_v49, 6  ;;  %v4075_v49 = vrot.slane %v4073_v40, 6 }
 0x348   : >> { %v13854_v47 = vpop.permute.xlu1 %3233 }
 0x349   : >> { %v13856_v19 = vpop.permute.xlu0 %3231  ;;  %3974 = vrot.lane.b32.xlu1 %v3961_v13, %s11131_s29  ;;  %3972 = vrot.lane.b32.xlu0 %v3960_v7, %s11131_s29  ;;  %v13884_v7 = vld [vmem:[%s12066_s23 + $0x5c] ss:$0 sps:$4 sm:$0x11]   ;;  %v4050_v11 = vor.u32 %v4049_v28, %v4046_v43  ;;  %v10884_v43 = vld [vmem:[%s16979_s5 + $0x10] ss:$0 sps:$4 sm:$0xff]  }
 0x34a   : >> { %v4065_v53 = vshll.u32 %v13884_v7, 16 }
 0x34b   : >> { %v4055_v22 = vsel %vm3267_vm14, %v4050_v11, %v4054_v62  ;;  %v4401_v62 = vrot.slane %v10884_v43, 2 }
 0x34c   : >> { %v13866_v50 = vpop.permute.xlu1 %3237  ;;  %v4067_v60 = vrot.slane %v4065_v53, 6 }
 0x34d   : >> { %v13868_v6 = vpop.permute.xlu0 %3235  ;;  %3978 = vrot.lane.b32.xlu1 %v3963_v3, %s11131_s29  ;;  %3976 = vrot.lane.b32.xlu0 %v3962_v45, %s11131_s29  ;;  %v4060_v3 = vshll.u32 %v13829_v48, 16  ;;  %v4070_v48 = vshrl.u32 %v13824_v10, 16 }
 0x34f   : >> { %v4062_v38 = vrot.slane %v4060_v3, 6  ;;  %v4072_v28 = vrot.slane %v4070_v48, 5  ;;  %v9655_v48 = vld [vmem:[%s12066_s23 + $0x64] sm:$0xe] }
 0x350   : >> { %v13879_v13 = vpop.permute.xlu1 %3241 }
 0x351   : >> { %17408 = vst [vmem:[#allocation42_spill] sm:$0xff] %v13879_v13  ;;  %v13881_v59 = vpop.permute.xlu0 %3239  ;;  %4110 = vrot.lane.b32.xlu1 %v4016_v29, %s11132_s26  ;;  %4108 = vrot.lane.b32.xlu0 %v4011_v0, %s11132_s26  ;;  %v4059_v0 = vrot.slane %v4057_v8, 5  ;;  %v9654_v8 = vld [vmem:[%s12066_s23 + $0x54] sm:$0xe] }
 0x352   : >> { %v9702_v13 = vcombine.low %v9654_v8, %v17407_v36 }
 0x353   : >> { %v4063_v10 = vor.u32 %v4062_v38, %v4059_v0  ;;  %v4076_v0 = vor.u32 %v4075_v49, %v4072_v28  ;;  %v4083_v28 = vshrl.u32 %v13846_v63, 16  ;;  %v4086_v49 = vshll.u32 %v13846_v63, 16 }
 0x354   : >> { %v13892_v45 = vpop.permute.xlu1 %3374  ;;  %v4176_v36 = vrot.slane %v9702_v13, 6 }
 0x355   : >> { %v13894_v4 = vpop.permute.xlu0 %3372  ;;  %4114 = vrot.lane.b32.xlu1 %v4029_v9, %s11132_s26  ;;  %4112 = vrot.lane.b32.xlu0 %v4024_v32, %s11132_s26  ;;  %v10883_v32 = vld [vmem:[%s16979_s5 + $0x8] sm:$0xfc]   ;;  %v4078_v9 = vshll.u32 %v13900_v23, 16  ;;  %v4085_v63 = vrot.slane %v4083_v28, 5 }
 0x357   : >> { %v4080_v38 = vrot.slane %v4078_v9, 6 }
 0x358   : >> { %v13905_v14 = vpop.permute.xlu1 %3378 }
 0x359   : >> { %v13907_v29 = vpop.permute.xlu0 %3376  ;;  %4118 = vrot.lane.b32.xlu1 %v4042_v52, %s11132_s26  ;;  %4116 = vrot.lane.b32.xlu0 %v4037_v58, %s11132_s26  ;;  %v4400_v52 = vrot.slane %v10883_v32, 2  ;;  %v4068_v58 = vsel %vm3267_vm14, %v4063_v10, %v4067_v60  ;;  %v10839_v60 = vld [vmem:[%s12066_s23 + $0x7c] ss:$0 sps:$4 sm:$0x11]   ;;  %v4081_v43 = vsel %vm3267_vm14, %v4076_v0, %v4080_v38  ;;  %v4099_v38 = vshll.u32 %v13840_v21, 16 }
 0x35a   : >> { %v4091_v8 = vshll.u32 %v10839_v60, 16 }
 0x35b   : >> { %v4402_v20 = vsel %vm2044_vm11, %v4400_v52, %v4401_v62  ;;  %v10840_v52 = vld [vmem:[%s12066_s23 + $0x8c] ss:$0 sps:$4 sm:$0x11]  }
 0x35c   : >> { %v13920_v3 = vpop.permute.xlu1 %3382  ;;  %10474 = vmatprep.subr.bf16.mxu1 %v4402_v20  ;;  %10354 = vmatprep.subr.bf16.mxu0 %v4402_v20  ;;  %v4104_v28 = vshll.u32 %v10840_v52, 16 }
 0x35d   : >> { %v13922_v53 = vpop.permute.xlu0 %3380  ;;  %4122 = vrot.lane.b32.xlu1 %v4055_v22, %s11132_s26  ;;  %4120 = vrot.lane.b32.xlu0 %v4050_v11, %s11132_s26  ;;  %v4177_v11 = vrot.slane %v13884_v7, 6  ;;  %v9703_v22 = vcombine.low %v9655_v48, %v13586_v57 }
 0x35e   : >> { %10476 = vmatpush3.bf16.msra.mxu1 %v4402_v20  ;;  %10355 = vmatpush3.bf16.msra.mxu0 %v4402_v20  ;;  %v4431_v20 = vsel %vm741_vm7, %v4401_v62, 0 }
 0x35f   : >> { %10580 = vmatprep.subr.msk.bf16.mxu1 %vm741_vm7, %v4401_v62  ;;  %10579 = vmatprep.subr.msk.bf16.mxu0 %vm741_vm7, %v4401_v62  ;;  %v4178_v57 = vsel %vm741_vm7, %v4176_v36, %v4177_v11  ;;  %v4179_v7 = vrot.slane %v9703_v22, 6  ;;  %v4088_v62 = vrot.slane %v4086_v49, 6 }
 0x360   : >> { %v13930_v40 = vpop.permute.xlu1 %3386 }
 0x361   : >> { %v13932_v32 = vpop.permute.xlu0 %3384  ;;  %4126 = vrot.lane.b32.xlu1 %v4068_v58, %s11132_s26  ;;  %4124 = vrot.lane.b32.xlu0 %v4063_v10, %s11132_s26  ;;  %v4180_v10 = vrot.slane %v13900_v23, 6  ;;  %v4096_v58 = vshrl.u32 %v13840_v21, 16  ;;  %v4093_v23 = vrot.slane %v4091_v8, 6  ;;  %v4106_v8 = vrot.slane %v4104_v28, 6  ;;  %v11042_v28 = vld [vmem:[%s12066_s23 + $0x18] sm:$0xf] }
 0x362   : >> { %10477 = vmatpush3.bf16.msra.mxu1 %v4431_v20  ;;  %10357 = vmatpush3.bf16.msra.mxu0 %v4431_v20 }
 0x363   : >> { %v4181_v11 = vsel %vm741_vm7, %v4179_v7, %v4180_v10  ;;  %v4098_v22 = vrot.slane %v4096_v58, 5 }
 0x364   : >> { %v13945_v9 = vpop.permute.xlu1 %3390 }
 0x365   : >> { %v13947_v13 = vpop.permute.xlu0 %3388  ;;  %4130 = vrot.lane.b32.xlu1 %v4081_v43, %s11132_s26  ;;  %4128 = vrot.lane.b32.xlu0 %v4076_v0, %s11132_s26  ;;  %v4089_v0 = vor.u32 %v4088_v62, %v4085_v63  ;;  %v4101_v43 = vrot.slane %v4099_v38, 6  ;;  %v9657_v62 = vld [vmem:[%s12066_s23 + $0x84] sm:$0xe] }
 0x367   : >> { %v4102_v10 = vor.u32 %v4101_v43, %v4098_v22  ;;  %v13989_v43 = vld [vmem:[%s16979_s5] sm:$0xff]  }
 0x368   : >> { %v13956_v48 = vpop.permute.xlu1 %3394  ;;  %17416 = vst [vmem:[#allocation48_spill] sm:$0xff] %v13989_v43  ;;  %10374 = vmatprep.subr.bf16.mxu1 %v13989_v43 }
 0x369   : >> { %v13958_v20 = vpop.permute.xlu0 %3392  ;;  %4206 = vrot.lane.b32.xlu1 %v4178_v57, %s11133_s16  ;;  %4204 = vrot.lane.b32.xlu0 %v4176_v36, %s11133_s16  ;;  %v4094_v57 = vsel %vm3267_vm14, %v4089_v0, %v4093_v23  ;;  %v9704_v36 = vcombine.low %v9656_v35, %v13654_v12  ;;  %v4107_v38 = vsel %vm3267_vm14, %v4102_v10, %v4106_v8  ;;  %v9650_v12 = vld [vmem:[%s12066_s23 + $0x14] sm:$0xe] }
 0x36a   : >> { %17409 = vst [vmem:[#allocation14_spill] sm:$0xff] %v13958_v20  ;;  %v9705_v23 = vcombine.low %v9657_v62, %v13705_v30  ;;  %v4186_v30 = vrot.slane %v10840_v52, 6  ;;  %v4165_v52 = vrot.slane %v13832_v15, 6  ;;  %v4168_v15 = vrot.slane %v13849_v31, 6 }
 0x36c   : >> { %v13963_v49 = vpop.permute.xlu1 %3398 }
 0x36d   : >> { %17410 = vst [vmem:[#allocation51_spill] sm:$0xff] %v13963_v49  ;;  %v13966_v21 = vpop.permute.xlu0 %3396  ;;  %4210 = vrot.lane.b32.xlu1 %v4181_v11, %s11133_s16  ;;  %4208 = vrot.lane.b32.xlu0 %v4179_v7, %s11133_s16  ;;  %v4182_v11 = vrot.slane %v9704_v36, 6  ;;  %v4183_v7 = vrot.slane %v10839_v60, 6  ;;  %v4185_v60 = vrot.slane %v9705_v23, 6  ;;  %v9651_v36 = vld [vmem:[%s12066_s23 + $0x24] sm:$0xe] }
 0x36e   : >> { %17411 = vst [vmem:[#allocation12_spill] sm:$0xff] %v13966_v21  ;;  %v9653_v49 = vld [vmem:[%s12066_s23 + $0x44] sm:$0xe] }
 0x370   : >> { %v13972_v63 = vpop.permute.xlu1 %3402 }
 0x371   : >> { %17412 = vst [vmem:[#allocation53_spill] sm:$0xff] %v13972_v63  ;;  %v13975_v58 = vpop.permute.xlu0 %3400  ;;  %4134 = vrot.lane.b32.xlu1 %v4094_v57, %s11132_s26  ;;  %4132 = vrot.lane.b32.xlu0 %v4089_v0, %s11132_s26  ;;  %v4184_v0 = vsel %vm741_vm7, %v4182_v11, %v4183_v7  ;;  %v9698_v57 = vcombine.low %v9650_v12, %v11042_v28  ;;  %v11043_v7 = vld [vmem:[%s12066_s23 + $0x28] sm:$0xf]  ;;  %v9652_v28 = vld [vmem:[%s12066_s23 + $0x34] sm:$0xe] }
 0x372   : >> { %17413 = vst [vmem:[#allocation11_spill] sm:$0xff] %v13975_v58  ;;  %v9699_v23 = vcombine.low %v9651_v36, %v11043_v7  ;;  %v9729_v63 = vld [vmem:[%s12066_s23 + $0x24] sm:$0xf]  ;;  %v14019_v7 = vld [vmem:[%s12066_s23 + $0x28] sm:$0xf] }
 0x373   : >> { %v9792_v31 = vcombine.low %v14019_v7, %v14019_v7 }
 0x374   : >> { %v13981_v22 = vpop.permute.xlu1 %3455 }
 0x375   : >> { %17414 = vst [vmem:[#allocation21_spill] sm:$0xff] %v13981_v22  ;;  %v13984_v35 = vpop.permute.xlu0 %3453  ;;  %4138 = vrot.lane.b32.xlu1 %v4107_v38, %s11132_s26  ;;  %4136 = vrot.lane.b32.xlu0 %v4102_v10, %s11132_s26  ;;  %v4187_v10 = vsel %vm741_vm7, %v4185_v60, %v4186_v30  ;;  %v4164_v38 = vrot.slane %v9698_v57, 6  ;;  %v4167_v30 = vrot.slane %v9699_v23, 6  ;;  %v11044_v57 = vld [vmem:[%s12066_s23 + $0x38] sm:$0xf] }
 0x376   : >> { %17415 = vst [vmem:[#allocation17_spill] sm:$0xff] %v13984_v35  ;;  %v9700_v36 = vcombine.low %v9652_v28, %v11044_v57  ;;  %v4171_v28 = vrot.slane %v13862_v39, 6  ;;  %v11045_v57 = vld [vmem:[%s12066_s23 + $0x48] sm:$0xf] }
 0x378   : >> { %v13996_v8 = vpop.permute.xlu1 %3459  ;;  %v4170_v23 = vrot.slane %v9700_v36, 6  ;;  %v4174_v36 = vrot.slane %v13873_v61, 6  ;;  %v9800_v61 = vcombine.low %v9729_v63, %v14019_v7 }
 0x379   : >> { %17417 = vst [vmem:[#allocation10_spill] sm:$0xff] %v13996_v8  ;;  %v13999_v62 = vpop.permute.xlu0 %3457  ;;  %4214 = vrot.lane.b32.xlu1 %v4184_v0, %s11133_s16  ;;  %4212 = vrot.lane.b32.xlu0 %v4182_v11, %s11133_s16  ;;  %v9728_v0 = vld [vmem:[%s12066_s23 + $0x20] sm:$0x8]  ;;  %v4166_v11 = vsel %vm741_vm7, %v4164_v38, %v4165_v52  ;;  %v4169_v52 = vsel %vm741_vm7, %v4167_v30, %v4168_v15  ;;  %v4813_v8 = vshrl.u32 %v9792_v31, 16 }
 0x37a   : >> { %17418 = vst [vmem:[#allocation47_spill] sm:$0xff] %v13999_v62  ;;  %v14024_v34 = vcombine.low %v9728_v0, %v9729_v63  ;;  %v14038_v0 = vld [vmem:[%s12066_s23 + $0x38] sm:$0xf]  ;;  %v4172_v39 = vsel %vm741_vm7, %v4170_v23, %v4171_v28  ;;  %v5013_v63 = vshll.u32 %v9800_v61, 16 }
 0x37b   : >> { %v9793_v15 = vcombine.low %v14038_v0, %v14038_v0 }
 0x37c   : >> { %v14006_v12 = vpop.permute.xlu1 %3463  ;;  %17422 = vst [vmem:[#allocation26_spill] sm:$0xff] %v14024_v34 }
 0x37d   : >> { %17419 = vst [vmem:[#allocation9_spill] sm:$0xff] %v14006_v12  ;;  %v14009_v58 = vpop.permute.xlu0 %3461  ;;  %4218 = vrot.lane.b32.xlu1 %v4187_v10, %s11133_s16  ;;  %4216 = vrot.lane.b32.xlu0 %v4185_v60, %s11133_s16  ;;  %v9731_v10 = vld [vmem:[%s12066_s23 + $0x30] sm:$0x8]  ;;  %v9732_v60 = vld [vmem:[%s12066_s23 + $0x34] sm:$0xf] }
 0x37e   : >> { %17420 = vst [vmem:[#allocation22_spill] sm:$0xff] %v14009_v58  ;;  %v14043_v12 = vcombine.low %v9731_v10, %v9732_v60  ;;  %v4802_v10 = vshrl.u32 %v14024_v34, 16 }
 0x380   : >> { %v14021_v21 = vpop.permute.xlu1 %3467  ;;  %17425 = vst [vmem:[#allocation37_spill] sm:$0xff] %v14043_v12 }
 0x381   : >> { %17421 = vst [vmem:[#allocation50_spill] sm:$0xff] %v14021_v21  ;;  %v14026_v43 = vpop.permute.xlu0 %3465  ;;  %4190 = vrot.lane.b32.xlu1 %v4166_v11, %s11133_s16  ;;  %4188 = vrot.lane.b32.xlu0 %v4164_v38, %s11133_s16  ;;  %v9701_v21 = vcombine.low %v9653_v49, %v11045_v57  ;;  %v4809_v38 = vshll.u32 %v9792_v31, 16 }
 0x382   : >> { %17423 = vst [vmem:[#allocation49_spill] sm:$0xff] %v14026_v43  ;;  %v4804_v43 = vshll.u32 %v14024_v34, 16 }
 0x383   : >> { %v4173_v49 = vrot.slane %v9701_v21, 6 }
 0x384   : >> { %v14040_v58 = vpop.permute.xlu1 %3471 }
 0x385   : >> { %17424 = vst [vmem:[#allocation23_spill] sm:$0xff] %v14040_v58  ;;  %v14045_v11 = vpop.permute.xlu0 %3469  ;;  %4194 = vrot.lane.b32.xlu1 %v4169_v52, %s11133_s16  ;;  %4192 = vrot.lane.b32.xlu0 %v4167_v30, %s11133_s16  ;;  %v4806_v58 = vrot.slane %v4804_v43, 1  ;;  %v4811_v52 = vrot.slane %v4809_v38, 1  ;;  %v4824_v30 = vshll.u32 %v9793_v15, 16  ;;  %v4175_v21 = vsel %vm741_vm7, %v4173_v49, %v4174_v36 }
 0x386   : >> { %17426 = vst [vmem:[#allocation43_spill] sm:$0xff] %v14045_v11  ;;  %v4819_v11 = vshll.u32 %v14043_v12, 16  ;;  %v4817_v43 = vshrl.u32 %v14043_v12, 16  ;;  %v9801_v12 = vcombine.low %v9732_v60, %v14038_v0 }
 0x387   : >> { %v4807_v34 = vor.u32 %v4806_v58, %v4802_v10  ;;  %v4815_v38 = vor.u32 %v4813_v8, %v4811_v52  ;;  %v4826_v31 = vrot.slane %v4824_v30, 1  ;;  %v14082_v30 = vld [vmem:[%s12066_s23 + $0x3c] ss:$0 sps:$4 sm:$0x11]  }
 0x388   : >> { %v14053_v57 = vpop.permute.xlu1 %3475 }
 0x389   : >> { %17427 = vst [vmem:[#allocation25_spill] sm:$0xff] %v14053_v57  ;;  %v14057_v62 = vpop.permute.xlu0 %3473  ;;  %4198 = vrot.lane.b32.xlu1 %v4172_v39, %s11133_s16  ;;  %4196 = vrot.lane.b32.xlu0 %v4170_v23, %s11133_s16  ;;  %v4821_v57 = vrot.slane %v4819_v11, 1  ;;  %v4828_v39 = vshrl.u32 %v9793_v15, 16  ;;  %v5010_v23 = vshrl.u32 %v9800_v61, 16  ;;  %v4812_v58 = vsel %vm3058_vm12, %v4807_v34, %v4811_v52 }
 0x38a   : >> { %17428 = vst [vmem:[#allocation52_spill] sm:$0xff] %v14057_v62  ;;  %v14070_v62 = vld [vmem:[%s12066_s23 + $0x2c] ss:$0 sps:$4 sm:$0x11]   ;;  %v4962_v52 = vrot.slane %v9801_v12, 5 }
 0x38b   : >> { %v4822_v10 = vor.u32 %v4821_v57, %v4817_v43  ;;  %v4830_v8 = vor.u32 %v4828_v39, %v4826_v31  ;;  %v5018_v15 = vshll.u32 %v14070_v62, 16  ;;  %v4961_v43 = vrot.slane %v9800_v61, 5 }
 0x38c   : >> { %v14063_v28 = vpop.permute.xlu1 %3479 }
 0x38d   : >> { %17429 = vst [vmem:[#allocation27_spill] sm:$0xff] %v14063_v28  ;;  %v14066_v35 = vpop.permute.xlu0 %3477  ;;  %4202 = vrot.lane.b32.xlu1 %v4175_v21, %s11133_s16  ;;  %4200 = vrot.lane.b32.xlu0 %v4173_v49, %s11133_s16  ;;  %v5012_v49 = vrot.slane %v5010_v23, 5  ;;  %v5015_v21 = vrot.slane %v5013_v63, 6  ;;  %v4827_v60 = vsel %vm3058_vm12, %v4822_v10, %v4826_v31  ;;  %v9768_v31 = vld [vmem:[%s12066_s23 + $0x24] sm:$0xe] }
 0x38e   : >> { %17430 = vst [vmem:[#allocation19_spill] sm:$0xff] %v14066_v35  ;;  %v5026_v35 = vshll.u32 %v9801_v12, 16 }
 0x38f   : >> { %v5016_v39 = vor.u32 %v5015_v21, %v5012_v49  ;;  %v14105_v49 = vld [vmem:[%s12066_s23 + $0x48] sm:$0xf] }
 0x390   : >> { %v14073_v36 = vpop.permute.xlu1 %3483  ;;  %v5028_v63 = vrot.slane %v5026_v35, 6  ;;  %v9816_v35 = vcombine.low %v9768_v31, %v14019_v7 }
 0x391   : >> { %17431 = vst [vmem:[#allocation20_spill] sm:$0xff] %v14073_v36  ;;  %v14076_v11 = vpop.permute.xlu0 %3481  ;;  %4923 = vrot.lane.b32.xlu1 %v4815_v38, %s11130_s27  ;;  %4921 = vrot.lane.b32.xlu0 %v4812_v58, %s11130_s27  ;;  %v5023_v36 = vshrl.u32 %v9801_v12, 16  ;;  %v5020_v38 = vrot.slane %v5018_v15, 6  ;;  %v5031_v58 = vshll.u32 %v14082_v30, 16  ;;  %v9735_v12 = vld [vmem:[%s12066_s23 + $0x44] sm:$0xf] }
 0x392   : >> { %17432 = vst [vmem:[#allocation16_spill] sm:$0xff] %v14076_v11 }
 0x393   : >> { %v5025_v23 = vrot.slane %v5023_v36, 5  ;;  %v5021_v61 = vsel %vm3267_vm14, %v5016_v39, %v5020_v38  ;;  %v5033_v15 = vrot.slane %v5031_v58, 6  ;;  %v5169_v38 = vrot.slane %v9816_v35, 6  ;;  %v14124_v58 = vld [vmem:[%s12066_s23 + $0x58] sm:$0xf] }
 0x394   : >> { %v14085_v34 = vpop.permute.xlu1 %3918  ;;  %v5173_v35 = vrot.slane %v14082_v30, 6  ;;  %v9802_v30 = vcombine.low %v9735_v12, %v14105_v49 }
 0x395   : >> { %17433 = vst [vmem:[#allocation44_spill] sm:$0xff] %v14085_v34  ;;  %v14088_v57 = vpop.permute.xlu0 %3916  ;;  %4927 = vrot.lane.b32.xlu1 %v4830_v8, %s11130_s27  ;;  %4925 = vrot.lane.b32.xlu0 %v4827_v60, %s11130_s27  ;;  %v9734_v8 = vld [vmem:[%s12066_s23 + $0x40] sm:$0x8]  ;;  %v5029_v36 = vor.u32 %v5028_v63, %v5025_v23  ;;  %v9769_v60 = vld [vmem:[%s12066_s23 + $0x34] sm:$0xe]  ;;  %v5170_v23 = vrot.slane %v14070_v62, 6 }
 0x396   : >> { %17434 = vst [vmem:[#allocation13_spill] sm:$0xff] %v14088_v57  ;;  %v14110_v28 = vcombine.low %v9734_v8, %v9735_v12  ;;  %v9817_v63 = vcombine.low %v9769_v60, %v14038_v0  ;;  %v5039_v12 = vshll.u32 %v9802_v30, 16 }
 0x397   : >> { %v5034_v7 = vsel %vm3267_vm14, %v5029_v36, %v5033_v15  ;;  %v9795_v15 = vcombine.low %v14124_v58, %v14124_v58  ;;  %v5171_v62 = vsel %vm741_vm7, %v5169_v38, %v5170_v23 }
 0x398   : >> { %v14093_v11 = vpop.permute.xlu1 %3922  ;;  %17438 = vst [vmem:[#allocation55_spill] sm:$0xff] %v14110_v28  ;;  %v4834_v8 = vshll.u32 %v14110_v28, 16  ;;  %v5172_v0 = vrot.slane %v9817_v63, 6 }
 0x399   : >> { %17435 = vst [vmem:[#allocation30_spill] sm:$0xff] %v14093_v11  ;;  %v14096_v10 = vpop.permute.xlu0 %3920  ;;  %4971 = vrot.lane.b32.xlu1 %v4962_v52, %s11131_s29  ;;  %4969 = vrot.lane.b32.xlu0 %v4961_v43, %s11131_s29  ;;  %v9737_v11 = vld [vmem:[%s12066_s23 + $0x50] sm:$0x8]  ;;  %v9738_v52 = vld [vmem:[%s12066_s23 + $0x54] sm:$0xf]  ;;  %v9794_v43 = vcombine.low %v14105_v49, %v14105_v49 }
 0x39a   : >> { %17436 = vst [vmem:[#allocation24_spill] sm:$0xff] %v14096_v10  ;;  %v5174_v23 = vsel %vm741_vm7, %v5172_v0, %v5173_v35 }
 0x39b   : >> { %v4843_v57 = vshrl.u32 %v9794_v43, 16 }
 0x39c   : >> { %v14107_v21 = vpop.permute.xlu1 %3926 }
 0x39d   : >> { %17437 = vst [vmem:[#allocation31_spill] sm:$0xff] %v14107_v21  ;;  %v14112_v10 = vpop.permute.xlu0 %3924  ;;  %5115 = vrot.lane.b32.xlu1 %v5021_v61, %s11132_s26  ;;  %5113 = vrot.lane.b32.xlu0 %v5016_v39, %s11132_s26  ;;  %v4839_v39 = vshll.u32 %v9794_v43, 16 }
 0x39e   : >> { %17439 = vst [vmem:[#allocation56_spill] sm:$0xff] %v14112_v10  ;;  %v14129_v10 = vcombine.low %v9737_v11, %v9738_v52  ;;  %v4832_v11 = vshrl.u32 %v14110_v28, 16 }
 0x3a0   : >> { %v14126_v31 = vpop.permute.xlu1 %3930  ;;  %17441 = vst [vmem:[#allocation58_spill] sm:$0xff] %v14129_v10 }
 0x3a1   : >> { %17440 = vst [vmem:[#allocation57_spill] sm:$0xff] %v14126_v31  ;;  %v14131_v61 = vpop.permute.xlu0 %3928  ;;  %5119 = vrot.lane.b32.xlu1 %v5034_v7, %s11132_s26  ;;  %5117 = vrot.lane.b32.xlu0 %v5029_v36, %s11132_s26  ;;  %v4836_v31 = vrot.slane %v4834_v8, 1  ;;  %v4841_v7 = vrot.slane %v4839_v39, 1  ;;  %v4854_v36 = vshll.u32 %v9795_v15, 16  ;;  %v4847_v8 = vshrl.u32 %v14129_v10, 16 }
 0x3a2   : >> { %17442 = vst [vmem:[#allocation59_spill] sm:$0xff] %v14131_v61  ;;  %v4849_v61 = vshll.u32 %v14129_v10, 16  ;;  %v9803_v10 = vcombine.low %v9738_v52, %v14124_v58 }
 0x3a3   : >> { %v4837_v28 = vor.u32 %v4836_v31, %v4832_v11  ;;  %v4845_v39 = vor.u32 %v4843_v57, %v4841_v7  ;;  %v4856_v43 = vrot.slane %v4854_v36, 1  ;;  %v14168_v36 = vld [vmem:[%s12066_s23 + $0x5c] ss:$0 sps:$4 sm:$0x11]  }
 0x3a4   : >> { %v14139_v60 = vpop.permute.xlu1 %3934  ;;  %v4851_v34 = vrot.slane %v4849_v61, 1 }
 0x3a5   : >> { %17443 = vst [vmem:[#allocation60_spill] sm:$0xff] %v14139_v60  ;;  %v14143_v21 = vpop.permute.xlu0 %3932  ;;  %5195 = vrot.lane.b32.xlu1 %v5171_v62, %s11133_s16  ;;  %5193 = vrot.lane.b32.xlu0 %v5169_v38, %s11133_s16  ;;  %v4858_v62 = vshrl.u32 %v9795_v15, 16  ;;  %v5036_v38 = vshrl.u32 %v9802_v30, 16  ;;  %v4842_v31 = vsel %vm3058_vm12, %v4837_v28, %v4841_v7  ;;  %v5044_v15 = vshll.u32 %v14156_v51, 16 }
 0x3a6   : >> { %17444 = vst [vmem:[#allocation61_spill] sm:$0xff] %v14143_v21  ;;  %v4852_v11 = vor.u32 %v4851_v34, %v4847_v8  ;;  %v4964_v7 = vrot.slane %v9803_v10, 5  ;;  %v4963_v8 = vrot.slane %v9802_v30, 5  ;;  %v10801_v30 = vld [vmem:[%s12066_s23 + $0x8] ss:$0 sps:$4 sm:$0x77]  }
 0x3a7   : >> { %v4860_v57 = vor.u32 %v4858_v62, %v4856_v43  ;;  %v14225_v26 = vsel %vm716_vm8, %v10801_v30, %v13707_v46  ;;  %v10819_v21 = vld [vmem:[%s12066_s23 + $0x68] ss:$0 sps:$4 sm:$0x77]  }
 0x3a8   : >> { %v14149_v63 = vpop.permute.xlu1 %3938  ;;  %v4857_v34 = vsel %vm3058_vm12, %v4852_v11, %v4856_v43  ;;  %v9770_v43 = vld [vmem:[%s12066_s23 + $0x44] sm:$0xe] }
 0x3a9   : >> { %17445 = vst [vmem:[#allocation62_spill] sm:$0xff] %v14149_v63  ;;  %v14152_v22 = vpop.permute.xlu0 %3936  ;;  %5199 = vrot.lane.b32.xlu1 %v5174_v23, %s11133_s16  ;;  %5197 = vrot.lane.b32.xlu0 %v5172_v0, %s11133_s16  ;;  %v5038_v0 = vrot.slane %v5036_v38, 5  ;;  %v5041_v23 = vrot.slane %v5039_v12, 6  ;;  %v5046_v38 = vrot.slane %v5044_v15, 6 }
 0x3aa   : >> { %17446 = vst [vmem:[#allocation63_spill] sm:$0xff] %v14152_v22  ;;  %v5052_v22 = vshll.u32 %v9803_v10, 16  ;;  %v10807_v63 = vld [vmem:[%s12066_s23 + $0x28] ss:$0 sps:$4 sm:$0x77]  }
 0x3ab   : >> { %v5042_v62 = vor.u32 %v5041_v23, %v5038_v0  ;;  %v9818_v0 = vcombine.low %v9770_v43, %v14105_v49  ;;  %v14192_v23 = vld [vmem:[%s12066_s23 + $0x68] sm:$0xf]  ;;  %v14244_v30 = vsel %vm716_vm8, %v10807_v63, %v13752_v54  ;;  %v10822_v63 = vld [vmem:[%s12066_s23 + $0x78] ss:$0 sps:$4 sm:$0x77]  }
 0x3ac   : >> { %v14159_v35 = vpop.permute.xlu1 %3942  ;;  %v14208_v49 = vcombine.low %v14192_v23, %v14192_v23 }
 0x3ad   : >> { %17447 = vst [vmem:[#allocation64_spill] sm:$0xff] %v14159_v35  ;;  %v14162_v61 = vpop.permute.xlu0 %3940  ;;  %4931 = vrot.lane.b32.xlu1 %v4845_v39, %s11130_s27  ;;  %4929 = vrot.lane.b32.xlu0 %v4842_v31, %s11130_s27  ;;  %v5049_v35 = vshrl.u32 %v9803_v10, 16  ;;  %v5057_v39 = vshll.u32 %v14168_v36, 16  ;;  %v5054_v31 = vrot.slane %v5052_v22, 6  ;;  %v9741_v10 = vld [vmem:[%s12066_s23 + $0x64] sm:$0xf] }
 0x3ae   : >> { %17448 = vst [vmem:[#allocation65_spill] sm:$0xff] %v14162_v61  ;;  %v9743_v61 = vld [vmem:[%s12066_s23 + $0x70] sm:$0x8] }
 0x3af   : >> { %v5051_v12 = vrot.slane %v5049_v35, 5  ;;  %v5047_v35 = vsel %vm3267_vm14, %v5042_v62, %v5046_v38  ;;  %v5059_v15 = vrot.slane %v5057_v39, 6  ;;  %v14211_v39 = vld [vmem:[%s12066_s23 + $0x78] sm:$0xf] }
 0x3b0   : >> { %v14171_v28 = vpop.permute.xlu1 %3946 }
 0x3b1   : >> { %17449 = vst [vmem:[#allocation66_spill] sm:$0xff] %v14171_v28  ;;  %v14174_v52 = vpop.permute.xlu0 %3944  ;;  %4935 = vrot.lane.b32.xlu1 %v4860_v57, %s11130_s27  ;;  %4933 = vrot.lane.b32.xlu0 %v4857_v34, %s11130_s27  ;;  %v9740_v57 = vld [vmem:[%s12066_s23 + $0x60] sm:$0x8]  ;;  %v5055_v22 = vor.u32 %v5054_v31, %v5051_v12  ;;  %v10804_v34 = vld [vmem:[%s12066_s23 + $0x18] ss:$0 sps:$4 sm:$0x77]  }
 0x3b2   : >> { %17450 = vst [vmem:[#allocation67_spill] sm:$0xff] %v14174_v52  ;;  %v14198_v52 = vcombine.low %v9740_v57, %v9741_v10  ;;  %v5175_v12 = vrot.slane %v9818_v0, 6  ;;  %v5176_v31 = vrot.slane %v14156_v51, 6  ;;  %v10810_v57 = vld [vmem:[%s12066_s23 + $0x38] ss:$0 sps:$4 sm:$0x77]  }
 0x3b3   : >> { %v5060_v38 = vsel %vm3267_vm14, %v5055_v22, %v5059_v15  ;;  %v10813_v0 = vld [vmem:[%s12066_s23 + $0x48] ss:$0 sps:$4 sm:$0x77]   ;;  %v3504_v54 = vsel %vm716_vm8, %v10810_v57, %v13768_v17 }
 0x3b4   : >> { %v14179_v28 = vpop.permute.xlu1 %3966  ;;  %17454 = vst [vmem:[#allocation71_spill] sm:$0xff] %v14198_v52 }
 0x3b5   : >> { %17451 = vst [vmem:[#allocation68_spill] sm:$0xff] %v14179_v28  ;;  %v14182_v11 = vpop.permute.xlu0 %3964  ;;  %4975 = vrot.lane.b32.xlu1 %v4964_v7, %s11131_s29  ;;  %4973 = vrot.lane.b32.xlu0 %v4963_v8, %s11131_s29  ;;  %v9744_v8 = vld [vmem:[%s12066_s23 + $0x74] sm:$0xf] }
 0x3b6   : >> { %17452 = vst [vmem:[#allocation69_spill] sm:$0xff] %v14182_v11  ;;  %v9771_v11 = vld [vmem:[%s12066_s23 + $0x54] sm:$0xe] }
 0x3b7   : >> { %v9819_v43 = vcombine.low %v9771_v11, %v14124_v58  ;;  %v14235_v58 = vcombine.low %v14211_v39, %v14211_v39  ;;  %v17460_v11 = vld [vmem:[#allocation39_spill] sm:$0xff] }
 0x3b8   : >> { %v14195_v28 = vpop.permute.xlu1 %3970  ;;  %v3491_v46 = vsel %vm716_vm8, %v17460_v11, %v13733_v44  ;;  %v5179_v44 = vrot.slane %v14168_v36, 6  ;;  %v17463_v36 = vld [vmem:[#allocation45_spill] sm:$0xff] }
 0x3b9   : >> { %17453 = vst [vmem:[#allocation70_spill] sm:$0xff] %v14195_v28  ;;  %v14200_v7 = vpop.permute.xlu0 %3968  ;;  %5123 = vrot.lane.b32.xlu1 %v5047_v35, %s11132_s26  ;;  %5121 = vrot.lane.b32.xlu0 %v5042_v62, %s11132_s26  ;;  %v4864_v35 = vshll.u32 %v14198_v52, 16  ;;  %v17458_v62 = vld [vmem:[#allocation35_spill] sm:$0xff]  ;;  %v3506_v17 = vsel %vm716_vm8, %v17463_v36, %v13785_v25  ;;  %v17465_v36 = vld [vmem:[#allocation38_spill] sm:$0xff] }
 0x3ba   : >> { %17455 = vst [vmem:[#allocation72_spill] sm:$0xff] %v14200_v7  ;;  %v14221_v7 = vcombine.low %v9743_v61, %v9744_v8  ;;  %v3486_v15 = vsel %vm716_vm8, %v17458_v62, %v13709_v55  ;;  %v3494_v61 = vsel %vm716_vm8, %v10804_v34, %v13731_v1  ;;  %v10816_v55 = vld [vmem:[%s12066_s23 + $0x58] ss:$0 sps:$4 sm:$0x77]   ;;  %v4869_v62 = vshll.u32 %v14208_v49, 16 }
 0x3bb   : >> { %v5177_v1 = vsel %vm741_vm7, %v5175_v12, %v5176_v31  ;;  %v5178_v34 = vrot.slane %v9819_v43, 6  ;;  %v4866_v60 = vrot.slane %v4864_v35, 1  ;;  %v4884_v43 = vshll.u32 %v14235_v58, 16 }
 0x3bc   : >> { %v14218_v28 = vpop.permute.xlu1 %3974  ;;  %17457 = vst [vmem:[#allocation74_spill] sm:$0xff] %v14221_v7  ;;  %v4879_v20 = vshll.u32 %v14221_v7, 16  ;;  %v3514_v57 = vsel %vm716_vm8, %v10816_v55, %v13790_v41  ;;  %v4871_v35 = vrot.slane %v4869_v62, 1  ;;  %v3516_v41 = vsel %vm716_vm8, %v17465_v36, %v13806_v27  ;;  %v17467_v62 = vld [vmem:[#allocation36_spill] sm:$0xff] }
 0x3bd   : >> { %17456 = vst [vmem:[#allocation73_spill] sm:$0xff] %v14218_v28  ;;  %v14231_v51 = vpop.permute.xlu0 %3972  ;;  %5127 = vrot.lane.b32.xlu1 %v5060_v38, %s11132_s26  ;;  %v17461_v28 = vld [vmem:[#allocation40_spill] sm:$0xff]  ;;  %5125 = vrot.lane.b32.xlu0 %v5055_v22, %s11132_s26  ;;  %v4862_v38 = vshrl.u32 %v14198_v52, 16  ;;  %v14268_v22 = vsel %vm716_vm8, %v10813_v0, %v13781_v33  ;;  %v17464_v33 = vld [vmem:[#allocation46_spill] sm:$0xff]  ;;  %v14288_v0 = vsel %vm716_vm8, %v10819_v21, %v13803_v18  ;;  %v4877_v18 = vshrl.u32 %v14221_v7, 16 }
 0x3be   : >> { %17459 = vst [vmem:[#allocation35_spill] sm:$0xff] %v14231_v51  ;;  %v3496_v51 = vsel %vm716_vm8, %v17461_v28, %v13757_v5  ;;  %v17462_v5 = vld [vmem:[#allocation41_spill] sm:$0xff]  ;;  %v3511_v25 = vsel %vm716_vm8, %v17464_v33, %v13793_v16  ;;  %v4881_v21 = vrot.slane %v4879_v20, 1  ;;  %v14305_v27 = vsel %vm716_vm8, %v17467_v62, %v13818_v42 }
 0x3bf   : >> { %v3501_v28 = vsel %vm716_vm8, %v17462_v5, %v13772_v56  ;;  %v4873_v56 = vshrl.u32 %v14208_v49, 16  ;;  %v14281_v5 = vcombine.low %v9741_v10, %v14192_v23  ;;  %v5180_v49 = vsel %vm741_vm7, %v5178_v34, %v5179_v44  ;;  %17468 = vst [vmem:[#allocation40_spill] sm:$0xff] %v14305_v27  ;;  %v9746_v33 = vld [vmem:[%s12066_s23 + $0x80] sm:$0x8] }
 0x3c0   : >> { %v14259_v11 = vpop.permute.xlu1 %3978  ;;  %v14297_v10 = vsel %vm716_vm8, %v10822_v63, %v13816_v24  ;;  %v4867_v16 = vor.u32 %v4866_v60, %v4862_v38  ;;  %v4888_v24 = vshrl.u32 %v14235_v58, 16  ;;  %v14311_v44 = vcombine.low %v9744_v8, %v14211_v39  ;;  %v14314_v63 = vld [vmem:[%s12066_s23 + $0x6c] ss:$0 sps:$4 sm:$0x11]  }
 0x3c1   : >> { %v14273_v31 = vpop.permute.xlu0 %3976  ;;  %5203 = vrot.lane.b32.xlu1 %v5177_v1, %s11133_s16  ;;  %5201 = vrot.lane.b32.xlu0 %v5175_v12, %s11133_s16  ;;  %17466 = vst [vmem:[#allocation39_spill] sm:$0xff] %v14297_v10  ;;  %v4886_v1 = vrot.slane %v4884_v43, 1  ;;  %v14318_v60 = vsel %vm859_vm9, %v3491_v46, %v13834_v37  ;;  %v4875_v20 = vor.u32 %v4873_v56, %v4871_v35  ;;  %v5062_v42 = vshrl.u32 %v14281_v5, 16  ;;  %v14325_v43 = vld [vmem:[%s12066_s23 + $0x84] sm:$0xf] }
 0x3c2   : >> { %v5065_v38 = vshll.u32 %v14281_v5, 16  ;;  %v14329_v8 = vsel %vm859_vm9, %v3494_v61, %v13834_v37  ;;  %v3526_v58 = vsel %vm859_vm9, %v3486_v15, %v13836_v2  ;;  %v14335_v46 = vld [vmem:[%s12066_s23 + $0x7c] ss:$0 sps:$4 sm:$0x11]   ;;  %v5075_v56 = vshrl.u32 %v14311_v44, 16 }
 0x3c3   : >> { %v5078_v36 = vshll.u32 %v14311_v44, 16  ;;  %v14344_v37 = vsel %vm859_vm9, %v3501_v28, %v13854_v47  ;;  %v4872_v15 = vsel %vm3058_vm12, %v4867_v16, %v4871_v35  ;;  %v14351_v62 = vsel %vm859_vm9, %v3504_v54, %v13854_v47  ;;  %v9772_v28 = vld [vmem:[%s12066_s23 + $0x64] sm:$0xe]  ;;  %v14367_v16 = vld [vmem:[%s12066_s23 + $0x88] sm:$0xf] }
 0x3c4   : >> { %v14299_v55 = vpop.permute.xlu1 %4110  ;;  %v3532_v7 = vsel %vm859_vm9, %v3496_v51, %v13856_v19  ;;  %v14362_v52 = vcombine.low %v9746_v33, %v14325_v43  ;;  %v4890_v35 = vor.u32 %v4888_v24, %v4886_v1  ;;  %v5064_v47 = vrot.slane %v5062_v42, 5  ;;  %v14376_v24 = vld [vmem:[%s12066_s23 + $0x98] sm:$0xf] }
 0x3c5   : >> { %v14307_v12 = vpop.permute.xlu0 %4108  ;;  %5207 = vrot.lane.b32.xlu1 %v5180_v49, %s11133_s16  ;;  %5205 = vrot.lane.b32.xlu0 %v5178_v34, %s11133_s16  ;;  %v3527_v49 = vsel %vm859_vm9, %v14225_v26, %v13836_v2  ;;  %v4882_v34 = vor.u32 %v4881_v21, %v4877_v18  ;;  %v3533_v26 = vsel %vm859_vm9, %v14244_v30, %v13856_v19  ;;  %v5067_v54 = vrot.slane %v5065_v38, 6 }
 0x3c6   : >> { %17469 = vst [vmem:[#allocation41_spill] sm:$0xff] %v14362_v52  ;;  %v5070_v51 = vshll.u32 %v14314_v63, 16  ;;  %v14371_v19 = vsel %vm859_vm9, %v3511_v25, %v13866_v50  ;;  %v5077_v30 = vrot.slane %v5075_v56, 5  ;;  %v5080_v18 = vrot.slane %v5078_v36, 6  ;;  %v9773_v56 = vld [vmem:[%s12066_s23 + $0x74] sm:$0xe] }
 0x3c7   : >> { %v5083_v21 = vshll.u32 %v14335_v46, 16  ;;  %v14384_v42 = vsel %vm859_vm9, %v3506_v17, %v13868_v6  ;;  %v4887_v25 = vsel %vm3058_vm12, %v4882_v34, %v4886_v1  ;;  %v9820_v33 = vcombine.low %v9772_v28, %v14192_v23  ;;  %v9749_v36 = vld [vmem:[%s12066_s23 + $0x90] sm:$0x8] }
 0x3c8   : >> { %v14346_v61 = vpop.permute.xlu1 %4114  ;;  %v3539_v27 = vsel %vm859_vm9, %v14268_v22, %v13868_v6  ;;  %v14404_v17 = vcombine.low %v14367_v16, %v14367_v16  ;;  %v4894_v1 = vshll.u32 %v14362_v52, 16  ;;  %v4966_v23 = vrot.slane %v14311_v44, 5 }
 0x3c9   : >> { %v14358_v2 = vpop.permute.xlu0 %4112  ;;  %4939 = vrot.lane.b32.xlu1 %v4875_v20, %s11130_s27  ;;  %4937 = vrot.lane.b32.xlu0 %v4872_v15, %s11130_s27  ;;  %v14380_v20 = vsel %vm859_vm9, %v3514_v57, %v13866_v50  ;;  %v9750_v15 = vld [vmem:[%s12066_s23 + $0x94] sm:$0xf]  ;;  %v14398_v50 = vsel %vm859_vm9, %v3516_v41, %v13881_v59  ;;  %v5068_v34 = vor.u32 %v5067_v54, %v5064_v47  ;;  %v5072_v28 = vrot.slane %v5070_v51, 6 }
 0x3ca   : >> { %17470 = vst [vmem:[#allocation45_spill] sm:$0xff] %v14398_v50  ;;  %v14411_v6 = vcombine.low %v14376_v24, %v14376_v24  ;;  %v14416_v22 = vsel %vm859_vm9, %v14288_v0, %v13881_v59  ;;  %v4965_v41 = vrot.slane %v14281_v5, 5  ;;  %v9821_v10 = vcombine.low %v9773_v56, %v14211_v39 }
 0x3cb   : >> { %v14425_v44 = vsel %vm2019_vm15, %v3527_v49, %v13892_v45  ;;  %v14429_v54 = vor.u32 %v5080_v18, %v5077_v30  ;;  %v5085_v51 = vrot.slane %v5083_v21, 6  ;;  %v14431_v50 = vrot.slane %v9820_v33, 6 }
 0x3cc   : >> { %v14386_v38 = vpop.permute.xlu1 %4118  ;;  %v5182_v0 = vrot.slane %v14314_v63, 6  ;;  %v4899_v5 = vshll.u32 %v14404_v17, 16  ;;  %v4892_v39 = vshrl.u32 %v14362_v52, 16  ;;  %v14440_v45 = vsel %vm2019_vm15, %v3526_v58, %v13894_v4 }
 0x3cd   : >> { %v14400_v57 = vpop.permute.xlu0 %4116  ;;  %4943 = vrot.lane.b32.xlu1 %v4890_v35, %s11130_s27  ;;  %4941 = vrot.lane.b32.xlu0 %v4887_v25, %s11130_s27  ;;  %v14421_v35 = vcombine.low %v9749_v36, %v9750_v15  ;;  %v4896_v25 = vrot.slane %v4894_v1, 1  ;;  %v14445_v49 = vsel %vm2019_vm15, %v14329_v8, %v13905_v14  ;;  %v5073_v30 = vsel %vm3267_vm14, %v5068_v34, %v5072_v28  ;;  %v14478_v36 = vld [vmem:[%s12066_s23 + $0x8c] ss:$0 sps:$4 sm:$0x11]  }
 0x3ce   : >> { %v4914_v63 = vshll.u32 %v14411_v6, 16  ;;  %v14453_v18 = vsel %vm2019_vm15, %v14318_v60, %v13907_v29  ;;  %v14456_v4 = vrot.slane %v9821_v10, 6  ;;  %v5185_v58 = vrot.slane %v14335_v46, 6 }
 0x3cf   : >> { %17471 = vst [vmem:[#allocation46_spill] sm:$0xff] %v14421_v35  ;;  %v4909_v14 = vshll.u32 %v14421_v35, 16  ;;  %v14462_v8 = vsel %vm2019_vm15, %v3533_v26, %v13920_v3  ;;  %v14466_v21 = vsel %vm2019_vm15, %v3532_v7, %v13922_v53  ;;  %v5086_v60 = vsel %vm3267_vm14, %v14429_v54, %v5085_v51 }
 0x3d0   : >> { %v14427_v47 = vpop.permute.xlu1 %4122  ;;  %v14472_v10 = vcombine.low %v14325_v43, %v14367_v16  ;;  %v5183_v33 = vsel %vm741_vm7, %v14431_v50, %v5182_v0  ;;  %v4901_v56 = vrot.slane %v4899_v5, 1  ;;  %v4903_v3 = vshrl.u32 %v14404_v17, 16  ;;  %v10859_v43 = vld [vmem:[%s12066_s23 + $0x58] ss:$0 sps:$4 sm:$0x77]  }
 0x3d1   : >> { %v14433_v59 = vpop.permute.xlu0 %4120  ;;  %4979 = vrot.lane.b32.xlu1 %v4966_v23, %s11131_s29  ;;  %4977 = vrot.lane.b32.xlu0 %v4965_v41, %s11131_s29  ;;  %v4897_v26 = vor.u32 %v4896_v25, %v4892_v39  ;;  %v14483_v53 = vsel %vm2019_vm15, %v14351_v62, %v13930_v40  ;;  %v14488_v7 = vsel %vm2019_vm15, %v14344_v37, %v13932_v32  ;;  %v14492_v1 = vrot.slane %v4914_v63, 1  ;;  %v17473_v39 = vld [vmem:[#allocation60_spill] sm:$0xff] }
 0x3d2   : >> { %v4918_v17 = vshrl.u32 %v14411_v6, 16  ;;  %v14498_v23 = vsel %vm741_vm7, %v14456_v4, %v5185_v58  ;;  %v4907_v40 = vshrl.u32 %v14421_v35, 16  ;;  %v4911_v62 = vrot.slane %v4909_v14, 1  ;;  %v14540_v58 = vld [vmem:[%s12066_s23 + $0x9c] ss:$0 sps:$4 sm:$0x11]  }
 0x3d3   : >> { %v14502_v32 = vcombine.low %v9750_v15, %v14376_v24  ;;  %v14506_v37 = vsel %vm2019_vm15, %v3539_v27, %v13945_v9  ;;  %v5088_v6 = vshrl.u32 %v14472_v10, 16  ;;  %v5091_v41 = vshll.u32 %v14472_v10, 16  ;;  %v17474_v14 = vld [vmem:[#allocation61_spill] sm:$0xff] }
 0x3d4   : >> { %v4127_v29 = vpop.permute.xlu1 %4126  ;;  %v14515_v0 = vor.u32 %v4903_v3, %v4901_v56  ;;  %v14518_v15 = vsel %vm3058_vm12, %v4897_v26, %v4901_v56  ;;  %v5096_v9 = vshll.u32 %v14478_v36, 16  ;;  %v4244_v25 = vsel %vm716_vm8, %v10859_v43, %v17473_v39  ;;  %v17475_v56 = vld [vmem:[#allocation54_spill] sm:$0xff] }
 0x3d5   : >> { %v4125_v46 = vpop.permute.xlu0 %4124  ;;  %5131 = vrot.lane.b32.xlu1 %v5073_v30, %s11132_s26  ;;  %5129 = vrot.lane.b32.xlu0 %v5068_v34, %s11132_s26  ;;  %v14511_v34 = vsel %vm2019_vm15, %v14384_v42, %v13947_v13  ;;  %v5101_v27 = vshrl.u32 %v14502_v32, 16  ;;  %v14525_v13 = vsel %vm2019_vm15, %v14380_v20, %v13956_v48  ;;  %v17472_v42 = vld [vmem:[#allocation14_spill] sm:$0xff]  ;;  %v14537_v63 = vor.u32 %v4918_v17, %v14492_v1  ;;  %v17476_v20 = vld [vmem:[#allocation35_spill] sm:$0xff] }
 0x3d6   : >> { %v14530_v5 = vsel %vm2019_vm15, %v14371_v19, %v17472_v42  ;;  %v10861_v30 = vld [vmem:[%s12066_s23 + $0x68] ss:$0 sps:$4 sm:$0x77]   ;;  %v4241_v48 = vsel %vm716_vm8, %v17475_v56, %v17474_v14  ;;  %v4274_v3 = vsel %vm859_vm9, %v4244_v25, %v17476_v20  ;;  %v14549_v19 = vor.u32 %v4911_v62, %v4907_v40 }
 0x3d7   : >> { %v5104_v26 = vshll.u32 %v14502_v32, 16  ;;  %v4303_v43 = vsel %vm2019_vm15, %v4274_v3, %v4127_v29  ;;  %v5090_v42 = vrot.slane %v5088_v6, 5  ;;  %v5093_v39 = vrot.slane %v5091_v41, 6  ;;  %v17477_v40 = vld [vmem:[#allocation62_spill] sm:$0xff]  ;;  %v9774_v6 = vld [vmem:[%s12066_s23 + $0x84] sm:$0xe] }
 0x3d8   : >> { %v4131_v28 = vpop.permute.xlu1 %4130  ;;  %v14557_v35 = vrot.slane %v5096_v9, 6  ;;  %v4249_v62 = vsel %vm716_vm8, %v10861_v30, %v17477_v40  ;;  %v5109_v29 = vshll.u32 %v14540_v58, 16  ;;  %v17478_v41 = vld [vmem:[#allocation63_spill] sm:$0xff]  ;;  %v17480_v3 = vld [vmem:[#allocation73_spill] sm:$0xff] }
 0x3d9   : >> { %v4129_v51 = vpop.permute.xlu0 %4128  ;;  %5135 = vrot.lane.b32.xlu1 %v5086_v60, %s11132_s26  ;;  %5133 = vrot.lane.b32.xlu0 %v14429_v54, %s11132_s26  ;;  %v4273_v60 = vsel %vm859_vm9, %v4241_v48, %v17476_v20  ;;  %v5103_v54 = vrot.slane %v5101_v27, 5  ;;  %v4277_v9 = vsel %vm859_vm9, %v4249_v62, %v17480_v3  ;;  %v5106_v30 = vrot.slane %v5104_v26, 6  ;;  %v9775_v40 = vld [vmem:[%s12066_s23 + $0x94] sm:$0xe] }
 0x3da   : >> { %v4301_v14 = vsel %vm2019_vm15, %v4273_v60, %v4125_v46  ;;  %v17479_v46 = vld [vmem:[#allocation18_spill] sm:$0xff]  ;;  %v17481_v60 = vld [vmem:[#allocation21_spill] sm:$0xff] }
 0x3db   : >> { %v4246_v20 = vsel %vm716_vm8, %v17479_v46, %v17478_v41  ;;  %v14587_v41 = vld [vmem:[%s12066_s23 + $0x38] sm:$0xf] }
 0x3dc   : >> { %v4207_v17 = vpop.permute.xlu1 %4206 }
 0x3dd   : >> { %v4335_v25 = vsel %vm3581_vm0, %v4303_v43, %v4207_v17  ;;  %v4205_v56 = vpop.permute.xlu0 %4204  ;;  %5211 = vrot.lane.b32.xlu1 %v5183_v33, %s11133_s16  ;;  %5209 = vrot.lane.b32.xlu0 %v14431_v50, %s11133_s16  ;;  %v3585_v33 = vsel %vm3581_vm0, %v14425_v44, %v17481_v60  ;;  %v17482_v43 = vld [vmem:[#allocation17_spill] sm:$0xff]  ;;  %v14608_v60 = vor.u32 %v5106_v30, %v5103_v54 }
 0x3de   : >> { %v4380_v52 = vrot.slane %v4335_v25, 3  ;;  %v4333_v48 = vsel %vm3581_vm0, %v4301_v14, %v4205_v56  ;;  %v3583_v17 = vsel %vm3581_vm0, %v14440_v45, %v17482_v43  ;;  %v4276_v14 = vsel %vm859_vm9, %v4246_v20, %v17480_v3  ;;  %v9836_v20 = vld [vmem:[%s12066_s23 + $0x30] sm:$0x8]  ;;  %v14597_v3 = vld [vmem:[%s12066_s23 + $0x34] sm:$0xf] }
 0x3df   : >> { %v4379_v27 = vrot.slane %v4333_v48, 3  ;;  %v4307_v25 = vsel %vm2019_vm15, %v4277_v9, %v4131_v28  ;;  %v4305_v50 = vsel %vm2019_vm15, %v4276_v14, %v4129_v51  ;;  %v9822_v48 = vcombine.low %v9774_v6, %v14367_v16  ;;  %v17483_v9 = vld [vmem:[#allocation10_spill] sm:$0xff]  ;;  %v17484_v16 = vld [vmem:[#allocation47_spill] sm:$0xff] }
 0x3e0   : >> { %v4211_v56 = vpop.permute.xlu1 %4210  ;;  %v14593_v28 = vor.u32 %v5093_v39, %v5090_v42  ;;  %v5111_v51 = vrot.slane %v5109_v29, 6  ;;  %v3587_v6 = vsel %vm3581_vm0, %v14453_v18, %v17484_v16  ;;  %v3635_v42 = vrot.slane %v3585_v33, 3  ;;  %v10863_v33 = vld [vmem:[%s12066_s23 + $0x78] ss:$0 sps:$4 sm:$0x77]  }
 0x3e1   : >> { %v4339_v26 = vsel %vm3581_vm0, %v4307_v25, %v4211_v56  ;;  %v4209_v62 = vpop.permute.xlu0 %4208  ;;  %v4381_v44 = vsel %vm3633_vm2, %v4379_v27, %v4380_v52  ;;  %5215 = vrot.lane.b32.xlu1 %v14498_v23, %s11133_s16  ;;  %v3589_v52 = vsel %vm3581_vm0, %v14445_v49, %v17483_v9  ;;  %5213 = vrot.lane.b32.xlu0 %v14456_v4, %s11133_s16  ;;  %v3634_v39 = vrot.slane %v3583_v17, 3  ;;  %v10896_v49 = vld [vmem:[%s16979_s5 + $0x8] ss:$0 sps:$4 sm:$0x33]  }
 0x3e2   : >> { %v4383_v45 = vrot.slane %v4339_v26, 3  ;;  %v4337_v46 = vsel %vm3581_vm0, %v4305_v50, %v4209_v62  ;;  %10366 = vmatprep.mubr.msk.bf16.mxu1 %vm4404_vm1, %v4381_v44  ;;  %v9823_v23 = vcombine.low %v9775_v40, %v14376_v24  ;;  %v14615_v43 = vcombine.low %v14587_v41, %v14587_v41  ;;  %v17485_v40 = vld [vmem:[#allocation9_spill] sm:$0xff]  ;;  %v17486_v50 = vld [vmem:[#allocation22_spill] sm:$0xff]  ;;  %v17487_v62 = vld [vmem:[#allocation48_spill] sm:$0xff] }
 0x3e3   : >> { %v4382_v27 = vrot.slane %v4337_v46, 3  ;;  %v14618_v25 = vrot.slane %v9822_v48, 6  ;;  %v5188_v24 = vrot.slane %v14478_v36, 6  ;;  %v14622_v4 = vcombine.low %v9836_v20, %v14597_v3 }
 0x3e4   : >> { %v4135_v29 = vpop.permute.xlu1 %4134  ;;  %v3638_v54 = vrot.slane %v3589_v52, 3  ;;  %v3637_v30 = vrot.slane %v3587_v6, 3  ;;  %v4917_v17 = vsel %vm3058_vm12, %v14549_v19, %v14492_v1  ;;  %v4968_v56 = vrot.slane %v14502_v32, 5  ;;  %v14654_v19 = vld [vmem:[%s16979_s5 + $0x14] sm:$0xff]   ;;  %v17489_v6 = vld [vmem:[#allocation65_spill] sm:$0xff] }
 0x3e5   : >> { %v4133_v18 = vpop.permute.xlu0 %4132  ;;  %v4384_v14 = vsel %vm3633_vm2, %v4382_v27, %v4383_v45  ;;  %4947 = vrot.lane.b32.xlu1 %v14515_v0, %s11130_s27  ;;  %v3593_v36 = vsel %vm3581_vm0, %v14462_v8, %v17485_v40  ;;  %v3591_v26 = vsel %vm3581_vm0, %v14466_v21, %v17486_v50  ;;  %4945 = vrot.lane.b32.xlu0 %v14518_v15, %s11130_s27  ;;  %v14641_v0 = vrot.slane %v9823_v23, 6  ;;  %v17488_v52 = vld [vmem:[#allocation64_spill] sm:$0xff]  ;;  %v17490_v27 = vld [vmem:[#allocation33_spill] sm:$0xff] }
 0x3e6   : >> { %10367 = vmatmul.mubr.msk.bf16.vlgmr.msra.gmra.mrb[0].mxu1 %vm4404_vm1, %v4384_v14  ;;  %v5191_v44 = vrot.slane %v14540_v58, 6  ;;  %v4967_v32 = vrot.slane %v14472_v10, 5  ;;  %v5099_v8 = vsel %vm3267_vm14, %v14593_v28, %v14557_v35  ;;  %v4564_v21 = vsel %vm741_vm7, %v10896_v49, 0 }
 0x3e7   : >> { %10375 = vmatpush3.bf16.msra.mxu1 %v17487_v62  ;;  %v5693_v15 = vshll.u32 %v14615_v43, 16  ;;  %v14658_v48 = vsel %vm3267_vm14, %v14608_v60, %v5111_v51  ;;  %v14661_v10 = vsel %vm3633_vm2, %v3634_v39, %v3635_v42  ;;  %v14665_v35 = vsel %vm741_vm7, %v14618_v25, %v5188_v24  ;;  %v10866_v51 = vld [vmem:[%s12066_s23 + $0x88] ss:$0 sps:$4 sm:$0x77]   ;;  %v9839_v62 = vld [vmem:[%s12066_s23 + $0x40] sm:$0x8] }
 0x3e8   : >> { %v4139_v1 = vpop.permute.xlu1 %4138  ;;  %10581 = vmatprep.subr.msk.bf16.mxu1 %vm741_vm7, %v10896_v49  ;;  %v5688_v45 = vshll.u32 %v14622_v4, 16  ;;  %v14669_v46 = vsel %vm3633_vm2, %v3637_v30, %v3638_v54  ;;  %v3641_v20 = vrot.slane %v3593_v36, 3  ;;  %v3640_v9 = vrot.slane %v3591_v26, 3 }
 0x3e9   : >> { %v4137_v58 = vpop.permute.xlu0 %4136  ;;  %v4254_v16 = vsel %vm716_vm8, %v10863_v33, %v17488_v52  ;;  %4951 = vrot.lane.b32.xlu1 %v14537_v63, %s11130_s27  ;;  %v4251_v23 = vsel %vm716_vm8, %v17490_v27, %v17489_v6  ;;  %4949 = vrot.lane.b32.xlu0 %v4917_v17, %s11130_s27  ;;  %v14684_v39 = vsel %vm741_vm7, %v14641_v0, %v5191_v44  ;;  %v5686_v49 = vshrl.u32 %v14622_v4, 16  ;;  %v14688_v63 = vld [vmem:[%s12066_s23 + $0x48] sm:$0xf]  ;;  %v10849_v44 = vld [vmem:[%s12066_s23 + $0x18] ss:$0 sps:$4 sm:$0x77]  }
 0x3ea   : >> { %v4280_v42 = vsel %vm859_vm9, %v4254_v16, %v14273_v31  ;;  %v4279_v14 = vsel %vm859_vm9, %v4251_v23, %v14273_v31  ;;  %v14693_v30 = vrot.slane %v5693_v15, 1  ;;  %v5697_v33 = vshrl.u32 %v14615_v43, 16  ;;  %v17491_v17 = vld [vmem:[#allocation50_spill] sm:$0xff] }
 0x3eb   : >> { %10377 = vmatpush3.bf16.msra.mxu1 %v4564_v21  ;;  %v4311_v24 = vsel %vm2019_vm15, %v4280_v42, %v4135_v29  ;;  %v14700_v40 = vsel %vm3581_vm0, %v14483_v53, %v17491_v17  ;;  %v4309_v36 = vsel %vm2019_vm15, %v4279_v14, %v4133_v18  ;;  %v5690_v31 = vrot.slane %v5688_v45, 1  ;;  %v14706_v29 = vld [vmem:[%s12066_s23 + $0x44] sm:$0xf]  ;;  %v17492_v21 = vld [vmem:[#allocation66_spill] sm:$0xff]  ;;  %v17493_v18 = vld [vmem:[#allocation67_spill] sm:$0xff] }
 0x3ec   : >> { %v4215_v54 = vpop.permute.xlu1 %4214  ;;  %10394 = vmatprep.subr.bf16.mxu1 %v14654_v19  ;;  %v4259_v43 = vsel %vm716_vm8, %v10866_v51, %v17492_v21  ;;  %v14715_v53 = vcombine.low %v14688_v63, %v14688_v63  ;;  %v17494_v16 = vld [vmem:[#allocation34_spill] sm:$0xff]  ;;  %v14724_v51 = vsel %vm3633_vm2, %v3640_v9, %v3641_v20  ;;  %v17498_v21 = vld [vmem:[#allocation15_spill] sm:$0xff] }
 0x3ed   : >> { %v4343_v50 = vsel %vm3581_vm0, %v4311_v24, %v4215_v54  ;;  %v4213_v26 = vpop.permute.xlu0 %4212  ;;  %4983 = vrot.lane.b32.xlu1 %v4968_v56, %s11131_s29  ;;  %v4256_v45 = vsel %vm716_vm8, %v17494_v16, %v17493_v18  ;;  %v4283_v6 = vsel %vm859_vm9, %v4259_v43, %v14259_v11  ;;  %4981 = vrot.lane.b32.xlu0 %v4967_v32, %s11131_s29  ;;  %v3644_v56 = vrot.slane %v14700_v40, 3  ;;  %v17495_v54 = vld [vmem:[#allocation49_spill] sm:$0xff] }
 0x3ee   : >> { %v4386_v15 = vrot.slane %v4343_v50, 3  ;;  %v4341_v52 = vsel %vm3581_vm0, %v4309_v36, %v4213_v26  ;;  %v4282_v23 = vsel %vm859_vm9, %v4256_v45, %v14259_v11  ;;  %v4315_v42 = vsel %vm2019_vm15, %v4283_v6, %v4139_v1  ;;  %v17496_v50 = vld [vmem:[#allocation44_spill] sm:$0xff]  ;;  %v10852_v1 = vld [vmem:[%s12066_s23 + $0x28] ss:$0 sps:$4 sm:$0x77]  }
 0x3ef   : >> { %v4385_v27 = vrot.slane %v4341_v52, 3  ;;  %v14731_v24 = vcombine.low %v9839_v62, %v14706_v29  ;;  %v14736_v17 = vsel %vm3581_vm0, %v14488_v7, %v17495_v54  ;;  %v4313_v32 = vsel %vm2019_vm15, %v4282_v23, %v4137_v58  ;;  %v17497_v58 = vld [vmem:[#allocation13_spill] sm:$0xff] }
 0x3f0   : >> { %v4219_v14 = vpop.permute.xlu1 %4218  ;;  %v4224_v11 = vsel %vm716_vm8, %v10849_v44, %v17496_v50  ;;  %v14748_v7 = vor.u32 %v5697_v33, %v14693_v30  ;;  %v4221_v43 = vsel %vm716_vm8, %v17498_v21, %v17497_v58  ;;  %v17499_v52 = vld [vmem:[#allocation69_spill] sm:$0xff]  ;;  %v5691_v18 = vor.u32 %v5690_v31, %v5686_v49  ;;  %v17500_v31 = vld [vmem:[#allocation30_spill] sm:$0xff]  ;;  %v17502_v50 = vld [vmem:[#allocation28_spill] sm:$0xff] }
 0x3f1   : >> { %v4347_v20 = vsel %vm3581_vm0, %v4315_v42, %v4219_v14  ;;  %v4217_v9 = vpop.permute.xlu0 %4216  ;;  %v4387_v36 = vsel %vm3633_vm2, %v4385_v27, %v4386_v15  ;;  %5139 = vrot.lane.b32.xlu1 %v5099_v8, %s11132_s26  ;;  %v4262_v15 = vsel %vm859_vm9, %v4224_v11, %v17499_v52  ;;  %5137 = vrot.lane.b32.xlu0 %v14593_v28, %s11132_s26  ;;  %v3643_v16 = vrot.slane %v14736_v17, 3  ;;  %v10960_v17 = vld [vmem:[%s16979_s5 + $0x1c] sm:$0xfc]  }
 0x3f2   : >> { %v4389_v26 = vrot.slane %v4347_v20, 3  ;;  %v4345_v62 = vsel %vm3581_vm0, %v4313_v32, %v4217_v9  ;;  %10370 = vmatprep.mubr.msk.bf16.mxu1 %vm4404_vm1, %v4387_v36  ;;  %v4261_v8 = vsel %vm859_vm9, %v4221_v43, %v17499_v52  ;;  %v4287_v33 = vsel %vm2019_vm15, %v4262_v15, %v14299_v55  ;;  %v10855_v32 = vld [vmem:[%s12066_s23 + $0x38] ss:$0 sps:$4 sm:$0x77]  }
 0x3f3   : >> { %v4388_v44 = vrot.slane %v4345_v62, 3  ;;  %v5703_v6 = vshll.u32 %v14731_v24, 16  ;;  %v4285_v27 = vsel %vm2019_vm15, %v4261_v8, %v14307_v12  ;;  %v5708_v49 = vshll.u32 %v14715_v53, 16  ;;  %v17501_v36 = vld [vmem:[#allocation24_spill] sm:$0xff]  ;;  %v17504_v8 = vld [vmem:[#allocation23_spill] sm:$0xff] }
 0x3f4   : >> { %v4191_v45 = vpop.permute.xlu1 %4190  ;;  %v4229_v54 = vsel %vm716_vm8, %v10852_v1, %v17500_v31  ;;  %v5701_v12 = vshrl.u32 %v14731_v24, 16  ;;  %v4226_v11 = vsel %vm716_vm8, %v17502_v50, %v17501_v36  ;;  %v17509_v36 = vld [vmem:[#allocation43_spill] sm:$0xff] }
 0x3f5   : >> { %v4319_v23 = vsel %vm3581_vm0, %v4287_v33, %v4191_v45  ;;  %v4189_v42 = vpop.permute.xlu0 %4188  ;;  %v14766_v14 = vpop.f32.mrb[0].mxu0  ;;  %v4390_v28 = vsel %vm3633_vm2, %v4388_v44, %v4389_v26  ;;  %5143 = vrot.lane.b32.xlu1 %v14658_v48, %s11132_s26  ;;  %v17503_v26 = vld [vmem:[#allocation68_spill] sm:$0xff]  ;;  %5141 = vrot.lane.b32.xlu0 %v14608_v60, %s11132_s26  ;;  %v14793_v48 = vsel %vm3058_vm12, %v5691_v18, %v14693_v30  ;;  %v5712_v60 = vshrl.u32 %v14715_v53, 16 }
 0x3f6   : >> { %v4368_v55 = vrot.slane %v4319_v23, 3  ;;  %v4317_v20 = vsel %vm3581_vm0, %v4285_v27, %v4189_v42  ;;  %v14774_v9 = vpop.f32.mrb[1].mxu0  ;;  %10371 = vmatmul.mubr.msk.bf16.gmra.mrb[4].mxu1 %vm4404_vm1, %v4390_v28  ;;  %v4265_v1 = vsel %vm859_vm9, %v4229_v54, %v17503_v26  ;;  %v4264_v21 = vsel %vm859_vm9, %v4226_v11, %v17503_v26  ;;  %v10857_v23 = vld [vmem:[%s12066_s23 + $0x48] ss:$0 sps:$4 sm:$0x77]   ;;  %v17507_v28 = vld [vmem:[#allocation29_spill] sm:$0xff] }
 0x3f7   : >> { %v4367_v62 = vrot.slane %v4317_v20, 3  ;;  %v14787_v58 = vpop.f32.mrb[2].mxu0  ;;  %10378 = vmatprep.mubr.msk.bf16.mxu1 %vm4404_vm1, %v14661_v10  ;;  %v4291_v43 = vsel %vm2019_vm15, %v4265_v1, %v14346_v61  ;;  %v5705_v44 = vrot.slane %v5703_v6, 1  ;;  %v14805_v10 = vsel %vm3581_vm0, %v14506_v37, %v17504_v8  ;;  %v17505_v61 = vld [vmem:[#allocation31_spill] sm:$0xff]  ;;  %v17506_v37 = vld [vmem:[#allocation56_spill] sm:$0xff] }
 0x3f8   : >> { %v14799_v52 = vpop.f32.mrb[3].mxu0  ;;  %v4195_v15 = vpop.permute.xlu1 %4194  ;;  %v4289_v30 = vsel %vm2019_vm15, %v4264_v21, %v14358_v2  ;;  %v4234_v27 = vsel %vm716_vm8, %v10855_v32, %v17505_v61  ;;  %v14820_v2 = vcombine.low %v14597_v3, %v14587_v41  ;;  %v4231_v31 = vsel %vm716_vm8, %v17507_v28, %v17506_v37  ;;  %v17508_v54 = vld [vmem:[#allocation72_spill] sm:$0xff]  ;;  %v17511_v8 = vld [vmem:[#allocation59_spill] sm:$0xff] }
 0x3f9   : >> { %v4323_v18 = vsel %vm3581_vm0, %v4291_v43, %v4195_v15  ;;  %v4193_v33 = vpop.permute.xlu0 %4192  ;;  %v4369_v45 = vsel %vm3633_vm2, %v4367_v62, %v4368_v55  ;;  %5219 = vrot.lane.b32.xlu1 %v14665_v35, %s11133_s16  ;;  %v4268_v32 = vsel %vm859_vm9, %v4234_v27, %v17508_v54  ;;  %5217 = vrot.lane.b32.xlu0 %v14618_v25, %s11133_s16  ;;  %v5710_v20 = vrot.slane %v5708_v49, 1 }
 0x3fa   : >> { %v4371_v42 = vrot.slane %v4323_v18, 3  ;;  %v4321_v6 = vsel %vm3581_vm0, %v4289_v30, %v4193_v33  ;;  %10358 = vmatprep.mubr.msk.bf16.mxu0 %vm4404_vm1, %v4369_v45  ;;  %v14832_v35 = vsel %vm3581_vm0, %v14511_v34, %v17509_v36  ;;  %v4267_v3 = vsel %vm859_vm9, %v4231_v31, %v17508_v54  ;;  %v17512_v30 = vld [vmem:[#allocation32_spill] sm:$0xff]  ;;  %v17513_v33 = vld [vmem:[#allocation70_spill] sm:$0xff] }
 0x3fb   : >> { %v4370_v55 = vrot.slane %v4321_v6, 3  ;;  %v4295_v50 = vsel %vm2019_vm15, %v4268_v32, %v14386_v38  ;;  %v5706_v26 = vor.u32 %v5705_v44, %v5701_v12  ;;  %v4293_v1 = vsel %vm2019_vm15, %v4267_v3, %v14400_v57  ;;  %v10912_v38 = vld [vmem:[%s16979_s5 + $0x1c] ss:$0 sps:$4 sm:$0x33]   ;;  %v17510_v12 = vld [vmem:[#allocation57_spill] sm:$0xff] }
 0x3fc   : >> { %v4199_v11 = vpop.permute.xlu1 %4198  ;;  %v14846_v34 = vcombine.low %v14706_v29, %v14688_v63  ;;  %v4239_v43 = vsel %vm716_vm8, %v10857_v23, %v17510_v12  ;;  %v5894_v29 = vshrl.u32 %v14820_v2, 16  ;;  %v4236_v18 = vsel %vm716_vm8, %v17512_v30, %v17511_v8  ;;  %v14872_v23 = vld [vmem:[%s12066_s23 + $0x3c] ss:$0 sps:$4 sm:$0x11]   ;;  %v17514_v6 = vld [vmem:[#allocation25_spill] sm:$0xff] }
 0x3fd   : >> { %v4372_v62 = vsel %vm3633_vm2, %v4370_v55, %v4371_v42  ;;  %v4327_v25 = vsel %vm3581_vm0, %v4295_v50, %v4199_v11  ;;  %v4197_v49 = vpop.permute.xlu0 %4196  ;;  %v4271_v45 = vsel %vm859_vm9, %v4239_v43, %v17513_v33  ;;  %5223 = vrot.lane.b32.xlu1 %v14684_v39, %s11133_s16  ;;  %5221 = vrot.lane.b32.xlu0 %v14641_v0, %s11133_s16  ;;  %v3647_v42 = vrot.slane %v14805_v10, 3  ;;  %v9842_v43 = vld [vmem:[%s12066_s23 + $0x50] sm:$0x8]  ;;  %v17518_v8 = vld [vmem:[#allocation52_spill] sm:$0xff] }
 0x3fe   : >> { %v14842_v21 = vpop.f32.mrb[4].mxu0  ;;  %v4374_v57 = vrot.slane %v4327_v25, 3  ;;  %v4325_v15 = vsel %vm3581_vm0, %v4293_v1, %v4197_v49  ;;  %10359 = vmatmul.mubr.msk.bf16.vlgmr.msra.gmra.mrb[16].mxu0 %vm4404_vm1, %v4372_v62  ;;  %10379 = vmatmul.mubr.msk.bf16.vlgmr.msra.gmra.mrb[8].mxu1 %vm4404_vm1, %v14669_v46  ;;  %v5897_v46 = vshll.u32 %v14820_v2, 16  ;;  %v14879_v37 = vsel %vm3581_vm0, %v14525_v13, %v17514_v6 }
 0x3ff   : >> { %v14854_v44 = vpop.f32.mrb[5].mxu0  ;;  %v4373_v61 = vrot.slane %v4325_v15, 3  ;;  %v4270_v28 = vsel %vm859_vm9, %v4236_v18, %v17513_v33  ;;  %v4299_v39 = vsel %vm2019_vm15, %v4271_v45, %v14427_v47  ;;  %10382 = vmatprep.mubr.msk.bf16.mxu1 %vm4404_vm1, %v14724_v51  ;;  %10395 = vmatpush3.bf16.msra.mxu1 %v14654_v19  ;;  %v5430_v47 = vsel %vm741_vm7, %v10912_v38, 0  ;;  %v17516_v15 = vld [vmem:[#allocation12_spill] sm:$0xff]  ;;  %v17520_v33 = vld [vmem:[#allocation19_spill] sm:$0xff] }
 0x400   : >> { %v14869_v27 = vpop.f32.mrb[6].mxu0  ;;  %v4203_v31 = vpop.permute.xlu1 %4202  ;;  %v4297_v10 = vsel %vm2019_vm15, %v4270_v28, %v14433_v59  ;;  %10582 = vmatprep.subr.msk.bf16.mxu1 %vm741_vm7, %v10912_v38  ;;  %v3646_v51 = vrot.slane %v14832_v35, 3  ;;  %v5714_v59 = vor.u32 %v5712_v60, %v5710_v20  ;;  %v5896_v3 = vrot.slane %v5894_v29, 5  ;;  %v14911_v60 = vld [vmem:[%s12066_s23 + $0x4c] ss:$0 sps:$4 sm:$0x11]  }
 0x401   : >> { %v14887_v0 = vpop.f32.mrb[7].mxu0  ;;  %v4331_v13 = vsel %vm3581_vm0, %v4299_v39, %v4203_v31  ;;  %v4201_v54 = vpop.permute.xlu0 %4200  ;;  %v4375_v32 = vsel %vm3633_vm2, %v4373_v61, %v4374_v57  ;;  %5807 = vrot.lane.b32.xlu1 %v14748_v7, %s11130_s27  ;;  %5805 = vrot.lane.b32.xlu0 %v14793_v48, %s11130_s27  ;;  %v5899_v50 = vrot.slane %v5897_v46, 6  ;;  %v5902_v35 = vshll.u32 %v14872_v23, 16  ;;  %v17515_v48 = vld [vmem:[#allocation51_spill] sm:$0xff]  ;;  %v17517_v29 = vld [vmem:[#allocation45_spill] sm:$0xff] }
 0x402   : >> { %v4377_v55 = vrot.slane %v4331_v13, 3  ;;  %v4329_v36 = vsel %vm3581_vm0, %v4297_v10, %v4201_v54  ;;  %10362 = vmatprep.mubr.msk.bf16.mxu0 %vm4404_vm1, %v4375_v32  ;;  %v3650_v11 = vrot.slane %v14879_v37, 3  ;;  %v5711_v53 = vsel %vm3058_vm12, %v5706_v26, %v5710_v20  ;;  %v14931_v57 = vld [vmem:[%s12066_s23 + $0x54] sm:$0xf]  ;;  %v17521_v13 = vld [vmem:[#allocation42_spill] sm:$0xff] }
 0x403   : >> { %v4376_v19 = vrot.slane %v4329_v36, 3  ;;  %v5907_v62 = vshrl.u32 %v14846_v34, 16  ;;  %v5910_v7 = vshll.u32 %v14846_v34, 16  ;;  %10397 = vmatpush3.bf16.msra.mxu1 %v5430_v47  ;;  %v3576_v25 = vsel %vm2019_vm15, %v14416_v22, %v17515_v48  ;;  %v17522_v54 = vld [vmem:[#allocation39_spill] sm:$0xff]  ;;  %v14972_v36 = vld [vmem:[%s12066_s23 + $0x58] sm:$0xf] }
 0x404   : >> { %v14907_v1 = vpop.permute.xlu1 %4923  ;;  %v3645_v20 = vsel %vm3633_vm2, %v3643_v16, %v3644_v56  ;;  %v5846_v26 = vrot.slane %v14846_v34, 5  ;;  %v3574_v22 = vsel %vm2019_vm15, %v17517_v29, %v17516_v15  ;;  %v3603_v30 = vsel %vm3581_vm0, %v14530_v5, %v17518_v8  ;;  %v10961_v16 = vld [vmem:[%s16979_s5 + $0x24] ss:$0 sps:$4 sm:$0xff]   ;;  %v17519_v34 = vld [vmem:[#allocation27_spill] sm:$0xff]  ;;  %v17525_v48 = vld [vmem:[#allocation20_spill] sm:$0xff] }
 0x405   : >> { %v14918_v49 = vpop.permute.xlu0 %4921  ;;  %v4378_v12 = vsel %vm3633_vm2, %v4376_v19, %v4377_v55  ;;  %v3648_v40 = vsel %vm3633_vm2, %v3646_v51, %v3647_v42  ;;  %v5845_v56 = vrot.slane %v14820_v2, 5  ;;  %v3609_v5 = vsel %vm3581_vm0, %v3576_v25, %v17519_v34  ;;  %5811 = vrot.lane.b32.xlu1 %v5714_v59, %s11130_s27  ;;  %5809 = vrot.lane.b32.xlu0 %v5711_v53, %s11130_s27  ;;  %v9876_v55 = vld [vmem:[%s12066_s23 + $0x34] sm:$0xe] }
 0x406   : >> { %v14920_v38 = vpop.f32.mrb[8].mxu0  ;;  %10363 = vmatmul.mubr.msk.bf16.gmra.mrb[20].mxu0 %vm4404_vm1, %v4378_v12  ;;  %10383 = vmatmul.mubr.msk.bf16.gmra.mrb[12].mxu1 %vm4404_vm1, %v3645_v20  ;;  %v3607_v45 = vsel %vm3581_vm0, %v3574_v22, %v17520_v33  ;;  %v5900_v61 = vor.u32 %v5899_v50, %v5896_v3  ;;  %v5904_v46 = vrot.slane %v5902_v35, 6  ;;  %v5909_v28 = vrot.slane %v5907_v62, 5  ;;  %v17523_v3 = vld [vmem:[#allocation40_spill] sm:$0xff]  ;;  %v17524_v35 = vld [vmem:[#allocation53_spill] sm:$0xff] }
 0x407   : >> { %v14939_v18 = vpop.f32.mrb[9].mxu0  ;;  %10386 = vmatprep.mubr.msk.bf16.mxu1 %vm4404_vm1, %v3648_v40  ;;  %v5912_v39 = vrot.slane %v5910_v7, 6  ;;  %v5915_v31 = vshll.u32 %v14911_v60, 16  ;;  %v6288_v10 = vrot.slane %v10960_v17, 2  ;;  %v3548_v32 = vsel %vm859_vm9, %v17522_v54, %v17521_v13  ;;  %v9877_v20 = vld [vmem:[%s12066_s23 + $0x44] sm:$0xe] }
 0x408   : >> { %v14957_v2 = vpop.f32.mrb[10].mxu0  ;;  %v14962_v6 = vpop.permute.xlu1 %4927  ;;  %v3649_v47 = vrot.slane %v3603_v30, 3  ;;  %v14975_v59 = vcombine.low %v9842_v43, %v14931_v57  ;;  %v14977_v19 = vrot.slane %v10961_v16, 2  ;;  %v3547_v50 = vsel %vm859_vm9, %v17523_v3, %v17521_v13  ;;  %v15001_v40 = vld [vmem:[%s12066_s23 + $0x64] sm:$0xf]  ;;  %v17527_v33 = vld [vmem:[#allocation16_spill] sm:$0xff] }
 0x409   : >> { %v14960_v42 = vpop.f32.mrb[11].mxu0  ;;  %v14968_v51 = vpop.permute.xlu0 %4925  ;;  %v3580_v53 = vsel %vm2019_vm15, %v3548_v32, %v17524_v35  ;;  %v3653_v62 = vrot.slane %v3609_v5, 3  ;;  %v3652_v7 = vrot.slane %v3607_v45, 3  ;;  %5855 = vrot.lane.b32.xlu1 %v5846_v26, %s11131_s29  ;;  %5853 = vrot.lane.b32.xlu0 %v5845_v56, %s11131_s29  ;;  %v5905_v12 = vsel %vm3267_vm14, %v5900_v61, %v5904_v46  ;;  %v9845_v26 = vld [vmem:[%s12066_s23 + $0x60] sm:$0x8]  ;;  %v17526_v56 = vld [vmem:[#allocation11_spill] sm:$0xff] }
 0x40a   : >> { %v3613_v25 = vsel %vm3581_vm0, %v3580_v53, %v17525_v48  ;;  %v14992_v43 = vsel %vm2044_vm11, %v6288_v10, %v14977_v19  ;;  %v5913_v29 = vor.u32 %v5912_v39, %v5909_v28  ;;  %v5917_v22 = vrot.slane %v5915_v31, 6  ;;  %v15019_v39 = vld [vmem:[%s12066_s23 + $0x68] sm:$0xf] }
 0x40b   : >> { %v9924_v8 = vcombine.low %v9876_v55, %v14587_v41  ;;  %v9902_v30 = vcombine.low %v14972_v36, %v14972_v36  ;;  %10414 = vmatprep.subr.bf16.mxu1 %v14992_v43  ;;  %v3578_v17 = vsel %vm2019_vm15, %v3547_v50, %v17526_v56  ;;  %v3651_v5 = vsel %vm3633_vm2, %v3649_v47, %v3650_v11 }
 0x40c   : >> { %v14994_v15 = vpop.permute.xlu1 %4971  ;;  %v5718_v41 = vshll.u32 %v14975_v59, 16  ;;  %v3611_v45 = vsel %vm3581_vm0, %v3578_v17, %v17527_v33  ;;  %v9925_v28 = vcombine.low %v9877_v20, %v14688_v63  ;;  %v3656_v31 = vrot.slane %v3613_v25, 3 }
 0x40d   : >> { %v4970_v16 = vpop.permute.xlu0 %4969  ;;  %5999 = vrot.lane.b32.xlu1 %v5905_v12, %s11132_s26  ;;  %5997 = vrot.lane.b32.xlu0 %v5900_v61, %s11132_s26  ;;  %v3654_v11 = vsel %vm3633_vm2, %v3652_v7, %v3653_v62  ;;  %v15027_v10 = vcombine.low %v9845_v26, %v15001_v40  ;;  %v5918_v54 = vsel %vm3267_vm14, %v5913_v29, %v5917_v22  ;;  %v6053_v32 = vrot.slane %v9924_v8, 6  ;;  %v10901_v62 = vld [vmem:[%s12066_s23 + $0x28] ss:$0 sps:$4 sm:$0x77]  }
 0x40e   : >> { %v15006_v34 = vpop.f32.mrb[12].mxu0  ;;  %10387 = vmatmul.mubr.msk.bf16.gmra.mrb[0].mxu1 %vm4404_vm1, %v3651_v5  ;;  %v6054_v47 = vrot.slane %v14872_v23, 6  ;;  %v5723_v55 = vshll.u32 %v9902_v30, 16  ;;  %v3655_v61 = vrot.slane %v3611_v45, 3  ;;  %v5716_v50 = vshrl.u32 %v14975_v59, 16 }
 0x40f   : >> { %v15014_v46 = vpop.f32.mrb[13].mxu0  ;;  %10390 = vmatprep.mubr.msk.bf16.mxu1 %vm4404_vm1, %v3654_v11  ;;  %v5720_v35 = vrot.slane %v5718_v41, 1  ;;  %v15037_v53 = vcombine.low %v15019_v39, %v15019_v39  ;;  %v6056_v7 = vrot.slane %v9925_v28, 6  ;;  %v6057_v48 = vrot.slane %v14911_v60, 6  ;;  %v17528_v41 = vld [vmem:[#allocation26_spill] sm:$0xff] }
 0x410   : >> { %v15023_v37 = vpop.f32.mrb[14].mxu0  ;;  %v5116_v63 = vpop.permute.xlu1 %5115  ;;  %v5733_v23 = vshll.u32 %v15027_v10, 16  ;;  %v6055_v12 = vsel %vm741_vm7, %v6053_v32, %v6054_v47  ;;  %v5725_v20 = vrot.slane %v5723_v55, 1  ;;  %v5727_v22 = vshrl.u32 %v9902_v30, 16 }
 0x411   : >> { %v15030_v13 = vpop.f32.mrb[15].mxu0  ;;  %v5114_v3 = vpop.permute.xlu0 %5113  ;;  %6003 = vrot.lane.b32.xlu1 %v5918_v54, %s11132_s26  ;;  %6001 = vrot.lane.b32.xlu0 %v5913_v29, %s11132_s26  ;;  %v3657_v26 = vsel %vm3633_vm2, %v3655_v61, %v3656_v31  ;;  %v5721_v56 = vor.u32 %v5720_v35, %v5716_v50  ;;  %v5738_v17 = vshll.u32 %v15037_v53, 16  ;;  %v5229_v60 = vsel %vm716_vm8, %v10901_v62, %v14907_v1  ;;  %v10904_v5 = vld [vmem:[%s12066_s23 + $0x38] ss:$0 sps:$4 sm:$0x77]  }
 0x412   : >> { %v6058_v29 = vsel %vm741_vm7, %v6056_v7, %v6057_v48  ;;  %v5226_v33 = vsel %vm716_vm8, %v17528_v41, %v14918_v49  ;;  %v5267_v30 = vsel %vm859_vm9, %v5229_v60, %v4970_v16  ;;  %v5731_v45 = vshrl.u32 %v15027_v10, 16 }
 0x413   : >> { %v5735_v28 = vrot.slane %v5733_v23, 1  ;;  %v5266_v1 = vsel %vm859_vm9, %v5226_v33, %v4970_v16  ;;  %v5292_v31 = vsel %vm2019_vm15, %v5267_v30, %v5116_v63  ;;  %v5729_v54 = vor.u32 %v5727_v22, %v5725_v20 }
 0x414   : >> { %v5120_v25 = vpop.permute.xlu1 %5119  ;;  %v15063_v47 = vcombine.low %v14931_v57, %v14972_v36  ;;  %v5290_v49 = vsel %vm2019_vm15, %v5266_v1, %v5114_v3  ;;  %v5740_v50 = vrot.slane %v5738_v17, 1  ;;  %v5234_v16 = vsel %vm716_vm8, %v10904_v5, %v14962_v6  ;;  %v17529_v57 = vld [vmem:[#allocation37_spill] sm:$0xff]  ;;  %v15101_v1 = vld [vmem:[%s12066_s23 + $0x6c] ss:$0 sps:$4 sm:$0x11]  }
 0x415   : >> { %v5118_v8 = vpop.permute.xlu0 %5117  ;;  %6079 = vrot.lane.b32.xlu1 %v6055_v12, %s11133_s16  ;;  %6077 = vrot.lane.b32.xlu0 %v6053_v32, %s11133_s16  ;;  %v5726_v32 = vsel %vm3058_vm12, %v5721_v56, %v5725_v20  ;;  %v5742_v62 = vshrl.u32 %v15037_v53, 16  ;;  %v5231_v48 = vsel %vm716_vm8, %v17529_v57, %v14968_v51  ;;  %v5270_v3 = vsel %vm859_vm9, %v5234_v16, %v14994_v15  ;;  %v15080_v20 = vld [vmem:[%s12066_s23 + $0x5c] ss:$0 sps:$4 sm:$0x11]   ;;  %v9848_v57 = vld [vmem:[%s12066_s23 + $0x70] sm:$0x8] }
 0x416   : >> { %10391 = vmatmul.mubr.msk.bf16.gmra.mrb[4].mxu1 %vm4404_vm1, %v3657_v26  ;;  %v5736_v12 = vor.u32 %v5735_v28, %v5731_v45  ;;  %v5269_v6 = vsel %vm859_vm9, %v5231_v48, %v14994_v15  ;;  %v5296_v53 = vsel %vm2019_vm15, %v5270_v3, %v5120_v25  ;;  %v5920_v26 = vshrl.u32 %v15063_v47, 16  ;;  %v9849_v48 = vld [vmem:[%s12066_s23 + $0x74] sm:$0xf] }
 0x417   : >> { %v5923_v51 = vshll.u32 %v15063_v47, 16  ;;  %v5294_v56 = vsel %vm2019_vm15, %v5269_v6, %v5118_v8  ;;  %v9911_v5 = vcombine.low %v15001_v40, %v15019_v39  ;;  %v5744_v8 = vor.u32 %v5742_v62, %v5740_v50 }
 0x418   : >> { %v5196_v11 = vpop.permute.xlu1 %5195  ;;  %v5928_v41 = vshll.u32 %v15080_v20, 16  ;;  %v5741_v45 = vsel %vm3058_vm12, %v5736_v12, %v5740_v50  ;;  %v5922_v40 = vrot.slane %v5920_v26, 5  ;;  %v15111_v50 = vld [vmem:[%s12066_s23 + $0x78] sm:$0xf]  ;;  %v5941_v62 = vshll.u32 %v15101_v1, 16 }
 0x419   : >> { %v5324_v55 = vsel %vm3581_vm0, %v5292_v31, %v5196_v11  ;;  %v5194_v61 = vpop.permute.xlu0 %5193  ;;  %6083 = vrot.lane.b32.xlu1 %v6058_v29, %s11133_s16  ;;  %6081 = vrot.lane.b32.xlu0 %v6056_v7, %s11133_s16  ;;  %v5933_v33 = vshrl.u32 %v9911_v5, 16  ;;  %v5925_v28 = vrot.slane %v5923_v51, 6  ;;  %v5936_v31 = vshll.u32 %v9911_v5, 16 }
 0x41a   : >> { %v5373_v35 = vrot.slane %v5324_v55, 3  ;;  %v5322_v63 = vsel %vm3581_vm0, %v5290_v49, %v5194_v61  ;;  %v5848_v49 = vrot.slane %v9911_v5, 5  ;;  %v5847_v55 = vrot.slane %v15063_v47, 5 }
 0x41b   : >> { %v5372_v23 = vrot.slane %v5322_v63, 3  ;;  %v5930_v61 = vrot.slane %v5928_v41, 6  ;;  %v5938_v63 = vrot.slane %v5936_v31, 6  ;;  %v6317_v47 = vsel %vm741_vm7, %v14977_v19, 0 }
 0x41c   : >> { %v5200_v22 = vpop.permute.xlu1 %5199  ;;  %v9904_v12 = vcombine.low %v15111_v50, %v15111_v50  ;;  %v15131_v6 = vcombine.low %v9848_v57, %v9849_v48  ;;  %v5943_v51 = vrot.slane %v5941_v62, 6  ;;  %v6060_v41 = vrot.slane %v15080_v20, 6 }
 0x41d   : >> { %v5328_v17 = vsel %vm3581_vm0, %v5296_v53, %v5200_v22  ;;  %v5198_v60 = vpop.permute.xlu0 %5197  ;;  %v5374_v7 = vsel %vm3633_vm2, %v5372_v23, %v5373_v35  ;;  %5815 = vrot.lane.b32.xlu1 %v5729_v54, %s11130_s27  ;;  %5813 = vrot.lane.b32.xlu0 %v5726_v32, %s11130_s27  ;;  %v5935_v32 = vrot.slane %v5933_v33, 5  ;;  %v5926_v35 = vor.u32 %v5925_v28, %v5922_v40  ;;  %v9878_v23 = vld [vmem:[%s12066_s23 + $0x54] sm:$0xe] }
 0x41e   : >> { %v5376_v29 = vrot.slane %v5328_v17, 3  ;;  %v5326_v15 = vsel %vm3581_vm0, %v5294_v56, %v5198_v60  ;;  %10398 = vmatprep.mubr.msk.bf16.mxu1 %vm4404_vm1, %v5374_v7  ;;  %v9926_v56 = vcombine.low %v9878_v23, %v14972_v36  ;;  %v9851_v17 = vld [vmem:[%s12066_s23 + $0x80] sm:$0x8]  ;;  %v15139_v60 = vld [vmem:[%s12066_s23 + $0x84] sm:$0xf]  ;;  %v5753_v5 = vshll.u32 %v9904_v12, 16 }
 0x41f   : >> { %v5375_v25 = vrot.slane %v5326_v15, 3  ;;  %v5931_v22 = vsel %vm3267_vm14, %v5926_v35, %v5930_v61  ;;  %v5939_v26 = vor.u32 %v5938_v63, %v5935_v32  ;;  %v5748_v15 = vshll.u32 %v15131_v6, 16 }
 0x420   : >> { %v15097_v30 = vpop.permute.xlu1 %4931  ;;  %v15151_v33 = vcombine.low %v9851_v17, %v15139_v60  ;;  %v6063_v31 = vrot.slane %v15101_v1, 6  ;;  %v5746_v20 = vshrl.u32 %v15131_v6, 16  ;;  %v10918_v1 = vld [vmem:[%s12066_s23 + $0x58] ss:$0 sps:$4 sm:$0x77]  }
 0x421   : >> { %v5377_v11 = vsel %vm3633_vm2, %v5375_v25, %v5376_v29  ;;  %v15104_v54 = vpop.permute.xlu0 %4929  ;;  %5819 = vrot.lane.b32.xlu1 %v5744_v8, %s11130_s27  ;;  %5817 = vrot.lane.b32.xlu0 %v5741_v45, %s11130_s27  ;;  %v15143_v29 = vld [vmem:[%s12066_s23 + $0x88] sm:$0xf]  ;;  %v5944_v36 = vsel %vm3267_vm14, %v5939_v26, %v5943_v51  ;;  %v6059_v8 = vrot.slane %v9926_v56, 6  ;;  %vm7382_vm11 = vsmask.f32 7440 }
 0x422   : >> { %10399 = vmatmul.mubr.msk.bf16.vlgmr.msra.gmra.mrb[8].mxu1 %vm4404_vm1, %v5377_v11  ;;  %v10915_v45 = vld [vmem:[%s12066_s23 + $0x48] ss:$0 sps:$4 sm:$0x77]   ;;  %v9905_v40 = vcombine.low %v15143_v29, %v15143_v29  ;;  %v5755_v11 = vrot.slane %v5753_v5, 1 }
 0x423   : >> { %10415 = vmatpush3.bf16.msra.mxu1 %v14992_v43  ;;  %v9879_v43 = vld [vmem:[%s12066_s23 + $0x64] sm:$0xe]  ;;  %v6061_v32 = vsel %vm741_vm7, %v6059_v8, %v6060_v41  ;;  %v5239_v57 = vsel %vm716_vm8, %v10915_v45, %v15097_v30 }
 0x424   : >> { %v15113_v16 = vpop.permute.xlu1 %4935  ;;  %10583 = vmatprep.subr.msk.bf16.mxu1 %vm741_vm7, %v14977_v19  ;;  %v9927_v7 = vcombine.low %v9879_v43, %v15019_v39  ;;  %v5768_v62 = vshll.u32 %v9905_v40, 16  ;;  %v17530_v43 = vld [vmem:[#allocation55_spill] sm:$0xff]  ;;  %v5772_v41 = vshrl.u32 %v9905_v40, 16 }
 0x425   : >> { %v15119_v3 = vpop.permute.xlu0 %4933  ;;  %5859 = vrot.lane.b32.xlu1 %v5848_v49, %s11131_s29  ;;  %5857 = vrot.lane.b32.xlu0 %v5847_v55, %s11131_s29  ;;  %v5757_v49 = vshrl.u32 %v9904_v12, 16  ;;  %v5750_v55 = vrot.slane %v5748_v15, 1  ;;  %v15167_v12 = vcombine.low %v9849_v48, %v15111_v50 }
 0x426   : >> { %v6062_v28 = vrot.slane %v9927_v7, 6  ;;  %v5761_v7 = vshrl.u32 %v15151_v33, 16 }
 0x427   : >> { %10417 = vmatpush3.bf16.msra.mxu1 %v6317_v47  ;;  %v5759_v47 = vor.u32 %v5757_v49, %v5755_v11  ;;  %v5751_v51 = vor.u32 %v5750_v55, %v5746_v20  ;;  %v5949_v40 = vshll.u32 %v15167_v12, 16 }
 0x428   : >> { %v15133_v53 = vpop.permute.xlu1 %4975  ;;  %v6064_v23 = vsel %vm741_vm7, %v6062_v28, %v6063_v31  ;;  %v17531_v31 = vld [vmem:[#allocation58_spill] sm:$0xff] }
 0x429   : >> { %v4974_v19 = vpop.permute.xlu0 %4973  ;;  %6007 = vrot.lane.b32.xlu1 %v5931_v22, %s11132_s26  ;;  %6005 = vrot.lane.b32.xlu0 %v5926_v35, %s11132_s26  ;;  %v5763_v35 = vshll.u32 %v15151_v33, 16  ;;  %v5236_v22 = vsel %vm716_vm8, %v17530_v43, %v15104_v54  ;;  %v5241_v49 = vsel %vm716_vm8, %v17531_v31, %v15119_v3  ;;  %v15197_v3 = vld [vmem:[%s12066_s23 + $0x7c] ss:$0 sps:$4 sm:$0x11]  }
 0x42a   : >> { %v5272_v30 = vsel %vm859_vm9, %v5236_v22, %v4974_v19 }
 0x42b   : >> { %v5765_v48 = vrot.slane %v5763_v35, 1  ;;  %v5756_v35 = vsel %vm3058_vm12, %v5751_v51, %v5755_v11 }
 0x42c   : >> { %v5124_v25 = vpop.permute.xlu1 %5123 }
 0x42d   : >> { %v5122_v39 = vpop.permute.xlu0 %5121  ;;  %6011 = vrot.lane.b32.xlu1 %v5944_v36, %s11132_s26  ;;  %6009 = vrot.lane.b32.xlu0 %v5939_v26, %s11132_s26  ;;  %v5273_v26 = vsel %vm859_vm9, %v5239_v57, %v4974_v19  ;;  %v5770_v36 = vrot.slane %v5768_v62, 1  ;;  %v5766_v62 = vor.u32 %v5765_v48, %v5761_v7 }
 0x42e   : >> { %v5300_v56 = vsel %vm2019_vm15, %v5273_v26, %v5124_v25  ;;  %v5298_v5 = vsel %vm2019_vm15, %v5272_v30, %v5122_v39  ;;  %v5946_v25 = vshrl.u32 %v15167_v12, 16  ;;  %v5951_v26 = vrot.slane %v5949_v40, 6 }
 0x42f   : >> { %v5771_v30 = vsel %vm3058_vm12, %v5766_v62, %v5770_v36 }
 0x430   : >> { %v5128_v61 = vpop.permute.xlu1 %5127 }
 0x431   : >> { %v5126_v63 = vpop.permute.xlu0 %5125  ;;  %6087 = vrot.lane.b32.xlu1 %v6061_v32, %s11133_s16  ;;  %6085 = vrot.lane.b32.xlu0 %v6059_v8, %s11133_s16  ;;  %v5244_v8 = vsel %vm716_vm8, %v10918_v1, %v15113_v16  ;;  %v5275_v16 = vsel %vm859_vm9, %v5241_v49, %v15133_v53  ;;  %v15228_v49 = vld [vmem:[%s12066_s23 + $0x98] sm:$0xf] }
 0x432   : >> { %v5276_v39 = vsel %vm859_vm9, %v5244_v8, %v15133_v53  ;;  %v5302_v57 = vsel %vm2019_vm15, %v5275_v16, %v5126_v63  ;;  %v9913_v53 = vcombine.low %v15139_v60, %v15143_v29  ;;  %v5948_v63 = vrot.slane %v5946_v25, 5 }
 0x433   : >> { %v5304_v55 = vsel %vm2019_vm15, %v5276_v39, %v5128_v61  ;;  %v5774_v61 = vor.u32 %v5772_v41, %v5770_v36  ;;  %v9854_v36 = vld [vmem:[%s12066_s23 + $0x90] sm:$0x8]  ;;  %v9855_v41 = vld [vmem:[%s12066_s23 + $0x94] sm:$0xf]  ;;  %v9906_v16 = vcombine.low %v15228_v49, %v15228_v49 }
 0x434   : >> { %v5204_v17 = vpop.permute.xlu1 %5203  ;;  %v5959_v7 = vshrl.u32 %v9913_v53, 16  ;;  %v5962_v60 = vshll.u32 %v9913_v53, 16  ;;  %v15233_v40 = vcombine.low %v9854_v36, %v9855_v41 }
 0x435   : >> { %v5332_v15 = vsel %vm3581_vm0, %v5300_v56, %v5204_v17  ;;  %v5202_v54 = vpop.permute.xlu0 %5201  ;;  %6091 = vrot.lane.b32.xlu1 %v6064_v23, %s11133_s16  ;;  %6089 = vrot.lane.b32.xlu0 %v6062_v28, %s11133_s16  ;;  %v5954_v56 = vshll.u32 %v15197_v3, 16  ;;  %v15213_v17 = vld [vmem:[%s12066_s23 + $0x8c] ss:$0 sps:$4 sm:$0x11]  }
 0x436   : >> { %v5379_v45 = vrot.slane %v5332_v15, 3  ;;  %v5330_v19 = vsel %vm3581_vm0, %v5298_v5, %v5202_v54  ;;  %v5850_v5 = vrot.slane %v9913_v53, 5  ;;  %v5849_v15 = vrot.slane %v15167_v12, 5  ;;  %v9881_v12 = vld [vmem:[%s12066_s23 + $0x84] sm:$0xe] }
 0x437   : >> { %v5378_v20 = vrot.slane %v5330_v19, 3  ;;  %v5952_v54 = vor.u32 %v5951_v26, %v5948_v63  ;;  %v5961_v19 = vrot.slane %v5959_v7, 5  ;;  %v5964_v25 = vrot.slane %v5962_v60, 6  ;;  %v15251_v53 = vld [vmem:[%s12066_s23 + $0xa8] sm:$0xf] }
 0x438   : >> { %v5208_v32 = vpop.permute.xlu1 %5207  ;;  %v5967_v31 = vshll.u32 %v15213_v17, 16  ;;  %v9907_v7 = vcombine.low %v15251_v53, %v15251_v53 }
 0x439   : >> { %v5336_v1 = vsel %vm3581_vm0, %v5304_v55, %v5208_v32  ;;  %v5206_v23 = vpop.permute.xlu0 %5205  ;;  %v5380_v28 = vsel %vm3633_vm2, %v5378_v20, %v5379_v45  ;;  %5823 = vrot.lane.b32.xlu1 %v5759_v47, %s11130_s27  ;;  %5821 = vrot.lane.b32.xlu0 %v5756_v35, %s11130_s27  ;;  %v5956_v45 = vrot.slane %v5954_v56, 6  ;;  %v9880_v20 = vld [vmem:[%s12066_s23 + $0x74] sm:$0xe]  ;;  %v5965_v35 = vor.u32 %v5964_v25, %v5961_v19  ;;  %v10927_v56 = vld [vmem:[%s12066_s23 + $0x68] ss:$0 sps:$4 sm:$0x77]  }
 0x43a   : >> { %v5382_v43 = vrot.slane %v5336_v1, 3  ;;  %v5334_v22 = vsel %vm3581_vm0, %v5302_v57, %v5206_v23  ;;  %10402 = vmatprep.mubr.msk.bf16.mxu1 %vm4404_vm1, %v5380_v28  ;;  %v5969_v62 = vrot.slane %v5967_v31, 6  ;;  %v9928_v57 = vcombine.low %v9880_v20, %v15111_v50  ;;  %v9857_v23 = vld [vmem:[%s12066_s23 + $0xa0] sm:$0x8]  ;;  %v15246_v28 = vld [vmem:[%s12066_s23 + $0xa4] sm:$0xf] }
 0x43b   : >> { %v5381_v11 = vrot.slane %v5334_v22, 3  ;;  %v5957_v32 = vsel %vm3267_vm14, %v5952_v54, %v5956_v45  ;;  %v5778_v22 = vshll.u32 %v15233_v40, 16  ;;  %v6066_v50 = vrot.slane %v15197_v3, 6 }
 0x43c   : >> { %v15208_v51 = vpop.permute.xlu1 %4939  ;;  %v5970_v63 = vsel %vm3267_vm14, %v5965_v35, %v5969_v62  ;;  %v6065_v26 = vrot.slane %v9928_v57, 6  ;;  %v5798_v31 = vshll.u32 %v9907_v7, 16  ;;  %v15274_v62 = vcombine.low %v9855_v41, %v15228_v49 }
 0x43d   : >> { %v15215_v48 = vpop.permute.xlu0 %4937  ;;  %v5383_v47 = vsel %vm3633_vm2, %v5381_v11, %v5382_v43  ;;  %5827 = vrot.lane.b32.xlu1 %v5774_v61, %s11130_s27  ;;  %5825 = vrot.lane.b32.xlu0 %v5771_v30, %s11130_s27  ;;  %v9929_v43 = vcombine.low %v9881_v12, %v15143_v29  ;;  %v5783_v11 = vshll.u32 %v9906_v16, 16  ;;  %v15258_v30 = vcombine.low %v9857_v23, %v15246_v28 }
 0x43e   : >> { %10403 = vmatmul.mubr.msk.bf16.gmra.mrb[12].mxu1 %vm4404_vm1, %v5383_v47  ;;  %v6069_v47 = vrot.slane %v15213_v17, 6  ;;  %v6067_v45 = vsel %vm741_vm7, %v6065_v26, %v6066_v50  ;;  %v5249_v20 = vsel %vm716_vm8, %v10927_v56, %v15208_v51  ;;  %v10930_v17 = vld [vmem:[%s12066_s23 + $0x78] ss:$0 sps:$4 sm:$0x77]   ;;  %v5800_v56 = vrot.slane %v5798_v31, 1 }
 0x43f   : >> { %v6068_v60 = vrot.slane %v9929_v43, 6  ;;  %v5785_v3 = vrot.slane %v5783_v11, 1  ;;  %v5793_v19 = vshll.u32 %v15258_v30, 16  ;;  %v5791_v11 = vshrl.u32 %v15258_v30, 16 }
 0x440   : >> { %v15224_v8 = vpop.permute.xlu1 %4943 }
 0x441   : >> { %v15230_v39 = vpop.permute.xlu0 %4941  ;;  %5863 = vrot.lane.b32.xlu1 %v5850_v5, %s11131_s29  ;;  %5861 = vrot.lane.b32.xlu0 %v5849_v15, %s11131_s29  ;;  %v5776_v5 = vshrl.u32 %v15233_v40, 16  ;;  %v5780_v15 = vrot.slane %v5778_v22, 1  ;;  %v6070_v12 = vsel %vm741_vm7, %v6068_v60, %v6069_v47  ;;  %v5795_v41 = vrot.slane %v5793_v19, 1 }
 0x442   : >> { %v5802_v47 = vshrl.u32 %v9907_v7, 16  ;;  %v5975_v7 = vshll.u32 %v15274_v62, 16 }
 0x444   : >> { %v15240_v55 = vpop.permute.xlu1 %4979 }
 0x445   : >> { %v4978_v1 = vpop.permute.xlu0 %4977  ;;  %6015 = vrot.lane.b32.xlu1 %v5957_v32, %s11132_s26  ;;  %6013 = vrot.lane.b32.xlu0 %v5952_v54, %s11132_s26  ;;  %v5787_v54 = vshrl.u32 %v9906_v16, 16  ;;  %v5781_v32 = vor.u32 %v5780_v15, %v5776_v5  ;;  %v17533_v15 = vld [vmem:[#allocation74_spill] sm:$0xff] }
 0x446   : >> { %v5279_v57 = vsel %vm859_vm9, %v5249_v20, %v4978_v1 }
 0x447   : >> { %v5789_v23 = vor.u32 %v5787_v54, %v5785_v3  ;;  %v5251_v54 = vsel %vm716_vm8, %v17533_v15, %v15230_v39  ;;  %v5786_v20 = vsel %vm3058_vm12, %v5781_v32, %v5785_v3  ;;  %v15304_v39 = vld [vmem:[%s12066_s23 + $0x9c] ss:$0 sps:$4 sm:$0x11]   ;;  %v5977_v32 = vrot.slane %v5975_v7, 6  ;;  %v9882_v7 = vld [vmem:[%s12066_s23 + $0x94] sm:$0xe] }
 0x448   : >> { %v5132_v61 = vpop.permute.xlu1 %5131 }
 0x449   : >> { %v5130_v29 = vpop.permute.xlu0 %5129  ;;  %6019 = vrot.lane.b32.xlu1 %v5970_v63, %s11132_s26  ;;  %6017 = vrot.lane.b32.xlu0 %v5965_v35, %s11132_s26  ;;  %v17532_v35 = vld [vmem:[#allocation71_spill] sm:$0xff]  ;;  %v5308_v43 = vsel %vm2019_vm15, %v5279_v57, %v5132_v61  ;;  %v5972_v61 = vshrl.u32 %v15274_v62, 16 }
 0x44a   : >> { %v5246_v16 = vsel %vm716_vm8, %v17532_v35, %v15215_v48 }
 0x44b   : >> { %v5278_v51 = vsel %vm859_vm9, %v5246_v16, %v4978_v1 }
 0x44c   : >> { %v5136_v36 = vpop.permute.xlu1 %5135  ;;  %v5306_v63 = vsel %vm2019_vm15, %v5278_v51, %v5130_v29 }
 0x44d   : >> { %v5134_v25 = vpop.permute.xlu0 %5133  ;;  %6095 = vrot.lane.b32.xlu1 %v6067_v45, %s11133_s16  ;;  %6093 = vrot.lane.b32.xlu0 %v6065_v26, %s11133_s16  ;;  %v5254_v26 = vsel %vm716_vm8, %v10930_v17, %v15224_v8  ;;  %v5281_v8 = vsel %vm859_vm9, %v5251_v54, %v15240_v55  ;;  %v5796_v17 = vor.u32 %v5795_v41, %v5791_v11  ;;  %v5980_v11 = vshll.u32 %v15304_v39, 16  ;;  %v15320_v41 = vld [vmem:[%s12066_s23 + $0xac] ss:$0 sps:$4 sm:$0x11]  }
 0x44e   : >> { %v5282_v29 = vsel %vm859_vm9, %v5254_v26, %v15240_v55  ;;  %v5310_v35 = vsel %vm2019_vm15, %v5281_v8, %v5134_v25  ;;  %v9915_v55 = vcombine.low %v15246_v28, %v15251_v53  ;;  %v5974_v25 = vrot.slane %v5972_v61, 5 }
 0x44f   : >> { %v5312_v19 = vsel %vm2019_vm15, %v5282_v29, %v5136_v36  ;;  %v5804_v36 = vor.u32 %v5802_v47, %v5800_v56  ;;  %v15326_v47 = vld [vmem:[%s12066_s23 + $0x44] sm:$0xf]  ;;  %v5851_v26 = vrot.slane %v15274_v62, 5  ;;  %v5982_v61 = vrot.slane %v5980_v11, 6 }
 0x450   : >> { %v5212_v22 = vpop.permute.xlu1 %5211  ;;  %v5988_v28 = vshll.u32 %v9915_v55, 16  ;;  %v5993_v29 = vshll.u32 %v15320_v41, 16 }
 0x451   : >> { %v5340_v50 = vsel %vm3581_vm0, %v5308_v43, %v5212_v22  ;;  %v5210_v48 = vpop.permute.xlu0 %5209  ;;  %6099 = vrot.lane.b32.xlu1 %v6070_v12, %s11133_s16  ;;  %6097 = vrot.lane.b32.xlu0 %v6068_v60, %s11133_s16  ;;  %v5801_v22 = vsel %vm3058_vm12, %v5796_v17, %v5800_v56  ;;  %v5852_v56 = vrot.slane %v9915_v55, 5 }
 0x452   : >> { %v5385_v5 = vrot.slane %v5340_v50, 3  ;;  %v5338_v1 = vsel %vm3581_vm0, %v5306_v63, %v5210_v48  ;;  %v5985_v63 = vshrl.u32 %v9915_v55, 16  ;;  %v5990_v54 = vrot.slane %v5988_v28, 6 }
 0x453   : >> { %v5384_v45 = vrot.slane %v5338_v1, 3  ;;  %v5995_v17 = vrot.slane %v5993_v29, 6 }
 0x454   : >> { %v5216_v31 = vpop.permute.xlu1 %5215  ;;  %v5987_v15 = vrot.slane %v5985_v63, 5 }
 0x455   : >> { %v5344_v16 = vsel %vm3581_vm0, %v5312_v19, %v5216_v31  ;;  %v5214_v12 = vpop.permute.xlu0 %5213  ;;  %v5386_v60 = vsel %vm3633_vm2, %v5384_v45, %v5385_v5  ;;  %5831 = vrot.lane.b32.xlu1 %v5789_v23, %s11130_s27  ;;  %5829 = vrot.lane.b32.xlu0 %v5786_v20, %s11130_s27  ;;  %v9944_v23 = vld [vmem:[%s12066_s23 + $0x40] sm:$0x8]  ;;  %v5978_v5 = vor.u32 %v5977_v32, %v5974_v25  ;;  %v15341_v19 = vld [vmem:[%s12066_s23 + $0x48] sm:$0xf] }
 0x456   : >> { %v5388_v57 = vrot.slane %v5344_v16, 3  ;;  %v5342_v51 = vsel %vm3581_vm0, %v5310_v35, %v5214_v12  ;;  %10406 = vmatprep.mubr.msk.bf16.mxu1 %vm4404_vm1, %v5386_v60  ;;  %v15338_v8 = vcombine.low %v9944_v23, %v15326_v47  ;;  %v5991_v20 = vor.u32 %v5990_v54, %v5987_v15  ;;  %v9947_v16 = vld [vmem:[%s12066_s23 + $0x50] sm:$0x8]  ;;  %v15351_v12 = vld [vmem:[%s12066_s23 + $0x54] sm:$0xf] }
 0x457   : >> { %v5387_v3 = vrot.slane %v5342_v51, 3  ;;  %v5983_v31 = vsel %vm3267_vm14, %v5978_v5, %v5982_v61  ;;  %v9930_v35 = vcombine.low %v9882_v7, %v15228_v49  ;;  %v10008_v51 = vcombine.low %v15341_v19, %v15341_v19 }
 0x458   : >> { %v15315_v43 = vpop.permute.xlu1 %4947  ;;  %v6575_v55 = vshll.u32 %v15338_v8, 16  ;;  %v5996_v25 = vsel %vm3267_vm14, %v5991_v20, %v5995_v17  ;;  %v6075_v15 = vrot.slane %v15320_v41, 6 }
 0x459   : >> { %v4946_v50 = vpop.permute.xlu0 %4945  ;;  %v5389_v48 = vsel %vm3633_vm2, %v5387_v3, %v5388_v57  ;;  %5835 = vrot.lane.b32.xlu1 %v5804_v36, %s11130_s27  ;;  %5833 = vrot.lane.b32.xlu0 %v5801_v22, %s11130_s27  ;;  %v9883_v57 = vld [vmem:[%s12066_s23 + $0xa4] sm:$0xe]  ;;  %v15360_v3 = vld [vmem:[%s12066_s23 + $0x58] sm:$0xf]  ;;  %v15363_v36 = vcombine.low %v9947_v16, %v15351_v12  ;;  %v6071_v32 = vrot.slane %v9930_v35, 6  ;;  %v6072_v22 = vrot.slane %v15304_v39, 6 }
 0x45a   : >> { %10407 = vmatmul.mubr.msk.bf16.gmra.mrb[0].mxu1 %vm4404_vm1, %v5389_v48  ;;  %v9931_v11 = vcombine.low %v9883_v57, %v15251_v53  ;;  %v6580_v28 = vshll.u32 %v10008_v51, 16  ;;  %v6573_v48 = vshrl.u32 %v15338_v8, 16  ;;  %v6577_v23 = vrot.slane %v6575_v55, 1  ;;  %v17534_v16 = vld [vmem:[#allocation41_spill] sm:$0xff] }
 0x45b   : >> { %v6073_v39 = vsel %vm741_vm7, %v6071_v32, %v6072_v22  ;;  %v6584_v7 = vshrl.u32 %v10008_v51, 16  ;;  %v5256_v57 = vsel %vm716_vm8, %v17534_v16, %v4946_v50  ;;  %v6588_v41 = vshrl.u32 %v15363_v36, 16 }
 0x45c   : >> { %v15331_v1 = vpop.permute.xlu1 %4951  ;;  %v6074_v53 = vrot.slane %v9931_v11, 6  ;;  %v6582_v29 = vrot.slane %v6580_v28, 1  ;;  %v15391_v50 = vcombine.low %v15326_v47, %v15341_v19  ;;  %v17535_v47 = vld [vmem:[#allocation46_spill] sm:$0xff] }
 0x45d   : >> { %v15334_v45 = vpop.permute.xlu0 %4949  ;;  %5867 = vrot.lane.b32.xlu1 %v5852_v56, %s11131_s29  ;;  %5865 = vrot.lane.b32.xlu0 %v5851_v26, %s11131_s29  ;;  %v10939_v56 = vld [vmem:[%s12066_s23 + $0x88] ss:$0 sps:$4 sm:$0x77]   ;;  %v10009_v26 = vcombine.low %v15360_v3, %v15360_v3 }
 0x45e   : >> { %v5259_v17 = vsel %vm716_vm8, %v10939_v56, %v15315_v43  ;;  %v6076_v43 = vsel %vm741_vm7, %v6074_v53, %v6075_v15 }
 0x45f   : >> { %v6595_v35 = vshll.u32 %v10009_v26, 16 }
 0x460   : >> { %v15345_v62 = vpop.permute.xlu1 %4983 }
 0x461   : >> { %v4982_v60 = vpop.permute.xlu0 %4981  ;;  %6023 = vrot.lane.b32.xlu1 %v5983_v31, %s11132_s26  ;;  %6021 = vrot.lane.b32.xlu0 %v5978_v5, %s11132_s26  ;;  %v6590_v5 = vshll.u32 %v15363_v36, 16  ;;  %v6578_v31 = vor.u32 %v6577_v23, %v6573_v48  ;;  %v6586_v23 = vor.u32 %v6584_v7, %v6582_v29  ;;  %v15405_v7 = vld [vmem:[%s12066_s23 + $0x4c] ss:$0 sps:$4 sm:$0x11]  }
 0x462   : >> { %v5285_v55 = vsel %vm859_vm9, %v5259_v17, %v4982_v60  ;;  %v5284_v51 = vsel %vm859_vm9, %v5256_v57, %v4982_v60  ;;  %v5261_v17 = vsel %vm716_vm8, %v17535_v47, %v15334_v45  ;;  %v15444_v47 = vld [vmem:[%s12066_s23 + $0x64] sm:$0xf] }
 0x463   : >> { %v6583_v56 = vsel %vm3058_vm12, %v6578_v31, %v6582_v29  ;;  %v5287_v29 = vsel %vm859_vm9, %v5261_v17, %v15345_v62  ;;  %v6784_v31 = vshll.u32 %v15391_v50, 16 }
 0x464   : >> { %v5140_v49 = vpop.permute.xlu1 %5139 }
 0x465   : >> { %v5138_v63 = vpop.permute.xlu0 %5137  ;;  %6027 = vrot.lane.b32.xlu1 %v5996_v25, %s11132_s26  ;;  %6025 = vrot.lane.b32.xlu0 %v5991_v20, %s11132_s26  ;;  %v10942_v20 = vld [vmem:[%s12066_s23 + $0x98] ss:$0 sps:$4 sm:$0x77]   ;;  %v6592_v25 = vrot.slane %v6590_v5, 1  ;;  %v5316_v22 = vsel %vm2019_vm15, %v5285_v55, %v5140_v49  ;;  %v6597_v49 = vrot.slane %v6595_v35, 1 }
 0x466   : >> { %v5314_v28 = vsel %vm2019_vm15, %v5284_v51, %v5138_v63  ;;  %v5264_v15 = vsel %vm716_vm8, %v10942_v20, %v15331_v1  ;;  %v6781_v1 = vshrl.u32 %v15391_v50, 16 }
 0x467   : >> { %v6593_v63 = vor.u32 %v6592_v25, %v6588_v41  ;;  %v10017_v25 = vcombine.low %v15351_v12, %v15360_v3 }
 0x468   : >> { %v5144_v61 = vpop.permute.xlu1 %5143 }
 0x469   : >> { %v5142_v54 = vpop.permute.xlu0 %5141  ;;  %6103 = vrot.lane.b32.xlu1 %v6073_v39, %s11133_s16  ;;  %6101 = vrot.lane.b32.xlu0 %v6071_v32, %s11133_s16  ;;  %v6599_v39 = vshrl.u32 %v10009_v26, 16  ;;  %v5288_v26 = vsel %vm859_vm9, %v5264_v15, %v15345_v62  ;;  %v9950_v15 = vld [vmem:[%s12066_s23 + $0x60] sm:$0x8] }
 0x46a   : >> { %v5320_v45 = vsel %vm2019_vm15, %v5288_v26, %v5144_v61  ;;  %v5318_v35 = vsel %vm2019_vm15, %v5287_v29, %v5142_v54  ;;  %v6598_v61 = vsel %vm3058_vm12, %v6593_v63, %v6597_v49  ;;  %v6789_v54 = vshll.u32 %v15405_v7, 16  ;;  %v15448_v26 = vld [vmem:[%s12066_s23 + $0x68] sm:$0xf] }
 0x46b   : >> { %v6601_v62 = vor.u32 %v6599_v39, %v6597_v49  ;;  %v6732_v49 = vrot.slane %v15391_v50, 5 }
 0x46c   : >> { %v5220_v11 = vpop.permute.xlu1 %5219  ;;  %v6791_v39 = vrot.slane %v6789_v54, 6 }
 0x46d   : >> { %v5348_v48 = vsel %vm3581_vm0, %v5316_v22, %v5220_v11  ;;  %v5218_v32 = vpop.permute.xlu0 %5217  ;;  %6107 = vrot.lane.b32.xlu1 %v6076_v43, %s11133_s16  ;;  %6105 = vrot.lane.b32.xlu0 %v6074_v53, %s11133_s16  ;;  %v15426_v11 = vld [vmem:[%s12066_s23 + $0x5c] ss:$0 sps:$4 sm:$0x11]   ;;  %v6783_v43 = vrot.slane %v6781_v1, 5 }
 0x46e   : >> { %v5391_v5 = vrot.slane %v5348_v48, 3  ;;  %v5346_v60 = vsel %vm3581_vm0, %v5314_v28, %v5218_v32  ;;  %v6786_v28 = vrot.slane %v6784_v31, 6  ;;  %v6794_v48 = vshrl.u32 %v10017_v25, 16 }
 0x46f   : >> { %v5390_v16 = vrot.slane %v5346_v60, 3  ;;  %v6797_v32 = vshll.u32 %v10017_v25, 16  ;;  %v6733_v60 = vrot.slane %v10017_v25, 5  ;;  %v6802_v29 = vshll.u32 %v15426_v11, 16 }
 0x470   : >> { %v5224_v57 = vpop.permute.xlu1 %5223  ;;  %v6787_v17 = vor.u32 %v6786_v28, %v6783_v43 }
 0x471   : >> { %v5222_v53 = vpop.permute.xlu0 %5221  ;;  %v5392_v20 = vsel %vm3633_vm2, %v5390_v16, %v5391_v5  ;;  %v5352_v55 = vsel %vm3581_vm0, %v5320_v45, %v5224_v57  ;;  %6694 = vrot.lane.b32.xlu1 %v6586_v23, %s11130_s27  ;;  %6692 = vrot.lane.b32.xlu0 %v6583_v56, %s11130_s27  ;;  %v15436_v56 = vld [vmem:[%s16978_s4] ss:$0 sm:$0xff]  ;;  %v6796_v16 = vrot.slane %v6794_v48, 5  ;;  %v6799_v63 = vrot.slane %v6797_v32, 6  ;;  %v15466_v57 = vld [vmem:[%s16979_s5 + $0x28] sm:$0xff]  }
 0x472   : >> { %v5350_v41 = vsel %vm3581_vm0, %v5318_v35, %v5222_v53  ;;  %10410 = vmatprep.mubr.msk.bf16.mxu1 %vm4404_vm1, %v5392_v20  ;;  %v5394_v51 = vrot.slane %v5352_v55, 3  ;;  %v15452_v1 = vadd.f32 %v14766_v14, %v15436_v56  ;;  %v15456_v50 = vadd.f32 %v15436_v56, %v14774_v9  ;;  %v9984_v35 = vld [vmem:[%s12066_s23 + $0x44] sm:$0xe]  ;;  %v9985_v53 = vld [vmem:[%s12066_s23 + $0x54] sm:$0xe]  ;;  %10434 = vmatprep.subr.bf16.mxu1 %v15466_v57 }
 0x473   : >> { %v5393_v22 = vrot.slane %v5350_v41, 3  ;;  %v15470_v20 = vcombine.low %v9950_v15, %v15444_v47  ;;  %v15474_v14 = vadd.f32 %v14787_v58, %v15436_v56  ;;  %v15480_v9 = vcombine.low %v15448_v26, %v15448_v26  ;;  %v9953_v55 = vld [vmem:[%s12066_s23 + $0x70] sm:$0x8]  ;;  %v15484_v41 = vld [vmem:[%s12066_s23 + $0x74] sm:$0xf] }
 0x474   : >> { %v15428_v5 = vpop.permute.xlu1 %5807  ;;  %v6800_v25 = vor.u32 %v6799_v63, %v6796_v16  ;;  %v15498_v48 = vadd.f32 %v15436_v56, %v14799_v52  ;;  %v10033_v32 = vcombine.low %v9985_v53, %v15360_v3  ;;  %v15525_v63 = vadd.f32 %v14869_v27, %v15436_v56 }
 0x475   : >> { %v15430_v12 = vpop.permute.xlu0 %5805  ;;  %v5395_v23 = vsel %vm3633_vm2, %v5393_v22, %v5394_v51  ;;  %6698 = vrot.lane.b32.xlu1 %v6601_v62, %s11130_s27  ;;  %6696 = vrot.lane.b32.xlu0 %v6598_v61, %s11130_s27  ;;  %17536 = vst [vmem:[#allocation38_spill] sm:$0xff] %v15470_v20  ;;  %v6792_v62 = vsel %vm3267_vm14, %v6787_v17, %v6791_v39  ;;  %v6804_v51 = vrot.slane %v6802_v29, 6  ;;  %v15489_v61 = vld [vmem:[%s12066_s23 + $0x78] sm:$0xf]  ;;  %v6610_v52 = vshll.u32 %v15480_v9, 16 }
 0x476   : >> { %10411 = vmatmul.mubr.msk.bf16.gmra.mrb[4].mxu1 %vm4404_vm1, %v5395_v23  ;;  %v10032_v22 = vcombine.low %v9984_v35, %v15341_v19  ;;  %v6605_v19 = vshll.u32 %v15470_v20, 16  ;;  %v15503_v23 = vcombine.low %v9953_v55, %v15484_v41  ;;  %v15515_v3 = vcombine.low %v15489_v61, %v15489_v61  ;;  %v10951_v35 = vld [vmem:[%s12066_s23 + $0x38] ss:$0 sps:$4 sm:$0x77]  }
 0x477   : >> { %v15519_v39 = vadd.f32 %v15436_v56, %v14854_v44  ;;  %v6805_v15 = vsel %vm3267_vm14, %v6800_v25, %v6804_v51  ;;  %v15533_v29 = vadd.f32 %v14920_v38, %v15436_v56  ;;  %v6944_v55 = vrot.slane %v15426_v11, 6 }
 0x478   : >> { %v15458_v31 = vpop.permute.xlu1 %5811  ;;  %17537 = vst [vmem:[#allocation36_spill] sm:$0xff] %v15503_v23  ;;  %v6940_v16 = vrot.slane %v10032_v22, 6  ;;  %v6607_v51 = vrot.slane %v6605_v19, 1  ;;  %v6620_v27 = vshll.u32 %v15503_v23, 16  ;;  %v6614_v38 = vshrl.u32 %v15480_v9, 16 }
 0x479   : >> { %v15460_v45 = vpop.permute.xlu0 %5809  ;;  %6742 = vrot.lane.b32.xlu1 %v6733_v60, %s11131_s29  ;;  %6740 = vrot.lane.b32.xlu0 %v6732_v49, %s11131_s29  ;;  %v15508_v49 = vadd.f32 %v14842_v21, %v15436_v56  ;;  %v6941_v21 = vrot.slane %v15405_v7, 6  ;;  %17538 = vst [vmem:[#allocation14_spill] sm:$0xff] %v15533_v29  ;;  %v6603_v7 = vshrl.u32 %v15470_v20, 16  ;;  %v6625_v60 = vshll.u32 %v15515_v3, 16  ;;  %v9966_v29 = vld [vmem:[%s12066_s23 + $0xb4] sm:$0xf] }
 0x47a   : >> { %v15549_v19 = vcombine.low %v15444_v47, %v15448_v26  ;;  %v15556_v9 = vadd.f32 %v15436_v56, %v14939_v18  ;;  %v6618_v54 = vshrl.u32 %v15503_v23, 16  ;;  %v6622_v47 = vrot.slane %v6620_v27, 1  ;;  %v15572_v27 = vld [vmem:[%s12066_s23 + $0x6c] ss:$0 sps:$4 sm:$0x11]  }
 0x47b   : >> { %v6627_v20 = vrot.slane %v6625_v60, 1 }
 0x47c   : >> { %v15494_v43 = vpop.permute.xlu1 %5855  ;;  %17539 = vst [vmem:[#allocation60_spill] sm:$0xff] %v15556_v9  ;;  %v6810_v60 = vshll.u32 %v15549_v19, 16 }
 0x47d   : >> { %v5854_v28 = vpop.permute.xlu0 %5853  ;;  %6886 = vrot.lane.b32.xlu1 %v6792_v62, %s11132_s26  ;;  %6884 = vrot.lane.b32.xlu0 %v6787_v17, %s11132_s26  ;;  %v15529_v17 = vadd.f32 %v15436_v56, %v14887_v0  ;;  %v6943_v62 = vrot.slane %v10033_v32, 6  ;;  %v6612_v0 = vrot.slane %v6610_v52, 1  ;;  %v6942_v32 = vsel %vm741_vm7, %v6940_v16, %v6941_v21 }
 0x47e   : >> { %v6608_v21 = vor.u32 %v6607_v51, %v6603_v7  ;;  %v6110_v52 = vsel %vm716_vm8, %v14622_v4, %v15430_v12  ;;  %v6629_v51 = vshrl.u32 %v15515_v3, 16 }
 0x47f   : >> { %v6945_v11 = vsel %vm741_vm7, %v6943_v62, %v6944_v55  ;;  %v6616_v18 = vor.u32 %v6614_v38, %v6612_v0  ;;  %v6150_v55 = vsel %vm859_vm9, %v6110_v52, %v5854_v28 }
 0x480   : >> { %v6000_v44 = vpop.permute.xlu1 %5999  ;;  %v6613_v38 = vsel %vm3058_vm12, %v6608_v21, %v6612_v0  ;;  %v6815_v0 = vshll.u32 %v15572_v27, 16  ;;  %v6812_v21 = vrot.slane %v6810_v60, 6 }
 0x481   : >> { %v5998_v53 = vpop.permute.xlu0 %5997  ;;  %6890 = vrot.lane.b32.xlu1 %v6805_v15, %s11132_s26  ;;  %6888 = vrot.lane.b32.xlu0 %v6800_v25, %s11132_s26  ;;  %v6113_v15 = vsel %vm716_vm8, %v10951_v35, %v15428_v5  ;;  %v10954_v25 = vld [vmem:[%s12066_s23 + $0x48] ss:$0 sps:$4 sm:$0x77]   ;;  %v6807_v5 = vshrl.u32 %v15549_v19, 16 }
 0x482   : >> { %v6151_v7 = vsel %vm859_vm9, %v6113_v15, %v5854_v28  ;;  %v6174_v4 = vsel %vm2019_vm15, %v6150_v55, %v5998_v53  ;;  %v6623_v15 = vor.u32 %v6622_v47, %v6618_v54  ;;  %v6115_v53 = vsel %vm716_vm8, %v14731_v24, %v15460_v45  ;;  %v15601_v47 = vld [vmem:[%s12066_s23 + $0x7c] ss:$0 sps:$4 sm:$0x11]  }
 0x483   : >> { %v6176_v35 = vsel %vm2019_vm15, %v6151_v7, %v6000_v44  ;;  %v6118_v44 = vsel %vm716_vm8, %v10954_v25, %v15458_v31  ;;  %v6153_v55 = vsel %vm859_vm9, %v6115_v53, %v15494_v43  ;;  %v6809_v31 = vrot.slane %v6807_v5, 5  ;;  %v9956_v7 = vld [vmem:[%s12066_s23 + $0x80] sm:$0x8] }
 0x484   : >> { %v6004_v58 = vpop.permute.xlu1 %6003  ;;  %v6154_v54 = vsel %vm859_vm9, %v6118_v44, %v15494_v43  ;;  %v15606_v43 = vadd.f32 %v14957_v2, %v15436_v56  ;;  %v15627_v44 = vadd.f32 %v15006_v34, %v15436_v56  ;;  %v6628_v53 = vsel %vm3058_vm12, %v6623_v15, %v6627_v20 }
 0x485   : >> { %v6002_v22 = vpop.permute.xlu0 %6001  ;;  %6966 = vrot.lane.b32.xlu1 %v6942_v32, %s11133_s16  ;;  %6964 = vrot.lane.b32.xlu0 %v6940_v16, %s11133_s16  ;;  %v15579_v16 = vcombine.low %v15484_v41, %v15489_v61  ;;  %v6180_v24 = vsel %vm2019_vm15, %v6154_v54, %v6004_v58  ;;  %v6631_v58 = vor.u32 %v6629_v51, %v6627_v20  ;;  %v11002_v20 = vld [vmem:[%s16979_s5 + $0x30] ss:$0 sps:$4 sm:$0x33]   ;;  %v6734_v15 = vrot.slane %v15549_v19, 5 }
 0x486   : >> { %v6178_v45 = vsel %vm2019_vm15, %v6153_v55, %v6002_v22  ;;  %17540 = vst [vmem:[#allocation61_spill] sm:$0xff] %v15606_v43  ;;  %v9957_v22 = vld [vmem:[%s12066_s23 + $0x84] sm:$0xf]  ;;  %v15623_v51 = vadd.f32 %v15436_v56, %v14960_v42  ;;  %17542 = vst [vmem:[#allocation35_spill] sm:$0xff] %v15627_v44  ;;  %v15642_v42 = vld [vmem:[%s12066_s23 + $0x88] sm:$0xf] }
 0x487   : >> { %v6820_v2 = vshrl.u32 %v15579_v16, 16  ;;  %v10965_v44 = vld [vmem:[%s12066_s23 + $0x58] ss:$0 sps:$4 sm:$0x77]   ;;  %v9965_v43 = vld [vmem:[%s12066_s23 + $0xb0] sm:$0x8] }
 0x488   : >> { %v6080_v12 = vpop.permute.xlu1 %6079  ;;  %17541 = vst [vmem:[#allocation54_spill] sm:$0xff] %v15623_v51 }
 0x489   : >> { %v6078_v32 = vpop.permute.xlu0 %6077  ;;  %v6208_v28 = vsel %vm3581_vm0, %v6176_v35, %v6080_v12  ;;  %6970 = vrot.lane.b32.xlu1 %v6945_v11, %s11133_s16  ;;  %6968 = vrot.lane.b32.xlu0 %v6943_v62, %s11133_s16  ;;  %v15614_v12 = vld [vmem:[%s12066_s23 + $0x94] sm:$0xf] }
 0x48a   : >> { %v6206_v3 = vsel %vm3581_vm0, %v6174_v4, %v6078_v32  ;;  %v6257_v41 = vrot.slane %v6208_v28, 3  ;;  %v9959_v4 = vld [vmem:[%s12066_s23 + $0x90] sm:$0x8]  ;;  %v6823_v28 = vshll.u32 %v15579_v16, 16 }
 0x48b   : >> { %v6256_v52 = vrot.slane %v6206_v3, 3  ;;  %v15647_v34 = vcombine.low %v9959_v4, %v15614_v12 }
 0x48c   : >> { %v6084_v25 = vpop.permute.xlu1 %6083 }
 0x48d   : >> { %v6082_v11 = vpop.permute.xlu0 %6081  ;;  %v6258_v62 = vsel %vm3633_vm2, %v6256_v52, %v6257_v41  ;;  %v6212_v5 = vsel %vm3581_vm0, %v6180_v24, %v6084_v25  ;;  %6702 = vrot.lane.b32.xlu1 %v6616_v18, %s11130_s27  ;;  %6700 = vrot.lane.b32.xlu0 %v6613_v38, %s11130_s27  ;;  %v9986_v18 = vld [vmem:[%s12066_s23 + $0x64] sm:$0xe]  ;;  %v9987_v41 = vld [vmem:[%s12066_s23 + $0x74] sm:$0xe]  ;;  %v15634_v38 = vadd.f32 %v15436_v56, %v15014_v46  ;;  %v6735_v46 = vrot.slane %v15579_v16, 5 }
 0x48e   : >> { %v6210_v35 = vsel %vm3581_vm0, %v6178_v45, %v6082_v11  ;;  %10418 = vmatprep.mubr.msk.bf16.mxu1 %vm4404_vm1, %v6258_v62  ;;  %v6260_v32 = vrot.slane %v6212_v5, 3  ;;  %v15644_v24 = vcombine.low %v9956_v7, %v9957_v22  ;;  %17545 = vst [vmem:[#allocation18_spill] sm:$0xff] %v15647_v34  ;;  %v6813_v45 = vor.u32 %v6812_v21, %v6809_v31  ;;  %v15656_v11 = vld [vmem:[%s12066_s23 + $0x98] sm:$0xf] }
 0x48f   : >> { %v6259_v60 = vrot.slane %v6210_v35, 3  ;;  %17543 = vst [vmem:[#allocation62_spill] sm:$0xff] %v15634_v38  ;;  %v6817_v25 = vrot.slane %v6815_v0, 6  ;;  %v6822_v62 = vrot.slane %v6820_v2, 5  ;;  %v6825_v7 = vrot.slane %v6823_v28, 6 }
 0x490   : >> { %v15637_v55 = vpop.permute.xlu1 %5815  ;;  %17544 = vst [vmem:[#allocation63_spill] sm:$0xff] %v15644_v24  ;;  %v6828_v5 = vshll.u32 %v15601_v47, 16  ;;  %v10034_v35 = vcombine.low %v9986_v18, %v15448_v26  ;;  %v10035_v19 = vcombine.low %v9987_v41, %v15489_v61  ;;  %v15667_v31 = vcombine.low %v15642_v42, %v15642_v42 }
 0x491   : >> { %v6261_v52 = vsel %vm3633_vm2, %v6259_v60, %v6260_v32  ;;  %v15639_v54 = vpop.permute.xlu0 %5813  ;;  %6706 = vrot.lane.b32.xlu1 %v6631_v58, %s11130_s27  ;;  %6704 = vrot.lane.b32.xlu0 %v6628_v53, %s11130_s27  ;;  %v6635_v58 = vshll.u32 %v15644_v24, 16  ;;  %v15677_v26 = vcombine.low %v15656_v11, %v15656_v11  ;;  %v6650_v32 = vshll.u32 %v15647_v34, 16 }
 0x492   : >> { %10419 = vmatmul.mubr.msk.bf16.vlgmr.msra.gmra.mrb[8].mxu1 %vm4404_vm1, %v6261_v52  ;;  %v7201_v61 = vsel %vm741_vm7, %v11002_v20, 0  ;;  %v15686_v2 = vadd.f32 %v15023_v37, %v15436_v56  ;;  %v15689_v28 = vcombine.low %v9957_v22, %v15642_v42  ;;  %v6818_v53 = vsel %vm3267_vm14, %v6813_v45, %v6817_v25 }
 0x493   : >> { %10435 = vmatpush3.bf16.msra.mxu1 %v15466_v57  ;;  %v6826_v18 = vor.u32 %v6825_v7, %v6822_v62  ;;  %v6830_v41 = vrot.slane %v6828_v5, 6  ;;  %v15694_v52 = vrot.slane %v10034_v35, 6  ;;  %v15697_v60 = vrot.slane %v10035_v19, 6 }
 0x494   : >> { %v15670_v0 = vpop.permute.xlu1 %5819  ;;  %10584 = vmatprep.subr.msk.bf16.mxu1 %vm741_vm7, %v11002_v20  ;;  %17546 = vst [vmem:[#allocation73_spill] sm:$0xff] %v15686_v2  ;;  %v6947_v20 = vrot.slane %v15572_v27, 6  ;;  %v6640_v37 = vshll.u32 %v15667_v31, 16  ;;  %v6633_v22 = vshrl.u32 %v15644_v24, 16  ;;  %v6637_v57 = vrot.slane %v6635_v58, 1 }
 0x495   : >> { %v15672_v21 = vpop.permute.xlu0 %5817  ;;  %6746 = vrot.lane.b32.xlu1 %v6735_v46, %s11131_s29  ;;  %6744 = vrot.lane.b32.xlu0 %v6734_v15, %s11131_s29  ;;  %v6655_v25 = vshll.u32 %v15677_v26, 16  ;;  %v6648_v62 = vshrl.u32 %v15647_v34, 16  ;;  %v6652_v7 = vrot.slane %v6650_v32, 1  ;;  %v6950_v27 = vrot.slane %v15601_v47, 6 }
 0x496   : >> { %v15708_v5 = vcombine.low %v15614_v12, %v15656_v11  ;;  %v6833_v35 = vshrl.u32 %v15689_v28, 16  ;;  %v6836_v19 = vshll.u32 %v15689_v28, 16  ;;  %v6831_v58 = vsel %vm3267_vm14, %v6826_v18, %v6830_v41  ;;  %v15719_v32 = vld [vmem:[%s12066_s23 + $0x9c] ss:$0 sps:$4 sm:$0x11]  }
 0x497   : >> { %10437 = vmatpush3.bf16.msra.mxu1 %v7201_v61  ;;  %v15716_v61 = vld [vmem:[%s12066_s23 + $0x8c] ss:$0 sps:$4 sm:$0x11]   ;;  %v6642_v47 = vrot.slane %v6640_v37, 1  ;;  %v6644_v4 = vshrl.u32 %v15667_v31, 16  ;;  %v6638_v34 = vor.u32 %v6637_v57, %v6633_v22  ;;  %v6657_v24 = vrot.slane %v6655_v25, 1 }
 0x498   : >> { %v15701_v46 = vpop.permute.xlu1 %5859  ;;  %v6846_v12 = vshrl.u32 %v15708_v5, 16  ;;  %v6849_v16 = vshll.u32 %v15708_v5, 16  ;;  %v6653_v41 = vor.u32 %v6652_v7, %v6648_v62  ;;  %v6835_v38 = vrot.slane %v6833_v35, 5  ;;  %v9962_v22 = vld [vmem:[%s12066_s23 + $0xa0] sm:$0x8] }
 0x499   : >> { %v5858_v15 = vpop.permute.xlu0 %5857  ;;  %6894 = vrot.lane.b32.xlu1 %v6818_v53, %s11132_s26  ;;  %6892 = vrot.lane.b32.xlu0 %v6813_v45, %s11132_s26  ;;  %v6659_v45 = vshrl.u32 %v15677_v26, 16  ;;  %v6838_v37 = vrot.slane %v6836_v19, 6  ;;  %v15729_v31 = vadd.f32 %v15436_v56, %v15030_v13  ;;  %v6841_v57 = vshll.u32 %v15716_v61, 16  ;;  %v9963_v25 = vld [vmem:[%s12066_s23 + $0xa4] sm:$0xf] }
 0x49a   : >> { %v6854_v26 = vshll.u32 %v15719_v32, 16  ;;  %v6948_v62 = vsel %vm741_vm7, %v15694_v52, %v6947_v20  ;;  %v6951_v13 = vsel %vm741_vm7, %v15697_v60, %v6950_v27  ;;  %v6848_v56 = vrot.slane %v6846_v12, 5  ;;  %v15755_v12 = vld [vmem:[%s12066_s23 + $0xa8] sm:$0xf] }
 0x49b   : >> { %v6851_v7 = vrot.slane %v6849_v16, 6  ;;  %v6646_v19 = vor.u32 %v6644_v4, %v6642_v47  ;;  %v15742_v23 = vor.u32 %v6659_v45, %v6657_v24  ;;  %v15745_v2 = vsel %vm3058_vm12, %v6653_v41, %v6657_v24  ;;  %v9988_v16 = vld [vmem:[%s12066_s23 + $0x84] sm:$0xe]  ;;  %v10968_v4 = vld [vmem:[%s12066_s23 + $0x68] ss:$0 sps:$4 sm:$0x77]  }
 0x49c   : >> { %v6008_v3 = vpop.permute.xlu1 %6007  ;;  %v6737_v20 = vrot.slane %v15708_v5, 5  ;;  %v15751_v27 = vor.u32 %v6838_v37, %v6835_v38  ;;  %v15757_v9 = vcombine.low %v9962_v22, %v9963_v25  ;;  %v6120_v24 = vsel %vm716_vm8, %v14975_v59, %v15639_v54 }
 0x49d   : >> { %v6006_v53 = vpop.permute.xlu0 %6005  ;;  %6898 = vrot.lane.b32.xlu1 %v6831_v58, %s11132_s26  ;;  %6896 = vrot.lane.b32.xlu0 %v6826_v18, %s11132_s26  ;;  %v6643_v58 = vsel %vm3058_vm12, %v6638_v34, %v6642_v47  ;;  %v6123_v34 = vsel %vm716_vm8, %v10965_v44, %v15637_v55  ;;  %v15768_v38 = vrot.slane %v6841_v57, 6  ;;  %v15770_v47 = vrot.slane %v6854_v26, 6  ;;  %v15786_v26 = vld [vmem:[%s12066_s23 + $0xb8] sm:$0xf] }
 0x49e   : >> { %v6156_v45 = vsel %vm859_vm9, %v6120_v24, %v5858_v15  ;;  %v6157_v41 = vsel %vm859_vm9, %v6123_v34, %v5858_v15  ;;  %v15774_v44 = vor.u32 %v6851_v7, %v6848_v56  ;;  %v15776_v55 = vcombine.low %v9965_v43, %v9966_v29 }
 0x49f   : >> { %v6184_v59 = vsel %vm2019_vm15, %v6157_v41, %v6008_v3  ;;  %v6182_v54 = vsel %vm2019_vm15, %v6156_v45, %v6006_v53  ;;  %v15783_v57 = vcombine.low %v15755_v12, %v15755_v12  ;;  %v6665_v43 = vshll.u32 %v15757_v9, 16 }
 0x4a0   : >> { %v6012_v35 = vpop.permute.xlu1 %6011  ;;  %v15792_v3 = vcombine.low %v9963_v25, %v15755_v12  ;;  %v6128_v53 = vsel %vm716_vm8, %v10968_v4, %v15670_v0  ;;  %v15808_v0 = vcombine.low %v15786_v26, %v15786_v26  ;;  %v9989_v4 = vld [vmem:[%s12066_s23 + $0x94] sm:$0xe]  ;;  %v15816_v45 = vcombine.low %v9966_v29, %v15786_v26 }
 0x4a1   : >> { %v6010_v18 = vpop.permute.xlu0 %6009  ;;  %6974 = vrot.lane.b32.xlu1 %v6948_v62, %s11133_s16  ;;  %6972 = vrot.lane.b32.xlu0 %v15694_v52, %s11133_s16  ;;  %v10036_v52 = vcombine.low %v9988_v16, %v15642_v42  ;;  %v6125_v42 = vsel %vm716_vm8, %v15027_v10, %v15672_v21  ;;  %v6160_v16 = vsel %vm859_vm9, %v6128_v53, %v15701_v46  ;;  %v6680_v10 = vshll.u32 %v15776_v55, 16 }
 0x4a2   : >> { %v6159_v25 = vsel %vm859_vm9, %v6125_v42, %v15701_v46  ;;  %v6188_v21 = vsel %vm2019_vm15, %v6160_v16, %v6012_v35  ;;  %v15819_v46 = vld [vmem:[%s12066_s23 + $0xac] ss:$0 sps:$4 sm:$0x11]   ;;  %v6859_v35 = vshrl.u32 %v15792_v3, 16  ;;  %v6872_v29 = vshrl.u32 %v15816_v45, 16 }
 0x4a3   : >> { %v10037_v53 = vcombine.low %v9989_v4, %v15656_v11  ;;  %v6670_v42 = vshll.u32 %v15783_v57, 16  ;;  %v6689_v51 = vshrl.u32 %v15808_v0, 16  ;;  %v6844_v5 = vsel %vm3267_vm14, %v15751_v27, %v15768_v38 }
 0x4a4   : >> { %v6088_v37 = vpop.permute.xlu1 %6087  ;;  %v6874_v4 = vrot.slane %v6872_v29, 5 }
 0x4a5   : >> { %v6086_v22 = vpop.permute.xlu0 %6085  ;;  %v6216_v15 = vsel %vm3581_vm0, %v6184_v59, %v6088_v37  ;;  %6978 = vrot.lane.b32.xlu1 %v6951_v13, %s11133_s16  ;;  %6976 = vrot.lane.b32.xlu0 %v15697_v60, %s11133_s16  ;;  %v6186_v13 = vsel %vm2019_vm15, %v6159_v25, %v6010_v18  ;;  %v6862_v18 = vshll.u32 %v15792_v3, 16 }
 0x4a6   : >> { %v6214_v62 = vsel %vm3581_vm0, %v6182_v54, %v6086_v22  ;;  %v6263_v56 = vrot.slane %v6216_v15, 3  ;;  %v15827_v54 = vld [vmem:[%s12066_s23 + $0xbc] ss:$0 sps:$4 sm:$0x11]   ;;  %v6875_v15 = vshll.u32 %v15816_v45, 16 }
 0x4a7   : >> { %v6262_v7 = vrot.slane %v6214_v62, 3  ;;  %v15833_v62 = vrot.slane %v10036_v52, 6  ;;  %v6682_v52 = vrot.slane %v6680_v10, 1  ;;  %v6864_v11 = vrot.slane %v6862_v18, 6 }
 0x4a8   : >> { %v6092_v34 = vpop.permute.xlu1 %6091  ;;  %v6956_v10 = vrot.slane %v15719_v32, 6  ;;  %v17547_v32 = vrot.slane %v15689_v28, 5  ;;  %v6962_v28 = vrot.slane %v15827_v54, 6 }
 0x4a9   : >> { %v6090_v24 = vpop.permute.xlu0 %6089  ;;  %v6264_v60 = vsel %vm3633_vm2, %v6262_v7, %v6263_v56  ;;  %v6220_v41 = vsel %vm3581_vm0, %v6188_v21, %v6092_v34  ;;  %6710 = vrot.lane.b32.xlu1 %v6646_v19, %s11130_s27  ;;  %6708 = vrot.lane.b32.xlu0 %v6643_v58, %s11130_s27  ;;  %v6663_v56 = vshrl.u32 %v15757_v9, 16  ;;  %v9990_v7 = vld [vmem:[%s12066_s23 + $0xa4] sm:$0xe]  ;;  %v6667_v19 = vrot.slane %v6665_v43, 1  ;;  %v9991_v34 = vld [vmem:[%s12066_s23 + $0xb4] sm:$0xe] }
 0x4aa   : >> { %v6218_v59 = vsel %vm3581_vm0, %v6186_v13, %v6090_v24  ;;  %10422 = vmatprep.mubr.msk.bf16.mxu1 %vm4404_vm1, %v6264_v60  ;;  %v6266_v37 = vrot.slane %v6220_v41, 3  ;;  %v6685_v58 = vshll.u32 %v15808_v0, 16  ;;  %v6678_v13 = vshrl.u32 %v15776_v55, 16 }
 0x4ab   : >> { %v6265_v22 = vrot.slane %v6218_v59, 3  ;;  %v6861_v24 = vrot.slane %v6859_v35, 5  ;;  %v6867_v60 = vshll.u32 %v15819_v46, 16  ;;  %v6877_v43 = vrot.slane %v6875_v15, 6 }
 0x4ac   : >> { %v5824_v25 = vpop.permute.xlu1 %5823  ;;  %v6880_v41 = vshll.u32 %v15827_v54, 16  ;;  %v10038_v59 = vcombine.low %v9990_v7, %v15755_v12  ;;  %v10039_v35 = vcombine.low %v9991_v34, %v15786_v26  ;;  %v6668_v29 = vor.u32 %v6667_v19, %v6663_v56  ;;  %v10977_v56 = vld [vmem:[%s12066_s23 + $0x78] ss:$0 sps:$4 sm:$0x77]  }
 0x4ad   : >> { %v5822_v16 = vpop.permute.xlu0 %5821  ;;  %v6267_v21 = vsel %vm3633_vm2, %v6265_v22, %v6266_v37  ;;  %6714 = vrot.lane.b32.xlu1 %v15742_v23, %s11130_s27  ;;  %6712 = vrot.lane.b32.xlu0 %v15745_v2, %s11130_s27  ;;  %v6953_v37 = vrot.slane %v15716_v61, 6  ;;  %v15852_v22 = vrot.slane %v10037_v53, 6  ;;  %v6672_v23 = vrot.slane %v6670_v42, 1  ;;  %v10980_v19 = vld [vmem:[%s12066_s23 + $0x88] ss:$0 sps:$4 sm:$0x77]  }
 0x4ae   : >> { %10423 = vmatmul.mubr.msk.bf16.gmra.mrb[12].mxu1 %vm4404_vm1, %v6267_v21  ;;  %v6674_v2 = vshrl.u32 %v15783_v57, 16  ;;  %v6687_v15 = vrot.slane %v6685_v58, 1  ;;  %v6683_v12 = vor.u32 %v6682_v52, %v6678_v13  ;;  %v15858_v7 = vor.u32 %v6864_v11, %v6861_v24 }
 0x4af   : >> { %v6869_v61 = vrot.slane %v6867_v60, 6  ;;  %v15866_v26 = vor.u32 %v6877_v43, %v6874_v4  ;;  %v6882_v57 = vrot.slane %v6880_v41, 6  ;;  %v15868_v53 = vrot.slane %v10038_v59, 6  ;;  %v15996_v60 = vld [vmem:[%s15926_s24 + $0x18] sm:$0xf] }
 0x4b0   : >> { %v5828_v18 = vpop.permute.xlu1 %5827  ;;  %v6959_v0 = vrot.slane %v15819_v46, 6  ;;  %v6857_v34 = vsel %vm3267_vm14, %v15774_v44, %v15770_v47  ;;  %v6954_v46 = vsel %vm741_vm7, %v15833_v62, %v6953_v37  ;;  %v15887_v52 = vsel %vm741_vm7, %v15852_v22, %v6956_v10  ;;  %v15929_v10 = vld [vmem:[%s15926_s24 + $0x4] sm:$0xf] }
 0x4b1   : >> { %v5826_v21 = vpop.permute.xlu0 %5825  ;;  %6750 = vrot.lane.b32.xlu1 %v6737_v20, %s11131_s29  ;;  %6748 = vrot.lane.b32.xlu0 %v17547_v32, %s11131_s29  ;;  %v15876_v20 = vrot.slane %v10039_v35, 6  ;;  %v15889_v38 = vor.u32 %v6674_v2, %v6672_v23  ;;  %v15892_v24 = vsel %vm3058_vm12, %v6668_v29, %v6672_v23  ;;  %v15894_v54 = vor.u32 %v6689_v51, %v6687_v15  ;;  %v15934_v23 = vld [vmem:[%s15926_s24 + $0x8] sm:$0xf]  ;;  %v15939_v2 = vld [vmem:[%s15926_s24 + $0x14] sm:$0xf] }
 0x4b2   : >> { %v15897_v11 = vsel %vm3058_vm12, %v6683_v12, %v6687_v15  ;;  %v15906_v4 = vsel %vm3267_vm14, %v15858_v7, %v6869_v61  ;;  %v15910_v51 = vsel %vm3267_vm14, %v15866_v26, %v6882_v57  ;;  %v15914_v43 = vsel %vm741_vm7, %v15868_v53, %v6959_v0  ;;  %v15946_v61 = vld [vmem:[%s15926_s24 + $0x18] sm:$0xf]  ;;  %vm15980_vm12 = vmor %vm7381_vm6, %vm7382_vm11 }
 0x4b3   : >> { %v6133_v41 = vsel %vm716_vm8, %v10977_v56, %v5824_v25  ;;  %v6130_v59 = vsel %vm716_vm8, %v15131_v6, %v5822_v16  ;;  %v15923_v37 = vsel %vm741_vm7, %v15876_v20, %v6962_v28  ;;  %v6138_v25 = vsel %vm716_vm8, %v10980_v19, %v5828_v18 }
 0x4b4   : >> { %v5864_v58 = vpop.permute.xlu1 %5863  ;;  %v7394_v12 = vshll.u32 %v15934_v23, 16  ;;  %v7398_v18 = vshrl.u32 %v15934_v23, 16  ;;  %v7404_v56 = vshll.u32 %v15939_v2, 16  ;;  %vm9085_vm14 = vcmask 195584  }
 0x4b5   : >> { %v5862_v13 = vpop.permute.xlu0 %5861  ;;  %6902 = vrot.lane.b32.xlu1 %v6844_v5, %s11132_s26  ;;  %6900 = vrot.lane.b32.xlu0 %v15751_v27, %s11132_s26  ;;  %v6135_v27 = vsel %vm716_vm8, %v15151_v33, %v5826_v21  ;;  %v7385_v33 = vshll.u32 %v15929_v10, 16  ;;  %v7388_v21 = vshrl.u32 %v15929_v10, 16  ;;  %v6166_v29 = vsel %vm859_vm9, %v6138_v25, %v5864_v58 }
 0x4b6   : >> { %v6165_v35 = vsel %vm859_vm9, %v6135_v27, %v5864_v58  ;;  %v6162_v15 = vsel %vm859_vm9, %v6130_v59, %v5862_v13  ;;  %v6163_v32 = vsel %vm859_vm9, %v6133_v41, %v5862_v13  ;;  %v7396_v28 = vrot.slane %v7394_v12, 5 }
 0x4b7   : >> { %v15952_v57 = vrot.slane %v7385_v33, 5  ;;  %v7390_v0 = vrot.slane %v7388_v21, 4  ;;  %v7400_v19 = vrot.slane %v7398_v18, 4  ;;  %v7407_v58 = vshrl.u32 %v15939_v2, 16  ;;  %v15964_v21 = vld [vmem:[%s15926_s24 + $0x14] sm:$0xf] }
 0x4b8   : >> { %v6016_v6 = vpop.permute.xlu1 %6015  ;;  %v15959_v27 = vrot.slane %v7404_v56, 5  ;;  %v7584_v56 = vld [vmem:[%s15926_s24 + $0xc] sm:$0x1] }
 0x4b9   : >> { %v6014_v16 = vpop.permute.xlu0 %6013  ;;  %6906 = vrot.lane.b32.xlu1 %v6857_v34, %s11132_s26  ;;  %6904 = vrot.lane.b32.xlu0 %v15774_v44, %s11132_s26  ;;  %v6192_v5 = vsel %vm2019_vm15, %v6163_v32, %v6016_v6  ;;  %v7391_v34 = vor.u32 %v7390_v0, %v15952_v57  ;;  %v7401_v33 = vor.u32 %v7400_v19, %v7396_v28  ;;  %v15966_v6 = vrot.slane %v7407_v58, 4 }
 0x4ba   : >> { %v6190_v59 = vsel %vm2019_vm15, %v6162_v15, %v6014_v16  ;;  %v7618_v15 = vrot.slane %v15929_v10, 5  ;;  %v7620_v19 = vrot.slane %v15934_v23, 5 }
 0x4bb   : >> { %v7402_v0 = vrot.slane %v7401_v33, 4 }
 0x4bc   : >> { %v6020_v13 = vpop.permute.xlu1 %6019 }
 0x4bd   : >> { %v6018_v41 = vpop.permute.xlu0 %6017  ;;  %v6196_v25 = vsel %vm2019_vm15, %v6166_v29, %v6020_v13  ;;  %6982 = vrot.lane.b32.xlu1 %v6954_v46, %s11133_s16  ;;  %6980 = vrot.lane.b32.xlu0 %v15833_v62, %s11133_s16  ;;  %v7392_v29 = vrot.slane %v7391_v34, 4  ;;  %v7619_v34 = vrot.slane %v7618_v15, 4  ;;  %v7562_v44 = vmax.bf16 %v7402_v0, %v15934_v23 }
 0x4be   : >> { %v6194_v18 = vsel %vm2019_vm15, %v6165_v35, %v6018_v41  ;;  %v7623_v35 = vrot.slane %v7584_v56, 5  ;;  %v7773_v41 = vshll.u32 %v15964_v21, 16  ;;  %v7776_v0 = vshrl.u32 %v15964_v21, 16 }
 0x4bf   : >> { %v7397_v13 = vsel %vm15980_vm12, %v7392_v29, %v7396_v28  ;;  %v7357_v28 = vld [vmem:[%s15926_s24] sm:$0x8] }
 0x4c0   : >> { %v6096_v62 = vpop.permute.xlu1 %6095  ;;  %v7561_v12 = vmax.bf16 %v7397_v13, %v15929_v10  ;;  %v7560_v10 = vmax.bf16 %v15952_v57, %v7357_v28  ;;  %v7775_v23 = vrot.slane %v7773_v41, 5 }
 0x4c1   : >> { %v6094_v58 = vpop.permute.xlu0 %6093  ;;  %v6224_v42 = vsel %vm3581_vm0, %v6192_v5, %v6096_v62  ;;  %6986 = vrot.lane.b32.xlu1 %v15887_v52, %s11133_s16  ;;  %6984 = vrot.lane.b32.xlu0 %v15852_v22, %s11133_s16  ;;  %v7621_v5 = vsel %vm15971_vm5, %v7619_v34, %v7620_v19  ;;  %v7782_v62 = vshll.u32 %v15996_v60, 16 }
 0x4c2   : >> { %v6222_v33 = vsel %vm3581_vm0, %v6190_v59, %v6094_v58  ;;  %v6269_v46 = vrot.slane %v6224_v42, 3  ;;  %v7622_v59 = vrot.slane %v7620_v19, 4  ;;  %v7699_v29 = vmax.bf16 %v7621_v5, %v7561_v12  ;;  %v10989_v12 = vld [vmem:[%s12066_s23 + $0x98] ss:$0 sps:$4 sm:$0x77]  }
 0x4c3   : >> { %v6268_v47 = vrot.slane %v6222_v33, 3  ;;  %v7786_v58 = vshrl.u32 %v15996_v60, 16  ;;  %v7698_v13 = vmax.bf16 %v7618_v15, %v7560_v10  ;;  %v7784_v28 = vrot.slane %v7782_v62, 5  ;;  %v10078_v15 = vld [vmem:[%s15926_s24 + $0x1c] sm:$0x1] }
 0x4c4   : >> { %v6100_v42 = vpop.permute.xlu1 %6099  ;;  %v7624_v22 = vsel %vm15971_vm5, %v7622_v59, %v7623_v35 }
 0x4c5   : >> { %v6098_v56 = vpop.permute.xlu0 %6097  ;;  %v6270_v52 = vsel %vm3633_vm2, %v6268_v47, %v6269_v46  ;;  %v6228_v19 = vsel %vm3581_vm0, %v6196_v25, %v6100_v42  ;;  %v7700_v34 = vmax.bf16 %v7624_v22, %v7562_v44  ;;  %6718 = vrot.lane.b32.xlu1 %v15889_v38, %s11130_s27  ;;  %6716 = vrot.lane.b32.xlu0 %v15892_v24, %s11130_s27  ;;  %v10054_v47 = vld [vmem:[%s15926_s24 + $0x10] sm:$0x8]  ;;  %v7778_v46 = vrot.slane %v7776_v0, 4 }
 0x4c6   : >> { %v6226_v57 = vsel %vm3581_vm0, %v6194_v18, %v6098_v56  ;;  %10426 = vmatprep.mubr.msk.bf16.mxu1 %vm4404_vm1, %v6270_v52  ;;  %v6272_v41 = vrot.slane %v6228_v19, 3  ;;  %v7749_v25 = vmax.bf16 %v15964_v21, %v7699_v29  ;;  %v7748_v18 = vmax.bf16 %v10054_v47, %v7698_v13  ;;  %v16028_v56 = vld [vmem:[%s15926_s24 + $0x24] sm:$0xf]  ;;  %v10992_v52 = vld [vmem:[%s12066_s23 + $0xa8] ss:$0 sps:$4 sm:$0x77]  }
 0x4c7   : >> { %v6271_v33 = vrot.slane %v6226_v57, 3  ;;  %v7750_v35 = vmax.bf16 %v15996_v60, %v7700_v34  ;;  %v7788_v44 = vrot.slane %v7786_v58, 4  ;;  %v7779_v10 = vor.u32 %v7778_v46, %v7775_v23  ;;  %v16036_v58 = vld [vmem:[%s15926_s24 + $0x28] sm:$0xf]  ;;  %v10088_v47 = vld [vmem:[%s15926_s24 + $0x20] sm:$0x8] }
 0x4c8   : >> { %v5832_v5 = vpop.permute.xlu1 %5831  ;;  %v8004_v42 = vrot.slane %v15964_v21, 5  ;;  %v8006_v24 = vrot.slane %v15996_v60, 5  ;;  %v7948_v62 = vmax.bf16 %v7775_v23, %v7748_v18  ;;  %v8009_v57 = vrot.slane %v10078_v15, 5 }
 0x4c9   : >> { %v5830_v59 = vpop.permute.xlu0 %5829  ;;  %v6273_v38 = vsel %vm3633_vm2, %v6271_v33, %v6272_v41  ;;  %v6143_v29 = vsel %vm716_vm8, %v10989_v12, %v5832_v5  ;;  %v7789_v22 = vor.u32 %v7788_v44, %v7784_v28  ;;  %6722 = vrot.lane.b32.xlu1 %v15894_v54, %s11130_s27  ;;  %6720 = vrot.lane.b32.xlu0 %v15897_v11, %s11130_s27  ;;  %v7780_v60 = vrot.slane %v7779_v10, 4 }
 0x4ca   : >> { %v6140_v0 = vsel %vm716_vm8, %v15233_v40, %v5830_v59  ;;  %10427 = vmatmul.mubr.msk.bf16.gmra.mrb[0].mxu1 %vm4404_vm1, %v6273_v38  ;;  %v8005_v21 = vrot.slane %v8004_v42, 4  ;;  %v8008_v19 = vrot.slane %v8006_v24, 4  ;;  %v8084_v40 = vmax.bf16 %v8004_v42, %v7948_v62 }
 0x4cb   : >> { %v7790_v12 = vrot.slane %v7789_v22, 4  ;;  %v8159_v13 = vshll.u32 %v16028_v56, 16  ;;  %v8162_v34 = vshrl.u32 %v16028_v56, 16  ;;  %v7785_v33 = vsel %vm15980_vm12, %v7780_v60, %v7784_v28 }
 0x4cc   : >> { %v5836_v23 = vpop.permute.xlu1 %5835  ;;  %v8007_v54 = vsel %vm15971_vm5, %v8005_v21, %v8006_v24  ;;  %v8010_v11 = vsel %vm15971_vm5, %v8008_v19, %v8009_v57  ;;  %v8168_v46 = vshll.u32 %v16036_v58, 16  ;;  %v7949_v15 = vmax.bf16 %v7785_v33, %v7749_v25  ;;  %v10112_v19 = vld [vmem:[%s15926_s24 + $0x2c] sm:$0x1] }
 0x4cd   : >> { %v5834_v41 = vpop.permute.xlu0 %5833  ;;  %v6148_v18 = vsel %vm716_vm8, %v10992_v52, %v5836_v23  ;;  %v7950_v5 = vmax.bf16 %v7790_v12, %v7750_v35  ;;  %v17552_v59 = vrot.slane %v15816_v45, 5  ;;  %v17553_v28 = vrot.slane %v15792_v3, 5  ;;  %v8672_v52 = vld [vmem:[%s16981_s7] sm:$0x3] }
 0x4ce   : >> { %v6145_v44 = vsel %vm716_vm8, %v15258_v30, %v5834_v41  ;;  %v8134_v38 = vmax.bf16 %v10088_v47, %v8084_v40  ;;  %v8161_v10 = vrot.slane %v8159_v13, 5  ;;  %v8164_v42 = vrot.slane %v8162_v34, 4  ;;  %10585 = vmatprep.subr.msk.bf16.mxu0 %vm741_vm7, %v8672_v52 }
 0x4cf   : >> { %6754 = vrot.lane.b32.xlu1 %v17552_v59, %s11131_s29  ;;  %6752 = vrot.lane.b32.xlu0 %v17553_v28, %s11131_s29  ;;  %v8170_v24 = vrot.slane %v8168_v46, 5  ;;  %v8085_v30 = vmax.bf16 %v8007_v54, %v7949_v15  ;;  %v8086_v25 = vmax.bf16 %v8010_v11, %v7950_v5  ;;  %v8172_v35 = vshrl.u32 %v16036_v58, 16 }
 0x4d0   : >> { %v8390_v45 = vrot.slane %v16028_v56, 5  ;;  %v5868_v22 = vpop.permute.xlu1 %5867  ;;  %v8729_v3 = vsel %vm741_vm7, %v8672_v52, 0  ;;  %v8165_v60 = vor.u32 %v8164_v42, %v8161_v10  ;;  %v8334_v21 = vmax.bf16 %v8161_v10, %v8134_v38 }
 0x4d1   : >> { %v5866_v62 = vpop.permute.xlu0 %5865  ;;  %v8392_v57 = vrot.slane %v16036_v58, 5  ;;  %v6171_v12 = vsel %vm859_vm9, %v6145_v44, %v5868_v22  ;;  %v6172_v40 = vsel %vm859_vm9, %v6148_v18, %v5868_v22  ;;  %v16074_v23 = vpop.f32.mrb[16].mxu0  ;;  %10455 = vmatpush3.bf16.msra.mxu0 %v8729_v3  ;;  %v8135_v33 = vmax.bf16 %v16028_v56, %v8085_v30 }
 0x4d2   : >> { %v6168_v13 = vsel %vm859_vm9, %v6140_v0, %v5866_v62  ;;  %v6169_v34 = vsel %vm859_vm9, %v6143_v29, %v5866_v62  ;;  %v16076_v41 = vpop.f32.mrb[17].mxu0  ;;  %v8136_v54 = vmax.bf16 %v16036_v58, %v8086_v25  ;;  %v8166_v11 = vrot.slane %v8165_v60, 4 }
 0x4d3   : >> { %6910 = vrot.lane.b32.xlu1 %v15906_v4, %s11132_s26  ;;  %6908 = vrot.lane.b32.xlu0 %v15858_v7, %s11132_s26  ;;  %v8174_v0 = vrot.slane %v8172_v35, 4  ;;  %v16084_v47 = vpop.f32.mrb[18].mxu0  ;;  %v8391_v29 = vrot.slane %v8390_v45, 4  ;;  %v8394_v46 = vrot.slane %v8392_v57, 4  ;;  %v8395_v18 = vrot.slane %v10112_v19, 5 }
 0x4d4   : >> { %v8470_v44 = vmax.bf16 %v8390_v45, %v8334_v21  ;;  %v16086_v15 = vpop.f32.mrb[19].mxu0  ;;  %v6024_v5 = vpop.permute.xlu1 %6023  ;;  %v8171_v4 = vsel %vm15980_vm12, %v8166_v11, %v8170_v24  ;;  %v7360_v7 = vld [vmem:[%s15926_s24 + $0x10] sm:$0x8]  ;;  %v17554_v56 = vor.u32 %v15966_v6, %v15959_v27  ;;  %v17555_v28 = vshll.u32 %v15946_v61, 16 }
 0x4d5   : >> { %v8175_v59 = vor.u32 %v8174_v0, %v8170_v24  ;;  %v6200_v10 = vsel %vm2019_vm15, %v6169_v34, %v6024_v5  ;;  %v6022_v42 = vpop.permute.xlu0 %6021  ;;  %v8335_v52 = vmax.bf16 %v8171_v4, %v8135_v33  ;;  %v8393_v30 = vsel %vm15971_vm5, %v8391_v29, %v8392_v57 }
 0x4d6   : >> { %v7411_v58 = vrot.slane %v17554_v56, 4  ;;  %v7415_v38 = vrot.slane %v17555_v28, 5  ;;  %v8396_v25 = vsel %vm15971_vm5, %v8394_v46, %v8395_v18  ;;  %v6198_v24 = vsel %vm2019_vm15, %v6168_v13, %v6022_v42  ;;  %v7585_v13 = vld [vmem:[%s15926_s24 + $0x1c] sm:$0x1] }
 0x4d7   : >> { %6914 = vrot.lane.b32.xlu1 %v15910_v51, %s11132_s26  ;;  %6912 = vrot.lane.b32.xlu0 %v15866_v26, %s11132_s26  ;;  %v8176_v6 = vrot.slane %v8175_v59, 4  ;;  %v8497_v35 = vshrl.u32 %v8470_v44, 16  ;;  %v8471_v45 = vmax.bf16 %v8393_v30, %v8335_v52  ;;  %v17556_v62 = vshrl.u32 %v15946_v61, 16  ;;  %s17587_s26 = scalar_lea.vmem (%p1080_p12), [#allocation6], %s11240_s22 }
 0x4d8   : >> { %v7416_v22 = vsel %vm15980_vm12, %v7411_v58, %v7415_v38  ;;  %v7563_v60 = vmax.bf16 %v15959_v27, %v7360_v7  ;;  %v6028_v21 = vpop.permute.xlu1 %6027  ;;  %v7625_v34 = vrot.slane %v15939_v2, 5  ;;  %v7630_v7 = vrot.slane %v7585_v13, 5  ;;  %s9135_s21 = sshll.u32 (%p1080_p12), %s17587_s26, 4  ;;  %s16929_s21 = int_to_ptr.vmem [resolvable:$true] %s9135_s21 }
 0x4d9   : >> { %v7419_v3 = vrot.slane %v17556_v62, 4  ;;  %v16111_v19 = vpop.f32.mrb[20].mxu0  ;;  %v8336_v57 = vmax.bf16 %v8176_v6, %v8136_v54  ;;  %v16113_v51 = vrot.slane %v8497_v35, 11  ;;  %v7564_v26 = vmax.bf16 %v7416_v22, %v15939_v2  ;;  %v6026_v11 = vpop.permute.xlu0 %6025  ;;  %v10057_v35 = vld [vmem:[%s15926_s24 + $0x20] sm:$0x8] }
 0x4da   : >> { %v6204_v33 = vsel %vm2019_vm15, %v6172_v40, %v6028_v21  ;;  %v16119_v0 = vpop.f32.mrb[21].mxu0  ;;  %v8502_v29 = vshrl.u32 %v8471_v45, 16  ;;  %v8505_v46 = vshll.u32 %v8471_v45, 16  ;;  %v6202_v27 = vsel %vm2019_vm15, %v6171_v12, %v6026_v11  ;;  %v10058_v45 = vld [vmem:[%s15926_s24 + $0x24] sm:$0xf] }
 0x4db   : >> { %v7420_v18 = vor.u32 %v7419_v3, %v7415_v38  ;;  %6990 = vrot.lane.b32.xlu1 %v15914_v43, %s11133_s16  ;;  %6988 = vrot.lane.b32.xlu0 %v15868_v53, %s11133_s16  ;;  %v16126_v54 = vpop.f32.mrb[22].mxu0  ;;  %v8472_v44 = vmax.bf16 %v8396_v25, %v8336_v57  ;;  %v7626_v2 = vrot.slane %v7625_v34, 4  ;;  %v7627_v40 = vrot.slane %v15946_v61, 5 }
 0x4dc   : >> { %v16129_v5 = vpop.f32.mrb[23].mxu0  ;;  %v8504_v4 = vrot.slane %v8502_v29, 7  ;;  %v7701_v12 = vmax.bf16 %v7625_v34, %v7563_v60  ;;  %v6104_v56 = vpop.permute.xlu1 %6103  ;;  %v16156_v34 = vld [vmem:[%s15926_s24 + $0x28] sm:$0xf]  ;;  %v7792_v11 = vshll.u32 %v10058_v45, 16 }
 0x4dd   : >> { %v7421_v59 = vrot.slane %v7420_v18, 4  ;;  %v8511_v53 = vshrl.u32 %v8472_v44, 16  ;;  %v8514_v58 = vshll.u32 %v8472_v44, 16  ;;  %v7628_v28 = vsel %vm15971_vm5, %v7626_v2, %v7627_v40  ;;  %v6102_v52 = vpop.permute.xlu0 %6101  ;;  %v10999_v44 = vld [vmem:[%s12066_s23 + $0x48] ss:$0 sps:$4 sm:$0x77]  }
 0x4de   : >> { %v7629_v38 = vrot.slane %v7627_v40, 4  ;;  %v6232_v42 = vsel %vm3581_vm0, %v6200_v10, %v6104_v56  ;;  %v8507_v30 = vor.u32 %v8505_v46, %v8504_v4  ;;  %v8509_v25 = vrot.slane %v8504_v4, 4 }
 0x4df   : >> { %v7565_v6 = vmax.bf16 %v7421_v59, %v15946_v61  ;;  %v6275_v22 = vrot.slane %v6232_v42, 3  ;;  %v6230_v62 = vsel %vm3581_vm0, %v6198_v24, %v6102_v52  ;;  %6994 = vrot.lane.b32.xlu1 %v15923_v37, %s11133_s16  ;;  %6992 = vrot.lane.b32.xlu0 %v15876_v20, %s11133_s16  ;;  %v8513_v3 = vrot.slane %v8511_v53, 7  ;;  %v10079_v42 = vld [vmem:[%s15926_s24 + $0x2c] sm:$0x1] }
 0x4e0   : >> { %v7631_v10 = vsel %vm15971_vm5, %v7629_v38, %v7630_v7  ;;  %v6274_v60 = vrot.slane %v6230_v62, 3  ;;  %v8508_v61 = vsel %vm16133_vm13, %v16113_v51, %v8507_v30  ;;  %v7702_v21 = vmax.bf16 %v7628_v28, %v7564_v26  ;;  %v6108_v24 = vpop.permute.xlu1 %6107 }
 0x4e1   : >> { %v16153_v57 = vmax.bf16 %v7631_v10, %v7565_v6  ;;  %v8516_v13 = vor.u32 %v8514_v58, %v8513_v3  ;;  %v7751_v37 = vmax.bf16 %v10057_v35, %v7701_v12  ;;  %v7795_v20 = vshrl.u32 %v10058_v45, 16  ;;  %v6106_v46 = vpop.permute.xlu0 %6105  ;;  %v16175_v58 = vld [vmem:[%s15926_s24 + $0x34] sm:$0xf]  ;;  %v11000_v35 = vld [vmem:[%s12066_s23 + $0x58] ss:$0 sps:$4 sm:$0x77]  }
 0x4e2   : >> { %v6236_v29 = vsel %vm3581_vm0, %v6204_v33, %v6108_v24  ;;  %v6276_v18 = vsel %vm3633_vm2, %v6274_v60, %v6275_v22  ;;  %v7752_v2 = vmax.bf16 %v10058_v45, %v7702_v21  ;;  %v6234_v40 = vsel %vm3581_vm0, %v6202_v27, %v6106_v46  ;;  %v16185_v3 = vld [vmem:[%s15926_s24 + $0x38] sm:$0xf] }
 0x4e3   : >> { %v7753_v51 = vmax.bf16 %v16156_v34, %v16153_v57  ;;  %v6278_v26 = vrot.slane %v6236_v29, 3  ;;  %10430 = vmatprep.mubr.msk.bf16.mxu1 %vm4404_vm1, %v6276_v18  ;;  %v17559_v4 = vmax.f32 %v15456_v50, 0.0  ;;  %v8517_v33 = vsel %vm16133_vm13, %v8509_v25, %v8516_v13  ;;  %v10091_v57 = vld [vmem:[%s15926_s24 + $0x30] sm:$0x8] }
 0x4e4   : >> { %v7794_v59 = vrot.slane %v7792_v11, 5  ;;  %v6277_v7 = vrot.slane %v6234_v40, 3  ;;  %v17560_v12 = vmax.f32 %v15498_v48, 0.0  ;;  %v10129_v56 = vcombine.low %v8508_v61, %v8517_v33  ;;  %v6695_v28 = vpop.permute.xlu1 %6694 }
 0x4e5   : >> { %8877 = vrot.lane.b32.xlu0 %v17559_v4, %s11131_s29  ;;  %v7797_v53 = vrot.slane %v7795_v20, 4  ;;  %v7801_v27 = vshll.u32 %v16156_v34, 16  ;;  %v7805_v50 = vshrl.u32 %v16156_v34, 16  ;;  %v8011_v52 = vrot.slane %v10058_v45, 5  ;;  %v6693_v48 = vpop.permute.xlu0 %6692 }
 0x4e6   : >> { %8879 = vrot.lane.b32.xlu1 %v17560_v12, %s11131_s29  ;;  %v7951_v38 = vmax.bf16 %v7794_v59, %v7751_v37  ;;  %v8013_v30 = vrot.slane %v16156_v34, 5  ;;  %v7000_v25 = vsel %vm716_vm8, %v10999_v44, %v6695_v28  ;;  %v6279_v6 = vsel %vm3633_vm2, %v6277_v7, %v6278_v26  ;;  %10456 = vmatprep.mubr.msk.bf16.mxu0 %vm716_vm8, %v10129_v56 }
 0x4e7   : >> { %v7798_v22 = vor.u32 %v7797_v53, %v7794_v59  ;;  %v7803_v62 = vrot.slane %v7801_v27, 5  ;;  %v6997_v10 = vsel %vm716_vm8, %v15338_v8, %v6693_v48  ;;  %10431 = vmatmul.mubr.msk.bf16.gmra.mrb[4].mxu1 %vm4404_vm1, %v6279_v6  ;;  %v17561_v45 = vmax.f32 %v15452_v1, 0.0 }
 0x4e8   : >> { %v7807_v60 = vrot.slane %v7805_v50, 4  ;;  %v8012_v61 = vrot.slane %v8011_v52, 4  ;;  %v8015_v21 = vrot.slane %v8013_v30, 4  ;;  %v17562_v24 = vmax.f32 %v15474_v14, 0.0  ;;  %v6699_v8 = vpop.permute.xlu1 %6698 }
 0x4e9   : >> { %8881 = vrot.lane.b32.xlu0 %v17561_v45, %s11131_s29  ;;  %v7799_v13 = vrot.slane %v7798_v22, 4  ;;  %v8016_v34 = vrot.slane %v10079_v42, 5  ;;  %v8087_v37 = vmax.bf16 %v8011_v52, %v7951_v38  ;;  %v8178_v11 = vshll.u32 %v16175_v58, 16  ;;  %v6697_v44 = vpop.permute.xlu0 %6696  ;;  %v16222_v22 = vld [vmem:[%s15926_s24 + $0x24] sm:$0xf] }
 0x4ea   : >> { %8883 = vrot.lane.b32.xlu1 %v17562_v24, %s11131_s29  ;;  %v7808_v20 = vor.u32 %v7807_v60, %v7803_v62  ;;  %v8014_v29 = vsel %vm15971_vm5, %v8012_v61, %v8013_v30  ;;  %v8181_v1 = vshrl.u32 %v16175_v58, 16  ;;  %v8187_v46 = vshll.u32 %v16185_v3, 16 }
 0x4eb   : >> { %v7005_v18 = vsel %vm716_vm8, %v11000_v35, %v6699_v8  ;;  %v7804_v14 = vsel %vm15980_vm12, %v7799_v13, %v7803_v62  ;;  %v8017_v26 = vsel %vm15971_vm5, %v8015_v21, %v8016_v34  ;;  %v8137_v40 = vmax.bf16 %v10091_v57, %v8087_v37  ;;  %v10113_v35 = vld [vmem:[%s15926_s24 + $0x3c] sm:$0x1]  ;;  %v16235_v8 = vld [vmem:[%s15926_s24 + $0x28] sm:$0xf] }
 0x4ec   : >> { %v7002_v4 = vsel %vm716_vm8, %v15363_v36, %v6697_v44  ;;  %v17563_v33 = vmax.f32 %v15519_v39, 0.0  ;;  %v7809_v59 = vrot.slane %v7808_v20, 4  ;;  %v7952_v7 = vmax.bf16 %v7804_v14, %v7752_v2  ;;  %v6743_v36 = vpop.permute.xlu1 %6742 }
 0x4ed   : >> { %v8180_v12 = vrot.slane %v8178_v11, 5  ;;  %v17564_v56 = vmax.f32 %v15529_v17, 0.0  ;;  %v8183_v53 = vrot.slane %v8181_v1, 4  ;;  %v8189_v27 = vrot.slane %v8187_v46, 5  ;;  %v6741_v17 = vpop.permute.xlu0 %6740 }
 0x4ee   : >> { %8885 = vrot.lane.b32.xlu0 %v17563_v33, %s11131_s29  ;;  %v8191_v28 = vshrl.u32 %v16185_v3, 16  ;;  %v8397_v50 = vrot.slane %v16175_v58, 5  ;;  %v7953_v38 = vmax.bf16 %v7809_v59, %v7753_v51  ;;  %v8088_v42 = vmax.bf16 %v8014_v29, %v7952_v7 }
 0x4ef   : >> { %8887 = vrot.lane.b32.xlu1 %v17564_v56, %s11131_s29  ;;  %v8337_v39 = vmax.bf16 %v8180_v12, %v8137_v40  ;;  %v8399_v52 = vrot.slane %v16185_v3, 5  ;;  %v7040_v2 = vsel %vm859_vm9, %v7002_v4, %v6743_v36  ;;  %v7041_v30 = vsel %vm859_vm9, %v7005_v18, %v6743_v36  ;;  %v17569_v40 = vld [vmem:[#allocation54_spill] sm:$0xff] }
 0x4f0   : >> { %v8184_v48 = vor.u32 %v8183_v53, %v8180_v12  ;;  %v8193_v6 = vrot.slane %v8191_v28, 4  ;;  %v7037_v62 = vsel %vm859_vm9, %v6997_v10, %v6741_v17  ;;  %v7038_v45 = vsel %vm859_vm9, %v7000_v25, %v6741_v17  ;;  %v6887_v37 = vpop.permute.xlu1 %6886  ;;  %v16257_v28 = vld [vmem:[%s15926_s24 + $0x20] sm:$0x8] }
 0x4f1   : >> { %v17565_v51 = vmax.f32 %v15508_v49, 0.0  ;;  %v8089_v60 = vmax.bf16 %v8017_v26, %v7953_v38  ;;  %v8138_v61 = vmax.bf16 %v16175_v58, %v8088_v42  ;;  %v17566_v21 = vmax.f32 %v15525_v63, 0.0  ;;  %v6885_v58 = vpop.permute.xlu0 %6884 }
 0x4f2   : >> { %v8185_v57 = vrot.slane %v8184_v48, 4  ;;  %v8194_v24 = vor.u32 %v8193_v6, %v8189_v27  ;;  %v8398_v13 = vrot.slane %v8397_v50, 4  ;;  %v8401_v34 = vrot.slane %v8399_v52, 4  ;;  %v17571_v6 = vld [vmem:[#allocation14_spill] sm:$0xff] }
 0x4f3   : >> { %8889 = vrot.lane.b32.xlu0 %v17565_v51, %s11131_s29  ;;  %8891 = vrot.lane.b32.xlu1 %v17566_v21, %s11131_s29  ;;  %v8139_v10 = vmax.bf16 %v16185_v3, %v8089_v60  ;;  %v8402_v11 = vrot.slane %v10113_v35, 5  ;;  %v8473_v25 = vmax.bf16 %v8397_v50, %v8337_v39  ;;  %v7423_v49 = vshll.u32 %v16222_v22, 16  ;;  %v17567_v3 = vld [vmem:[#allocation60_spill] sm:$0xff]  ;;  %v7586_v60 = vld [vmem:[%s15926_s24 + $0x2c] sm:$0x1] }
 0x4f4   : >> { %v7063_v20 = vsel %vm2019_vm15, %v7038_v45, %v6887_v37  ;;  %v8190_v63 = vsel %vm15980_vm12, %v8185_v57, %v8189_v27  ;;  %v8195_v29 = vrot.slane %v8194_v24, 4  ;;  %v8400_v1 = vsel %vm15971_vm5, %v8398_v13, %v8399_v52  ;;  %v6891_v56 = vpop.permute.xlu1 %6890 }
 0x4f5   : >> { %v7061_v46 = vsel %vm2019_vm15, %v7037_v62, %v6885_v58  ;;  %v17568_v18 = vmax.f32 %v17567_v3, 0.0  ;;  %v8338_v44 = vmax.bf16 %v8190_v63, %v8138_v61  ;;  %v8403_v14 = vsel %vm15971_vm5, %v8401_v34, %v8402_v11  ;;  %v6889_v42 = vpop.permute.xlu0 %6888  ;;  %v17573_v61 = vld [vmem:[#allocation61_spill] sm:$0xff] }
 0x4f6   : >> { %v8519_v26 = vshrl.u32 %v8473_v25, 16  ;;  %v17570_v4 = vmax.f32 %v17569_v40, 0.0  ;;  %v8339_v33 = vmax.bf16 %v8195_v29, %v8139_v10  ;;  %v16252_v59 = vrot.slane %v7423_v49, 5 }
 0x4f7   : >> { %8893 = vrot.lane.b32.xlu0 %v17568_v18, %s11131_s29  ;;  %v7426_v7 = vshrl.u32 %v16222_v22, 16  ;;  %v7432_v12 = vshll.u32 %v16235_v8, 16  ;;  %v8474_v53 = vmax.bf16 %v8400_v1, %v8338_v44  ;;  %v7436_v50 = vshrl.u32 %v16235_v8, 16  ;;  %v17575_v18 = vld [vmem:[#allocation62_spill] sm:$0xff] }
 0x4f8   : >> { %8895 = vrot.lane.b32.xlu1 %v17570_v4, %s11131_s29  ;;  %v10121_v27 = vrot.slane %v8519_v26, 11  ;;  %v7632_v36 = vrot.slane %v16222_v22, 5  ;;  %v7067_v38 = vsel %vm2019_vm15, %v7041_v30, %v6891_v56  ;;  %v8475_v39 = vmax.bf16 %v8403_v14, %v8339_v33 }
 0x4f9   : >> { %v7428_v52 = vrot.slane %v7426_v7, 4  ;;  %v7434_v17 = vrot.slane %v7432_v12, 5  ;;  %v7065_v48 = vsel %vm2019_vm15, %v7040_v2, %v6889_v42  ;;  %v17572_v35 = vmax.f32 %v17571_v6, 0.0  ;;  %v6967_v2 = vpop.permute.xlu1 %6966  ;;  %v6965_v49 = vpop.permute.xlu0 %6964 }
 0x4fa   : >> { %v8524_v62 = vshrl.u32 %v8474_v53, 16  ;;  %v8527_v45 = vshll.u32 %v8474_v53, 16  ;;  %v7438_v51 = vrot.slane %v7436_v50, 4  ;;  %v17574_v21 = vmax.f32 %v17573_v61, 0.0 }
 0x4fb   : >> { %8897 = vrot.lane.b32.xlu0 %v17572_v35, %s11131_s29  ;;  %v8533_v57 = vshrl.u32 %v8475_v39, 16  ;;  %v8536_v30 = vshll.u32 %v8475_v39, 16  ;;  %v7429_v24 = vor.u32 %v7428_v52, %v16252_v59  ;;  %v7566_v13 = vmax.bf16 %v16252_v59, %v16257_v28  ;;  %v17578_v35 = vld [vmem:[#allocation35_spill] sm:$0xff] }
 0x4fc   : >> { %8899 = vrot.lane.b32.xlu1 %v17574_v21, %s11131_s29  ;;  %v8526_v34 = vrot.slane %v8524_v62, 7  ;;  %v7439_v37 = vor.u32 %v7438_v51, %v7434_v17  ;;  %v7633_v10 = vrot.slane %v7632_v36, 4  ;;  %v7634_v11 = vrot.slane %v16235_v8, 5  ;;  %v10060_v51 = vld [vmem:[%s15926_s24 + $0x30] sm:$0x8] }
 0x4fd   : >> { %v7095_v25 = vsel %vm3581_vm0, %v7063_v20, %v6967_v2  ;;  %v8535_v58 = vrot.slane %v8533_v57, 7  ;;  %v7430_v63 = vrot.slane %v7429_v24, 4  ;;  %v7637_v29 = vrot.slane %v7586_v60, 5  ;;  %v6971_v7 = vpop.permute.xlu1 %6970  ;;  %v6969_v50 = vpop.permute.xlu0 %6968  ;;  %v11004_v21 = vld [vmem:[%s12066_s23 + $0x78] ss:$0 sps:$4 sm:$0x77]  }
 0x4fe   : >> { %v7144_v1 = vrot.slane %v7095_v25, 3  ;;  %v7093_v3 = vsel %vm3581_vm0, %v7061_v46, %v6965_v49  ;;  %v17576_v44 = vmax.f32 %v17575_v18, 0.0  ;;  %v8529_v14 = vor.u32 %v8527_v45, %v8526_v34  ;;  %v11003_v46 = vld [vmem:[%s12066_s23 + $0x68] ss:$0 sps:$4 sm:$0x77]  }
 0x4ff   : >> { %v8531_v26 = vrot.slane %v8526_v34, 4  ;;  %v7143_v40 = vrot.slane %v7093_v3, 3  ;;  %v17577_v4 = vmax.f32 %v15729_v31, 0.0  ;;  %v8538_v20 = vor.u32 %v8536_v30, %v8535_v58 }
 0x500   : >> { %8901 = vrot.lane.b32.xlu0 %v17576_v44, %s11131_s29  ;;  %v7435_v33 = vsel %vm15980_vm12, %v7430_v63, %v7434_v17  ;;  %v7440_v59 = vrot.slane %v7439_v37, 4  ;;  %v8530_v12 = vsel %vm16133_vm13, %v10121_v27, %v8529_v14  ;;  %v7635_v53 = vsel %vm15971_vm5, %v7633_v10, %v7634_v11  ;;  %v10061_v17 = vld [vmem:[%s15926_s24 + $0x34] sm:$0xf]  ;;  %v16297_v27 = vld [vmem:[%s15926_s24 + $0x38] sm:$0xf] }
 0x501   : >> { %8903 = vrot.lane.b32.xlu1 %v17577_v4, %s11131_s29  ;;  %v7567_v56 = vmax.bf16 %v7435_v33, %v16222_v22  ;;  %v7636_v31 = vrot.slane %v7634_v11, 4  ;;  %v7099_v28 = vsel %vm3581_vm0, %v7067_v38, %v6971_v7  ;;  %v7145_v42 = vsel %vm3633_vm2, %v7143_v40, %v7144_v1  ;;  %v6703_v24 = vpop.permute.xlu1 %6702  ;;  %v6701_v49 = vpop.permute.xlu0 %6700 }
 0x502   : >> { %v8539_v39 = vsel %vm16133_vm13, %v8531_v26, %v8538_v20  ;;  %v7568_v52 = vmax.bf16 %v7440_v59, %v16235_v8  ;;  %v7147_v22 = vrot.slane %v7099_v28, 3  ;;  %v7097_v6 = vsel %vm3581_vm0, %v7065_v48, %v6969_v50  ;;  %10438 = vmatprep.mubr.msk.bf16.mxu1 %vm4404_vm1, %v7145_v42  ;;  %v17580_v8 = vld [vmem:[#allocation73_spill] sm:$0xff]  ;;  %v10096_v42 = vld [vmem:[%s15926_s24 + $0x48] sm:$0xf] }
 0x503   : >> { %v17579_v38 = vmax.f32 %v17578_v35, 0.0  ;;  %v10130_v62 = vcombine.low %v8530_v12, %v8539_v39  ;;  %v7638_v45 = vsel %vm15971_vm5, %v7636_v31, %v7637_v29  ;;  %v7146_v60 = vrot.slane %v7097_v6, 3  ;;  %v10080_v29 = vld [vmem:[%s15926_s24 + $0x3c] sm:$0x1]  ;;  %v10094_v50 = vld [vmem:[%s15926_s24 + $0x40] sm:$0x8] }
 0x504   : >> { %v17581_v61 = vmax.f32 %v17580_v8, 0.0  ;;  %v7704_v48 = vmax.bf16 %v7632_v36, %v7566_v13  ;;  %v7705_v57 = vmax.bf16 %v7635_v53, %v7567_v56  ;;  %v7706_v30 = vmax.bf16 %v7638_v45, %v7568_v52  ;;  %v16318_v36 = vld [vmem:[%s15926_s24 + $0x44] sm:$0xf]  ;;  %v17582_v13 = vld [vmem:[#allocation38_spill] sm:$0xff]  ;;  %v17583_v39 = vld [vmem:[#allocation36_spill] sm:$0xff] }
 0x505   : >> { %8905 = vrot.lane.b32.xlu0 %v17579_v38, %s11131_s29  ;;  %10457 = vmatmul.mubr.msk.bf16.vlgmr.msra.gmra.mrb[24].mxu0 %vm716_vm8, %v10130_v62  ;;  %v7811_v2 = vshll.u32 %v10061_v17, 16  ;;  %v7814_v34 = vshrl.u32 %v10061_v17, 16  ;;  %v7820_v37 = vshll.u32 %v16297_v27, 16  ;;  %v7824_v10 = vshrl.u32 %v16297_v27, 16  ;;  %v6707_v20 = vpop.permute.xlu1 %6706  ;;  %v6705_v56 = vpop.permute.xlu0 %6704 }
 0x506   : >> { %8907 = vrot.lane.b32.xlu1 %v17581_v61, %s11131_s29  ;;  %v7148_v11 = vsel %vm3633_vm2, %v7146_v60, %v7147_v22  ;;  %v7010_v25 = vsel %vm716_vm8, %v11003_v46, %v6703_v24  ;;  %v7754_v58 = vmax.bf16 %v10060_v51, %v7704_v48  ;;  %v7755_v63 = vmax.bf16 %v10061_v17, %v7705_v57  ;;  %s16592_s29 = scalar_lea.vmem [#allocation5], %s11793_s14 }
 0x507   : >> { %v7007_v1 = vsel %vm716_vm8, %v17582_v13, %v6701_v49  ;;  %10439 = vmatmul.mubr.msk.bf16.vlgmr.msra.gmra.mrb[8].mxu1 %vm4404_vm1, %v7148_v11  ;;  %v7756_v3 = vmax.bf16 %v16297_v27, %v7706_v30  ;;  %v7813_v18 = vrot.slane %v7811_v2, 5  ;;  %v7816_v44 = vrot.slane %v7814_v34, 4  ;;  %v10114_v2 = vld [vmem:[%s15926_s24 + $0x4c] sm:$0x1] }
 0x508   : >> { %v7822_v14 = vrot.slane %v7820_v37, 5  ;;  %v7826_v26 = vrot.slane %v7824_v10, 4  ;;  %v8018_v40 = vrot.slane %v10061_v17, 5  ;;  %v8020_v4 = vrot.slane %v16297_v27, 5 }
 0x509   : >> { %v7817_v33 = vor.u32 %v7816_v44, %v7813_v18  ;;  %v7954_v59 = vmax.bf16 %v7813_v18, %v7754_v58  ;;  %v8023_v7 = vrot.slane %v10080_v29, 5  ;;  %v8197_v46 = vshll.u32 %v16318_v36, 16  ;;  %v6747_v45 = vpop.permute.xlu1 %6746  ;;  %v6745_v57 = vpop.permute.xlu0 %6744 }
 0x50a   : >> { %v7015_v12 = vsel %vm716_vm8, %v11004_v21, %v6707_v20  ;;  %v7827_v53 = vor.u32 %v7826_v26, %v7822_v14  ;;  %v8019_v31 = vrot.slane %v8018_v40, 4  ;;  %v8022_v28 = vrot.slane %v8020_v4, 4 }
 0x50b   : >> { %v7012_v52 = vsel %vm716_vm8, %v17583_v39, %v6705_v56  ;;  %v7818_v17 = vrot.slane %v7817_v33, 4  ;;  %v8090_v22 = vmax.bf16 %v8018_v40, %v7954_v59  ;;  %v8199_v27 = vrot.slane %v8197_v46, 5  ;;  %v16345_v40 = vld [vmem:[%s15926_s24 + $0x34] sm:$0xf]  ;;  %v16350_v33 = vld [vmem:[%s15926_s24 + $0x38] sm:$0xf] }
 0x50c   : >> { %v7828_v6 = vrot.slane %v7827_v53, 4  ;;  %v8021_v35 = vsel %vm15971_vm5, %v8019_v31, %v8020_v4  ;;  %v8024_v38 = vsel %vm15971_vm5, %v8022_v28, %v8023_v7  ;;  %v8200_v62 = vshrl.u32 %v16318_v36, 16 }
 0x50d   : >> { %v7823_v51 = vsel %vm15980_vm12, %v7818_v17, %v7822_v14  ;;  %v8140_v60 = vmax.bf16 %v10094_v50, %v8090_v22  ;;  %v8206_v8 = vshll.u32 %v10096_v42, 16  ;;  %v8210_v61 = vshrl.u32 %v10096_v42, 16  ;;  %v6895_v18 = vpop.permute.xlu1 %6894 }
 0x50e   : >> { %v7046_v21 = vsel %vm859_vm9, %v7012_v52, %v6747_v45  ;;  %v7047_v48 = vsel %vm859_vm9, %v7015_v12, %v6747_v45  ;;  %v7955_v30 = vmax.bf16 %v7823_v51, %v7755_v63  ;;  %v7956_v24 = vmax.bf16 %v7828_v6, %v7756_v3 }
 0x50f   : >> { %v7043_v34 = vsel %vm859_vm9, %v7007_v1, %v6745_v57  ;;  %v7044_v37 = vsel %vm859_vm9, %v7010_v25, %v6745_v57  ;;  %v8202_v10 = vrot.slane %v8200_v62, 4  ;;  %v8208_v11 = vrot.slane %v8206_v8, 5  ;;  %v6893_v1 = vpop.permute.xlu0 %6892 }
 0x510   : >> { %v8091_v49 = vmax.bf16 %v8021_v35, %v7955_v30  ;;  %v8092_v58 = vmax.bf16 %v8024_v38, %v7956_v24  ;;  %v8212_v29 = vrot.slane %v8210_v61, 4  ;;  %v8340_v13 = vmax.bf16 %v8199_v27, %v8140_v60  ;;  %v7366_v38 = vld [vmem:[%s15926_s24 + $0x30] sm:$0x8] }
 0x511   : >> { %v8203_v44 = vor.u32 %v8202_v10, %v8199_v27  ;;  %v8404_v14 = vrot.slane %v16318_v36, 5  ;;  %v8406_v26 = vrot.slane %v10096_v42, 5  ;;  %v8409_v63 = vrot.slane %v10114_v2, 5  ;;  %v6899_v50 = vpop.permute.xlu1 %6898 }
 0x512   : >> { %v7071_v3 = vsel %vm2019_vm15, %v7044_v37, %v6895_v18  ;;  %v8141_v25 = vmax.bf16 %v16318_v36, %v8091_v49  ;;  %v8142_v4 = vmax.bf16 %v10096_v42, %v8092_v58  ;;  %v8213_v20 = vor.u32 %v8212_v29, %v8208_v11  ;;  %v7587_v29 = vld [vmem:[%s15926_s24 + $0x3c] sm:$0x1] }
 0x513   : >> { %v7069_v59 = vsel %vm2019_vm15, %v7043_v34, %v6893_v1  ;;  %v8204_v7 = vrot.slane %v8203_v44, 4  ;;  %v8405_v46 = vrot.slane %v8404_v14, 4  ;;  %v8408_v12 = vrot.slane %v8406_v26, 4  ;;  %v6897_v22 = vpop.permute.xlu0 %6896 }
 0x514   : >> { %v8214_v56 = vrot.slane %v8213_v20, 4  ;;  %v8476_v53 = vmax.bf16 %v8404_v14, %v8340_v13  ;;  %v7442_v31 = vshll.u32 %v16345_v40, 16  ;;  %v7445_v28 = vshrl.u32 %v16345_v40, 16 }
 0x515   : >> { %v8209_v36 = vsel %vm15980_vm12, %v8204_v7, %v8208_v11  ;;  %v8407_v42 = vsel %vm15971_vm5, %v8405_v46, %v8406_v26  ;;  %v8410_v39 = vsel %vm15971_vm5, %v8408_v12, %v8409_v63  ;;  %v7451_v52 = vshll.u32 %v16350_v33, 16  ;;  %v6975_v24 = vpop.permute.xlu1 %6974 }
 0x516   : >> { %v7075_v17 = vsel %vm2019_vm15, %v7047_v48, %v6899_v50  ;;  %v8341_v27 = vmax.bf16 %v8209_v36, %v8141_v25  ;;  %v8342_v6 = vmax.bf16 %v8214_v56, %v8142_v4  ;;  %v8541_v35 = vshrl.u32 %v8476_v53, 16  ;;  %v11005_v53 = vld [vmem:[%s12066_s23 + $0x88] ss:$0 sps:$4 sm:$0x77]  }
 0x517   : >> { %v7073_v62 = vsel %vm2019_vm15, %v7046_v21, %v6897_v22  ;;  %v7444_v45 = vrot.slane %v7442_v31, 5  ;;  %v7447_v51 = vrot.slane %v7445_v28, 4  ;;  %v7453_v60 = vrot.slane %v7451_v52, 5  ;;  %v6973_v11 = vpop.permute.xlu0 %6972 }
 0x518   : >> { %v8477_v8 = vmax.bf16 %v8407_v42, %v8341_v27  ;;  %v8478_v61 = vmax.bf16 %v8410_v39, %v8342_v6  ;;  %v10122_v57 = vrot.slane %v8541_v35, 11  ;;  %v7455_v30 = vshrl.u32 %v16350_v33, 16  ;;  %v10063_v6 = vld [vmem:[%s15926_s24 + $0x40] sm:$0x8]  ;;  %v10064_v35 = vld [vmem:[%s15926_s24 + $0x44] sm:$0xf] }
 0x519   : >> { %v7448_v2 = vor.u32 %v7447_v51, %v7444_v45  ;;  %v7569_v34 = vmax.bf16 %v7444_v45, %v7366_v38  ;;  %v7639_v48 = vrot.slane %v16345_v40, 5  ;;  %v7641_v37 = vrot.slane %v16350_v33, 5  ;;  %v6979_v4 = vpop.permute.xlu1 %6978 }
 0x51a   : >> { %v7103_v10 = vsel %vm3581_vm0, %v7071_v3, %v6975_v24  ;;  %v8546_v21 = vshrl.u32 %v8477_v8, 16  ;;  %v8549_v49 = vshll.u32 %v8477_v8, 16  ;;  %v8555_v58 = vshrl.u32 %v8478_v61, 16  ;;  %v10065_v8 = vld [vmem:[%s15926_s24 + $0x48] sm:$0xf] }
 0x51b   : >> { %v7150_v13 = vrot.slane %v7103_v10, 3  ;;  %v7101_v18 = vsel %vm3581_vm0, %v7069_v59, %v6973_v11  ;;  %v8558_v44 = vshll.u32 %v8478_v61, 16  ;;  %v7449_v14 = vrot.slane %v7448_v2, 4  ;;  %v6977_v56 = vpop.permute.xlu0 %6976 }
 0x51c   : >> { %v7149_v26 = vrot.slane %v7101_v18, 3  ;;  %v8548_v63 = vrot.slane %v8546_v21, 7  ;;  %v8557_v1 = vrot.slane %v8555_v58, 7  ;;  %v7457_v25 = vrot.slane %v7455_v30, 4 }
 0x51d   : >> { %v7454_v20 = vsel %vm15980_vm12, %v7449_v14, %v7453_v60  ;;  %v7640_v3 = vrot.slane %v7639_v48, 4  ;;  %v7643_v7 = vrot.slane %v7641_v37, 4  ;;  %v7644_v46 = vrot.slane %v7587_v29, 5  ;;  %v6711_v38 = vpop.permute.xlu1 %6710  ;;  %v11006_v30 = vld [vmem:[%s12066_s23 + $0x98] ss:$0 sps:$4 sm:$0x77]  }
 0x51e   : >> { %v7107_v12 = vsel %vm3581_vm0, %v7075_v17, %v6979_v4  ;;  %v7151_v59 = vsel %vm3633_vm2, %v7149_v26, %v7150_v13  ;;  %v8551_v31 = vor.u32 %v8549_v49, %v8548_v63  ;;  %v8553_v28 = vrot.slane %v8548_v63, 4  ;;  %v10081_v14 = vld [vmem:[%s15926_s24 + $0x4c] sm:$0x1] }
 0x51f   : >> { %v7153_v50 = vrot.slane %v7107_v12, 3  ;;  %v7105_v36 = vsel %vm3581_vm0, %v7073_v62, %v6977_v56  ;;  %10442 = vmatprep.mubr.msk.bf16.mxu1 %vm4404_vm1, %v7151_v59  ;;  %v8560_v42 = vor.u32 %v8558_v44, %v8557_v1  ;;  %v7458_v39 = vor.u32 %v7457_v25, %v7453_v60 }
 0x520   : >> { %v7152_v52 = vrot.slane %v7105_v36, 3  ;;  %v8552_v17 = vsel %vm16133_vm13, %v10122_v57, %v8551_v31  ;;  %v7570_v22 = vmax.bf16 %v7454_v20, %v16345_v40  ;;  %v7642_v27 = vsel %vm15971_vm5, %v7640_v3, %v7641_v37  ;;  %v6709_v57 = vpop.permute.xlu0 %6708  ;;  %v17584_v37 = vld [vmem:[#allocation63_spill] sm:$0xff] }
 0x521   : >> { %v8561_v62 = vsel %vm16133_vm13, %v8553_v28, %v8560_v42  ;;  %v7459_v45 = vrot.slane %v7458_v39, 4  ;;  %v7645_v51 = vsel %vm15971_vm5, %v7643_v7, %v7644_v46  ;;  %v7707_v60 = vmax.bf16 %v7639_v48, %v7569_v34  ;;  %v6715_v13 = vpop.permute.xlu1 %6714  ;;  %v10098_v3 = vld [vmem:[%s15926_s24 + $0x54] sm:$0xf]  ;;  %v17585_v7 = vld [vmem:[#allocation18_spill] sm:$0xff]  ;;  %v10097_v36 = vld [vmem:[%s15926_s24 + $0x50] sm:$0x8] }
 0x522   : >> { %v7020_v61 = vsel %vm716_vm8, %v11005_v53, %v6711_v38  ;;  %v7154_v40 = vsel %vm3633_vm2, %v7152_v52, %v7153_v50  ;;  %v10131_v24 = vcombine.low %v8552_v17, %v8561_v62  ;;  %v7708_v2 = vmax.bf16 %v7642_v27, %v7570_v22 }
 0x523   : >> { %v7017_v10 = vsel %vm716_vm8, %v17584_v37, %v6709_v57  ;;  %10443 = vmatmul.mubr.msk.bf16.gmra.mrb[12].mxu1 %vm4404_vm1, %v7154_v40  ;;  %v7571_v11 = vmax.bf16 %v7459_v45, %v16350_v33  ;;  %v7757_v21 = vmax.bf16 %v10063_v6, %v7707_v60  ;;  %v7830_v49 = vshll.u32 %v10064_v35, 16  ;;  %v10099_v45 = vld [vmem:[%s15926_s24 + $0x58] sm:$0xf] }
 0x524   : >> { %10460 = vmatprep.mubr.msk.bf16.mxu0 %vm716_vm8, %v10131_v24  ;;  %v7758_v34 = vmax.bf16 %v10064_v35, %v7708_v2  ;;  %v7833_v48 = vshrl.u32 %v10064_v35, 16  ;;  %v7839_v58 = vshll.u32 %v10065_v8, 16  ;;  %v7843_v29 = vshrl.u32 %v10065_v8, 16  ;;  %v6713_v25 = vpop.permute.xlu0 %6712 }
 0x525   : >> { %v7709_v18 = vmax.bf16 %v7645_v51, %v7571_v11  ;;  %v7832_v44 = vrot.slane %v7830_v49, 5  ;;  %v8025_v26 = vrot.slane %v10064_v35, 5  ;;  %v8027_v63 = vrot.slane %v10065_v8, 5  ;;  %v6751_v42 = vpop.permute.xlu1 %6750 }
 0x526   : >> { %v7025_v1 = vsel %vm716_vm8, %v11006_v30, %v6715_v13  ;;  %v7835_v33 = vrot.slane %v7833_v48, 4  ;;  %v7841_v4 = vrot.slane %v7839_v58, 5  ;;  %v7845_v20 = vrot.slane %v7843_v29, 4 }
 0x527   : >> { %v7022_v46 = vsel %vm716_vm8, %v17585_v7, %v6713_v25  ;;  %v7759_v12 = vmax.bf16 %v10065_v8, %v7709_v18  ;;  %v7957_v56 = vmax.bf16 %v7832_v44, %v7757_v21  ;;  %v8026_v59 = vrot.slane %v8025_v26, 4  ;;  %v10115_v18 = vld [vmem:[%s15926_s24 + $0x5c] sm:$0x1] }
 0x528   : >> { %v7836_v53 = vor.u32 %v7835_v33, %v7832_v44  ;;  %v7846_v31 = vor.u32 %v7845_v20, %v7841_v4  ;;  %v8029_v28 = vrot.slane %v8027_v63, 4  ;;  %v8030_v50 = vrot.slane %v10081_v14, 5  ;;  %v6749_v35 = vpop.permute.xlu0 %6748 }
 0x529   : >> { %v8028_v39 = vsel %vm15971_vm5, %v8026_v59, %v8027_v63  ;;  %v8093_v52 = vmax.bf16 %v8025_v26, %v7957_v56  ;;  %v8216_v17 = vshll.u32 %v10098_v3, 16  ;;  %v8219_v22 = vshrl.u32 %v10098_v3, 16  ;;  %v6903_v37 = vpop.permute.xlu1 %6902  ;;  %v16419_v56 = vld [vmem:[%s15926_s24 + $0x44] sm:$0xf]  ;;  %v16422_v59 = vld [vmem:[%s15926_s24 + $0x48] sm:$0xf] }
 0x52a   : >> { %v7052_v27 = vsel %vm859_vm9, %v7022_v46, %v6751_v42  ;;  %v7053_v6 = vsel %vm859_vm9, %v7025_v1, %v6751_v42  ;;  %v7837_v38 = vrot.slane %v7836_v53, 4  ;;  %v7847_v62 = vrot.slane %v7846_v31, 4 }
 0x52b   : >> { %v7049_v51 = vsel %vm859_vm9, %v7017_v10, %v6749_v35  ;;  %v7050_v60 = vsel %vm859_vm9, %v7020_v61, %v6749_v35  ;;  %v8031_v8 = vsel %vm15971_vm5, %v8029_v28, %v8030_v50  ;;  %v8143_v57 = vmax.bf16 %v10097_v36, %v8093_v52 }
 0x52c   : >> { %v7842_v40 = vsel %vm15980_vm12, %v7837_v38, %v7841_v4  ;;  %v7959_v30 = vmax.bf16 %v7847_v62, %v7759_v12  ;;  %v8218_v24 = vrot.slane %v8216_v17, 5  ;;  %v8221_v2 = vrot.slane %v8219_v22, 4  ;;  %v6901_v58 = vpop.permute.xlu0 %6900 }
 0x52d   : >> { %v7958_v11 = vmax.bf16 %v7842_v40, %v7758_v34  ;;  %v8225_v21 = vshll.u32 %v10099_v45, 16  ;;  %v8229_v49 = vshrl.u32 %v10099_v45, 16  ;;  %v8411_v48 = vrot.slane %v10098_v3, 5  ;;  %v6907_v4 = vpop.permute.xlu1 %6906 }
 0x52e   : >> { %v7079_v10 = vsel %vm2019_vm15, %v7050_v60, %v6903_v37  ;;  %v8095_v61 = vmax.bf16 %v8031_v8, %v7959_v30  ;;  %v8222_v29 = vor.u32 %v8221_v2, %v8218_v24  ;;  %v8343_v13 = vmax.bf16 %v8218_v24, %v8143_v57  ;;  %v7369_v57 = vld [vmem:[%s15926_s24 + $0x40] sm:$0x8] }
 0x52f   : >> { %v7077_v44 = vsel %vm2019_vm15, %v7049_v51, %v6901_v58  ;;  %v8094_v14 = vmax.bf16 %v8028_v39, %v7958_v11  ;;  %v8227_v26 = vrot.slane %v8225_v21, 5  ;;  %v8231_v63 = vrot.slane %v8229_v49, 4 }
 0x530   : >> { %v8145_v1 = vmax.bf16 %v10099_v45, %v8095_v61  ;;  %v8223_v25 = vrot.slane %v8222_v29, 4  ;;  %v8412_v34 = vrot.slane %v8411_v48, 4  ;;  %v8413_v33 = vrot.slane %v10099_v45, 5  ;;  %v6905_v31 = vpop.permute.xlu0 %6904 }
 0x531   : >> { %v8144_v20 = vmax.bf16 %v10098_v3, %v8094_v14  ;;  %v8232_v7 = vor.u32 %v8231_v63, %v8227_v26  ;;  %v8416_v46 = vrot.slane %v10115_v18, 5  ;;  %v8479_v12 = vmax.bf16 %v8411_v48, %v8343_v13  ;;  %v6983_v38 = vpop.permute.xlu1 %6982 }
 0x532   : >> { %v7083_v53 = vsel %vm2019_vm15, %v7053_v6, %v6907_v4  ;;  %v8228_v28 = vsel %vm15980_vm12, %v8223_v25, %v8227_v26  ;;  %v8414_v50 = vsel %vm15971_vm5, %v8412_v34, %v8413_v33  ;;  %v8415_v36 = vrot.slane %v8413_v33, 4  ;;  %v11007_v25 = vld [vmem:[%s12066_s23 + $0xa8] ss:$0 sps:$4 sm:$0x77]  }
 0x533   : >> { %v7081_v3 = vsel %vm2019_vm15, %v7052_v27, %v6905_v31  ;;  %v8233_v42 = vrot.slane %v8232_v7, 4  ;;  %v8344_v39 = vmax.bf16 %v8228_v28, %v8144_v20  ;;  %v8563_v52 = vshrl.u32 %v8479_v12, 16  ;;  %v7588_v28 = vld [vmem:[%s15926_s24 + $0x4c] sm:$0x1] }
 0x534   : >> { %v8417_v17 = vsel %vm15971_vm5, %v8415_v36, %v8416_v46  ;;  %v7461_v22 = vshll.u32 %v16419_v56, 16  ;;  %v7464_v6 = vshrl.u32 %v16419_v56, 16  ;;  %v7470_v35 = vshll.u32 %v16422_v59, 16  ;;  %v6981_v8 = vpop.permute.xlu0 %6980 }
 0x535   : >> { %v8345_v62 = vmax.bf16 %v8233_v42, %v8145_v1  ;;  %v8480_v45 = vmax.bf16 %v8414_v50, %v8344_v39  ;;  %v10123_v51 = vrot.slane %v8563_v52, 11  ;;  %v7474_v60 = vshrl.u32 %v16422_v59, 16  ;;  %v6987_v29 = vpop.permute.xlu1 %6986  ;;  %v10067_v52 = vld [vmem:[%s15926_s24 + $0x54] sm:$0xf] }
 0x536   : >> { %v7111_v27 = vsel %vm3581_vm0, %v7079_v10, %v6983_v38  ;;  %v7463_v40 = vrot.slane %v7461_v22, 5  ;;  %v7466_v30 = vrot.slane %v7464_v6, 4  ;;  %v7472_v24 = vrot.slane %v7470_v35, 5  ;;  %v11008_v35 = vld [vmem:[%s12066_s23 + $0xb8] ss:$0 sps:$4 sm:$0x77]  }
 0x537   : >> { %v7156_v2 = vrot.slane %v7111_v27, 3  ;;  %v7109_v37 = vsel %vm3581_vm0, %v7077_v44, %v6981_v8  ;;  %v8481_v11 = vmax.bf16 %v8417_v17, %v8345_v62  ;;  %v8568_v21 = vshrl.u32 %v8480_v45, 16  ;;  %v10066_v8 = vld [vmem:[%s15926_s24 + $0x50] sm:$0x8] }
 0x538   : >> { %v7155_v49 = vrot.slane %v7109_v37, 3  ;;  %v8571_v48 = vshll.u32 %v8480_v45, 16  ;;  %v7467_v58 = vor.u32 %v7466_v30, %v7463_v40  ;;  %v7476_v61 = vrot.slane %v7474_v60, 4  ;;  %v6985_v63 = vpop.permute.xlu0 %6984  ;;  %v16458_v45 = vld [vmem:[%s15926_s24 + $0x58] sm:$0xf] }
 0x539   : >> { %v8570_v13 = vrot.slane %v8568_v21, 7  ;;  %v8577_v18 = vshrl.u32 %v8481_v11, 16  ;;  %v8580_v14 = vshll.u32 %v8481_v11, 16  ;;  %v7572_v10 = vmax.bf16 %v7463_v40, %v7369_v57  ;;  %v6719_v50 = vpop.permute.xlu1 %6718 }
 0x53a   : >> { %v7115_v26 = vsel %vm3581_vm0, %v7083_v53, %v6987_v29  ;;  %v7157_v1 = vsel %vm3633_vm2, %v7155_v49, %v7156_v2  ;;  %v7468_v34 = vrot.slane %v7467_v58, 4  ;;  %v7477_v44 = vor.u32 %v7476_v61, %v7472_v24  ;;  %v10082_v29 = vld [vmem:[%s15926_s24 + $0x5c] sm:$0x1] }
 0x53b   : >> { %v7159_v33 = vrot.slane %v7115_v26, 3  ;;  %v7113_v4 = vsel %vm3581_vm0, %v7081_v3, %v6985_v63  ;;  %10446 = vmatprep.mubr.msk.bf16.mxu1 %vm4404_vm1, %v7157_v1  ;;  %v8573_v20 = vor.u32 %v8571_v48, %v8570_v13  ;;  %v8575_v7 = vrot.slane %v8570_v13, 4 }
 0x53c   : >> { %v7158_v46 = vrot.slane %v7113_v4, 3  ;;  %v8579_v12 = vrot.slane %v8577_v18, 7  ;;  %v7473_v53 = vsel %vm15980_vm12, %v7468_v34, %v7472_v24  ;;  %v7478_v31 = vrot.slane %v7477_v44, 4  ;;  %v6717_v22 = vpop.permute.xlu0 %6716 }
 0x53d   : >> { %v8574_v36 = vsel %vm16133_vm13, %v10123_v51, %v8573_v20  ;;  %v7573_v42 = vmax.bf16 %v7473_v53, %v16419_v56  ;;  %v7646_v3 = vrot.slane %v16419_v56, 5  ;;  %v7648_v39 = vrot.slane %v16422_v59, 5  ;;  %v6723_v2 = vpop.permute.xlu1 %6722 }
 0x53e   : >> { %v7030_v17 = vsel %vm716_vm8, %v11007_v25, %v6719_v50  ;;  %v7160_v6 = vsel %vm3633_vm2, %v7158_v46, %v7159_v33  ;;  %v8582_v38 = vor.u32 %v8580_v14, %v8579_v12  ;;  %v7574_v62 = vmax.bf16 %v7478_v31, %v16422_v59 }
 0x53f   : >> { %v7027_v51 = vsel %vm716_vm8, %v15757_v9, %v6717_v22  ;;  %10447 = vmatmul.mubr.msk.bf16.gmra.mrb[0].mxu1 %vm4404_vm1, %v7160_v6  ;;  %v7647_v56 = vrot.slane %v7646_v3, 4  ;;  %v7650_v60 = vrot.slane %v7648_v39, 4  ;;  %v7651_v27 = vrot.slane %v7588_v28, 5  ;;  %v10102_v28 = vld [vmem:[%s15926_s24 + $0x68] sm:$0xf] }
 0x540   : >> { %v8583_v57 = vsel %vm16133_vm13, %v8575_v7, %v8582_v38  ;;  %v7710_v40 = vmax.bf16 %v7646_v3, %v7572_v10  ;;  %v7849_v30 = vshll.u32 %v10067_v52, 16  ;;  %v7852_v24 = vshrl.u32 %v10067_v52, 16  ;;  %v6721_v49 = vpop.permute.xlu0 %6720 }
 0x541   : >> { %v10132_v59 = vcombine.low %v8574_v36, %v8583_v57  ;;  %v7649_v37 = vsel %vm15971_vm5, %v7647_v56, %v7648_v39  ;;  %v7652_v9 = vsel %vm15971_vm5, %v7650_v60, %v7651_v27  ;;  %v7858_v11 = vshll.u32 %v16458_v45, 16  ;;  %v6755_v34 = vpop.permute.xlu1 %6754  ;;  %v10100_v39 = vld [vmem:[%s15926_s24 + $0x60] sm:$0x8] }
 0x542   : >> { %v7035_v21 = vsel %vm716_vm8, %v11008_v35, %v6723_v2  ;;  %v7711_v48 = vmax.bf16 %v7649_v37, %v7573_v42  ;;  %v7712_v58 = vmax.bf16 %v7652_v9, %v7574_v62  ;;  %v7760_v61 = vmax.bf16 %v10066_v8, %v7710_v40  ;;  %v10116_v40 = vld [vmem:[%s15926_s24 + $0x6c] sm:$0x1] }
 0x543   : >> { %v7032_v13 = vsel %vm716_vm8, %v15776_v55, %v6721_v49  ;;  %10461 = vmatmul.mubr.msk.bf16.gmra.mrb[28].mxu0 %vm716_vm8, %v10132_v59  ;;  %v7851_v18 = vrot.slane %v7849_v30, 5  ;;  %v7854_v14 = vrot.slane %v7852_v24, 4  ;;  %v7860_v10 = vrot.slane %v7858_v11, 5  ;;  %v10101_v55 = vld [vmem:[%s15926_s24 + $0x64] sm:$0xf] }
 0x544   : >> { %v7761_v26 = vmax.bf16 %v10067_v52, %v7711_v48  ;;  %v7762_v63 = vmax.bf16 %v16458_v45, %v7712_v58  ;;  %v7862_v1 = vshrl.u32 %v16458_v45, 16  ;;  %v8032_v25 = vrot.slane %v10067_v52, 5  ;;  %v6753_v12 = vpop.permute.xlu0 %6752 }
 0x545   : >> { %v7855_v44 = vor.u32 %v7854_v14, %v7851_v18  ;;  %v7960_v33 = vmax.bf16 %v7851_v18, %v7760_v61  ;;  %v8034_v4 = vrot.slane %v16458_v45, 5  ;;  %v8037_v20 = vrot.slane %v10082_v29, 5  ;;  %v6911_v38 = vpop.permute.xlu1 %6910 }
 0x546   : >> { %v7058_v7 = vsel %vm859_vm9, %v7032_v13, %v6755_v34  ;;  %v7059_v46 = vsel %vm859_vm9, %v7035_v21, %v6755_v34  ;;  %v7864_v53 = vrot.slane %v7862_v1, 4  ;;  %v8033_v31 = vrot.slane %v8032_v25, 4  ;;  %v16496_v13 = vld [vmem:[%s15926_s24 + $0x54] sm:$0xf] }
 0x547   : >> { %v7055_v50 = vsel %vm859_vm9, %v7027_v51, %v6753_v12  ;;  %v7056_v36 = vsel %vm859_vm9, %v7030_v17, %v6753_v12  ;;  %v7856_v42 = vrot.slane %v7855_v44, 4  ;;  %v8036_v3 = vrot.slane %v8034_v4, 4 }
 0x548   : >> { %v7865_v52 = vor.u32 %v7864_v53, %v7860_v10  ;;  %v8035_v22 = vsel %vm15971_vm5, %v8033_v31, %v8034_v4  ;;  %v8096_v6 = vmax.bf16 %v8032_v25, %v7960_v33  ;;  %v8235_v35 = vshll.u32 %v10101_v55, 16  ;;  %v6909_v60 = vpop.permute.xlu0 %6908 }
 0x549   : >> { %v7861_v62 = vsel %vm15980_vm12, %v7856_v42, %v7860_v10  ;;  %v8038_v45 = vsel %vm15971_vm5, %v8036_v3, %v8037_v20  ;;  %v8238_v51 = vshrl.u32 %v10101_v55, 16  ;;  %v8244_v56 = vshll.u32 %v10102_v28, 16  ;;  %v6915_v49 = vpop.permute.xlu1 %6914 }
 0x54a   : >> { %v7087_v17 = vsel %vm2019_vm15, %v7056_v36, %v6911_v38  ;;  %v7866_v27 = vrot.slane %v7865_v52, 4  ;;  %v7961_v8 = vmax.bf16 %v7861_v62, %v7761_v26  ;;  %v8146_v57 = vmax.bf16 %v10100_v39, %v8096_v6  ;;  %v7372_v39 = vld [vmem:[%s15926_s24 + $0x50] sm:$0x8]  ;;  %v16511_v52 = vld [vmem:[%s15926_s24 + $0x58] sm:$0xf] }
 0x54b   : >> { %v7085_v30 = vsel %vm2019_vm15, %v7055_v50, %v6909_v60  ;;  %v8237_v24 = vrot.slane %v8235_v35, 5  ;;  %v8240_v2 = vrot.slane %v8238_v51, 4  ;;  %v8246_v59 = vrot.slane %v8244_v56, 5 }
 0x54c   : >> { %v7962_v37 = vmax.bf16 %v7866_v27, %v7762_v63  ;;  %v8097_v9 = vmax.bf16 %v8035_v22, %v7961_v8  ;;  %v8248_v11 = vshrl.u32 %v10102_v28, 16  ;;  %v8418_v21 = vrot.slane %v10101_v55, 5  ;;  %v6913_v14 = vpop.permute.xlu0 %6912 }
 0x54d   : >> { %v8241_v48 = vor.u32 %v8240_v2, %v8237_v24  ;;  %v8346_v58 = vmax.bf16 %v8237_v24, %v8146_v57  ;;  %v8420_v61 = vrot.slane %v10102_v28, 5  ;;  %v8423_v29 = vrot.slane %v10116_v40, 5  ;;  %v6991_v53 = vpop.permute.xlu1 %6990 }
 0x54e   : >> { %v7091_v18 = vsel %vm2019_vm15, %v7059_v46, %v6915_v49  ;;  %v8098_v10 = vmax.bf16 %v8038_v45, %v7962_v37  ;;  %v8147_v26 = vmax.bf16 %v10101_v55, %v8097_v9  ;;  %v8250_v1 = vrot.slane %v8248_v11, 4 }
 0x54f   : >> { %v7089_v25 = vsel %vm2019_vm15, %v7058_v7, %v6913_v14  ;;  %v8242_v34 = vrot.slane %v8241_v48, 4  ;;  %v8419_v63 = vrot.slane %v8418_v21, 4  ;;  %v8422_v44 = vrot.slane %v8420_v61, 4 }
 0x550   : >> { %v8148_v33 = vmax.bf16 %v10102_v28, %v8098_v10  ;;  %v8251_v4 = vor.u32 %v8250_v1, %v8246_v59  ;;  %v8482_v20 = vmax.bf16 %v8418_v21, %v8346_v58  ;;  %v7480_v12 = vshll.u32 %v16496_v13, 16  ;;  %v6989_v36 = vpop.permute.xlu0 %6988 }
 0x551   : >> { %v8247_v46 = vsel %vm15980_vm12, %v8242_v34, %v8246_v59  ;;  %v8421_v55 = vsel %vm15971_vm5, %v8419_v63, %v8420_v61  ;;  %v8424_v7 = vsel %vm15971_vm5, %v8422_v44, %v8423_v29  ;;  %v7483_v31 = vshrl.u32 %v16496_v13, 16  ;;  %v6995_v60 = vpop.permute.xlu1 %6994 }
 0x552   : >> { %v7119_v50 = vsel %vm3581_vm0, %v7087_v17, %v6991_v53  ;;  %v8252_v28 = vrot.slane %v8251_v4, 4  ;;  %v8347_v42 = vmax.bf16 %v8247_v46, %v8147_v26  ;;  %v8585_v3 = vshrl.u32 %v8482_v20, 16 }
 0x553   : >> { %v7162_v22 = vrot.slane %v7119_v50, 3  ;;  %v7117_v6 = vsel %vm3581_vm0, %v7085_v30, %v6989_v36  ;;  %v7482_v35 = vrot.slane %v7480_v12, 5  ;;  %v7485_v38 = vrot.slane %v7483_v31, 4  ;;  %v10070_v12 = vld [vmem:[%s15926_s24 + $0x64] sm:$0xf] }
 0x554   : >> { %v7161_v62 = vrot.slane %v7117_v6, 3  ;;  %v8348_v45 = vmax.bf16 %v8252_v28, %v8148_v33  ;;  %v8483_v51 = vmax.bf16 %v8421_v55, %v8347_v42  ;;  %v10124_v56 = vrot.slane %v8585_v3, 11  ;;  %v6993_v24 = vpop.permute.xlu0 %6992  ;;  %v7589_v33 = vld [vmem:[%s15926_s24 + $0x5c] sm:$0x1]  ;;  %v10069_v42 = vld [vmem:[%s15926_s24 + $0x60] sm:$0x8] }
 0x555   : >> { %v7486_v27 = vor.u32 %v7485_v38, %v7482_v35  ;;  %v7489_v17 = vshll.u32 %v16511_v52, 16  ;;  %v7493_v8 = vshrl.u32 %v16511_v52, 16  ;;  %v7575_v57 = vmax.bf16 %v7482_v35, %v7372_v39  ;;  %v10071_v35 = vld [vmem:[%s15926_s24 + $0x68] sm:$0xf] }
 0x556   : >> { %v7123_v40 = vsel %vm3581_vm0, %v7091_v18, %v6995_v60  ;;  %v7163_v2 = vsel %vm3633_vm2, %v7161_v62, %v7162_v22  ;;  %v8484_v59 = vmax.bf16 %v8424_v7, %v8348_v45  ;;  %v8590_v30 = vshrl.u32 %v8483_v51, 16 }
 0x557   : >> { %v7165_v37 = vrot.slane %v7123_v40, 3  ;;  %v7121_v9 = vsel %vm3581_vm0, %v7089_v25, %v6993_v24  ;;  %10450 = vmatprep.mubr.msk.bf16.mxu1 %vm4404_vm1, %v7163_v2  ;;  %v8593_v11 = vshll.u32 %v8483_v51, 16  ;;  %v7487_v21 = vrot.slane %v7486_v27, 4 }
 0x558   : >> { %v7164_v49 = vrot.slane %v7121_v9, 3  ;;  %v8592_v48 = vrot.slane %v8590_v30, 7  ;;  %v8599_v58 = vshrl.u32 %v8484_v59, 16  ;;  %v8602_v61 = vshll.u32 %v8484_v59, 16  ;;  %v16522_v26 = vpop.permute.xlu0 %8877  ;;  %v16524_v1 = vpop.permute.xlu1 %8879  ;;  %v10083_v59 = vld [vmem:[%s15926_s24 + $0x6c] sm:$0x1] }
 0x559   : >> { %v7491_v29 = vrot.slane %v7489_v17, 5  ;;  %v7495_v18 = vrot.slane %v7493_v8, 4  ;;  %v7653_v14 = vrot.slane %v16496_v13, 5  ;;  %v7655_v10 = vrot.slane %v16511_v52, 5  ;;  %v10104_v9 = vld [vmem:[%s15926_s24 + $0x74] sm:$0xf] }
 0x55a   : >> { %v7166_v25 = vsel %vm3633_vm2, %v7164_v49, %v7165_v37  ;;  %v8595_v34 = vor.u32 %v8593_v11, %v8592_v48  ;;  %v8597_v63 = vrot.slane %v8592_v48, 4  ;;  %v8601_v44 = vrot.slane %v8599_v58, 7  ;;  %v10105_v49 = vld [vmem:[%s15926_s24 + $0x78] sm:$0xf] }
 0x55b   : >> { %10451 = vmatmul.mubr.msk.bf16.gmra.mrb[4].mxu1 %vm4404_vm1, %v7166_v25  ;;  %v7492_v4 = vsel %vm15980_vm12, %v7487_v21, %v7491_v29  ;;  %v7496_v20 = vor.u32 %v7495_v18, %v7491_v29  ;;  %v7654_v7 = vrot.slane %v7653_v14, 4  ;;  %v7657_v50 = vrot.slane %v7655_v10, 4  ;;  %v10103_v25 = vld [vmem:[%s15926_s24 + $0x70] sm:$0x8] }
 0x55c   : >> { %v8596_v53 = vsel %vm16133_vm13, %v10124_v56, %v8595_v34  ;;  %v8604_v46 = vor.u32 %v8602_v61, %v8601_v44  ;;  %v7576_v55 = vmax.bf16 %v7492_v4, %v16496_v13  ;;  %v7658_v36 = vrot.slane %v7589_v33, 5  ;;  %v16536_v3 = vpop.permute.xlu0 %8881  ;;  %v16538_v39 = vpop.permute.xlu1 %8883 }
 0x55d   : >> { %v7497_v31 = vrot.slane %v7496_v20, 4  ;;  %v7713_v28 = vmax.bf16 %v7653_v14, %v7575_v57  ;;  %v7656_v6 = vsel %vm15971_vm5, %v7654_v7, %v7655_v10  ;;  %v7868_v38 = vshll.u32 %v10070_v12, 16 }
 0x55e   : >> { %v8605_v22 = vsel %vm16133_vm13, %v8597_v63, %v8604_v46  ;;  %v7871_v13 = vshrl.u32 %v10070_v12, 16  ;;  %v7659_v51 = vsel %vm15971_vm5, %v7657_v50, %v7658_v36  ;;  %v7714_v56 = vmax.bf16 %v7656_v6, %v7576_v55 }
 0x55f   : >> { %v10133_v62 = vcombine.low %v8596_v53, %v8605_v22  ;;  %v7577_v45 = vmax.bf16 %v7497_v31, %v16511_v52  ;;  %v7763_v60 = vmax.bf16 %v10069_v42, %v7713_v28  ;;  %v7870_v27 = vrot.slane %v7868_v38, 5 }
 0x560   : >> { %v7873_v17 = vrot.slane %v7871_v13, 4  ;;  %v7877_v8 = vshll.u32 %v10071_v35, 16  ;;  %v7881_v57 = vshrl.u32 %v10071_v35, 16  ;;  %v16549_v40 = vpop.permute.xlu0 %8885  ;;  %v8039_v30 = vrot.slane %v10070_v12, 5 }
 0x561   : >> { %10464 = vmatprep.mubr.msk.bf16.mxu0 %vm716_vm8, %v10133_v62  ;;  %v16551_v24 = vpop.permute.xlu1 %8887  ;;  %v7715_v2 = vmax.bf16 %v7659_v51, %v7577_v45  ;;  %v7963_v52 = vmax.bf16 %v7870_v27, %v7763_v60  ;;  %v8041_v37 = vrot.slane %v10071_v35, 5  ;;  %v7764_v11 = vmax.bf16 %v10070_v12, %v7714_v56  ;;  %v10117_v51 = vld [vmem:[%s15926_s24 + $0x7c] sm:$0x1] }
 0x562   : >> { %v7874_v21 = vor.u32 %v7873_v17, %v7870_v27  ;;  %v7879_v48 = vrot.slane %v7877_v8, 5  ;;  %v7883_v58 = vrot.slane %v7881_v57, 4  ;;  %v8040_v61 = vrot.slane %v8039_v30, 4  ;;  %v16573_v17 = vld [vmem:[%s15926_s24 + $0x64] sm:$0xf] }
 0x563   : >> { %v8043_v29 = vrot.slane %v8041_v37, 4  ;;  %v8044_v14 = vrot.slane %v10083_v59, 5  ;;  %v8099_v10 = vmax.bf16 %v8039_v30, %v7963_v52  ;;  %v8254_v34 = vshll.u32 %v10104_v9, 16 }
 0x564   : >> { %v7875_v18 = vrot.slane %v7874_v21, 4  ;;  %v7765_v33 = vmax.bf16 %v10071_v35, %v7715_v2  ;;  %v7884_v4 = vor.u32 %v7883_v58, %v7879_v48  ;;  %v8257_v20 = vshrl.u32 %v10104_v9, 16 }
 0x565   : >> { %v16557_v63 = vpop.permute.xlu0 %8889  ;;  %v16559_v44 = vpop.permute.xlu1 %8891  ;;  %v8263_v53 = vshll.u32 %v10105_v49, 16  ;;  %v8042_v46 = vsel %vm15971_vm5, %v8040_v61, %v8041_v37  ;;  %v8045_v55 = vsel %vm15971_vm5, %v8043_v29, %v8044_v14  ;;  %v8149_v50 = vmax.bf16 %v10103_v25, %v8099_v10  ;;  %v16580_v61 = vld [vmem:[%s15926_s24 + $0x68] sm:$0xf]  ;;  %v7375_v25 = vld [vmem:[%s15926_s24 + $0x60] sm:$0x8] }
 0x566   : >> { %v7880_v12 = vsel %vm15980_vm12, %v7875_v18, %v7879_v48  ;;  %v7885_v7 = vrot.slane %v7884_v4, 4  ;;  %v8256_v36 = vrot.slane %v8254_v34, 5  ;;  %v8259_v28 = vrot.slane %v8257_v20, 4  ;;  %v8858_v4 = vld [vmem:[%s16592_s29 + $0x68] sm:$0xff] }
 0x567   : >> { %v7964_v31 = vmax.bf16 %v7880_v12, %v7764_v11  ;;  %v8265_v42 = vrot.slane %v8263_v53, 5  ;;  %v8267_v22 = vshrl.u32 %v10105_v49, 16  ;;  %v8425_v6 = vrot.slane %v10104_v9, 5 }
 0x568   : >> { %v7965_v13 = vmax.bf16 %v7885_v7, %v7765_v33  ;;  %v8349_v45 = vmax.bf16 %v8256_v36, %v8149_v50  ;;  %v8427_v56 = vrot.slane %v10105_v49, 5  ;;  %v8260_v60 = vor.u32 %v8259_v28, %v8256_v36 }
 0x569   : >> { %v16567_v35 = vpop.permute.xlu0 %8893  ;;  %v8100_v62 = vmax.bf16 %v8042_v46, %v7964_v31  ;;  %v8269_v27 = vrot.slane %v8267_v22, 4  ;;  %v8426_v2 = vrot.slane %v8425_v6, 4  ;;  %v8430_v37 = vrot.slane %v10117_v51, 5 }
 0x56a   : >> { %v16569_v38 = vpop.permute.xlu1 %8895  ;;  %v8101_v8 = vmax.bf16 %v8045_v55, %v7965_v13  ;;  %v8429_v52 = vrot.slane %v8427_v56, 4  ;;  %v8261_v59 = vrot.slane %v8260_v60, 4  ;;  %v8485_v58 = vmax.bf16 %v8425_v6, %v8349_v45 }
 0x56b   : >> { %v8150_v57 = vmax.bf16 %v10104_v9, %v8100_v62  ;;  %v8270_v30 = vor.u32 %v8269_v27, %v8265_v42  ;;  %v7499_v29 = vshll.u32 %v16573_v17, 16  ;;  %v7502_v18 = vshrl.u32 %v16573_v17, 16  ;;  %v7590_v27 = vld [vmem:[%s15926_s24 + $0x6c] sm:$0x1] }
 0x56c   : >> { %v8151_v48 = vmax.bf16 %v10105_v49, %v8101_v8  ;;  %v8266_v9 = vsel %vm15980_vm12, %v8261_v59, %v8265_v42  ;;  %v8428_v10 = vsel %vm15971_vm5, %v8426_v2, %v8427_v56  ;;  %v8431_v33 = vsel %vm15971_vm5, %v8429_v52, %v8430_v37  ;;  %v8857_v49 = vld [vmem:[%s16592_s29 + $0x60] sm:$0xff] }
 0x56d   : >> { %v16575_v11 = vpop.permute.xlu0 %8897  ;;  %v8271_v14 = vrot.slane %v8270_v30, 4  ;;  %v8350_v34 = vmax.bf16 %v8266_v9, %v8150_v57  ;;  %v7501_v20 = vrot.slane %v7499_v29, 5  ;;  %v7504_v12 = vrot.slane %v7502_v18, 4  ;;  %v10073_v9 = vld [vmem:[%s15926_s24 + $0x74] sm:$0xf] }
 0x56e   : >> { %v16577_v21 = vpop.permute.xlu1 %8899  ;;  %v7508_v46 = vshll.u32 %v16580_v61, 16  ;;  %v7512_v55 = vshrl.u32 %v16580_v61, 16  ;;  %v8607_v31 = vshrl.u32 %v8485_v58, 16  ;;  %v7660_v42 = vrot.slane %v16573_v17, 5 }
 0x56f   : >> { %v8351_v53 = vmax.bf16 %v8271_v14, %v8151_v48  ;;  %v8486_v7 = vmax.bf16 %v8428_v10, %v8350_v34  ;;  %v7578_v28 = vmax.bf16 %v7501_v20, %v7375_v25  ;;  %v7505_v62 = vor.u32 %v7504_v12, %v7501_v20 }
 0x570   : >> { %v7510_v56 = vrot.slane %v7508_v46, 5  ;;  %v7514_v60 = vrot.slane %v7512_v55, 4  ;;  %v7661_v52 = vrot.slane %v7660_v42, 4  ;;  %v10125_v59 = vrot.slane %v8607_v31, 11 }
 0x571   : >> { %v8487_v22 = vmax.bf16 %v8431_v33, %v8351_v53  ;;  %v8612_v45 = vshrl.u32 %v8486_v7, 16  ;;  %v8615_v51 = vshll.u32 %v8486_v7, 16  ;;  %v7506_v2 = vrot.slane %v7505_v62, 4  ;;  %v10072_v33 = vld [vmem:[%s15926_s24 + $0x70] sm:$0x8] }
 0x572   : >> { %v8902_v50 = vpop.permute.xlu0 %8901  ;;  %v7515_v37 = vor.u32 %v7514_v60, %v7510_v56  ;;  %v7662_v48 = vrot.slane %v16580_v61, 5  ;;  %v7665_v18 = vrot.slane %v7590_v27, 5  ;;  %v7716_v53 = vmax.bf16 %v7660_v42, %v7578_v28  ;;  %v10074_v7 = vld [vmem:[%s15926_s24 + $0x78] sm:$0xf]  ;;  %v10084_v62 = vld [vmem:[%s15926_s24 + $0x7c] sm:$0x1] }
 0x573   : >> { %v8904_v36 = vpop.permute.xlu1 %8903  ;;  %v16600_v6 = vsel %vm859_vm9, %v8857_v49, %v8902_v50  ;;  %v8621_v8 = vshrl.u32 %v8487_v22, 16  ;;  %v8624_v57 = vshll.u32 %v8487_v22, 16  ;;  %v8614_v30 = vrot.slane %v8612_v45, 7 }
 0x574   : >> { %v16603_v13 = vsel %vm859_vm9, %v8858_v4, %v8904_v36  ;;  %v7511_v29 = vsel %vm15980_vm12, %v7506_v2, %v7510_v56  ;;  %v7516_v25 = vrot.slane %v7515_v37, 4  ;;  %v7663_v4 = vsel %vm15971_vm5, %v7661_v52, %v7662_v48 }
 0x575   : >> { %v8623_v58 = vrot.slane %v8621_v8, 7  ;;  %v8617_v14 = vor.u32 %v8615_v51, %v8614_v30  ;;  %v8619_v10 = vrot.slane %v8614_v30, 4  ;;  %v7579_v34 = vmax.bf16 %v7511_v29, %v16573_v17  ;;  %v10107_v8 = vld [vmem:[%s15926_s24 + $0x84] sm:$0xf]  ;;  %v10108_v30 = vld [vmem:[%s15926_s24 + $0x88] sm:$0xf] }
 0x576   : >> { %v7664_v20 = vrot.slane %v7662_v48, 4  ;;  %v7580_v46 = vmax.bf16 %v7516_v25, %v16580_v61  ;;  %v7887_v31 = vshll.u32 %v10073_v9, 16  ;;  %v7766_v36 = vmax.bf16 %v10072_v33, %v7716_v53 }
 0x577   : >> { %v8626_v49 = vor.u32 %v8624_v57, %v8623_v58  ;;  %v8618_v12 = vsel %vm16133_vm13, %v10125_v59, %v8617_v14  ;;  %v7717_v55 = vmax.bf16 %v7663_v4, %v7579_v34  ;;  %v7890_v22 = vshrl.u32 %v10073_v9, 16 }
 0x578   : >> { %v7666_v17 = vsel %vm15971_vm5, %v7664_v20, %v7665_v18  ;;  %v7889_v51 = vrot.slane %v7887_v31, 5  ;;  %v7896_v56 = vshll.u32 %v10074_v7, 16  ;;  %v7900_v60 = vshrl.u32 %v10074_v7, 16  ;;  %v10106_v18 = vld [vmem:[%s15926_s24 + $0x80] sm:$0x8] }
 0x579   : >> { %v8627_v50 = vsel %vm16133_vm13, %v8619_v10, %v8626_v49  ;;  %v7718_v42 = vmax.bf16 %v7666_v17, %v7580_v46  ;;  %v7767_v45 = vmax.bf16 %v10073_v9, %v7717_v55  ;;  %v7892_v61 = vrot.slane %v7890_v22, 4  ;;  %v10118_v55 = vld [vmem:[%s15926_s24 + $0x8c] sm:$0x1] }
 0x57a   : >> { %v10134_v28 = vcombine.low %v8618_v12, %v8627_v50  ;;  %v8046_v27 = vrot.slane %v10073_v9, 5  ;;  %v7966_v2 = vmax.bf16 %v7889_v51, %v7766_v36  ;;  %v8048_v52 = vrot.slane %v10074_v7, 5 }
 0x57b   : >> { %v7768_v57 = vmax.bf16 %v10074_v7, %v7718_v42  ;;  %v8051_v59 = vrot.slane %v10084_v62, 5  ;;  %v7893_v37 = vor.u32 %v7892_v61, %v7889_v51  ;;  %v7898_v48 = vrot.slane %v7896_v56, 5  ;;  %v16635_v42 = vld [vmem:[%s15926_s24 + $0x74] sm:$0xf] }
 0x57c   : >> { %10465 = vmatmul.mubr.msk.bf16.gmra.mrb[32].mxu0 %vm716_vm8, %v10134_v28  ;;  %v7902_v58 = vrot.slane %v7900_v60, 4  ;;  %v8047_v29 = vrot.slane %v8046_v27, 4  ;;  %v8050_v14 = vrot.slane %v8048_v52, 4  ;;  %v8102_v10 = vmax.bf16 %v8046_v27, %v7966_v2 }
 0x57d   : >> { %v8273_v25 = vshll.u32 %v10107_v8, 16  ;;  %v8276_v34 = vshrl.u32 %v10107_v8, 16  ;;  %v7894_v33 = vrot.slane %v7893_v37, 4  ;;  %v8282_v4 = vshll.u32 %v10108_v30, 16 }
 0x57e   : >> { %v7903_v9 = vor.u32 %v7902_v58, %v7898_v48  ;;  %v8049_v49 = vsel %vm15971_vm5, %v8047_v29, %v8048_v52  ;;  %v8052_v20 = vsel %vm15971_vm5, %v8050_v14, %v8051_v59  ;;  %v8152_v53 = vmax.bf16 %v10106_v18, %v8102_v10 }
 0x57f   : >> { %v8275_v12 = vrot.slane %v8273_v25, 5  ;;  %v8278_v46 = vrot.slane %v8276_v34, 4  ;;  %v7899_v7 = vsel %vm15980_vm12, %v7894_v33, %v7898_v48  ;;  %v8284_v50 = vrot.slane %v8282_v4, 5  ;;  %v7378_v25 = vld [vmem:[%s15926_s24 + $0x70] sm:$0x8] }
 0x580   : >> { %v7904_v31 = vrot.slane %v7903_v9, 4  ;;  %v8286_v17 = vshrl.u32 %v10108_v30, 16  ;;  %v7967_v36 = vmax.bf16 %v7899_v7, %v7767_v45  ;;  %v8432_v28 = vrot.slane %v10107_v8, 5  ;;  %v7380_v45 = vld [vmem:[%s15926_s24 + $0x78] sm:$0xf] }
 0x581   : >> { %v8279_v22 = vor.u32 %v8278_v46, %v8275_v12  ;;  %v8352_v62 = vmax.bf16 %v8275_v12, %v8152_v53  ;;  %v8434_v56 = vrot.slane %v10108_v30, 5  ;;  %v8437_v60 = vrot.slane %v10118_v55, 5 }
 0x582   : >> { %v7968_v51 = vmax.bf16 %v7904_v31, %v7768_v57  ;;  %v8288_v61 = vrot.slane %v8286_v17, 4  ;;  %v8103_v27 = vmax.bf16 %v8049_v49, %v7967_v36  ;;  %v8433_v52 = vrot.slane %v8432_v28, 4 }
 0x583   : >> { %v8280_v2 = vrot.slane %v8279_v22, 4  ;;  %v8488_v59 = vmax.bf16 %v8432_v28, %v8352_v62  ;;  %v8436_v58 = vrot.slane %v8434_v56, 4  ;;  %v7518_v29 = vshll.u32 %v16635_v42, 16 }
 0x584   : >> { %v8104_v37 = vmax.bf16 %v8052_v20, %v7968_v51  ;;  %v8289_v48 = vor.u32 %v8288_v61, %v8284_v50  ;;  %v8153_v18 = vmax.bf16 %v10107_v8, %v8103_v27  ;;  %v8435_v57 = vsel %vm15971_vm5, %v8433_v52, %v8434_v56  ;;  %v7591_v8 = vld [vmem:[%s15926_s24 + $0x7c] sm:$0x1] }
 0x585   : >> { %v8285_v14 = vsel %vm15980_vm12, %v8280_v2, %v8284_v50  ;;  %v8629_v10 = vshrl.u32 %v8488_v59, 16  ;;  %v8438_v9 = vsel %vm15971_vm5, %v8436_v58, %v8437_v60  ;;  %v7520_v49 = vrot.slane %v7518_v29, 5  ;;  %v10076_v2 = vld [vmem:[%s15926_s24 + $0x84] sm:$0xf]  ;;  %v10075_v58 = vld [vmem:[%s15926_s24 + $0x80] sm:$0x8] }
 0x586   : >> { %v8154_v34 = vmax.bf16 %v10108_v30, %v8104_v37  ;;  %v8290_v33 = vrot.slane %v8289_v48, 4  ;;  %v8353_v4 = vmax.bf16 %v8285_v14, %v8153_v18  ;;  %v7521_v53 = vshrl.u32 %v16635_v42, 16 }
 0x587   : >> { %v10126_v20 = vrot.slane %v8629_v10, 11  ;;  %v7527_v12 = vshll.u32 %v7380_v45, 16  ;;  %v7531_v55 = vshrl.u32 %v7380_v45, 16  ;;  %v7581_v7 = vmax.bf16 %v7520_v49, %v7378_v25 }
 0x588   : >> { %v8354_v46 = vmax.bf16 %v8290_v33, %v8154_v34  ;;  %v7667_v31 = vrot.slane %v16635_v42, 5  ;;  %v8489_v50 = vmax.bf16 %v8435_v57, %v8353_v4  ;;  %v7523_v17 = vrot.slane %v7521_v53, 4  ;;  %v10077_v34 = vld [vmem:[%s15926_s24 + $0x88] sm:$0xf] }
 0x589   : >> { %v7529_v30 = vrot.slane %v7527_v12, 5  ;;  %v7669_v36 = vrot.slane %v7380_v45, 5  ;;  %v7533_v62 = vrot.slane %v7531_v55, 4  ;;  %v7672_v51 = vrot.slane %v7591_v8, 5 }
 0x58a   : >> { %v8490_v22 = vmax.bf16 %v8438_v9, %v8354_v46  ;;  %v7668_v28 = vrot.slane %v7667_v31, 4  ;;  %v8634_v61 = vshrl.u32 %v8489_v50, 16  ;;  %v8637_v56 = vshll.u32 %v8489_v50, 16 }
 0x58b   : >> { %v7524_v60 = vor.u32 %v7523_v17, %v7520_v49  ;;  %v7671_v27 = vrot.slane %v7669_v36, 4  ;;  %v7534_v37 = vor.u32 %v7533_v62, %v7529_v30  ;;  %v7719_v57 = vmax.bf16 %v7667_v31, %v7581_v7 }
 0x58c   : >> { %v8643_v52 = vshrl.u32 %v8490_v22, 16  ;;  %v8646_v59 = vshll.u32 %v8490_v22, 16  ;;  %v7670_v48 = vsel %vm15971_vm5, %v7668_v28, %v7669_v36  ;;  %v8636_v29 = vrot.slane %v8634_v61, 7  ;;  %v10110_v61 = vld [vmem:[%s15926_s24 + $0x94] sm:$0xf] }
 0x58d   : >> { %v7525_v18 = vrot.slane %v7524_v60, 4  ;;  %v7673_v14 = vsel %vm15971_vm5, %v7671_v27, %v7672_v51  ;;  %v7535_v25 = vrot.slane %v7534_v37, 4  ;;  %v7906_v33 = vshll.u32 %v10076_v2, 16  ;;  %v10111_v37 = vld [vmem:[%s15926_s24 + $0x98] sm:$0xf] }
 0x58e   : >> { %v8645_v10 = vrot.slane %v8643_v52, 7  ;;  %v7909_v9 = vshrl.u32 %v10076_v2, 16  ;;  %v8639_v49 = vor.u32 %v8637_v56, %v8636_v29  ;;  %v8641_v4 = vrot.slane %v8636_v29, 4 }
 0x58f   : >> { %v7530_v53 = vsel %vm15980_vm12, %v7525_v18, %v7529_v30  ;;  %v7769_v12 = vmax.bf16 %v10075_v58, %v7719_v57  ;;  %v7583_v55 = vmax.bf16 %v7535_v25, %v7380_v45  ;;  %v7908_v50 = vrot.slane %v7906_v33, 5  ;;  %v10085_v30 = vld [vmem:[%s15926_s24 + $0x8c] sm:$0x1] }
 0x590   : >> { %v8648_v8 = vor.u32 %v8646_v59, %v8645_v10  ;;  %v7582_v46 = vmax.bf16 %v7530_v53, %v16635_v42  ;;  %v8640_v7 = vsel %vm16133_vm13, %v10126_v20, %v8639_v49  ;;  %v7911_v31 = vrot.slane %v7909_v9, 4 }
 0x591   : >> { %v7915_v17 = vshll.u32 %v10077_v34, 16  ;;  %v7919_v36 = vshrl.u32 %v10077_v34, 16  ;;  %v7721_v28 = vmax.bf16 %v7673_v14, %v7583_v55  ;;  %v7969_v51 = vmax.bf16 %v7908_v50, %v7769_v12 }
 0x592   : >> { %v8649_v22 = vsel %vm16133_vm13, %v8641_v4, %v8648_v8  ;;  %v7720_v62 = vmax.bf16 %v7670_v48, %v7582_v46  ;;  %v7912_v42 = vor.u32 %v7911_v31, %v7908_v50  ;;  %v8053_v20 = vrot.slane %v10076_v2, 5  ;;  %v10109_v48 = vld [vmem:[%s15926_s24 + $0x90] sm:$0x8]  ;;  %v10119_v31 = vld [vmem:[%s15926_s24 + $0x9c] sm:$0x1]  ;;  %s11134_s24 = smov 24  }
 0x593   : >> { %v10135_v56 = vcombine.low %v8640_v7, %v8649_v22  ;;  %v7917_v45 = vrot.slane %v7915_v17, 5  ;;  %v7921_v60 = vrot.slane %v7919_v36, 4  ;;  %v7771_v52 = vmax.bf16 %v10077_v34, %v7721_v28 }
 0x594   : >> { %v7770_v27 = vmax.bf16 %v10076_v2, %v7720_v62  ;;  %v8055_v59 = vrot.slane %v10077_v34, 5  ;;  %v7913_v58 = vrot.slane %v7912_v42, 4  ;;  %v8058_v18 = vrot.slane %v10085_v30, 5 }
 0x595   : >> { %10468 = vmatprep.mubr.msk.bf16.mxu0 %vm716_vm8, %v10135_v56  ;;  %v7922_v29 = vor.u32 %v7921_v60, %v7917_v45  ;;  %v8292_v14 = vshll.u32 %v10110_v61, 16  ;;  %v8054_v57 = vrot.slane %v8053_v20, 4  ;;  %v8105_v25 = vmax.bf16 %v8053_v20, %v7969_v51 }
 0x596   : >> { %v8057_v10 = vrot.slane %v8055_v59, 4  ;;  %v8295_v33 = vshrl.u32 %v10110_v61, 16  ;;  %v7918_v9 = vsel %vm15980_vm12, %v7913_v58, %v7917_v45  ;;  %v8301_v2 = vshll.u32 %v10111_v37, 16 }
 0x597   : >> { %v7923_v49 = vrot.slane %v7922_v29, 4  ;;  %v8294_v4 = vrot.slane %v8292_v14, 5  ;;  %v7970_v34 = vmax.bf16 %v7918_v9, %v7770_v27  ;;  %v8056_v53 = vsel %vm15971_vm5, %v8054_v57, %v8055_v59 }
 0x598   : >> { %v8059_v12 = vsel %vm15971_vm5, %v8057_v10, %v8058_v18  ;;  %v8155_v8 = vmax.bf16 %v10109_v48, %v8105_v25  ;;  %v8297_v55 = vrot.slane %v8295_v33, 4  ;;  %v8303_v50 = vrot.slane %v8301_v2, 5 }
 0x599   : >> { %v7971_v46 = vmax.bf16 %v7923_v49, %v7771_v52  ;;  %v8305_v7 = vshrl.u32 %v10111_v37, 16  ;;  %v8106_v17 = vmax.bf16 %v8056_v53, %v7970_v34  ;;  %v8439_v22 = vrot.slane %v10110_v61, 5 }
 0x59a   : >> { %v8355_v36 = vmax.bf16 %v8294_v4, %v8155_v8  ;;  %v8441_v62 = vrot.slane %v10111_v37, 5  ;;  %v8298_v51 = vor.u32 %v8297_v55, %v8294_v4  ;;  %v8444_v60 = vrot.slane %v10119_v31, 5 }
 0x59b   : >> { %v8107_v28 = vmax.bf16 %v8059_v12, %v7971_v46  ;;  %v8307_v30 = vrot.slane %v8305_v7, 4  ;;  %v8156_v56 = vmax.bf16 %v10110_v61, %v8106_v17  ;;  %v8440_v42 = vrot.slane %v8439_v22, 4 }
 0x59c   : >> { %v8443_v45 = vrot.slane %v8441_v62, 4  ;;  %v8299_v20 = vrot.slane %v8298_v51, 4  ;;  %v8491_v58 = vmax.bf16 %v8439_v22, %v8355_v36  ;;  %v16696_v36 = vld [vmem:[%s16980_s6] ss:$0 sm:$0xff]  ;;  %vm9104_vm15 = vcmask 261120  }
 0x59d   : >> { %v8157_v27 = vmax.bf16 %v10111_v37, %v8107_v28  ;;  %v8308_v59 = vor.u32 %v8307_v30, %v8303_v50  ;;  %v8442_v18 = vsel %vm15971_vm5, %v8440_v42, %v8441_v62 }
 0x59e   : >> { %v8304_v52 = vsel %vm15980_vm12, %v8299_v20, %v8303_v50  ;;  %v8445_v14 = vsel %vm15971_vm5, %v8443_v45, %v8444_v60  ;;  %v8651_v10 = vshrl.u32 %v8491_v58, 16 }
 0x59f   : >> { %v8309_v29 = vrot.slane %v8308_v59, 4  ;;  %v8356_v48 = vmax.bf16 %v8304_v52, %v8156_v56 }
 0x5a0   : >> { %v10127_v4 = vrot.slane %v8651_v10, 11 }
 0x5a1   : >> { %v8357_v57 = vmax.bf16 %v8309_v29, %v8157_v27  ;;  %v8492_v61 = vmax.bf16 %v8442_v18, %v8356_v48 }
 0x5a3   : >> { %v8493_v25 = vmax.bf16 %v8445_v14, %v8357_v57  ;;  %v8656_v33 = vshrl.u32 %v8492_v61, 16  ;;  %v8659_v37 = vshll.u32 %v8492_v61, 16 }
 0x5a5   : >> { %v8665_v9 = vshrl.u32 %v8493_v25, 16  ;;  %v8668_v49 = vshll.u32 %v8493_v25, 16  ;;  %v8658_v2 = vrot.slane %v8656_v33, 7 }
 0x5a7   : >> { %v8667_v32 = vrot.slane %v8665_v9, 7  ;;  %v8661_v34 = vor.u32 %v8659_v37, %v8658_v2  ;;  %v8663_v53 = vrot.slane %v8658_v2, 4 }
 0x5a9   : >> { %v8670_v12 = vor.u32 %v8668_v49, %v8667_v32  ;;  %v8662_v8 = vsel %vm16133_vm13, %v10127_v4, %v8661_v34 }
 0x5ab   : >> { %v8671_v16 = vsel %vm16133_vm13, %v8663_v53, %v8670_v12 }
 0x5ac   : >> { %v10136_v46 = vcombine.low %v8662_v8, %v8671_v16 }
 0x5ae   : >> { %10469 = vmatmul.mubr.msk.bf16.gmra.mrb[36].mxu0 %vm716_vm8, %v10136_v46 }
 0x5d8   : >> { %v16686_v55 = vpop.f32.mrb[24].mxu0 }
 0x5d9   : >> { %v16688_v50 = vpop.f32.mrb[25].mxu0 }
 0x5da   : >> { %v10440_v7 = vpop.f32.mrb[8].mxu1  ;;  %v16690_v31 = vpop.f32.mrb[26].mxu0 }
 0x5db   : >> { %v10478_v17 = vadd.f32 %v10440_v7, %v16074_v23  ;;  %v7237_v22 = vpop.f32.mrb[9].mxu1  ;;  %v16698_v43 = vpop.f32.mrb[27].mxu0 }
 0x5dc   : >> { %v10479_v62 = vadd.f32 %v7237_v22, %v16076_v41  ;;  %v10441_v28 = vpop.f32.mrb[10].mxu1 }
 0x5dd   : >> { %v10480_v51 = vadd.f32 %v10441_v28, %v16084_v47  ;;  %v7240_v30 = vpop.f32.mrb[11].mxu1  ;;  %v7325_v23 = vadd.f32 %v10478_v17, %v16696_v36 }
 0x5de   : >> { %v7323_v56 = vadd.f32 %v10479_v62, %v16696_v36  ;;  %v10481_v42 = vadd.f32 %v7240_v30, %v16086_v15 }
 0x5df   : >> { %v7326_v27 = vadd.f32 %v10480_v51, %v16696_v36  ;;  %v7341_v59 = vmax.f32 %v7325_v23, 0.0 }
 0x5e0   : >> { %v7339_v45 = vmax.f32 %v7323_v56, 0.0  ;;  %v7324_v60 = vadd.f32 %v10481_v42, %v16696_v36  ;;  %v16735_v42 = vld [vmem:[%s16982_s8] ss:$0 sm:$0xff] }
 0x5e1   : >> { %v7342_v41 = vmax.f32 %v7326_v27, 0.0 }
 0x5e2   : >> { %v7340_v20 = vmax.f32 %v7324_v60, 0.0  ;;  %8941 = vrot.lane.b32.xlu0 %v7339_v45, %s11133_s16 }
 0x5e4   : >> { %8943 = vrot.lane.b32.xlu1 %v7340_v20, %s11133_s16 }
 0x5e6   : >> { %8945 = vrot.lane.b32.xlu0 %v7341_v59, %s11133_s16  ;;  %v8766_v59 = vadd.f32 %v16735_v42, %v16688_v50 }
 0x5e8   : >> { %8947 = vrot.lane.b32.xlu1 %v7342_v41, %s11133_s16 }
 0x5f6   : >> { %v10444_v47 = vpop.f32.mrb[12].mxu1 }
 0x5f7   : >> { %v10482_v15 = vadd.f32 %v10444_v47, %v16111_v19  ;;  %v7253_v58 = vpop.f32.mrb[13].mxu1 }
 0x5f8   : >> { %v10483_v52 = vadd.f32 %v7253_v58, %v16119_v0  ;;  %v10445_v29 = vpop.f32.mrb[14].mxu1  ;;  %v8769_v58 = vadd.f32 %v16735_v42, %v16698_v43 }
 0x5f9   : >> { %v10484_v18 = vadd.f32 %v10445_v29, %v16126_v54  ;;  %v7256_v48 = vpop.f32.mrb[15].mxu1  ;;  %v7329_v61 = vadd.f32 %v10482_v15, %v16696_v36  ;;  %v8828_v15 = vmax.f32 %v8766_v59, 0.0 }
 0x5fa   : >> { %v7327_v14 = vadd.f32 %v10483_v52, %v16696_v36  ;;  %v10485_v57 = vadd.f32 %v7256_v48, %v16129_v5  ;;  %v8774_v52 = vadd.f32 %v16686_v55, %v16735_v42  ;;  %v8829_v29 = vmax.f32 %v8769_v58, 0.0 }
 0x5fb   : >> { %v7330_v33 = vadd.f32 %v10484_v18, %v16696_v36  ;;  %v7345_v19 = vmax.f32 %v7329_v61, 0.0 }
 0x5fc   : >> { %v7343_v10 = vmax.f32 %v7327_v14, 0.0  ;;  %v7328_v25 = vadd.f32 %v10485_v57, %v16696_v36  ;;  %v8830_v18 = vmax.f32 %v8774_v52, 0.0 }
 0x5fd   : >> { %v7346_v0 = vmax.f32 %v7330_v33, 0.0 }
 0x5fe   : >> { %v7344_v37 = vmax.f32 %v7328_v25, 0.0  ;;  %8949 = vrot.lane.b32.xlu0 %v7343_v10, %s11133_s16 }
 0x600   : >> { %8951 = vrot.lane.b32.xlu1 %v7344_v37, %s11133_s16 }
 0x602   : >> { %8953 = vrot.lane.b32.xlu0 %v7345_v19, %s11133_s16 }
 0x604   : >> { %8955 = vrot.lane.b32.xlu1 %v7346_v0, %s11133_s16 }
 0x612   : >> { %v10448_v54 = vpop.f32.mrb[0].mxu1 }
 0x613   : >> { %v7269_v5 = vpop.f32.mrb[1].mxu1  ;;  %v7333_v2 = vadd.f32 %v10448_v54, %v16696_v36 }
 0x614   : >> { %v7331_v9 = vadd.f32 %v16696_v36, %v7269_v5  ;;  %v10449_v49 = vpop.f32.mrb[2].mxu1 }
 0x615   : >> { %v7272_v4 = vpop.f32.mrb[3].mxu1  ;;  %v7334_v8 = vadd.f32 %v10449_v49, %v16696_v36  ;;  %v7349_v17 = vmax.f32 %v7333_v2, 0.0 }
 0x616   : >> { %v7347_v32 = vmax.f32 %v7331_v9, 0.0  ;;  %v7332_v34 = vadd.f32 %v16696_v36, %v7272_v4  ;;  %v10462_v53 = vpop.f32.mrb[28].mxu0 }
 0x617   : >> { %v8781_v12 = vpop.f32.mrb[29].mxu0  ;;  %v7350_v22 = vmax.f32 %v7334_v8, 0.0  ;;  %v8790_v55 = vadd.f32 %v10462_v53, %v16735_v42  ;;  %v8908_v8 = vpop.permute.xlu1 %8907 }
 0x618   : >> { %v7348_v16 = vmax.f32 %v7332_v34, 0.0  ;;  %8957 = vrot.lane.b32.xlu0 %v7347_v32, %s11133_s16  ;;  %v10463_v46 = vpop.f32.mrb[30].mxu0  ;;  %v8782_v50 = vadd.f32 %v16735_v42, %v8781_v12  ;;  %v8906_v34 = vpop.permute.xlu0 %8905 }
 0x619   : >> { %v8784_v7 = vpop.f32.mrb[31].mxu0  ;;  %v8834_v61 = vmax.f32 %v8790_v55, 0.0 }
 0x61a   : >> { %8959 = vrot.lane.b32.xlu1 %v7348_v16, %s11133_s16  ;;  %v8832_v48 = vmax.f32 %v8782_v50, 0.0  ;;  %v8785_v14 = vadd.f32 %v16735_v42, %v8784_v7 }
 0x61c   : >> { %8961 = vrot.lane.b32.xlu0 %v7349_v17, %s11133_s16  ;;  %v8833_v57 = vmax.f32 %v8785_v14, 0.0  ;;  %v8845_v14 = vld [vmem:[%s16592_s29] sm:$0xff] }
 0x61e   : >> { %8963 = vrot.lane.b32.xlu1 %v7350_v22, %s11133_s16 }
 0x62e   : >> { %v10452_v62 = vpop.f32.mrb[4].mxu1 }
 0x62f   : >> { %v7285_v28 = vpop.f32.mrb[5].mxu1  ;;  %v7337_v23 = vadd.f32 %v10452_v62, %v16696_v36 }
 0x630   : >> { %v7335_v51 = vadd.f32 %v16696_v36, %v7285_v28  ;;  %v10453_v30 = vpop.f32.mrb[6].mxu1 }
 0x631   : >> { %v7288_v56 = vpop.f32.mrb[7].mxu1  ;;  %v7338_v27 = vadd.f32 %v10453_v30, %v16696_v36  ;;  %v7353_v41 = vmax.f32 %v7337_v23, 0.0 }
 0x632   : >> { %v7351_v45 = vmax.f32 %v7335_v51, 0.0  ;;  %v7336_v60 = vadd.f32 %v16696_v36, %v7288_v56  ;;  %v8777_v36 = vadd.f32 %v16690_v31, %v16735_v42  ;;  %v8793_v31 = vadd.f32 %v10463_v46, %v16735_v42 }
 0x633   : >> { %v7354_v47 = vmax.f32 %v7338_v27, 0.0 }
 0x634   : >> { %v7352_v20 = vmax.f32 %v7336_v60, 0.0  ;;  %8965 = vrot.lane.b32.xlu0 %v7351_v45, %s11133_s16  ;;  %v8831_v43 = vmax.f32 %v8777_v36, 0.0  ;;  %v8835_v10 = vmax.f32 %v8793_v31, 0.0 }
 0x636   : >> { %8967 = vrot.lane.b32.xlu1 %v7352_v20, %s11133_s16 }
 0x638   : >> { %8969 = vrot.lane.b32.xlu0 %v7353_v41, %s11133_s16 }
 0x63a   : >> { %8971 = vrot.lane.b32.xlu1 %v7354_v47, %s11133_s16  ;;  %s17586_s16 = scalar_lea.vmem [#allocation6], %s11240_s22 }
 0x63b   : >> { %s16815_s27 = scalar_lea.vmem %s17586_s16, %s11793_s14 [#allocation6]  ;;  %s10186_s14 = sshll.u32 (%p1080_p12), %s11209_s13, 12 }
 0x63c   : >> { %9005 = vrot.lane.b32.xlu0 %v8828_v15, %s11134_s24  ;;  %s16925_s23 = scalar_lea.hbm (%p1080_p12), %s16983_s9, %s10186_s14  ;;  %s11135_s13 = smov (%p1080_p12), [#allocation6]  }
 0x63d   : > { %s11050_s16 = sshll.u32 (%p1080_p12), %s11135_s13, 4  ;;  %s11051_s16 = int_to_ptr.vmem [resolvable:$false] %s11050_s16 }
 0x63e   : >> { %9007 = vrot.lane.b32.xlu1 %v8829_v29, %s11134_s24  ;;  %v8859_v29 = vld [vmem:[%s16592_s29 + $0x70] sm:$0xff]  ;;  %p11053_p2 = scmp.lt.s32.totalorder (%p1080_p12), %s16929_s21, %s11051_s16 }
 0x63f   : >> { %v9067_v55 = vsel %vm859_vm9, %v8859_v29, %v8906_v34 }
 0x640   : >> { %9009 = vrot.lane.b32.xlu0 %v8830_v18, %s11134_s24 }
 0x642   : >> { %9011 = vrot.lane.b32.xlu1 %v8831_v43, %s11134_s24  ;;  %v8860_v43 = vld [vmem:[%s16592_s29 + $0x78] sm:$0xff] }
 0x644   : >> { %9013 = vrot.lane.b32.xlu0 %v8832_v48, %s11134_s24 }
 0x646   : >> { %9015 = vrot.lane.b32.xlu1 %v8833_v57, %s11134_s24 }
 0x648   : >> { %9017 = vrot.lane.b32.xlu0 %v8834_v61, %s11134_s24  ;;  %v8846_v61 = vld [vmem:[%s16592_s29 + $0x8] sm:$0xff] }
 0x64a   : >> { %9019 = vrot.lane.b32.xlu1 %v8835_v10, %s11134_s24  ;;  %v9068_v10 = vsel %vm859_vm9, %v8860_v43, %v8908_v8 }
 0x64f   : >> { %v10466_v25 = vpop.f32.mrb[32].mxu0 }
 0x650   : >> { %v8797_v33 = vpop.f32.mrb[33].mxu0  ;;  %v8806_v54 = vadd.f32 %v10466_v25, %v16735_v42  ;;  %v9053_v25 = vsel %vm859_vm9, %v8845_v14, %v16522_v26  ;;  %v8856_v14 = vld [vmem:[%s16592_s29 + $0x58] sm:$0xff] }
 0x651   : >> { %v8798_v37 = vadd.f32 %v16735_v42, %v8797_v33  ;;  %v10467_v19 = vpop.f32.mrb[34].mxu0  ;;  %v8847_v33 = vld [vmem:[%s16592_s29 + $0x10] sm:$0xff] }
 0x652   : >> { %v8800_v0 = vpop.f32.mrb[35].mxu0  ;;  %v8809_v49 = vadd.f32 %v10467_v19, %v16735_v42  ;;  %v8838_v2 = vmax.f32 %v8806_v54, 0.0  ;;  %v8848_v54 = vld [vmem:[%s16592_s29 + $0x18] sm:$0xff] }
 0x653   : >> { %v8836_v5 = vmax.f32 %v8798_v37, 0.0  ;;  %v8801_v9 = vadd.f32 %v16735_v42, %v8800_v0  ;;  %v9054_v0 = vsel %vm859_vm9, %v8846_v61, %v16524_v1  ;;  %v9056_v34 = vsel %vm859_vm9, %v8848_v54, %v16538_v39 }
 0x654   : >> { %v8839_v32 = vmax.f32 %v8809_v49, 0.0  ;;  %v8942_v28 = vpop.permute.xlu0 %8941  ;;  %v9055_v49 = vsel %vm859_vm9, %v8847_v33, %v16536_v3 }
 0x655   : >> { %v8837_v4 = vmax.f32 %v8801_v9, 0.0  ;;  %9021 = vrot.lane.b32.xlu0 %v8836_v5, %s11134_s24  ;;  %v9069_v37 = vsel %vm3581_vm0, %v9053_v25, %v8942_v28  ;;  %v8852_v28 = vld [vmem:[%s16592_s29 + $0x38] sm:$0xff] }
 0x656   : >> { %v8944_v56 = vpop.permute.xlu1 %8943 }
 0x657   : >> { %9023 = vrot.lane.b32.xlu1 %v8837_v4, %s11134_s24  ;;  %v9070_v5 = vsel %vm3581_vm0, %v9054_v0, %v8944_v56 }
 0x658   : >> { %v8946_v60 = vpop.permute.xlu0 %8945 }
 0x659   : >> { %9025 = vrot.lane.b32.xlu0 %v8838_v2, %s11134_s24  ;;  %v8849_v2 = vld [vmem:[%s16592_s29 + $0x20] sm:$0xff] }
 0x65a   : >> { %v8948_v27 = vpop.permute.xlu1 %8947 }
 0x65b   : >> { %9027 = vrot.lane.b32.xlu1 %v8839_v32, %s11134_s24  ;;  %v9071_v32 = vsel %vm3581_vm0, %v9055_v49, %v8946_v60  ;;  %v9072_v8 = vsel %vm3581_vm0, %v9056_v34, %v8948_v27 }
 0x670   : >> { %v8950_v20 = vpop.permute.xlu0 %8949 }
 0x672   : >> { %v8952_v59 = vpop.permute.xlu1 %8951 }
 0x676   : >> { %v16780_v41 = vpop.permute.xlu1 %8955 }
 0x681   : >> { %v10470_v53 = vpop.f32.mrb[36].mxu0 }
 0x682   : >> { %v8813_v12 = vpop.f32.mrb[37].mxu0  ;;  %v8822_v17 = vadd.f32 %v10470_v53, %v16735_v42 }
 0x683   : >> { %v8814_v16 = vadd.f32 %v16735_v42, %v8813_v12  ;;  %v10471_v46 = vpop.f32.mrb[38].mxu0  ;;  %v8850_v12 = vld [vmem:[%s16592_s29 + $0x28] sm:$0xff] }
 0x684   : >> { %v8816_v7 = vpop.f32.mrb[39].mxu0  ;;  %v8825_v51 = vadd.f32 %v10471_v46, %v16735_v42  ;;  %v8842_v23 = vmax.f32 %v8822_v17, 0.0 }
 0x685   : >> { %v8840_v22 = vmax.f32 %v8814_v16, 0.0  ;;  %v8817_v62 = vadd.f32 %v16735_v42, %v8816_v7  ;;  %v8954_v42 = vpop.permute.xlu0 %8953  ;;  %v9057_v16 = vsel %vm859_vm9, %v8849_v2, %v16549_v40  ;;  %v8851_v7 = vld [vmem:[%s16592_s29 + $0x30] sm:$0xff] }
 0x686   : >> { %v8843_v45 = vmax.f32 %v8825_v51, 0.0  ;;  %v9073_v17 = vsel %vm3581_vm0, %v9057_v16, %v8950_v20 }
 0x687   : >> { %v8841_v30 = vmax.f32 %v8817_v62, 0.0  ;;  %9029 = vrot.lane.b32.xlu0 %v8840_v22, %s11134_s24  ;;  %v9058_v22 = vsel %vm859_vm9, %v8850_v12, %v16551_v24 }
 0x688   : >> { %v9074_v51 = vsel %vm3581_vm0, %v9058_v22, %v8952_v59  ;;  %v8853_v59 = vld [vmem:[%s16592_s29 + $0x40] sm:$0xff] }
 0x689   : >> { %9031 = vrot.lane.b32.xlu1 %v8841_v30, %s11134_s24  ;;  %v9059_v30 = vsel %vm859_vm9, %v8851_v7, %v16557_v63 }
 0x68a   : >> { %v16782_v47 = vpop.permute.xlu0 %8957 }
 0x68b   : >> { %9033 = vrot.lane.b32.xlu0 %v8842_v23, %s11134_s24  ;;  %v9075_v23 = vsel %vm3581_vm0, %v9059_v30, %v8954_v42  ;;  %v8854_v42 = vld [vmem:[%s16592_s29 + $0x48] sm:$0xff] }
 0x68c   : >> { %v16784_v15 = vpop.permute.xlu1 %8959 }
 0x68d   : >> { %9035 = vrot.lane.b32.xlu1 %v8843_v45, %s11134_s24  ;;  %v9060_v45 = vsel %vm859_vm9, %v8852_v28, %v16559_v44  ;;  %v8855_v44 = vld [vmem:[%s16592_s29 + $0x50] sm:$0xff]  ;;  %s11046_s24 = scalar_lea.vmem (%p1080_p12), %s16929_s21, 4096 }
 0x68e   : >> { %v16786_v58 = vpop.permute.xlu0 %8961  ;;  %v9076_v27 = vsel %vm3581_vm0, %v9060_v45, %v16780_v41  ;;  %v9062_v41 = vsel %vm859_vm9, %v8854_v42, %v16569_v38  ;;  %p11047_p13 = scmp.ne.s32.totalorder (%p1080_p12), %s16929_s21, %s11046_s24 }
 0x690   : >> { %v16788_v52 = vpop.permute.xlu1 %8963  ;;  %p11048_p0 = pnand (%p1080_p12), %p11047_p13, %p11226_p5 }
 0x692   : > { %p11049_p1 = pneg (%p1080_p12), %p11048_p0 }
 0x6a6   : >> { %v8966_v36 = vpop.permute.xlu0 %8965 }
 0x6a7   : >> { %v16793_v50 = vsel %vm3581_vm0, %v16600_v6, %v8966_v36  ;;  %v9061_v36 = vsel %vm859_vm9, %v8853_v59, %v16567_v35 }
 0x6a8   : >> { %v8968_v18 = vpop.permute.xlu1 %8967  ;;  %v9077_v29 = vsel %vm3581_vm0, %v9061_v36, %v16782_v47 }
 0x6a9   : >> { %v16798_v48 = vsel %vm3581_vm0, %v16603_v13, %v8968_v18 }
 0x6aa   : >> { %v8970_v31 = vpop.permute.xlu0 %8969 }
 0x6ab   : >> { %v16803_v57 = vsel %vm3581_vm0, %v9067_v55, %v8970_v31  ;;  %v9078_v55 = vsel %vm3581_vm0, %v9062_v41, %v16784_v15  ;;  %v9063_v31 = vsel %vm859_vm9, %v8855_v44, %v16575_v11  ;;  %v9064_v15 = vsel %vm859_vm9, %v8856_v14, %v16577_v21 }
 0x6ac   : >> { %v8972_v6 = vpop.permute.xlu1 %8971  ;;  %v9079_v38 = vsel %vm3581_vm0, %v9063_v31, %v16786_v58 }
 0x6ad   : >> { %v16810_v13 = vsel %vm3581_vm0, %v9068_v10, %v8972_v6  ;;  %v9080_v6 = vsel %vm3581_vm0, %v9064_v15, %v16788_v52 }
 0x6ae   : >> { %v9006_v19 = vpop.permute.xlu0 %9005 }
 0x6af   : >> { %v9086_v26 = vsel %vm9085_vm14, %v9069_v37, %v9006_v19 }
 0x6b0   : >> { %9105 = vst.msk [vmem:[%s16815_s27] sm:$0xff] %vm9104_vm15, %v9086_v26  ;;  %v9008_v9 = vpop.permute.xlu1 %9007 }
 0x6b1   : >> { %v9087_v4 = vsel %vm9085_vm14, %v9070_v5, %v9008_v9 }
 0x6b2   : >> { %9106 = vst.msk [vmem:[%s16815_s27 + $0x8] sm:$0xff] %vm9104_vm15, %v9087_v4  ;;  %v9010_v1 = vpop.permute.xlu0 %9009 }
 0x6b3   : >> { %v9088_v53 = vsel %vm9085_vm14, %v9071_v32, %v9010_v1 }
 0x6b4   : >> { %9107 = vst.msk [vmem:[%s16815_s27 + $0x10] sm:$0xff] %vm9104_vm15, %v9088_v53  ;;  %v9012_v3 = vpop.permute.xlu1 %9011 }
 0x6b5   : >> { %v9089_v46 = vsel %vm9085_vm14, %v9072_v8, %v9012_v3 }
 0x6b6   : >> { %9108 = vst.msk [vmem:[%s16815_s27 + $0x18] sm:$0xff] %vm9104_vm15, %v9089_v46  ;;  %v9014_v39 = vpop.permute.xlu0 %9013 }
 0x6b7   : >> { %v9090_v62 = vsel %vm9085_vm14, %v9073_v17, %v9014_v39 }
 0x6b8   : >> { %9109 = vst.msk [vmem:[%s16815_s27 + $0x20] sm:$0xff] %vm9104_vm15, %v9090_v62  ;;  %v9016_v40 = vpop.permute.xlu1 %9015 }
 0x6b9   : >> { %v9091_v56 = vsel %vm9085_vm14, %v9074_v51, %v9016_v40 }
 0x6ba   : >> { %9110 = vst.msk [vmem:[%s16815_s27 + $0x28] sm:$0xff] %vm9104_vm15, %v9091_v56  ;;  %v9018_v24 = vpop.permute.xlu0 %9017 }
 0x6bb   : >> { %v9092_v60 = vsel %vm9085_vm14, %v9075_v23, %v9018_v24 }
 0x6bc   : >> { %9111 = vst.msk [vmem:[%s16815_s27 + $0x30] sm:$0xff] %vm9104_vm15, %v9092_v60  ;;  %v9020_v63 = vpop.permute.xlu1 %9019 }
 0x6bd   : >> { %v9093_v20 = vsel %vm9085_vm14, %v9076_v27, %v9020_v63 }
 0x6be   : >> { %9112 = vst.msk [vmem:[%s16815_s27 + $0x38] sm:$0xff] %vm9104_vm15, %v9093_v20 }
 0x6c7   : >> { %v9022_v18 = vpop.permute.xlu0 %9021 }
 0x6c8   : >> { %v9094_v43 = vsel %vm9085_vm14, %v9077_v29, %v9022_v18 }
 0x6c9   : >> { %9113 = vst.msk [vmem:[%s16815_s27 + $0x40] sm:$0xff] %vm9104_vm15, %v9094_v43  ;;  %v9024_v35 = vpop.permute.xlu1 %9023 }
 0x6ca   : >> { %v9095_v47 = vsel %vm9085_vm14, %v9078_v55, %v9024_v35 }
 0x6cb   : >> { %9114 = vst.msk [vmem:[%s16815_s27 + $0x48] sm:$0xff] %vm9104_vm15, %v9095_v47  ;;  %v9026_v61 = vpop.permute.xlu0 %9025 }
 0x6cc   : >> { %v9096_v10 = vsel %vm9085_vm14, %v9079_v38, %v9026_v61 }
 0x6cd   : >> { %9115 = vst.msk [vmem:[%s16815_s27 + $0x50] sm:$0xff] %vm9104_vm15, %v9096_v10  ;;  %v9028_v11 = vpop.permute.xlu1 %9027 }
 0x6ce   : >> { %v9097_v25 = vsel %vm9085_vm14, %v9080_v6, %v9028_v11 }
 0x6cf   : >> { %9116 = vst.msk [vmem:[%s16815_s27 + $0x58] sm:$0xff] %vm9104_vm15, %v9097_v25 }
 0x6f9   : >> { %v9030_v58 = vpop.permute.xlu0 %9029 }
 0x6fa   : >> { %v9098_v33 = vsel %vm9085_vm14, %v16793_v50, %v9030_v58 }
 0x6fb   : >> { %9117 = vst.msk [vmem:[%s16815_s27 + $0x60] sm:$0xff] %vm9104_vm15, %v9098_v33  ;;  %v9032_v21 = vpop.permute.xlu1 %9031  ;;  %1082 = sbr.rel (!%p1080_p12) target bundleno = 513 (0x201), region = 137 }
 0x6fc   : >> { %v9099_v37 = vsel %vm9085_vm14, %v16798_v48, %v9032_v21 }
 0x6fd   : >> { %9118 = vst.msk [vmem:[%s16815_s27 + $0x68] sm:$0xff] %vm9104_vm15, %v9099_v37  ;;  %v9034_v52 = vpop.permute.xlu0 %9033 }
 0x6fe   : >> { %v9100_v19 = vsel %vm9085_vm14, %v16803_v57, %v9034_v52 }
 0x6ff   : >> { %9119 = vst.msk [vmem:[%s16815_s27 + $0x70] sm:$0xff] %vm9104_vm15, %v9100_v19  ;;  %v9036_v0 = vpop.permute.xlu1 %9035 }
 0x700   : >> { %v9101_v26 = vsel %vm9085_vm14, %v16810_v13, %v9036_v0 }
 0x701   : >> { %9120 = vst.msk [vmem:[%s16815_s27 + $0x78] sm:$0xff] %vm9104_vm15, %v9101_v26  ;;  %s11052_s27 = scalar_lea.vmem (%p1080_p12), %s11051_s16, 8192 }
 0x702   : > { %p11054_p3 = scmp.lt.s32.totalorder %s11052_s27, %s11046_s24 }
 0x704   : > { %p11055_p4 = por %p11054_p3, %p11053_p2 }
 0x706   : > { %p11056_p7 = pnand %p11055_p4, %p11049_p1 }
 0x708   : > { %11059 = shalt.err (!%p11056_p7)
}
 0x709   : > { %s11060_s22 = scalar_lea.hbm %s16925_s23, 4096  ;;  %s11064_s29 = scalar_lea.hbm %s16983_s9, 8192 }
 0x70a   : > { %p11061_p8 = scmp.ne.s32.totalorder %s16925_s23, %s11060_s22  ;;  %p11065_p11 = scmp.lt.u32.totalorder %s16925_s23, %s16983_s9 }
 0x70b   : > { %p11066_p12 = scmp.lt.u32.totalorder %s11064_s29, %s11060_s22  ;;  %p11068_p0 = scmp.lt.u32.totalorder %s11060_s22, %s16925_s23 }
 0x70c   : > { %p11062_p9 = pnand %p11061_p8, %p11226_p5 }
 0x70d   : > { %p11067_p13 = por %p11066_p12, %p11065_p11 }
 0x70e   : > { %p11063_p10 = pneg %p11062_p9 }
 0x70f   : > { %p11069_p1 = por %p11068_p0, %p11067_p13 }
 0x711   : > { %p11070_p2 = pnand %p11069_p1, %p11063_p10 }
 0x713   : > { %11073 = shalt.err (!%p11070_p2)
}
 0x714   : > { %s11136_s24 = smov 128   ;;  %s11137_s13 = smov 8  }
 0x715   : > { %10586 = dma.vmem_to_hbm [thread:$0]  (%p11226_p5), %s16929_s21, 4096, %s16925_s23, %s16933_s17, %s11136_s24, %s11136_s24, %s11137_s13  }
 0x716 PF: > { %p10592_p3 = scmp.ge.s32.totalorder %s11116_s12, 2  ;;  %s9150_s16 = sand.u32 1, %s11104_s30  }
 0x717   : > { %s9151_s27 = scalar_lea.sflag [#allocation7], %s9150_s16 }
 0x718   : > { %p10589_p4 = pnand %p10592_p3, %p11230_p6 }
 0x71a   : > { %11099 = dma.done.wait (!%p10589_p4), %s9151_s27, 4096  }
 0x71b   : > { %11101 = vsyncadd (!%p10589_p4), %s9151_s27, 4294963200  ;;  %p19_p7 = scmp.ge.s32.totalorder %s11213_s15, 4   ;;  %s17589_s30 = smov %s11108_s10 }
 0x71c   : > { %s17590_s10 = smov %s11112_s11  ;;  %s17591_s11 = smov %s11224_s18 }
 0x71d   : > { %s17592_s12 = smov %s11213_s15  ;;  %21 = sbr.rel (!%p19_p7) target bundleno = 3 (0x3), region = 148 }
 0x724   :  { %9156 = vsyncpa [#allocation7], 1 }
 0x725   :  { %9158 = vsyncpa [#allocation7 + $0x1], 1 }

</bundles_post_ra>
